<compile_context>
chip_gen: v7x
topology: tpu7x:2x2x1
jax: 0.10.0
libtpu: 0.0.40
codegen_flags: <defaults>
</compile_context>

<pallas_src>
import functools

import jax
import jax.numpy as jnp
from jax.experimental import pallas as pl
from jax.experimental.pallas import tpu as pltpu

# Raise scoped VMEM above the v5e/v6e defaults (16/32 MiB) while staying well
# under v7x's 64 MiB physical VMEM. Actual per-step usage here is a few MiB
# (block-3 weights ~4 MiB bf16, kept resident across grid steps).
_VMEM_LIMIT_BYTES = 48 * 1024 * 1024


# ----------------------- in-kernel conv3x3 + ReLU -------------------------- #
def _conv3x3_relu(x, w_ref, b_ref):
    """3x3 same-padded conv + bias + ReLU on one image, at the value level.

    x:      (H, W, Cin)      bf16 value
    w_ref:  (3, 3*Cin, Cout) ref (kw-major along the middle axis)
    b_ref:  (1, Cout)        f32 ref
    returns (H, W, Cout)     bf16
    """
    h, w, cin = x.shape
    cout = w_ref.shape[-1]

    # Fuse the 3 kw taps along the channel (lane) axis: xcat[i, j, :] holds the
    # channels of padded columns j, j+1, j+2  ->  each matmul has K = 3*Cin.
    zcol = jnp.zeros((h, 1, cin), x.dtype)
    xl = jnp.concatenate([zcol, x[:, :w - 1, :]], axis=1)    # padded col j + 0
    xr = jnp.concatenate([x[:, 1:, :], zcol], axis=1)        # padded col j + 2
    xcat = jnp.concatenate([xl, x, xr], axis=-1)             # (H, W, 3*Cin)

    # Height padding: one zero row above/below; each kh tap then becomes a
    # cheap contiguous row-slice of the flattened patch matrix.
    zrow = jnp.zeros((1, w, 3 * cin), x.dtype)
    xcat = jnp.concatenate([zrow, xcat, zrow], axis=0)       # (H+2, W, 3*Cin)
    xflat = xcat.reshape((h + 2) * w, 3 * cin)

    acc = jnp.zeros((h * w, cout), jnp.float32)
    for kh in range(3):
        patch = xflat[kh * w:kh * w + h * w, :]              # (H*W, 3*Cin) bf16
        acc = acc + jnp.dot(patch, w_ref[kh],
                            preferred_element_type=jnp.float32)
    acc = jnp.maximum(acc + b_ref[...].astype(jnp.float32), 0.0)   # bias+ReLU in f32
    return acc.reshape(h, w, cout).astype(x.dtype)


# --------------------------- in-kernel 2x2 maxpool -------------------------- #
def _maxpool2x2(x):
    """2x2 / stride-2 max pool (floor, like nn.MaxPool2d(2)) on (H, W, C)."""
    h, w, c = x.shape
    ho, wo = h // 2, w // 2
    x = x[:ho * 2, :wo * 2, :]
    x = x.reshape(ho, 2, wo * 2, c)
    x = jnp.maximum(x[:, 0], x[:, 1])                        # row pairs
    x = x.reshape(ho, wo, 2, c)
    x = jnp.maximum(x[:, :, 0, :], x[:, :, 1, :])            # column pairs
    return x                                                 # (ho, wo, c)


# ------------------------- fused VGG block kernel --------------------------- #
def _make_block_kernel(num_layers, pool):
    def kernel(x_ref, *refs):
        o_ref = refs[-1]
        h = x_ref[0]                                         # (H, W, Cin) bf16
        for l in range(num_layers):                          # convs chained in VMEM
            h = _conv3x3_relu(h, refs[2 * l], refs[2 * l + 1])
        if pool:
            h = _maxpool2x2(h)
        o_ref[...] = h.reshape((1,) + h.shape).astype(o_ref.dtype)
    return kernel


def conv_block(x, layers, pool):
    """Fused VGG block: several conv3x3+ReLU layers (+ optional 2x2 maxpool).

    x:      (N, H, W, Cin) bf16 (NHWC -> channels on the 128 lanes)
    layers: list of (w3, b) with w3 (3, 3*Cin, Cout) bf16, b (1, Cout) f32
    """
    n, h, w, cin = x.shape
    cout = layers[-1][0].shape[-1]
    ho, wo = (h // 2, w // 2) if pool else (h, w)

    in_specs = [pl.BlockSpec((1, h, w, cin), lambda i: (i, 0, 0, 0))]
    flat_args = []
    for (w3, b) in layers:
        # Constant block index -> weights stay resident across grid steps.
        in_specs.append(pl.BlockSpec(w3.shape, lambda i: (0, 0, 0)))
        in_specs.append(pl.BlockSpec(b.shape, lambda i: (0, 0)))
        flat_args.extend([w3, b])

    # NOTE: for large spatial inputs (e.g. 224x224) H would additionally be
    # row-tiled with a 1-row halo to bound per-step VMEM; at the small shapes
    # used here one image per grid step fits comfortably.
    return pl.pallas_call(
        _make_block_kernel(len(layers), pool),
        out_shape=jax.ShapeDtypeStruct((n, ho, wo, cout), jnp.bfloat16),
        grid=(n,),
        in_specs=in_specs,
        out_specs=pl.BlockSpec((1, ho, wo, cout), lambda i: (i, 0, 0, 0)),
        compiler_params=pltpu.CompilerParams(
            dimension_semantics=("parallel",),
            vmem_limit_bytes=_VMEM_LIMIT_BYTES),
    )(x, *flat_args)


# ---------------------------- gridded MSE kernel ---------------------------- #
def _mse_kernel(denom, f_ref, o_ref, acc_ref):
    @pl.when(pl.program_id(0) == 0)
    def _():
        acc_ref[0] = 0.0
    d = f_ref[0, 0].astype(jnp.float32) - f_ref[1, 0].astype(jnp.float32)
    acc_ref[0] += jnp.sum(d * d)
    # Constant output block index -> resident; last step's value is written back.
    o_ref[...] = jnp.full((1, 1), acc_ref[0] * (1.0 / denom), jnp.float32)


def mse_of_halves(feats, n):
    """mse_loss(feats[:n], feats[n:]) as a gridded Pallas reduction."""
    two_n, ho, wo, c = feats.shape
    assert two_n == 2 * n
    f5 = feats.reshape(2, n, ho, wo, c)   # leading-dim split, no data movement
    denom = float(n * ho * wo * c)
    out = pl.pallas_call(
        functools.partial(_mse_kernel, denom),
        out_shape=jax.ShapeDtypeStruct((1, 1), jnp.float32),
        grid=(n,),
        in_specs=[pl.BlockSpec((2, 1, ho, wo, c), lambda i: (0, i, 0, 0, 0))],
        out_specs=pl.BlockSpec((1, 1), lambda i: (0, 0)),
        scratch_shapes=[pltpu.SMEM((1,), jnp.float32)],
        compiler_params=pltpu.CompilerParams(
            dimension_semantics=("arbitrary",),
            vmem_limit_bytes=_VMEM_LIMIT_BYTES),
    )(f5)
    return out[0, 0]


# ----------------------- VGG19.features[:18] forward ------------------------ #
_VGG_CFG = [(3, 64), (64, 64),          # block 1 (pool after)
            (64, 128), (128, 128),      # block 2 (pool after)
            (128, 256), (256, 256), (256, 256), (256, 256)]  # block 3


def init_vgg19_slice_params(key):
    """Deterministic He-normal 3x3 conv weights stored as (3, 3*Cin, Cout)
    bf16 (kh outer, kw-major along the middle axis) + zero f32 biases."""
    params = []
    for i, (cin, cout) in enumerate(_VGG_CFG):
        k = jax.random.fold_in(key, i)
        fan_in = 9 * cin
        w = jax.random.normal(k, (3, 3, cin, cout), jnp.float32)
        w = w * jnp.sqrt(2.0 / fan_in)
        w3 = w.reshape(3, 3 * cin, cout).astype(jnp.bfloat16)
        b = jnp.zeros((1, cout), jnp.float32)
        params.append((w3, b))
    return params


def vgg_features(x, params):
    # x: (N, H, W, 3) bf16 NHWC
    x = conv_block(x, params[0:2], pool=True)    # -> (N, H/2, W/2, 64)
    x = conv_block(x, params[2:4], pool=True)    # -> (N, H/4, W/4, 128)
    x = conv_block(x, params[4:8], pool=False)   # -> (N, H/4, W/4, 256)
    return x


def perceptual_loss(x_nchw, y_nchw, params):
    # PyTorch-style NCHW inputs -> NHWC bf16 (channels on the lanes).
    x = jnp.transpose(x_nchw, (0, 2, 3, 1)).astype(jnp.bfloat16)
    y = jnp.transpose(y_nchw, (0, 2, 3, 1)).astype(jnp.bfloat16)
    n = x.shape[0]
    xy = jnp.concatenate([x, y], axis=0)         # single pass for both inputs
    feats = vgg_features(xy, params)             # (2N, H/4, W/4, 256) bf16
    return mse_of_halves(feats, n)


if __name__ == "__main__":
    key = jax.random.PRNGKey(0)
    kx, ky, kp = jax.random.split(key, 3)
    # Small NCHW inputs consistent with the module (3 input channels for VGG).
    x = jax.random.normal(kx, (2, 3, 16, 16), jnp.float32)
    y = jax.random.normal(ky, (2, 3, 16, 16), jnp.float32)
    params = init_vgg19_slice_params(kp)

    loss = jax.jit(perceptual_loss)(x, y, params)
    jax.block_until_ready(loss)
    print("KERNEL_OK")
</pallas_src>

<mosaic_0001>
module attributes {stable_mosaic.version = 11 : i64} {
  func.func @kernel(%arg0: i32, %arg1: memref<1x8x8x64xbf16, #tpu.memory_space<vmem>>, %arg2: memref<3x192x128xbf16, #tpu.memory_space<vmem>>, %arg3: memref<1x128xf32, #tpu.memory_space<vmem>>, %arg4: memref<3x384x128xbf16, #tpu.memory_space<vmem>>, %arg5: memref<1x128xf32, #tpu.memory_space<vmem>>, %arg6: memref<1x4x4x128xbf16, #tpu.memory_space<vmem>>) attributes {dimension_semantics = [#tpu.dimension_semantics<parallel>], iteration_bounds = array<i64: 4>, scalar_prefetch = 0 : i64, scratch_operands = 0 : i64, tpu.core_type = #tpu.core_type<tc>, window_params = [{transform_indices = @transform_0, window_bounds = array<i64: 1, 8, 8, 64>}, {pipeline_mode = #tpu.pipeline_mode<synchronous>, transform_indices = @transform_1, window_bounds = array<i64: 3, 192, 128>}, {pipeline_mode = #tpu.pipeline_mode<synchronous>, transform_indices = @transform_2, window_bounds = array<i64: 1, 128>}, {pipeline_mode = #tpu.pipeline_mode<synchronous>, transform_indices = @transform_3, window_bounds = array<i64: 3, 384, 128>}, {pipeline_mode = #tpu.pipeline_mode<synchronous>, transform_indices = @transform_4, window_bounds = array<i64: 1, 128>}, {transform_indices = @transform_5, window_bounds = array<i64: 1, 4, 4, 128>}]} {
    %c0 = arith.constant 0 : index
    %c0_0 = arith.constant 0 : index
    %c0_1 = arith.constant 0 : index
    %c0_2 = arith.constant 0 : index
    %0 = vector.load %arg1[%c0, %c0_0, %c0_1, %c0_2] : memref<1x8x8x64xbf16, #tpu.memory_space<vmem>>, vector<1x8x8x64xbf16>
    %1 = vector.shape_cast %0 : vector<1x8x8x64xbf16> to vector<8x8x64xbf16>
    %cst = arith.constant 0.000000e+00 : bf16
    %2 = vector.broadcast %cst : bf16 to vector<8x1x64xbf16>
    %3 = vector.extract_strided_slice %1 {offsets = [0, 0, 0], sizes = [8, 7, 64], strides = [1, 1, 1]} : vector<8x8x64xbf16> to vector<8x7x64xbf16>
    %4 = tpu.concatenate %2, %3 in 1 : vector<8x1x64xbf16>, vector<8x7x64xbf16> -> vector<8x8x64xbf16>
    %5 = vector.extract_strided_slice %1 {offsets = [0, 1, 0], sizes = [8, 7, 64], strides = [1, 1, 1]} : vector<8x8x64xbf16> to vector<8x7x64xbf16>
    %6 = tpu.concatenate %5, %2 in 1 : vector<8x7x64xbf16>, vector<8x1x64xbf16> -> vector<8x8x64xbf16>
    %7 = tpu.concatenate %4, %1, %6 in 2 : vector<8x8x64xbf16>, vector<8x8x64xbf16>, vector<8x8x64xbf16> -> vector<8x8x192xbf16>
    %cst_3 = arith.constant 0.000000e+00 : bf16
    %8 = vector.broadcast %cst_3 : bf16 to vector<1x8x192xbf16>
    %9 = tpu.concatenate %8, %7, %8 in 0 : vector<1x8x192xbf16>, vector<8x8x192xbf16>, vector<1x8x192xbf16> -> vector<10x8x192xbf16>
    %10 = vector.shape_cast %9 : vector<10x8x192xbf16> to vector<80x192xbf16>
    %cst_4 = arith.constant 0.000000e+00 : f32
    %11 = vector.broadcast %cst_4 : f32 to vector<64x128xf32>
    %12 = vector.extract_strided_slice %10 {offsets = [0, 0], sizes = [64, 192], strides = [1, 1]} : vector<80x192xbf16> to vector<64x192xbf16>
    %c0_5 = arith.constant 0 : index
    %c0_6 = arith.constant 0 : index
    %c0_7 = arith.constant 0 : index
    %13 = vector.load %arg2[%c0_5, %c0_6, %c0_7] : memref<3x192x128xbf16, #tpu.memory_space<vmem>>, vector<1x192x128xbf16>
    %14 = vector.shape_cast %13 : vector<1x192x128xbf16> to vector<192x128xbf16>
    %cst_8 = arith.constant dense<0.000000e+00> : vector<64x128xf32>
    %15 = tpu.matmul %12, %14, %cst_8 {dimension_numbers = #tpu.dot_dimension_numbers<[1], [0], [0], [1], [0, 0, 1, 1], [], []>} : vector<64x192xbf16>, vector<192x128xbf16>, vector<64x128xf32> -> vector<64x128xf32>
    %16 = arith.addf %11, %15 : vector<64x128xf32>
    %17 = vector.extract_strided_slice %10 {offsets = [8, 0], sizes = [64, 192], strides = [1, 1]} : vector<80x192xbf16> to vector<64x192xbf16>
    %c1 = arith.constant 1 : index
    %c0_9 = arith.constant 0 : index
    %c0_10 = arith.constant 0 : index
    %18 = vector.load %arg2[%c1, %c0_9, %c0_10] : memref<3x192x128xbf16, #tpu.memory_space<vmem>>, vector<1x192x128xbf16>
    %19 = vector.shape_cast %18 : vector<1x192x128xbf16> to vector<192x128xbf16>
    %cst_11 = arith.constant dense<0.000000e+00> : vector<64x128xf32>
    %20 = tpu.matmul %17, %19, %cst_11 {dimension_numbers = #tpu.dot_dimension_numbers<[1], [0], [0], [1], [0, 0, 1, 1], [], []>} : vector<64x192xbf16>, vector<192x128xbf16>, vector<64x128xf32> -> vector<64x128xf32>
    %21 = arith.addf %16, %20 : vector<64x128xf32>
    %22 = vector.extract_strided_slice %10 {offsets = [16, 0], sizes = [64, 192], strides = [1, 1]} : vector<80x192xbf16> to vector<64x192xbf16>
    %c2 = arith.constant 2 : index
    %c0_12 = arith.constant 0 : index
    %c0_13 = arith.constant 0 : index
    %23 = vector.load %arg2[%c2, %c0_12, %c0_13] : memref<3x192x128xbf16, #tpu.memory_space<vmem>>, vector<1x192x128xbf16>
    %24 = vector.shape_cast %23 : vector<1x192x128xbf16> to vector<192x128xbf16>
    %cst_14 = arith.constant dense<0.000000e+00> : vector<64x128xf32>
    %25 = tpu.matmul %22, %24, %cst_14 {dimension_numbers = #tpu.dot_dimension_numbers<[1], [0], [0], [1], [0, 0, 1, 1], [], []>} : vector<64x192xbf16>, vector<192x128xbf16>, vector<64x128xf32> -> vector<64x128xf32>
    %26 = arith.addf %21, %25 : vector<64x128xf32>
    %c0_15 = arith.constant 0 : index
    %c0_16 = arith.constant 0 : index
    %27 = vector.load %arg3[%c0_15, %c0_16] : memref<1x128xf32, #tpu.memory_space<vmem>>, vector<1x128xf32>
    %28 = vector.broadcast %27 : vector<1x128xf32> to vector<64x128xf32>
    %29 = arith.addf %26, %28 : vector<64x128xf32>
    %cst_17 = arith.constant 0.000000e+00 : f32
    %30 = vector.broadcast %cst_17 : f32 to vector<64x128xf32>
    %31 = arith.maximumf %29, %30 : vector<64x128xf32>
    %32 = vector.shape_cast %31 : vector<64x128xf32> to vector<8x8x128xf32>
    %33 = arith.truncf %32 : vector<8x8x128xf32> to vector<8x8x128xbf16>
    %cst_18 = arith.constant 0.000000e+00 : bf16
    %34 = vector.broadcast %cst_18 : bf16 to vector<8x1x128xbf16>
    %35 = vector.extract_strided_slice %33 {offsets = [0, 0, 0], sizes = [8, 7, 128], strides = [1, 1, 1]} : vector<8x8x128xbf16> to vector<8x7x128xbf16>
    %36 = tpu.concatenate %34, %35 in 1 : vector<8x1x128xbf16>, vector<8x7x128xbf16> -> vector<8x8x128xbf16>
    %37 = vector.extract_strided_slice %33 {offsets = [0, 1, 0], sizes = [8, 7, 128], strides = [1, 1, 1]} : vector<8x8x128xbf16> to vector<8x7x128xbf16>
    %38 = tpu.concatenate %37, %34 in 1 : vector<8x7x128xbf16>, vector<8x1x128xbf16> -> vector<8x8x128xbf16>
    %39 = tpu.concatenate %36, %33, %38 in 2 : vector<8x8x128xbf16>, vector<8x8x128xbf16>, vector<8x8x128xbf16> -> vector<8x8x384xbf16>
    %cst_19 = arith.constant 0.000000e+00 : bf16
    %40 = vector.broadcast %cst_19 : bf16 to vector<1x8x384xbf16>
    %41 = tpu.concatenate %40, %39, %40 in 0 : vector<1x8x384xbf16>, vector<8x8x384xbf16>, vector<1x8x384xbf16> -> vector<10x8x384xbf16>
    %42 = vector.shape_cast %41 : vector<10x8x384xbf16> to vector<80x384xbf16>
    %cst_20 = arith.constant 0.000000e+00 : f32
    %43 = vector.broadcast %cst_20 : f32 to vector<64x128xf32>
    %44 = vector.extract_strided_slice %42 {offsets = [0, 0], sizes = [64, 384], strides = [1, 1]} : vector<80x384xbf16> to vector<64x384xbf16>
    %c0_21 = arith.constant 0 : index
    %c0_22 = arith.constant 0 : index
    %c0_23 = arith.constant 0 : index
    %45 = vector.load %arg4[%c0_21, %c0_22, %c0_23] : memref<3x384x128xbf16, #tpu.memory_space<vmem>>, vector<1x384x128xbf16>
    %46 = vector.shape_cast %45 : vector<1x384x128xbf16> to vector<384x128xbf16>
    %cst_24 = arith.constant dense<0.000000e+00> : vector<64x128xf32>
    %47 = tpu.matmul %44, %46, %cst_24 {dimension_numbers = #tpu.dot_dimension_numbers<[1], [0], [0], [1], [0, 0, 1, 1], [], []>} : vector<64x384xbf16>, vector<384x128xbf16>, vector<64x128xf32> -> vector<64x128xf32>
    %48 = arith.addf %43, %47 : vector<64x128xf32>
    %49 = vector.extract_strided_slice %42 {offsets = [8, 0], sizes = [64, 384], strides = [1, 1]} : vector<80x384xbf16> to vector<64x384xbf16>
    %c1_25 = arith.constant 1 : index
    %c0_26 = arith.constant 0 : index
    %c0_27 = arith.constant 0 : index
    %50 = vector.load %arg4[%c1_25, %c0_26, %c0_27] : memref<3x384x128xbf16, #tpu.memory_space<vmem>>, vector<1x384x128xbf16>
    %51 = vector.shape_cast %50 : vector<1x384x128xbf16> to vector<384x128xbf16>
    %cst_28 = arith.constant dense<0.000000e+00> : vector<64x128xf32>
    %52 = tpu.matmul %49, %51, %cst_28 {dimension_numbers = #tpu.dot_dimension_numbers<[1], [0], [0], [1], [0, 0, 1, 1], [], []>} : vector<64x384xbf16>, vector<384x128xbf16>, vector<64x128xf32> -> vector<64x128xf32>
    %53 = arith.addf %48, %52 : vector<64x128xf32>
    %54 = vector.extract_strided_slice %42 {offsets = [16, 0], sizes = [64, 384], strides = [1, 1]} : vector<80x384xbf16> to vector<64x384xbf16>
    %c2_29 = arith.constant 2 : index
    %c0_30 = arith.constant 0 : index
    %c0_31 = arith.constant 0 : index
    %55 = vector.load %arg4[%c2_29, %c0_30, %c0_31] : memref<3x384x128xbf16, #tpu.memory_space<vmem>>, vector<1x384x128xbf16>
    %56 = vector.shape_cast %55 : vector<1x384x128xbf16> to vector<384x128xbf16>
    %cst_32 = arith.constant dense<0.000000e+00> : vector<64x128xf32>
    %57 = tpu.matmul %54, %56, %cst_32 {dimension_numbers = #tpu.dot_dimension_numbers<[1], [0], [0], [1], [0, 0, 1, 1], [], []>} : vector<64x384xbf16>, vector<384x128xbf16>, vector<64x128xf32> -> vector<64x128xf32>
    %58 = arith.addf %53, %57 : vector<64x128xf32>
    %c0_33 = arith.constant 0 : index
    %c0_34 = arith.constant 0 : index
    %59 = vector.load %arg5[%c0_33, %c0_34] : memref<1x128xf32, #tpu.memory_space<vmem>>, vector<1x128xf32>
    %60 = vector.broadcast %59 : vector<1x128xf32> to vector<64x128xf32>
    %61 = arith.addf %58, %60 : vector<64x128xf32>
    %cst_35 = arith.constant 0.000000e+00 : f32
    %62 = vector.broadcast %cst_35 : f32 to vector<64x128xf32>
    %63 = arith.maximumf %61, %62 : vector<64x128xf32>
    %64 = vector.shape_cast %63 : vector<64x128xf32> to vector<8x8x128xf32>
    %65 = arith.truncf %64 : vector<8x8x128xf32> to vector<8x8x128xbf16>
    %66 = vector.shape_cast %65 : vector<8x8x128xbf16> to vector<4x2x8x128xbf16>
    %67 = vector.extract_strided_slice %66 {offsets = [0, 0, 0, 0], sizes = [4, 1, 8, 128], strides = [1, 1, 1, 1]} : vector<4x2x8x128xbf16> to vector<4x1x8x128xbf16>
    %68 = vector.shape_cast %67 : vector<4x1x8x128xbf16> to vector<4x8x128xbf16>
    %69 = vector.extract_strided_slice %66 {offsets = [0, 1, 0, 0], sizes = [4, 1, 8, 128], strides = [1, 1, 1, 1]} : vector<4x2x8x128xbf16> to vector<4x1x8x128xbf16>
    %70 = vector.shape_cast %69 : vector<4x1x8x128xbf16> to vector<4x8x128xbf16>
    %71 = arith.maximumf %68, %70 : vector<4x8x128xbf16>
    %72 = vector.shape_cast %71 : vector<4x8x128xbf16> to vector<4x4x2x128xbf16>
    %73 = vector.extract_strided_slice %72 {offsets = [0, 0, 0, 0], sizes = [4, 4, 1, 128], strides = [1, 1, 1, 1]} : vector<4x4x2x128xbf16> to vector<4x4x1x128xbf16>
    %74 = vector.shape_cast %73 : vector<4x4x1x128xbf16> to vector<4x4x128xbf16>
    %75 = vector.extract_strided_slice %72 {offsets = [0, 0, 1, 0], sizes = [4, 4, 1, 128], strides = [1, 1, 1, 1]} : vector<4x4x2x128xbf16> to vector<4x4x1x128xbf16>
    %76 = vector.shape_cast %75 : vector<4x4x1x128xbf16> to vector<4x4x128xbf16>
    %77 = arith.maximumf %74, %76 : vector<4x4x128xbf16>
    %78 = vector.shape_cast %77 : vector<4x4x128xbf16> to vector<1x4x4x128xbf16>
    %c0_36 = arith.constant 0 : index
    %c0_37 = arith.constant 0 : index
    %c0_38 = arith.constant 0 : index
    %c0_39 = arith.constant 0 : index
    %79 = vector.load %arg6[%c0_36, %c0_37, %c0_38, %c0_39] : memref<1x4x4x128xbf16, #tpu.memory_space<vmem>>, vector<1x4x4x128xbf16>
    tpu.vector_store %arg6[%c0_36, %c0_37, %c0_38, %c0_39], %78 {strides = array<i32>} : memref<1x4x4x128xbf16, #tpu.memory_space<vmem>>, vector<1x4x4x128xbf16>,
    return
  }
  func.func @transform_0(%arg0: i32) -> (i32, i32, i32, i32) {
    %c0_i32 = arith.constant 0 : i32
    %c0_i32_0 = arith.constant 0 : i32
    %c0_i32_1 = arith.constant 0 : i32
    %c0_i32_2 = arith.constant 0 : i32
    return %arg0, %c0_i32, %c0_i32_0, %c0_i32_1 : i32, i32, i32, i32
  }
  func.func @transform_1(%arg0: i32) -> (i32, i32, i32) {
    %c0_i32 = arith.constant 0 : i32
    %c0_i32_0 = arith.constant 0 : i32
    %c0_i32_1 = arith.constant 0 : i32
    %c0_i32_2 = arith.constant 0 : i32
    return %c0_i32, %c0_i32_0, %c0_i32_1 : i32, i32, i32
  }
  func.func @transform_2(%arg0: i32) -> (i32, i32) {
    %c0_i32 = arith.constant 0 : i32
    %c0_i32_0 = arith.constant 0 : i32
    %c0_i32_1 = arith.constant 0 : i32
    return %c0_i32, %c0_i32_0 : i32, i32
  }
  func.func @transform_3(%arg0: i32) -> (i32, i32, i32) {
    %c0_i32 = arith.constant 0 : i32
    %c0_i32_0 = arith.constant 0 : i32
    %c0_i32_1 = arith.constant 0 : i32
    %c0_i32_2 = arith.constant 0 : i32
    return %c0_i32, %c0_i32_0, %c0_i32_1 : i32, i32, i32
  }
  func.func @transform_4(%arg0: i32) -> (i32, i32) {
    %c0_i32 = arith.constant 0 : i32
    %c0_i32_0 = arith.constant 0 : i32
    %c0_i32_1 = arith.constant 0 : i32
    return %c0_i32, %c0_i32_0 : i32, i32
  }
  func.func @transform_5(%arg0: i32) -> (i32, i32, i32, i32) {
    %c0_i32 = arith.constant 0 : i32
    %c0_i32_0 = arith.constant 0 : i32
    %c0_i32_1 = arith.constant 0 : i32
    %c0_i32_2 = arith.constant 0 : i32
    return %arg0, %c0_i32, %c0_i32_0, %c0_i32_1 : i32, i32, i32, i32
  }
}

module attributes {stable_mosaic.version = 11 : i64} {
  func.func @kernel(%arg0: i32, %arg1: memref<1x4x4x128xbf16, #tpu.memory_space<vmem>>, %arg2: memref<3x384x256xbf16, #tpu.memory_space<vmem>>, %arg3: memref<1x256xf32, #tpu.memory_space<vmem>>, %arg4: memref<3x768x256xbf16, #tpu.memory_space<vmem>>, %arg5: memref<1x256xf32, #tpu.memory_space<vmem>>, %arg6: memref<3x768x256xbf16, #tpu.memory_space<vmem>>, %arg7: memref<1x256xf32, #tpu.memory_space<vmem>>, %arg8: memref<3x768x256xbf16, #tpu.memory_space<vmem>>, %arg9: memref<1x256xf32, #tpu.memory_space<vmem>>, %arg10: memref<1x4x4x256xbf16, #tpu.memory_space<vmem>>) attributes {dimension_semantics = [#tpu.dimension_semantics<parallel>], iteration_bounds = array<i64: 4>, scalar_prefetch = 0 : i64, scratch_operands = 0 : i64, tpu.core_type = #tpu.core_type<tc>, window_params = [{transform_indices = @transform_0, window_bounds = array<i64: 1, 4, 4, 128>}, {pipeline_mode = #tpu.pipeline_mode<synchronous>, transform_indices = @transform_1, window_bounds = array<i64: 3, 384, 256>}, {pipeline_mode = #tpu.pipeline_mode<synchronous>, transform_indices = @transform_2, window_bounds = array<i64: 1, 256>}, {pipeline_mode = #tpu.pipeline_mode<synchronous>, transform_indices = @transform_3, window_bounds = array<i64: 3, 768, 256>}, {pipeline_mode = #tpu.pipeline_mode<synchronous>, transform_indices = @transform_4, window_bounds = array<i64: 1, 256>}, {pipeline_mode = #tpu.pipeline_mode<synchronous>, transform_indices = @transform_5, window_bounds = array<i64: 3, 768, 256>}, {pipeline_mode = #tpu.pipeline_mode<synchronous>, transform_indices = @transform_6, window_bounds = array<i64: 1, 256>}, {pipeline_mode = #tpu.pipeline_mode<synchronous>, transform_indices = @transform_7, window_bounds = array<i64: 3, 768, 256>}, {pipeline_mode = #tpu.pipeline_mode<synchronous>, transform_indices = @transform_8, window_bounds = array<i64: 1, 256>}, {transform_indices = @transform_9, window_bounds = array<i64: 1, 4, 4, 256>}]} {
    %c0 = arith.constant 0 : index
    %c0_0 = arith.constant 0 : index
    %c0_1 = arith.constant 0 : index
    %c0_2 = arith.constant 0 : index
    %0 = vector.load %arg1[%c0, %c0_0, %c0_1, %c0_2] : memref<1x4x4x128xbf16, #tpu.memory_space<vmem>>, vector<1x4x4x128xbf16>
    %1 = vector.shape_cast %0 : vector<1x4x4x128xbf16> to vector<4x4x128xbf16>
    %cst = arith.constant 0.000000e+00 : bf16
    %2 = vector.broadcast %cst : bf16 to vector<4x1x128xbf16>
    %3 = vector.extract_strided_slice %1 {offsets = [0, 0, 0], sizes = [4, 3, 128], strides = [1, 1, 1]} : vector<4x4x128xbf16> to vector<4x3x128xbf16>
    %4 = tpu.concatenate %2, %3 in 1 : vector<4x1x128xbf16>, vector<4x3x128xbf16> -> vector<4x4x128xbf16>
    %5 = vector.extract_strided_slice %1 {offsets = [0, 1, 0], sizes = [4, 3, 128], strides = [1, 1, 1]} : vector<4x4x128xbf16> to vector<4x3x128xbf16>
    %6 = tpu.concatenate %5, %2 in 1 : vector<4x3x128xbf16>, vector<4x1x128xbf16> -> vector<4x4x128xbf16>
    %7 = tpu.concatenate %4, %1, %6 in 2 : vector<4x4x128xbf16>, vector<4x4x128xbf16>, vector<4x4x128xbf16> -> vector<4x4x384xbf16>
    %cst_3 = arith.constant 0.000000e+00 : bf16
    %8 = vector.broadcast %cst_3 : bf16 to vector<1x4x384xbf16>
    %9 = tpu.concatenate %8, %7, %8 in 0 : vector<1x4x384xbf16>, vector<4x4x384xbf16>, vector<1x4x384xbf16> -> vector<6x4x384xbf16>
    %10 = vector.shape_cast %9 : vector<6x4x384xbf16> to vector<24x384xbf16>
    %cst_4 = arith.constant 0.000000e+00 : f32
    %11 = vector.broadcast %cst_4 : f32 to vector<16x256xf32>
    %12 = vector.extract_strided_slice %10 {offsets = [0, 0], sizes = [16, 384], strides = [1, 1]} : vector<24x384xbf16> to vector<16x384xbf16>
    %c0_5 = arith.constant 0 : index
    %c0_6 = arith.constant 0 : index
    %c0_7 = arith.constant 0 : index
    %13 = vector.load %arg2[%c0_5, %c0_6, %c0_7] : memref<3x384x256xbf16, #tpu.memory_space<vmem>>, vector<1x384x256xbf16>
    %14 = vector.shape_cast %13 : vector<1x384x256xbf16> to vector<384x256xbf16>
    %cst_8 = arith.constant dense<0.000000e+00> : vector<16x256xf32>
    %15 = tpu.matmul %12, %14, %cst_8 {dimension_numbers = #tpu.dot_dimension_numbers<[1], [0], [0], [1], [0, 0, 1, 1], [], []>} : vector<16x384xbf16>, vector<384x256xbf16>, vector<16x256xf32> -> vector<16x256xf32>
    %16 = arith.addf %11, %15 : vector<16x256xf32>
    %17 = vector.extract_strided_slice %10 {offsets = [4, 0], sizes = [16, 384], strides = [1, 1]} : vector<24x384xbf16> to vector<16x384xbf16>
    %c1 = arith.constant 1 : index
    %c0_9 = arith.constant 0 : index
    %c0_10 = arith.constant 0 : index
    %18 = vector.load %arg2[%c1, %c0_9, %c0_10] : memref<3x384x256xbf16, #tpu.memory_space<vmem>>, vector<1x384x256xbf16>
    %19 = vector.shape_cast %18 : vector<1x384x256xbf16> to vector<384x256xbf16>
    %cst_11 = arith.constant dense<0.000000e+00> : vector<16x256xf32>
    %20 = tpu.matmul %17, %19, %cst_11 {dimension_numbers = #tpu.dot_dimension_numbers<[1], [0], [0], [1], [0, 0, 1, 1], [], []>} : vector<16x384xbf16>, vector<384x256xbf16>, vector<16x256xf32> -> vector<16x256xf32>
    %21 = arith.addf %16, %20 : vector<16x256xf32>
    %22 = vector.extract_strided_slice %10 {offsets = [8, 0], sizes = [16, 384], strides = [1, 1]} : vector<24x384xbf16> to vector<16x384xbf16>
    %c2 = arith.constant 2 : index
    %c0_12 = arith.constant 0 : index
    %c0_13 = arith.constant 0 : index
    %23 = vector.load %arg2[%c2, %c0_12, %c0_13] : memref<3x384x256xbf16, #tpu.memory_space<vmem>>, vector<1x384x256xbf16>
    %24 = vector.shape_cast %23 : vector<1x384x256xbf16> to vector<384x256xbf16>
    %cst_14 = arith.constant dense<0.000000e+00> : vector<16x256xf32>
    %25 = tpu.matmul %22, %24, %cst_14 {dimension_numbers = #tpu.dot_dimension_numbers<[1], [0], [0], [1], [0, 0, 1, 1], [], []>} : vector<16x384xbf16>, vector<384x256xbf16>, vector<16x256xf32> -> vector<16x256xf32>
    %26 = arith.addf %21, %25 : vector<16x256xf32>
    %c0_15 = arith.constant 0 : index
    %c0_16 = arith.constant 0 : index
    %27 = vector.load %arg3[%c0_15, %c0_16] : memref<1x256xf32, #tpu.memory_space<vmem>>, vector<1x256xf32>
    %28 = vector.broadcast %27 : vector<1x256xf32> to vector<16x256xf32>
    %29 = arith.addf %26, %28 : vector<16x256xf32>
    %cst_17 = arith.constant 0.000000e+00 : f32
    %30 = vector.broadcast %cst_17 : f32 to vector<16x256xf32>
    %31 = arith.maximumf %29, %30 : vector<16x256xf32>
    %32 = vector.shape_cast %31 : vector<16x256xf32> to vector<4x4x256xf32>
    %33 = arith.truncf %32 : vector<4x4x256xf32> to vector<4x4x256xbf16>
    %cst_18 = arith.constant 0.000000e+00 : bf16
    %34 = vector.broadcast %cst_18 : bf16 to vector<4x1x256xbf16>
    %35 = vector.extract_strided_slice %33 {offsets = [0, 0, 0], sizes = [4, 3, 256], strides = [1, 1, 1]} : vector<4x4x256xbf16> to vector<4x3x256xbf16>
    %36 = tpu.concatenate %34, %35 in 1 : vector<4x1x256xbf16>, vector<4x3x256xbf16> -> vector<4x4x256xbf16>
    %37 = vector.extract_strided_slice %33 {offsets = [0, 1, 0], sizes = [4, 3, 256], strides = [1, 1, 1]} : vector<4x4x256xbf16> to vector<4x3x256xbf16>
    %38 = tpu.concatenate %37, %34 in 1 : vector<4x3x256xbf16>, vector<4x1x256xbf16> -> vector<4x4x256xbf16>
    %39 = tpu.concatenate %36, %33, %38 in 2 : vector<4x4x256xbf16>, vector<4x4x256xbf16>, vector<4x4x256xbf16> -> vector<4x4x768xbf16>
    %cst_19 = arith.constant 0.000000e+00 : bf16
    %40 = vector.broadcast %cst_19 : bf16 to vector<1x4x768xbf16>
    %41 = tpu.concatenate %40, %39, %40 in 0 : vector<1x4x768xbf16>, vector<4x4x768xbf16>, vector<1x4x768xbf16> -> vector<6x4x768xbf16>
    %42 = vector.shape_cast %41 : vector<6x4x768xbf16> to vector<24x768xbf16>
    %cst_20 = arith.constant 0.000000e+00 : f32
    %43 = vector.broadcast %cst_20 : f32 to vector<16x256xf32>
    %44 = vector.extract_strided_slice %42 {offsets = [0, 0], sizes = [16, 768], strides = [1, 1]} : vector<24x768xbf16> to vector<16x768xbf16>
    %c0_21 = arith.constant 0 : index
    %c0_22 = arith.constant 0 : index
    %c0_23 = arith.constant 0 : index
    %45 = vector.load %arg4[%c0_21, %c0_22, %c0_23] : memref<3x768x256xbf16, #tpu.memory_space<vmem>>, vector<1x768x256xbf16>
    %46 = vector.shape_cast %45 : vector<1x768x256xbf16> to vector<768x256xbf16>
    %cst_24 = arith.constant dense<0.000000e+00> : vector<16x256xf32>
    %47 = tpu.matmul %44, %46, %cst_24 {dimension_numbers = #tpu.dot_dimension_numbers<[1], [0], [0], [1], [0, 0, 1, 1], [], []>} : vector<16x768xbf16>, vector<768x256xbf16>, vector<16x256xf32> -> vector<16x256xf32>
    %48 = arith.addf %43, %47 : vector<16x256xf32>
    %49 = vector.extract_strided_slice %42 {offsets = [4, 0], sizes = [16, 768], strides = [1, 1]} : vector<24x768xbf16> to vector<16x768xbf16>
    %c1_25 = arith.constant 1 : index
    %c0_26 = arith.constant 0 : index
    %c0_27 = arith.constant 0 : index
    %50 = vector.load %arg4[%c1_25, %c0_26, %c0_27] : memref<3x768x256xbf16, #tpu.memory_space<vmem>>, vector<1x768x256xbf16>
    %51 = vector.shape_cast %50 : vector<1x768x256xbf16> to vector<768x256xbf16>
    %cst_28 = arith.constant dense<0.000000e+00> : vector<16x256xf32>
    %52 = tpu.matmul %49, %51, %cst_28 {dimension_numbers = #tpu.dot_dimension_numbers<[1], [0], [0], [1], [0, 0, 1, 1], [], []>} : vector<16x768xbf16>, vector<768x256xbf16>, vector<16x256xf32> -> vector<16x256xf32>
    %53 = arith.addf %48, %52 : vector<16x256xf32>
    %54 = vector.extract_strided_slice %42 {offsets = [8, 0], sizes = [16, 768], strides = [1, 1]} : vector<24x768xbf16> to vector<16x768xbf16>
    %c2_29 = arith.constant 2 : index
    %c0_30 = arith.constant 0 : index
    %c0_31 = arith.constant 0 : index
    %55 = vector.load %arg4[%c2_29, %c0_30, %c0_31] : memref<3x768x256xbf16, #tpu.memory_space<vmem>>, vector<1x768x256xbf16>
    %56 = vector.shape_cast %55 : vector<1x768x256xbf16> to vector<768x256xbf16>
    %cst_32 = arith.constant dense<0.000000e+00> : vector<16x256xf32>
    %57 = tpu.matmul %54, %56, %cst_32 {dimension_numbers = #tpu.dot_dimension_numbers<[1], [0], [0], [1], [0, 0, 1, 1], [], []>} : vector<16x768xbf16>, vector<768x256xbf16>, vector<16x256xf32> -> vector<16x256xf32>
    %58 = arith.addf %53, %57 : vector<16x256xf32>
    %c0_33 = arith.constant 0 : index
    %c0_34 = arith.constant 0 : index
    %59 = vector.load %arg5[%c0_33, %c0_34] : memref<1x256xf32, #tpu.memory_space<vmem>>, vector<1x256xf32>
    %60 = vector.broadcast %59 : vector<1x256xf32> to vector<16x256xf32>
    %61 = arith.addf %58, %60 : vector<16x256xf32>
    %cst_35 = arith.constant 0.000000e+00 : f32
    %62 = vector.broadcast %cst_35 : f32 to vector<16x256xf32>
    %63 = arith.maximumf %61, %62 : vector<16x256xf32>
    %64 = vector.shape_cast %63 : vector<16x256xf32> to vector<4x4x256xf32>
    %65 = arith.truncf %64 : vector<4x4x256xf32> to vector<4x4x256xbf16>
    %cst_36 = arith.constant 0.000000e+00 : bf16
    %66 = vector.broadcast %cst_36 : bf16 to vector<4x1x256xbf16>
    %67 = vector.extract_strided_slice %65 {offsets = [0, 0, 0], sizes = [4, 3, 256], strides = [1, 1, 1]} : vector<4x4x256xbf16> to vector<4x3x256xbf16>
    %68 = tpu.concatenate %66, %67 in 1 : vector<4x1x256xbf16>, vector<4x3x256xbf16> -> vector<4x4x256xbf16>
    %69 = vector.extract_strided_slice %65 {offsets = [0, 1, 0], sizes = [4, 3, 256], strides = [1, 1, 1]} : vector<4x4x256xbf16> to vector<4x3x256xbf16>
    %70 = tpu.concatenate %69, %66 in 1 : vector<4x3x256xbf16>, vector<4x1x256xbf16> -> vector<4x4x256xbf16>
    %71 = tpu.concatenate %68, %65, %70 in 2 : vector<4x4x256xbf16>, vector<4x4x256xbf16>, vector<4x4x256xbf16> -> vector<4x4x768xbf16>
    %cst_37 = arith.constant 0.000000e+00 : bf16
    %72 = vector.broadcast %cst_37 : bf16 to vector<1x4x768xbf16>
    %73 = tpu.concatenate %72, %71, %72 in 0 : vector<1x4x768xbf16>, vector<4x4x768xbf16>, vector<1x4x768xbf16> -> vector<6x4x768xbf16>
    %74 = vector.shape_cast %73 : vector<6x4x768xbf16> to vector<24x768xbf16>
    %cst_38 = arith.constant 0.000000e+00 : f32
    %75 = vector.broadcast %cst_38 : f32 to vector<16x256xf32>
    %76 = vector.extract_strided_slice %74 {offsets = [0, 0], sizes = [16, 768], strides = [1, 1]} : vector<24x768xbf16> to vector<16x768xbf16>
    %c0_39 = arith.constant 0 : index
    %c0_40 = arith.constant 0 : index
    %c0_41 = arith.constant 0 : index
    %77 = vector.load %arg6[%c0_39, %c0_40, %c0_41] : memref<3x768x256xbf16, #tpu.memory_space<vmem>>, vector<1x768x256xbf16>
    %78 = vector.shape_cast %77 : vector<1x768x256xbf16> to vector<768x256xbf16>
    %cst_42 = arith.constant dense<0.000000e+00> : vector<16x256xf32>
    %79 = tpu.matmul %76, %78, %cst_42 {dimension_numbers = #tpu.dot_dimension_numbers<[1], [0], [0], [1], [0, 0, 1, 1], [], []>} : vector<16x768xbf16>, vector<768x256xbf16>, vector<16x256xf32> -> vector<16x256xf32>
    %80 = arith.addf %75, %79 : vector<16x256xf32>
    %81 = vector.extract_strided_slice %74 {offsets = [4, 0], sizes = [16, 768], strides = [1, 1]} : vector<24x768xbf16> to vector<16x768xbf16>
    %c1_43 = arith.constant 1 : index
    %c0_44 = arith.constant 0 : index
    %c0_45 = arith.constant 0 : index
    %82 = vector.load %arg6[%c1_43, %c0_44, %c0_45] : memref<3x768x256xbf16, #tpu.memory_space<vmem>>, vector<1x768x256xbf16>
    %83 = vector.shape_cast %82 : vector<1x768x256xbf16> to vector<768x256xbf16>
    %cst_46 = arith.constant dense<0.000000e+00> : vector<16x256xf32>
    %84 = tpu.matmul %81, %83, %cst_46 {dimension_numbers = #tpu.dot_dimension_numbers<[1], [0], [0], [1], [0, 0, 1, 1], [], []>} : vector<16x768xbf16>, vector<768x256xbf16>, vector<16x256xf32> -> vector<16x256xf32>
    %85 = arith.addf %80, %84 : vector<16x256xf32>
    %86 = vector.extract_strided_slice %74 {offsets = [8, 0], sizes = [16, 768], strides = [1, 1]} : vector<24x768xbf16> to vector<16x768xbf16>
    %c2_47 = arith.constant 2 : index
    %c0_48 = arith.constant 0 : index
    %c0_49 = arith.constant 0 : index
    %87 = vector.load %arg6[%c2_47, %c0_48, %c0_49] : memref<3x768x256xbf16, #tpu.memory_space<vmem>>, vector<1x768x256xbf16>
    %88 = vector.shape_cast %87 : vector<1x768x256xbf16> to vector<768x256xbf16>
    %cst_50 = arith.constant dense<0.000000e+00> : vector<16x256xf32>
    %89 = tpu.matmul %86, %88, %cst_50 {dimension_numbers = #tpu.dot_dimension_numbers<[1], [0], [0], [1], [0, 0, 1, 1], [], []>} : vector<16x768xbf16>, vector<768x256xbf16>, vector<16x256xf32> -> vector<16x256xf32>
    %90 = arith.addf %85, %89 : vector<16x256xf32>
    %c0_51 = arith.constant 0 : index
    %c0_52 = arith.constant 0 : index
    %91 = vector.load %arg7[%c0_51, %c0_52] : memref<1x256xf32, #tpu.memory_space<vmem>>, vector<1x256xf32>
    %92 = vector.broadcast %91 : vector<1x256xf32> to vector<16x256xf32>
    %93 = arith.addf %90, %92 : vector<16x256xf32>
    %cst_53 = arith.constant 0.000000e+00 : f32
    %94 = vector.broadcast %cst_53 : f32 to vector<16x256xf32>
    %95 = arith.maximumf %93, %94 : vector<16x256xf32>
    %96 = vector.shape_cast %95 : vector<16x256xf32> to vector<4x4x256xf32>
    %97 = arith.truncf %96 : vector<4x4x256xf32> to vector<4x4x256xbf16>
    %cst_54 = arith.constant 0.000000e+00 : bf16
    %98 = vector.broadcast %cst_54 : bf16 to vector<4x1x256xbf16>
    %99 = vector.extract_strided_slice %97 {offsets = [0, 0, 0], sizes = [4, 3, 256], strides = [1, 1, 1]} : vector<4x4x256xbf16> to vector<4x3x256xbf16>
    %100 = tpu.concatenate %98, %99 in 1 : vector<4x1x256xbf16>, vector<4x3x256xbf16> -> vector<4x4x256xbf16>
    %101 = vector.extract_strided_slice %97 {offsets = [0, 1, 0], sizes = [4, 3, 256], strides = [1, 1, 1]} : vector<4x4x256xbf16> to vector<4x3x256xbf16>
    %102 = tpu.concatenate %101, %98 in 1 : vector<4x3x256xbf16>, vector<4x1x256xbf16> -> vector<4x4x256xbf16>
    %103 = tpu.concatenate %100, %97, %102 in 2 : vector<4x4x256xbf16>, vector<4x4x256xbf16>, vector<4x4x256xbf16> -> vector<4x4x768xbf16>
    %cst_55 = arith.constant 0.000000e+00 : bf16
    %104 = vector.broadcast %cst_55 : bf16 to vector<1x4x768xbf16>
    %105 = tpu.concatenate %104, %103, %104 in 0 : vector<1x4x768xbf16>, vector<4x4x768xbf16>, vector<1x4x768xbf16> -> vector<6x4x768xbf16>
    %106 = vector.shape_cast %105 : vector<6x4x768xbf16> to vector<24x768xbf16>
    %cst_56 = arith.constant 0.000000e+00 : f32
    %107 = vector.broadcast %cst_56 : f32 to vector<16x256xf32>
    %108 = vector.extract_strided_slice %106 {offsets = [0, 0], sizes = [16, 768], strides = [1, 1]} : vector<24x768xbf16> to vector<16x768xbf16>
    %c0_57 = arith.constant 0 : index
    %c0_58 = arith.constant 0 : index
    %c0_59 = arith.constant 0 : index
    %109 = vector.load %arg8[%c0_57, %c0_58, %c0_59] : memref<3x768x256xbf16, #tpu.memory_space<vmem>>, vector<1x768x256xbf16>
    %110 = vector.shape_cast %109 : vector<1x768x256xbf16> to vector<768x256xbf16>
    %cst_60 = arith.constant dense<0.000000e+00> : vector<16x256xf32>
    %111 = tpu.matmul %108, %110, %cst_60 {dimension_numbers = #tpu.dot_dimension_numbers<[1], [0], [0], [1], [0, 0, 1, 1], [], []>} : vector<16x768xbf16>, vector<768x256xbf16>, vector<16x256xf32> -> vector<16x256xf32>
    %112 = arith.addf %107, %111 : vector<16x256xf32>
    %113 = vector.extract_strided_slice %106 {offsets = [4, 0], sizes = [16, 768], strides = [1, 1]} : vector<24x768xbf16> to vector<16x768xbf16>
    %c1_61 = arith.constant 1 : index
    %c0_62 = arith.constant 0 : index
    %c0_63 = arith.constant 0 : index
    %114 = vector.load %arg8[%c1_61, %c0_62, %c0_63] : memref<3x768x256xbf16, #tpu.memory_space<vmem>>, vector<1x768x256xbf16>
    %115 = vector.shape_cast %114 : vector<1x768x256xbf16> to vector<768x256xbf16>
    %cst_64 = arith.constant dense<0.000000e+00> : vector<16x256xf32>
    %116 = tpu.matmul %113, %115, %cst_64 {dimension_numbers = #tpu.dot_dimension_numbers<[1], [0], [0], [1], [0, 0, 1, 1], [], []>} : vector<16x768xbf16>, vector<768x256xbf16>, vector<16x256xf32> -> vector<16x256xf32>
    %117 = arith.addf %112, %116 : vector<16x256xf32>
    %118 = vector.extract_strided_slice %106 {offsets = [8, 0], sizes = [16, 768], strides = [1, 1]} : vector<24x768xbf16> to vector<16x768xbf16>
    %c2_65 = arith.constant 2 : index
    %c0_66 = arith.constant 0 : index
    %c0_67 = arith.constant 0 : index
    %119 = vector.load %arg8[%c2_65, %c0_66, %c0_67] : memref<3x768x256xbf16, #tpu.memory_space<vmem>>, vector<1x768x256xbf16>
    %120 = vector.shape_cast %119 : vector<1x768x256xbf16> to vector<768x256xbf16>
    %cst_68 = arith.constant dense<0.000000e+00> : vector<16x256xf32>
    %121 = tpu.matmul %118, %120, %cst_68 {dimension_numbers = #tpu.dot_dimension_numbers<[1], [0], [0], [1], [0, 0, 1, 1], [], []>} : vector<16x768xbf16>, vector<768x256xbf16>, vector<16x256xf32> -> vector<16x256xf32>
    %122 = arith.addf %117, %121 : vector<16x256xf32>
    %c0_69 = arith.constant 0 : index
    %c0_70 = arith.constant 0 : index
    %123 = vector.load %arg9[%c0_69, %c0_70] : memref<1x256xf32, #tpu.memory_space<vmem>>, vector<1x256xf32>
    %124 = vector.broadcast %123 : vector<1x256xf32> to vector<16x256xf32>
    %125 = arith.addf %122, %124 : vector<16x256xf32>
    %cst_71 = arith.constant 0.000000e+00 : f32
    %126 = vector.broadcast %cst_71 : f32 to vector<16x256xf32>
    %127 = arith.maximumf %125, %126 : vector<16x256xf32>
    %128 = vector.shape_cast %127 : vector<16x256xf32> to vector<4x4x256xf32>
    %129 = arith.truncf %128 : vector<4x4x256xf32> to vector<4x4x256xbf16>
    %130 = vector.shape_cast %129 : vector<4x4x256xbf16> to vector<1x4x4x256xbf16>
    %c0_72 = arith.constant 0 : index
    %c0_73 = arith.constant 0 : index
    %c0_74 = arith.constant 0 : index
    %c0_75 = arith.constant 0 : index
    %131 = vector.load %arg10[%c0_72, %c0_73, %c0_74, %c0_75] : memref<1x4x4x256xbf16, #tpu.memory_space<vmem>>, vector<1x4x4x256xbf16>
    tpu.vector_store %arg10[%c0_72, %c0_73, %c0_74, %c0_75], %130 {strides = array<i32>} : memref<1x4x4x256xbf16, #tpu.memory_space<vmem>>, vector<1x4x4x256xbf16>,
    return
  }
  func.func @transform_0(%arg0: i32) -> (i32, i32, i32, i32) {
    %c0_i32 = arith.constant 0 : i32
    %c0_i32_0 = arith.constant 0 : i32
    %c0_i32_1 = arith.constant 0 : i32
    %c0_i32_2 = arith.constant 0 : i32
    return %arg0, %c0_i32, %c0_i32_0, %c0_i32_1 : i32, i32, i32, i32
  }
  func.func @transform_1(%arg0: i32) -> (i32, i32, i32) {
    %c0_i32 = arith.constant 0 : i32
    %c0_i32_0 = arith.constant 0 : i32
    %c0_i32_1 = arith.constant 0 : i32
    %c0_i32_2 = arith.constant 0 : i32
    return %c0_i32, %c0_i32_0, %c0_i32_1 : i32, i32, i32
  }
  func.func @transform_2(%arg0: i32) -> (i32, i32) {
    %c0_i32 = arith.constant 0 : i32
    %c0_i32_0 = arith.constant 0 : i32
    %c0_i32_1 = arith.constant 0 : i32
    return %c0_i32, %c0_i32_0 : i32, i32
  }
  func.func @transform_3(%arg0: i32) -> (i32, i32, i32) {
    %c0_i32 = arith.constant 0 : i32
    %c0_i32_0 = arith.constant 0 : i32
    %c0_i32_1 = arith.constant 0 : i32
    %c0_i32_2 = arith.constant 0 : i32
    return %c0_i32, %c0_i32_0, %c0_i32_1 : i32, i32, i32
  }
  func.func @transform_4(%arg0: i32) -> (i32, i32) {
    %c0_i32 = arith.constant 0 : i32
    %c0_i32_0 = arith.constant 0 : i32
    %c0_i32_1 = arith.constant 0 : i32
    return %c0_i32, %c0_i32_0 : i32, i32
  }
  func.func @transform_5(%arg0: i32) -> (i32, i32, i32) {
    %c0_i32 = arith.constant 0 : i32
    %c0_i32_0 = arith.constant 0 : i32
    %c0_i32_1 = arith.constant 0 : i32
    %c0_i32_2 = arith.constant 0 : i32
    return %c0_i32, %c0_i32_0, %c0_i32_1 : i32, i32, i32
  }
  func.func @transform_6(%arg0: i32) -> (i32, i32) {
    %c0_i32 = arith.constant 0 : i32
    %c0_i32_0 = arith.constant 0 : i32
    %c0_i32_1 = arith.constant 0 : i32
    return %c0_i32, %c0_i32_0 : i32, i32
  }
  func.func @transform_7(%arg0: i32) -> (i32, i32, i32) {
    %c0_i32 = arith.constant 0 : i32
    %c0_i32_0 = arith.constant 0 : i32
    %c0_i32_1 = arith.constant 0 : i32
    %c0_i32_2 = arith.constant 0 : i32
    return %c0_i32, %c0_i32_0, %c0_i32_1 : i32, i32, i32
  }
  func.func @transform_8(%arg0: i32) -> (i32, i32) {
    %c0_i32 = arith.constant 0 : i32
    %c0_i32_0 = arith.constant 0 : i32
    %c0_i32_1 = arith.constant 0 : i32
    return %c0_i32, %c0_i32_0 : i32, i32
  }
  func.func @transform_9(%arg0: i32) -> (i32, i32, i32, i32) {
    %c0_i32 = arith.constant 0 : i32
    %c0_i32_0 = arith.constant 0 : i32
    %c0_i32_1 = arith.constant 0 : i32
    %c0_i32_2 = arith.constant 0 : i32
    return %arg0, %c0_i32, %c0_i32_0, %c0_i32_1 : i32, i32, i32, i32
  }
}

module attributes {stable_mosaic.version = 11 : i64} {
  func.func @kernel(%arg0: i32, %arg1: memref<1x16x16x3xbf16, #tpu.memory_space<vmem>>, %arg2: memref<3x9x64xbf16, #tpu.memory_space<vmem>>, %arg3: memref<1x64xf32, #tpu.memory_space<vmem>>, %arg4: memref<3x192x64xbf16, #tpu.memory_space<vmem>>, %arg5: memref<1x64xf32, #tpu.memory_space<vmem>>, %arg6: memref<1x8x8x64xbf16, #tpu.memory_space<vmem>>) attributes {dimension_semantics = [#tpu.dimension_semantics<parallel>], iteration_bounds = array<i64: 4>, scalar_prefetch = 0 : i64, scratch_operands = 0 : i64, tpu.core_type = #tpu.core_type<tc>, window_params = [{transform_indices = @transform_0, window_bounds = array<i64: 1, 16, 16, 3>}, {pipeline_mode = #tpu.pipeline_mode<synchronous>, transform_indices = @transform_1, window_bounds = array<i64: 3, 9, 64>}, {pipeline_mode = #tpu.pipeline_mode<synchronous>, transform_indices = @transform_2, window_bounds = array<i64: 1, 64>}, {pipeline_mode = #tpu.pipeline_mode<synchronous>, transform_indices = @transform_3, window_bounds = array<i64: 3, 192, 64>}, {pipeline_mode = #tpu.pipeline_mode<synchronous>, transform_indices = @transform_4, window_bounds = array<i64: 1, 64>}, {transform_indices = @transform_5, window_bounds = array<i64: 1, 8, 8, 64>}]} {
    %c0 = arith.constant 0 : index
    %c0_0 = arith.constant 0 : index
    %c0_1 = arith.constant 0 : index
    %c0_2 = arith.constant 0 : index
    %0 = vector.load %arg1[%c0, %c0_0, %c0_1, %c0_2] : memref<1x16x16x3xbf16, #tpu.memory_space<vmem>>, vector<1x16x16x3xbf16>
    %1 = vector.shape_cast %0 : vector<1x16x16x3xbf16> to vector<16x16x3xbf16>
    %cst = arith.constant 0.000000e+00 : bf16
    %2 = vector.broadcast %cst : bf16 to vector<16x1x3xbf16>
    %3 = vector.extract_strided_slice %1 {offsets = [0, 0, 0], sizes = [16, 15, 3], strides = [1, 1, 1]} : vector<16x16x3xbf16> to vector<16x15x3xbf16>
    %4 = tpu.concatenate %2, %3 in 1 : vector<16x1x3xbf16>, vector<16x15x3xbf16> -> vector<16x16x3xbf16>
    %5 = vector.extract_strided_slice %1 {offsets = [0, 1, 0], sizes = [16, 15, 3], strides = [1, 1, 1]} : vector<16x16x3xbf16> to vector<16x15x3xbf16>
    %6 = tpu.concatenate %5, %2 in 1 : vector<16x15x3xbf16>, vector<16x1x3xbf16> -> vector<16x16x3xbf16>
    %7 = tpu.concatenate %4, %1, %6 in 2 : vector<16x16x3xbf16>, vector<16x16x3xbf16>, vector<16x16x3xbf16> -> vector<16x16x9xbf16>
    %cst_3 = arith.constant 0.000000e+00 : bf16
    %8 = vector.broadcast %cst_3 : bf16 to vector<1x16x9xbf16>
    %9 = tpu.concatenate %8, %7, %8 in 0 : vector<1x16x9xbf16>, vector<16x16x9xbf16>, vector<1x16x9xbf16> -> vector<18x16x9xbf16>
    %10 = vector.shape_cast %9 : vector<18x16x9xbf16> to vector<288x9xbf16>
    %cst_4 = arith.constant 0.000000e+00 : f32
    %11 = vector.broadcast %cst_4 : f32 to vector<256x64xf32>
    %12 = vector.extract_strided_slice %10 {offsets = [0, 0], sizes = [256, 9], strides = [1, 1]} : vector<288x9xbf16> to vector<256x9xbf16>
    %c0_5 = arith.constant 0 : index
    %c0_6 = arith.constant 0 : index
    %c0_7 = arith.constant 0 : index
    %13 = vector.load %arg2[%c0_5, %c0_6, %c0_7] : memref<3x9x64xbf16, #tpu.memory_space<vmem>>, vector<1x9x64xbf16>
    %14 = vector.shape_cast %13 : vector<1x9x64xbf16> to vector<9x64xbf16>
    %cst_8 = arith.constant dense<0.000000e+00> : vector<256x64xf32>
    %15 = tpu.matmul %12, %14, %cst_8 {dimension_numbers = #tpu.dot_dimension_numbers<[1], [0], [0], [1], [0, 0, 1, 1], [], []>} : vector<256x9xbf16>, vector<9x64xbf16>, vector<256x64xf32> -> vector<256x64xf32>
    %16 = arith.addf %11, %15 : vector<256x64xf32>
    %17 = vector.extract_strided_slice %10 {offsets = [16, 0], sizes = [256, 9], strides = [1, 1]} : vector<288x9xbf16> to vector<256x9xbf16>
    %c1 = arith.constant 1 : index
    %c0_9 = arith.constant 0 : index
    %c0_10 = arith.constant 0 : index
    %18 = vector.load %arg2[%c1, %c0_9, %c0_10] : memref<3x9x64xbf16, #tpu.memory_space<vmem>>, vector<1x9x64xbf16>
    %19 = vector.shape_cast %18 : vector<1x9x64xbf16> to vector<9x64xbf16>
    %cst_11 = arith.constant dense<0.000000e+00> : vector<256x64xf32>
    %20 = tpu.matmul %17, %19, %cst_11 {dimension_numbers = #tpu.dot_dimension_numbers<[1], [0], [0], [1], [0, 0, 1, 1], [], []>} : vector<256x9xbf16>, vector<9x64xbf16>, vector<256x64xf32> -> vector<256x64xf32>
    %21 = arith.addf %16, %20 : vector<256x64xf32>
    %22 = vector.extract_strided_slice %10 {offsets = [32, 0], sizes = [256, 9], strides = [1, 1]} : vector<288x9xbf16> to vector<256x9xbf16>
    %c2 = arith.constant 2 : index
    %c0_12 = arith.constant 0 : index
    %c0_13 = arith.constant 0 : index
    %23 = vector.load %arg2[%c2, %c0_12, %c0_13] : memref<3x9x64xbf16, #tpu.memory_space<vmem>>, vector<1x9x64xbf16>
    %24 = vector.shape_cast %23 : vector<1x9x64xbf16> to vector<9x64xbf16>
    %cst_14 = arith.constant dense<0.000000e+00> : vector<256x64xf32>
    %25 = tpu.matmul %22, %24, %cst_14 {dimension_numbers = #tpu.dot_dimension_numbers<[1], [0], [0], [1], [0, 0, 1, 1], [], []>} : vector<256x9xbf16>, vector<9x64xbf16>, vector<256x64xf32> -> vector<256x64xf32>
    %26 = arith.addf %21, %25 : vector<256x64xf32>
    %c0_15 = arith.constant 0 : index
    %c0_16 = arith.constant 0 : index
    %27 = vector.load %arg3[%c0_15, %c0_16] : memref<1x64xf32, #tpu.memory_space<vmem>>, vector<1x64xf32>
    %28 = vector.broadcast %27 : vector<1x64xf32> to vector<256x64xf32>
    %29 = arith.addf %26, %28 : vector<256x64xf32>
    %cst_17 = arith.constant 0.000000e+00 : f32
    %30 = vector.broadcast %cst_17 : f32 to vector<256x64xf32>
    %31 = arith.maximumf %29, %30 : vector<256x64xf32>
    %32 = vector.shape_cast %31 : vector<256x64xf32> to vector<16x16x64xf32>
    %33 = arith.truncf %32 : vector<16x16x64xf32> to vector<16x16x64xbf16>
    %cst_18 = arith.constant 0.000000e+00 : bf16
    %34 = vector.broadcast %cst_18 : bf16 to vector<16x1x64xbf16>
    %35 = vector.extract_strided_slice %33 {offsets = [0, 0, 0], sizes = [16, 15, 64], strides = [1, 1, 1]} : vector<16x16x64xbf16> to vector<16x15x64xbf16>
    %36 = tpu.concatenate %34, %35 in 1 : vector<16x1x64xbf16>, vector<16x15x64xbf16> -> vector<16x16x64xbf16>
    %37 = vector.extract_strided_slice %33 {offsets = [0, 1, 0], sizes = [16, 15, 64], strides = [1, 1, 1]} : vector<16x16x64xbf16> to vector<16x15x64xbf16>
    %38 = tpu.concatenate %37, %34 in 1 : vector<16x15x64xbf16>, vector<16x1x64xbf16> -> vector<16x16x64xbf16>
    %39 = tpu.concatenate %36, %33, %38 in 2 : vector<16x16x64xbf16>, vector<16x16x64xbf16>, vector<16x16x64xbf16> -> vector<16x16x192xbf16>
    %cst_19 = arith.constant 0.000000e+00 : bf16
    %40 = vector.broadcast %cst_19 : bf16 to vector<1x16x192xbf16>
    %41 = tpu.concatenate %40, %39, %40 in 0 : vector<1x16x192xbf16>, vector<16x16x192xbf16>, vector<1x16x192xbf16> -> vector<18x16x192xbf16>
    %42 = vector.shape_cast %41 : vector<18x16x192xbf16> to vector<288x192xbf16>
    %cst_20 = arith.constant 0.000000e+00 : f32
    %43 = vector.broadcast %cst_20 : f32 to vector<256x64xf32>
    %44 = vector.extract_strided_slice %42 {offsets = [0, 0], sizes = [256, 192], strides = [1, 1]} : vector<288x192xbf16> to vector<256x192xbf16>
    %c0_21 = arith.constant 0 : index
    %c0_22 = arith.constant 0 : index
    %c0_23 = arith.constant 0 : index
    %45 = vector.load %arg4[%c0_21, %c0_22, %c0_23] : memref<3x192x64xbf16, #tpu.memory_space<vmem>>, vector<1x192x64xbf16>
    %46 = vector.shape_cast %45 : vector<1x192x64xbf16> to vector<192x64xbf16>
    %cst_24 = arith.constant dense<0.000000e+00> : vector<256x64xf32>
    %47 = tpu.matmul %44, %46, %cst_24 {dimension_numbers = #tpu.dot_dimension_numbers<[1], [0], [0], [1], [0, 0, 1, 1], [], []>} : vector<256x192xbf16>, vector<192x64xbf16>, vector<256x64xf32> -> vector<256x64xf32>
    %48 = arith.addf %43, %47 : vector<256x64xf32>
    %49 = vector.extract_strided_slice %42 {offsets = [16, 0], sizes = [256, 192], strides = [1, 1]} : vector<288x192xbf16> to vector<256x192xbf16>
    %c1_25 = arith.constant 1 : index
    %c0_26 = arith.constant 0 : index
    %c0_27 = arith.constant 0 : index
    %50 = vector.load %arg4[%c1_25, %c0_26, %c0_27] : memref<3x192x64xbf16, #tpu.memory_space<vmem>>, vector<1x192x64xbf16>
    %51 = vector.shape_cast %50 : vector<1x192x64xbf16> to vector<192x64xbf16>
    %cst_28 = arith.constant dense<0.000000e+00> : vector<256x64xf32>
    %52 = tpu.matmul %49, %51, %cst_28 {dimension_numbers = #tpu.dot_dimension_numbers<[1], [0], [0], [1], [0, 0, 1, 1], [], []>} : vector<256x192xbf16>, vector<192x64xbf16>, vector<256x64xf32> -> vector<256x64xf32>
    %53 = arith.addf %48, %52 : vector<256x64xf32>
    %54 = vector.extract_strided_slice %42 {offsets = [32, 0], sizes = [256, 192], strides = [1, 1]} : vector<288x192xbf16> to vector<256x192xbf16>
    %c2_29 = arith.constant 2 : index
    %c0_30 = arith.constant 0 : index
    %c0_31 = arith.constant 0 : index
    %55 = vector.load %arg4[%c2_29, %c0_30, %c0_31] : memref<3x192x64xbf16, #tpu.memory_space<vmem>>, vector<1x192x64xbf16>
    %56 = vector.shape_cast %55 : vector<1x192x64xbf16> to vector<192x64xbf16>
    %cst_32 = arith.constant dense<0.000000e+00> : vector<256x64xf32>
    %57 = tpu.matmul %54, %56, %cst_32 {dimension_numbers = #tpu.dot_dimension_numbers<[1], [0], [0], [1], [0, 0, 1, 1], [], []>} : vector<256x192xbf16>, vector<192x64xbf16>, vector<256x64xf32> -> vector<256x64xf32>
    %58 = arith.addf %53, %57 : vector<256x64xf32>
    %c0_33 = arith.constant 0 : index
    %c0_34 = arith.constant 0 : index
    %59 = vector.load %arg5[%c0_33, %c0_34] : memref<1x64xf32, #tpu.memory_space<vmem>>, vector<1x64xf32>
    %60 = vector.broadcast %59 : vector<1x64xf32> to vector<256x64xf32>
    %61 = arith.addf %58, %60 : vector<256x64xf32>
    %cst_35 = arith.constant 0.000000e+00 : f32
    %62 = vector.broadcast %cst_35 : f32 to vector<256x64xf32>
    %63 = arith.maximumf %61, %62 : vector<256x64xf32>
    %64 = vector.shape_cast %63 : vector<256x64xf32> to vector<16x16x64xf32>
    %65 = arith.truncf %64 : vector<16x16x64xf32> to vector<16x16x64xbf16>
    %66 = vector.shape_cast %65 : vector<16x16x64xbf16> to vector<8x2x16x64xbf16>
    %67 = vector.extract_strided_slice %66 {offsets = [0, 0, 0, 0], sizes = [8, 1, 16, 64], strides = [1, 1, 1, 1]} : vector<8x2x16x64xbf16> to vector<8x1x16x64xbf16>
    %68 = vector.shape_cast %67 : vector<8x1x16x64xbf16> to vector<8x16x64xbf16>
    %69 = vector.extract_strided_slice %66 {offsets = [0, 1, 0, 0], sizes = [8, 1, 16, 64], strides = [1, 1, 1, 1]} : vector<8x2x16x64xbf16> to vector<8x1x16x64xbf16>
    %70 = vector.shape_cast %69 : vector<8x1x16x64xbf16> to vector<8x16x64xbf16>
    %71 = arith.maximumf %68, %70 : vector<8x16x64xbf16>
    %72 = vector.shape_cast %71 : vector<8x16x64xbf16> to vector<8x8x2x64xbf16>
    %73 = vector.extract_strided_slice %72 {offsets = [0, 0, 0, 0], sizes = [8, 8, 1, 64], strides = [1, 1, 1, 1]} : vector<8x8x2x64xbf16> to vector<8x8x1x64xbf16>
    %74 = vector.shape_cast %73 : vector<8x8x1x64xbf16> to vector<8x8x64xbf16>
    %75 = vector.extract_strided_slice %72 {offsets = [0, 0, 1, 0], sizes = [8, 8, 1, 64], strides = [1, 1, 1, 1]} : vector<8x8x2x64xbf16> to vector<8x8x1x64xbf16>
    %76 = vector.shape_cast %75 : vector<8x8x1x64xbf16> to vector<8x8x64xbf16>
    %77 = arith.maximumf %74, %76 : vector<8x8x64xbf16>
    %78 = vector.shape_cast %77 : vector<8x8x64xbf16> to vector<1x8x8x64xbf16>
    %c0_36 = arith.constant 0 : index
    %c0_37 = arith.constant 0 : index
    %c0_38 = arith.constant 0 : index
    %c0_39 = arith.constant 0 : index
    %79 = vector.load %arg6[%c0_36, %c0_37, %c0_38, %c0_39] : memref<1x8x8x64xbf16, #tpu.memory_space<vmem>>, vector<1x8x8x64xbf16>
    tpu.vector_store %arg6[%c0_36, %c0_37, %c0_38, %c0_39], %78 {strides = array<i32>} : memref<1x8x8x64xbf16, #tpu.memory_space<vmem>>, vector<1x8x8x64xbf16>,
    return
  }
  func.func @transform_0(%arg0: i32) -> (i32, i32, i32, i32) {
    %c0_i32 = arith.constant 0 : i32
    %c0_i32_0 = arith.constant 0 : i32
    %c0_i32_1 = arith.constant 0 : i32
    %c0_i32_2 = arith.constant 0 : i32
    return %arg0, %c0_i32, %c0_i32_0, %c0_i32_1 : i32, i32, i32, i32
  }
  func.func @transform_1(%arg0: i32) -> (i32, i32, i32) {
    %c0_i32 = arith.constant 0 : i32
    %c0_i32_0 = arith.constant 0 : i32
    %c0_i32_1 = arith.constant 0 : i32
    %c0_i32_2 = arith.constant 0 : i32
    return %c0_i32, %c0_i32_0, %c0_i32_1 : i32, i32, i32
  }
  func.func @transform_2(%arg0: i32) -> (i32, i32) {
    %c0_i32 = arith.constant 0 : i32
    %c0_i32_0 = arith.constant 0 : i32
    %c0_i32_1 = arith.constant 0 : i32
    return %c0_i32, %c0_i32_0 : i32, i32
  }
  func.func @transform_3(%arg0: i32) -> (i32, i32, i32) {
    %c0_i32 = arith.constant 0 : i32
    %c0_i32_0 = arith.constant 0 : i32
    %c0_i32_1 = arith.constant 0 : i32
    %c0_i32_2 = arith.constant 0 : i32
    return %c0_i32, %c0_i32_0, %c0_i32_1 : i32, i32, i32
  }
  func.func @transform_4(%arg0: i32) -> (i32, i32) {
    %c0_i32 = arith.constant 0 : i32
    %c0_i32_0 = arith.constant 0 : i32
    %c0_i32_1 = arith.constant 0 : i32
    return %c0_i32, %c0_i32_0 : i32, i32
  }
  func.func @transform_5(%arg0: i32) -> (i32, i32, i32, i32) {
    %c0_i32 = arith.constant 0 : i32
    %c0_i32_0 = arith.constant 0 : i32
    %c0_i32_1 = arith.constant 0 : i32
    %c0_i32_2 = arith.constant 0 : i32
    return %arg0, %c0_i32, %c0_i32_0, %c0_i32_1 : i32, i32, i32, i32
  }
}

module attributes {stable_mosaic.version = 11 : i64} {
  func.func @_mse_kernel(%arg0: i32, %arg1: memref<2x1x4x4x256xbf16, #tpu.memory_space<vmem>>, %arg2: memref<1x1xf32, #tpu.memory_space<vmem>>, %arg3: memref<1xf32, #tpu.memory_space<smem>>) attributes {dimension_semantics = [#tpu.dimension_semantics<arbitrary>], iteration_bounds = array<i64: 2>, scalar_prefetch = 0 : i64, scratch_operands = 1 : i64, tpu.core_type = #tpu.core_type<tc>, window_params = [{transform_indices = @transform_0, window_bounds = array<i64: 2, 1, 4, 4, 256>}, {pipeline_mode = #tpu.pipeline_mode<synchronous>, transform_indices = @transform_1, window_bounds = array<i64: 1, 1>}]} {
    %c0_i32 = arith.constant 0 : i32
    %0 = arith.cmpi eq, %arg0, %c0_i32 : i32
    %1 = arith.extui %0 : i1 to i32
    %c0_i32_0 = arith.constant 0 : i32
    %2 = arith.cmpi ne, %1, %c0_i32_0 : i32
    scf.if %2 {
      %cst_15 = arith.constant 0.000000e+00 : f32
      %c0_16 = arith.constant 0 : index
      %22 = memref.load %arg3[%c0_16] : memref<1xf32, #tpu.memory_space<smem>>
      memref.store %cst_15, %arg3[%c0_16] : memref<1xf32, #tpu.memory_space<smem>>
    } else {
    }
    %c0 = arith.constant 0 : index
    %c0_1 = arith.constant 0 : index
    %c0_2 = arith.constant 0 : index
    %c0_3 = arith.constant 0 : index
    %c0_4 = arith.constant 0 : index
    %3 = vector.load %arg1[%c0, %c0_1, %c0_2, %c0_3, %c0_4] : memref<2x1x4x4x256xbf16, #tpu.memory_space<vmem>>, vector<1x1x4x4x256xbf16>
    %4 = vector.shape_cast %3 : vector<1x1x4x4x256xbf16> to vector<4x4x256xbf16>
    %5 = arith.extf %4 : vector<4x4x256xbf16> to vector<4x4x256xf32>
    %c1 = arith.constant 1 : index
    %c0_5 = arith.constant 0 : index
    %c0_6 = arith.constant 0 : index
    %c0_7 = arith.constant 0 : index
    %c0_8 = arith.constant 0 : index
    %6 = vector.load %arg1[%c1, %c0_5, %c0_6, %c0_7, %c0_8] : memref<2x1x4x4x256xbf16, #tpu.memory_space<vmem>>, vector<1x1x4x4x256xbf16>
    %7 = vector.shape_cast %6 : vector<1x1x4x4x256xbf16> to vector<4x4x256xbf16>
    %8 = arith.extf %7 : vector<4x4x256xbf16> to vector<4x4x256xf32>
    %9 = arith.subf %5, %8 : vector<4x4x256xf32>
    %c0_9 = arith.constant 0 : index
    %10 = memref.load %arg3[%c0_9] : memref<1xf32, #tpu.memory_space<smem>>
    %11 = arith.mulf %9, %9 : vector<4x4x256xf32>
    %12 = vector.shape_cast %11 : vector<4x4x256xf32> to vector<1x4x4x256xf32>
    %cst = arith.constant dense<0.000000e+00> : vector<1xf32>
    %13 = vector.multi_reduction <add>, %12, %cst [1, 2, 3] : vector<1x4x4x256xf32> to vector<1xf32>
    %14 = vector.shape_cast %13 : vector<1xf32> to vector<1x1x1x1xf32>
    %15 = vector.extract %14[0, 0, 0, 0] : f32 from vector<1x1x1x1xf32>
    %16 = arith.addf %10, %15 : f32
    %c0_10 = arith.constant 0 : index
    %17 = memref.load %arg3[%c0_10] : memref<1xf32, #tpu.memory_space<smem>>
    memref.store %16, %arg3[%c0_10] : memref<1xf32, #tpu.memory_space<smem>>
    %c0_11 = arith.constant 0 : index
    %18 = memref.load %arg3[%c0_11] : memref<1xf32, #tpu.memory_space<smem>>
    %cst_12 = arith.constant 1.22070313E-4 : f32
    %19 = arith.mulf %18, %cst_12 : f32
    %20 = vector.broadcast %19 : f32 to vector<1x1xf32>
    %c0_13 = arith.constant 0 : index
    %c0_14 = arith.constant 0 : index
    %21 = vector.load %arg2[%c0_13, %c0_14] : memref<1x1xf32, #tpu.memory_space<vmem>>, vector<1x1xf32>
    tpu.vector_store %arg2[%c0_13, %c0_14], %20 {strides = array<i32>} : memref<1x1xf32, #tpu.memory_space<vmem>>, vector<1x1xf32>,
    return
  }
  func.func @transform_0(%arg0: i32) -> (i32, i32, i32, i32, i32) {
    %c0_i32 = arith.constant 0 : i32
    %c0_i32_0 = arith.constant 0 : i32
    %c0_i32_1 = arith.constant 0 : i32
    %c0_i32_2 = arith.constant 0 : i32
    %c0_i32_3 = arith.constant 0 : i32
    return %c0_i32, %arg0, %c0_i32_0, %c0_i32_1, %c0_i32_2 : i32, i32, i32, i32, i32
  }
  func.func @transform_1(%arg0: i32) -> (i32, i32) {
    %c0_i32 = arith.constant 0 : i32
    %c0_i32_0 = arith.constant 0 : i32
    %c0_i32_1 = arith.constant 0 : i32
    return %c0_i32, %c0_i32_0 : i32, i32
  }
}

</mosaic_0001>

<bundles_post_ra>
// kernel: perceptual_loss.7
= control target key start
LH: loop header
LB: loop body
LE: loop exit
PB: predicated region body
PF: predicated region fallthrough
CT: control target
= control target key end

     0   :  { %6 = vsyncpa [#allocation5], 0  ;;  %s442_s6 = smov 0   ;;  %s444_s7 = smov 0   ;;  %s527_s0 = inlined_call_operand.vmem [shape: bf16[2,2,4,4,256], index: 0, kind: input, shape index: {}]   ;;  %s528_s1 = inlined_call_operand.hbm [shape: f32[1,1], index: 1, kind: output, shape index: {}]  }
   0x1   :  { %s446_s8 = smov 0  }
   0x2 LB: > { %s302_s9 = sadd.s32 4294967295, %s428_s8   ;;  %s459_s10 = sadd.s32 1, %s428_s8   ;;  %s428_s8 = sphi %s446_s8, %s532_s8   ;;  %s424_s7 = sphi %s444_s7, %s531_s7   ;;  %s420_s6 = sphi %s442_s6, %s530_s6  }
   0x3   : > { %s16_s11 = ssub.s32 %s428_s8, %s459_s10  ;;  %s19_s12 = sadd.s32 1, %s424_s7 }
   0x4   : > { %p17_p0 = scmp.eq.s32.totalorder %s16_s11, 0  ;;  %p26_p1 = scmp.ne.s32.totalorder %s424_s7, %s420_s6 }
   0x5   : > { %p27_p2 = scmp.eq.s32.totalorder %s428_s8, 0  ;;  %p304_p4 = scmp.ge.s32.totalorder %s428_s8, 2 }
   0x6   : > { %s468_s13 = scalar_select %p17_p0, %s424_s7, %s19_s12  }
   0x7   : > { %p28_p3 = por %p27_p2, %p26_p1  ;;  %73 = sbr.rel (%p304_p4) target bundleno = 21 (0x15), region = 16 }
   0xe   : > { %76 = sbr.rel (!%p28_p3) target bundleno = 21 (0x15), region = 20  ;;  %s78_s14 = sand.u32 (%p28_p3), 1, %s424_s7  }
   0xf   : > { %s319_s15 = sshll.u32 (%p28_p3), %s428_s8, 4  ;;  %s305_s16 = sshll.u32 (%p28_p3), %s78_s14, 5 }
  0x10   : > { %s83_s19 = scalar_lea.vmem (%p28_p3), %s527_s0, %s319_s15  ;;  %s80_s20 = scalar_lea.vmem (%p28_p3), [#allocation3], %s305_s16 }
  0x11   : > { %v99_v0 = vld [vmem:[%s83_s19] sm:$0xff] (%p28_p3)   ;;  %v103_v1 = vld [vmem:[%s83_s19 + $0x8] sm:$0xff] (%p28_p3)  }
  0x12   : > { %v107_v2 = vld [vmem:[%s83_s19 + $0x20] sm:$0xff] (%p28_p3)   ;;  %100 = vst [vmem:[%s80_s20] sm:$0xff] (%p28_p3), %v99_v0   ;;  %104 = vst [vmem:[%s80_s20 + $0x8] sm:$0xff] (%p28_p3), %v103_v1   ;;  %v111_v3 = vld [vmem:[%s83_s19 + $0x28] sm:$0xff] (%p28_p3)  }
  0x13   : > { %108 = vst [vmem:[%s80_s20 + $0x10] sm:$0xff] (%p28_p3), %v107_v2   ;;  %112 = vst [vmem:[%s80_s20 + $0x18] sm:$0xff] (%p28_p3), %v111_v3  }
  0x15 PF: > { %p308_p5 = scmp.ge.s32.totalorder %s428_s8, 1  ;;  %p152_p6 = scmp.lt.s32.totalorder %s428_s8, 3 }
  0x17   : > { %p153_p7 = pnand %p308_p5, %p152_p6 }
  0x18   : > { %s159_s21 = sand.u32 (!%p153_p7), 1, %s420_s6   ;;  %vm217_vm0 = vcmask (!%p153_p7), 1043456   ;;  %p347_p8 = scmp.eq.s32.totalorder (!%p153_p7), %s302_s9, 0  ;;  %vm248_vm1 = vcmask (!%p153_p7), 0  }
  0x19   : > { %156 = sbr.rel (%p153_p7) target bundleno = 275 (0x113), region = 61  ;;  %s309_s22 = sshll.u32 (!%p153_p7), %s159_s21, 5 }
  0x1a   : > { %s161_s23 = scalar_lea.vmem (!%p153_p7), [#allocation3], %s309_s22  ;;  %s430_s24 = smov (!%p153_p7), 0.0  }
  0x1b   : > { %v321_v4 = vld [vmem:[%s161_s23] sm:$0xff] (!%p153_p7)   ;;  %v336_v5 = vld [vmem:[%s161_s23 + $0x8] sm:$0xff] (!%p153_p7)   ;;  %v337_v6 = vld [vmem:[%s161_s23 + $0x10] sm:$0xff] (!%p153_p7)   ;;  %s431_s28 = smov (!%p153_p7), [#allocation4]   ;;  %p491_p9 = scmp.eq.s32.totalorder (!%p153_p7), %s302_s9, 1 }
  0x1c   : > { %v322_v7 = vunpack.c.l.bf16 (!%p153_p7), %v321_v4  ;;  %v323_v8 = vunpack.c.h.bf16 (!%p153_p7), %v321_v4  ;;  %v326_v9 = vunpack.c.l.bf16 (!%p153_p7), %v336_v5  ;;  %v338_v10 = vld [vmem:[%s161_s23 + $0x18] sm:$0xff] (!%p153_p7)   ;;  %v330_v11 = vunpack.c.l.bf16 (!%p153_p7), %v337_v6  ;;  %s257_s29 = sshll.u32 (!%p153_p7), %s431_s28, 4  ;;  %s258_s29 = int_to_ptr.vmem [resolvable:$true] %s257_s29 }
  0x1d   : > { %v331_v12 = vunpack.c.h.bf16 (!%p153_p7), %v337_v6  ;;  %v334_v13 = vunpack.c.l.bf16 (!%p153_p7), %v338_v10  ;;  %v327_v14 = vunpack.c.h.bf16 (!%p153_p7), %v336_v5  ;;  %v335_v15 = vunpack.c.h.bf16 (!%p153_p7), %v338_v10  ;;  %s376_s3 = scalar_lea.vmem (!%p153_p7), %s258_s29, 16  ;;  %s382_s4 = scalar_lea.vmem (!%p153_p7), %s258_s29, 32 }
  0x1e   : > { %v196_v16 = vsub.f32 (!%p153_p7), %v322_v7, %v330_v11  ;;  %p377_p10 = scmp.ne.s32.totalorder (!%p153_p7), %s258_s29, %s376_s3  ;;  %p383_p13 = scmp.lt.s32.totalorder (!%p153_p7), %s258_s29, %s258_s29 }
  0x1f   : > { %v197_v17 = vsub.f32 (!%p153_p7), %v323_v8, %v331_v12  ;;  %v198_v18 = vsub.f32 (!%p153_p7), %v326_v9, %v334_v13  ;;  %v199_v21 = vsub.f32 (!%p153_p7), %v327_v14, %v335_v15  ;;  %p384_p0 = scmp.lt.s32.totalorder (!%p153_p7), %s382_s4, %s376_s3 }
  0x20   : > { %v201_v19 = vmul.f32 %v196_v16, %v196_v16  ;;  %342 = sst [smem:[#allocation2]] (%p347_p8), %s430_s24  ;;  %p378_p11 = pnand %p377_p10, %p491_p9 }
  0x21   : > { %v202_v20 = vmul.f32 %v197_v17, %v197_v17  ;;  %v203_v22 = vmul.f32 %v198_v18, %v198_v18  ;;  %v204_v29 = vmul.f32 %v199_v21, %v199_v21  ;;  %s200_s25 = sld [smem:[#allocation2]]  ;;  %p385_p1 = por %p384_p0, %p383_p13 }
  0x22   : > { %v209_v23 = vcombine.high %v201_v19, %v201_v19  ;;  %v218_v25 = vsel %vm217_vm0, %v201_v19, 0.0  ;;  %p379_p12 = pneg %p378_p11 }
  0x23   : > { %v210_v24 = vcombine.high %v202_v20, %v202_v20  ;;  %v221_v27 = vsel %vm217_vm0, %v202_v20, 0.0  ;;  %v211_v30 = vcombine.high %v203_v22, %v203_v22  ;;  %v225_v33 = vsel %vm217_vm0, %v203_v22, 0.0 }
  0x24   : > { %v219_v26 = vsel %vm217_vm0, %v209_v23, 0.0  ;;  %v212_v35 = vcombine.high %v204_v29, %v204_v29  ;;  %v229_v38 = vsel %vm217_vm0, %v204_v29, 0.0  ;;  %p386_p2 = pnand %p385_p1, %p379_p12 }
  0x25   : > { %v220_v28 = vadd.f32 %v219_v26, %v218_v25  ;;  %v223_v31 = vsel %vm217_vm0, %v210_v24, 0.0  ;;  %v227_v36 = vsel %vm217_vm0, %v211_v30, 0.0 }
  0x26   : > { %v231_v40 = vsel %vm217_vm0, %v212_v35, 0.0 }
  0x27   : > { %v222_v32 = vadd.f32 %v221_v27, %v220_v28 }
  0x29   : > { %v224_v34 = vadd.f32 %v223_v31, %v222_v32 }
  0x2b   : > { %v226_v37 = vadd.f32 %v225_v33, %v224_v34 }
  0x2d   : > { %v228_v39 = vadd.f32 %v227_v36, %v226_v37 }
  0x2f   : > { %v230_v41 = vadd.f32 %v229_v38, %v228_v39 }
  0x31   : > { %v232_v42 = vadd.f32 %v231_v40, %v230_v41 }
  0x33   : > { %233 = vadd.xlane.f32.xlu0 %v232_v42 }
  0xc0   : > { %v234_v43 = vpop.xlane.xlu0 %233 }
  0xc1   : > { %v235_v44 = vrot.slane %v234_v43, 4 }
  0xc3   : > { %v236_v45 = vadd.f32 %v235_v44, %v234_v43 }
  0xc5   : > { %v237_v46 = vrot.slane %v236_v45, 2 }
  0xc7   : > { %v238_v47 = vadd.f32 %v237_v46, %v236_v45 }
  0xc9   : > { %v239_v48 = vrot.slane %v238_v47, 1 }
  0xcb   : > { %v240_v49 = vadd.f32 %v239_v48, %v238_v47 }
  0xcd   : > { %339 = vpush %v240_v49 }
  0xfe   : > { %s340_s26 = spop %339 }
  0xff   : > { %s242_s27 = sadd.f32 %s340_s26, %s200_s25 }
 0x101   : > { %244 = sst [smem:[#allocation2]] %s242_s27  ;;  %s246_s2 = smul.f32 0.00012207031, %s242_s27 }
 0x103   : > { %v247_v50 = vstv %s246_s2 }
 0x104   : > { %249 = vst.msk [vmem:[#allocation4] sm:$0x1] %vm248_vm1, %v247_v50 }
 0x105   : > { %389 = shalt.err (!%p386_p2)
}
 0x106   : > { %s390_s8 = scalar_lea.hbm %s528_s1, 16 }
 0x107   : > { %p391_p3 = scmp.ne.s32.totalorder %s528_s1, %s390_s8  ;;  %p396_p6 = scmp.lt.u32.totalorder %s390_s8, %s528_s1 }
 0x109   : > { %p392_p4 = pnand %p391_p3, %p491_p9 }
 0x10b   : > { %p393_p5 = pneg %p392_p4 }
 0x10d   : > { %p398_p7 = pnand %p396_p6, %p393_p5 }
 0x10f   : > { %401 = shalt.err (!%p398_p7)
}
 0x110   : > { %344 = dma.vmem_to_hbm [thread:$0]  (%p491_p9), %s258_s29, 16, %s528_s1, [#allocation5]  }
 0x111   : > { %415 = dma.done.wait (%p491_p9), [#allocation5], 16  }
 0x112   : > { %417 = vsyncadd (%p491_p9), [#allocation5], 4294967280 }
 0x113 PF: > { %p9_p8 = scmp.ge.s32.totalorder %s459_s10, 4   ;;  %s530_s6 = smov %s424_s7 }
 0x114   : > { %s531_s7 = smov %s468_s13  ;;  %s532_s8 = smov %s459_s10 }
 0x115   :  { %11 = sbr.rel (!%p9_p8) target bundleno = 2 (0x2), region = 104 }
 0x11c   :  { %270 = vsyncpa [#allocation5], 1 }
 0x11d   :  { %272 = vsyncpa [#allocation5 + $0x1], 1 }

// kernel: perceptual_loss.5
= control target key start
LH: loop header
LB: loop body
LE: loop exit
PB: predicated region body
PF: predicated region fallthrough
CT: control target
= control target key end

     0   :  { %10 = vsyncpa [#allocation3], 0  ;;  %s4362_s0 = inlined_call_operand.vmem [shape: bf16[4,8,8,64], index: 0, kind: input, shape index: {}]   ;;  %s4363_s1 = inlined_call_operand.hbm [shape: bf16[3,192,128], index: 1, kind: input, shape index: {}]   ;;  %s4364_s2 = inlined_call_operand.hbm [shape: f32[1,128], index: 2, kind: input, shape index: {}]   ;;  %s4365_s3 = inlined_call_operand.hbm [shape: bf16[3,384,128], index: 3, kind: input, shape index: {}]   ;;  %s4366_s4 = inlined_call_operand.hbm [shape: f32[1,128], index: 4, kind: input, shape index: {}]   ;;  %s4367_s5 = inlined_call_operand.vmem [shape: bf16[4,4,4,128], index: 5, kind: output, shape index: {}]  }
   0x1   :  { %11 = vsyncpa [#allocation5], 0 }
   0x2   :  { %12 = vsyncpa [#allocation8], 0  ;;  %s3776_s18 = smov 0  }
   0x3 LB: > { %s3735_s19 = smov [#allocation4]   ;;  %s3782_s21 = sadd.s32 4294967295, %s3733_s18   ;;  %s3733_s18 = sphi %s3776_s18, %s18_s18  }
   0x4   : > { %s185_s20 = sshll.u32 %s3735_s19, 4  ;;  %p2942_p0 = scmp.ge.s32.totalorder %s3733_s18, 1  ;;  %s3787_s20 = int_to_ptr.vmem [resolvable:$true] %s185_s20 }
   0x5   : > { %p159_p1 = scmp.lt.s32.totalorder %s3733_s18, 5  ;;  %p4368_p2 = scmp.eq.s32.totalorder %s3782_s21, 0 }
   0x6   : > { %s3736_s23 = smov [#allocation2]   ;;  %s3737_s26 = smov [#allocation6]  }
   0x7   : > { %p3789_p3 = pnand %p2942_p0, %p159_p1  ;;  %s171_s24 = sshll.u32 %s3736_s23, 4  ;;  %s3795_s24 = int_to_ptr.vmem [resolvable:$true] %s171_s24 }
   0x8   : > { %s195_s27 = sshll.u32 %s3737_s26, 4  ;;  %s3738_s28 = smov [#allocation7]   ;;  %s3803_s27 = int_to_ptr.vmem [resolvable:$true] %s195_s27 }
   0x9   : > { %s4370_s22 = scalar_select %p3789_p3, 1, 0 }
   0xa   : > { %p3447_p4 = pneg %p3789_p3  ;;  %s3805_s29 = sshll.u32 %s3738_s28, 4  ;;  %s210_s29 = int_to_ptr.vmem [resolvable:$true] %s3805_s29 }
   0xb   : > { %s3603_s7 = scalar_lea.hbm %s4364_s2, 16 }
   0xc   : > { %p3799_p5 = pnand %p4368_p2, %p3447_p4  ;;  %p3604_p6 = scmp.ne.s32.totalorder %s4364_s2, %s3603_s7 }
   0xd   : > { %p3610_p10 = scmp.lt.u32.totalorder %s3603_s7, %s4364_s2 }
   0xe   : > { %p3815_p7 = pneg %p3799_p5 }
  0x10   : > { %p3606_p8 = pnand %p3815_p7, %p3604_p6 }
  0x12   : > { %p3607_p9 = pneg %p3606_p8 }
  0x14   : > { %p3612_p11 = pnand %p3610_p10, %p3607_p9 }
  0x16   : > { %3615 = shalt.err (!%p3612_p11)
}
  0x17   : > { %s3616_s13 = scalar_lea.vmem %s3787_s20, 16  ;;  %s3623_s14 = scalar_lea.vmem %s3787_s20, 32 }
  0x18   : > { %p3617_p12 = scmp.ne.s32.totalorder %s3787_s20, %s3616_s13  ;;  %p3624_p1 = scmp.lt.s32.totalorder %s3787_s20, %s3787_s20 }
  0x19   : > { %p3625_p4 = scmp.lt.s32.totalorder %s3623_s14, %s3616_s13 }
  0x1a   : > { %p3619_p13 = pnand %p3617_p12, %p3815_p7 }
  0x1b   : > { %p3626_p6 = por %p3625_p4, %p3624_p1 }
  0x1c   : > { %p3620_p0 = pneg %p3619_p13 }
  0x1e   : > { %p3627_p8 = pnand %p3626_p6, %p3620_p0 }
  0x20   : > { %3630 = shalt.err (!%p3627_p8)
}
  0x21   : > { %3453 = dma.hbm_to_vmem [thread:$0]  (!%p3799_p5), %s4364_s2, 16, %s3787_s20, [#allocation5]  }
  0x22   : > { %s3631_s23 = scalar_lea.hbm %s4363_s1, 4608 }
  0x23   : > { %p3632_p9 = scmp.ne.s32.totalorder %s4363_s1, %s3631_s23  ;;  %p3638_p12 = scmp.lt.u32.totalorder %s3631_s23, %s4363_s1 }
  0x25   : > { %p3634_p10 = pnand %p3632_p9, %p3815_p7 }
  0x27   : > { %p3635_p11 = pneg %p3634_p10 }
  0x29   : > { %p3640_p13 = pnand %p3638_p12, %p3635_p11 }
  0x2b   : > { %3643 = shalt.err (!%p3640_p13)
}
  0x2c   : > { %s3644_s20 = scalar_lea.vmem %s3795_s24, 4608  ;;  %p3652_p6 = scmp.lt.s32.totalorder %s3795_s24, %s3795_s24 }
  0x2d   : > { %p3645_p0 = scmp.ne.s32.totalorder %s3795_s24, %s3644_s20  ;;  %p3653_p8 = scmp.lt.s32.totalorder %s3644_s20, %s3644_s20 }
  0x2f   : > { %p3647_p1 = pnand %p3645_p0, %p3815_p7  ;;  %p3654_p9 = por %p3653_p8, %p3652_p6 }
  0x31   : > { %p3648_p4 = pneg %p3647_p1 }
  0x33   : > { %p3655_p10 = pnand %p3654_p9, %p3648_p4 }
  0x35   : > { %3658 = shalt.err (!%p3655_p10)
}
  0x36   : > { %s3739_s7 = smov 64   ;;  %s3740_s8 = smov 4  }
  0x37   : > { %3450 = dma.hbm_to_vmem [thread:$0]  (!%p3799_p5), %s4363_s1, 4608, %s3795_s24, [#allocation3], %s3739_s7, %s3739_s7, %s3740_s8  }
  0x38   : > { %s3659_s14 = scalar_lea.hbm %s4365_s3, 9216 }
  0x39   : > { %p3660_p11 = scmp.ne.s32.totalorder %s4365_s3, %s3659_s14  ;;  %p3666_p0 = scmp.lt.u32.totalorder %s3659_s14, %s4365_s3 }
  0x3b   : > { %p3662_p12 = pnand %p3660_p11, %p3815_p7 }
  0x3d   : > { %p3663_p13 = pneg %p3662_p12 }
  0x3f   : > { %p3668_p1 = pnand %p3666_p0, %p3663_p13 }
  0x41   : > { %3671 = shalt.err (!%p3668_p1)
}
  0x42   : > { %s3672_s24 = scalar_lea.vmem %s3803_s27, 9216  ;;  %p3680_p9 = scmp.lt.s32.totalorder %s3803_s27, %s3803_s27 }
  0x43   : > { %p3673_p4 = scmp.ne.s32.totalorder %s3803_s27, %s3672_s24  ;;  %p3681_p10 = scmp.lt.s32.totalorder %s3672_s24, %s3672_s24 }
  0x45   : > { %p3675_p6 = pnand %p3673_p4, %p3815_p7  ;;  %p3682_p11 = por %p3681_p10, %p3680_p9 }
  0x47   : > { %p3676_p8 = pneg %p3675_p6 }
  0x49   : > { %p3683_p12 = pnand %p3682_p11, %p3676_p8 }
  0x4b   : > { %3686 = shalt.err (!%p3683_p12)
}
  0x4c   : > { %3456 = dma.hbm_to_vmem [thread:$0]  (!%p3799_p5), %s4365_s3, 9216, %s3803_s27, [#allocation5], %s3739_s7, %s3739_s7, %s3740_s8  }
  0x4d   : > { %s3687_s6 = scalar_lea.hbm %s4366_s4, 16 }
  0x4e   : > { %p3688_p13 = scmp.ne.s32.totalorder %s4366_s4, %s3687_s6  ;;  %p3694_p4 = scmp.lt.u32.totalorder %s3687_s6, %s4366_s4 }
  0x50   : > { %p3690_p0 = pnand %p3688_p13, %p3815_p7 }
  0x52   : > { %p3691_p1 = pneg %p3690_p0 }
  0x54   : > { %p3696_p6 = pnand %p3694_p4, %p3691_p1 }
  0x56   : > { %3699 = shalt.err (!%p3696_p6)
}
  0x57   : > { %s3700_s13 = scalar_lea.vmem %s210_s29, 16  ;;  %s3707_s27 = scalar_lea.vmem %s210_s29, 32 }
  0x58   : > { %p3701_p8 = scmp.ne.s32.totalorder %s210_s29, %s3700_s13  ;;  %p3708_p11 = scmp.lt.s32.totalorder %s210_s29, %s210_s29 }
  0x59   : > { %p3709_p12 = scmp.lt.s32.totalorder %s3707_s27, %s3700_s13 }
  0x5a   : > { %p3703_p9 = pnand %p3701_p8, %p3815_p7 }
  0x5b   : > { %p3710_p2 = por %p3709_p12, %p3708_p11 }
  0x5c   : > { %p3704_p10 = pneg %p3703_p9 }
  0x5e   : > { %p3711_p3 = pnand %p3710_p2, %p3704_p10 }
  0x60   : > { %3714 = shalt.err (!%p3711_p3)
}
  0x61   : > { %3459 = dma.hbm_to_vmem [thread:$0]  (!%p3799_p5), %s4366_s4, 16, %s210_s29, [#allocation8]  }
  0x62   : > { %p4373_p13 = scmp.ne.s32.totalorder %s4370_s22, 0 }
  0x63   : > { %p4374_p0 = scmp.eq.s32.totalorder (!%p4373_p13), %s3782_s21, 0 }
  0x64   : > { %230 = sbr.rel (%p4373_p13) target bundleno = 885 (0x375), region = 40 }
  0x6b   : > { %3720 = dma.done.wait (%p4374_p0), [#allocation3], 4608   ;;  %p4375_p7 = pmov %p4374_p0 }
  0x6c   : > { %p4376_p1 = pmov %p4374_p0 }
  0x6d   : > { %3722 = vsyncadd (%p4375_p7), [#allocation3], 4294962688 }
  0x6e   : > { %3724 = dma.done.wait (%p4376_p1), [#allocation5], 9232   ;;  %p4377_p2 = pmov %p4374_p0 }
  0x6f   : > { %p4378_p3 = pmov %p4374_p0 }
  0x70   : > { %3726 = vsyncadd (%p4377_p2), [#allocation5], 4294958064 }
  0x71   : > { %3728 = dma.done.wait (%p4378_p3), [#allocation8], 16   ;;  %p4379_p5 = pmov %p4374_p0 }
  0x72   : > { %p270_p4 = scmp.lt.s32.totalorder %s3782_s21, 3  ;;  %v3741_v0 = vmov 0   ;;  %s3742_s14 = smov 64   ;;  %v3495_v4 = vld [vmem:[#allocation2] sm:$0xff]   ;;  %vm413_vm0 = vsmask.f32 3328 }
  0x73   : > { %3730 = vsyncadd (%p4379_p5), [#allocation8], 4294967280  ;;  %804 = vmatprep.subr.bf16.mxu1 %v3741_v0  ;;  %643 = vmatprep.subr.bf16.mxu0 %v3741_v0  ;;  %v3496_v7 = vld [vmem:[#allocation2 + $0x60] sm:$0xff]   ;;  %v3497_v9 = vld [vmem:[#allocation2 + $0x8] sm:$0xff]   ;;  %vm412_vm1 = vcmask 1043456   ;;  %vm439_vm3 = vcmask 523264  }
  0x74   : > { %s4385_s21 = smov (!%p270_p4, %s3782_s21), 3  ;;  %805 = vmatpush1.bf16.msra.mxu1 %v3495_v4  ;;  %644 = vmatpush1.bf16.msra.mxu0 %v3496_v7  ;;  %v3498_v11 = vld [vmem:[#allocation2 + $0x68] sm:$0xff]   ;;  %v3499_v13 = vld [vmem:[#allocation2 + $0x10] sm:$0xff]   ;;  %v3501_v17 = vld [vmem:[#allocation2 + $0x18] sm:$0xff]   ;;  %vm377_vm4 = vcmask 1040384   ;;  %vm2778_vm7 = vcmask 1041409  }
  0x75   : > { %s3154_s22 = sshll.u32 %s4385_s21, 5  ;;  %806 = vmatprep.subr.bf16.mxu1 %v3741_v0  ;;  %645 = vmatprep.subr.bf16.mxu0 %v3741_v0  ;;  %v3500_v15 = vld [vmem:[#allocation2 + $0x70] sm:$0xff]   ;;  %vm3963_vm2 = vmand %vm412_vm1, %vm413_vm0  ;;  %v3502_v23 = vld [vmem:[#allocation2 + $0x78] sm:$0xff]   ;;  %vm378_vm5 = vsmask.f32 256  ;;  %vm2781_vm8 = vcmask 1042434  }
  0x76   : > { %s274_s10 = scalar_lea.vmem %s4362_s0, %s3154_s22  ;;  %v3503_v24 = vld [vmem:[#allocation2 + $0x20] sm:$0xff]   ;;  %v3505_v32 = vld [vmem:[#allocation2 + $0x28] sm:$0xff]   ;;  %v3507_v42 = vld [vmem:[#allocation2 + $0x30] sm:$0xff]   ;;  %vm2784_vm9 = vcmask 1043459   ;;  %s3155_s15 = sshll.u32 %s4385_s21, 3 }
  0x77   : > { %v3487_v1 = vld [vmem:[%s274_s10] ss:$0 sps:$4 sm:$0xff]   ;;  %v3926_v2 = vld [vmem:[%s274_s10 + $0x8] ss:$0 sps:$4 sm:$0xff]   ;;  %v3929_v3 = vld [vmem:[%s274_s10 + $0x4] ss:$0 sps:$4 sm:$0xff]   ;;  %s4325_s21 = scalar_lea.vmem %s4367_s5, %s3155_s15 }
  0x78   : > { %423 = vrot.lane.b32.xlu0 %v3487_v1, %s3742_s14  ;;  %427 = vrot.lane.b32.xlu1 %v3926_v2, %s3742_s14  ;;  %v3933_v5 = vld [vmem:[%s274_s10 + $0xc] ss:$0 sps:$4 sm:$0xff]   ;;  %v3935_v6 = vld [vmem:[%s274_s10 + $0x10] ss:$0 sps:$4 sm:$0xff]   ;;  %v314_v10 = vshrl.u32 %v3487_v1, 16  ;;  %v317_v18 = vshll.u32 %v3487_v1, 16  ;;  %vm4068_vm6 = vmand %vm377_vm4, %vm378_vm5 }
  0x79   : > { %v3940_v8 = vld [vmem:[%s274_s10 + $0x14] ss:$0 sps:$4 sm:$0xff]   ;;  %v3944_v12 = vld [vmem:[%s274_s10 + $0x18] ss:$0 sps:$4 sm:$0xff]   ;;  %807 = vmatpush1.bf16.msra.mxu1 %v3497_v9  ;;  %v3947_v14 = vld [vmem:[%s274_s10 + $0x1c] ss:$0 sps:$4 sm:$0xff]   ;;  %646 = vmatpush1.bf16.msra.mxu0 %v3498_v11 }
  0x7a   : > { %808 = vmatprep.subr.bf16.mxu1 %v3741_v0  ;;  %v316_v16 = vrot.slane %v314_v10, 7  ;;  %647 = vmatprep.subr.bf16.mxu0 %v3741_v0  ;;  %v321_v19 = vshrl.u32 %v3929_v3, 16  ;;  %v388_v21 = vrot.slane %v317_v18, 1  ;;  %v338_v26 = vshll.u32 %v3933_v5, 16  ;;  %v3504_v29 = vld [vmem:[#allocation2 + $0x80] sm:$0xff]   ;;  %v3506_v39 = vld [vmem:[#allocation2 + $0x88] sm:$0xff]  }
  0x7b   : > { %v331_v31 = vshll.u32 %v3926_v2, 16  ;;  %v324_v33 = vshll.u32 %v3929_v3, 16  ;;  %v328_v34 = vshrl.u32 %v3926_v2, 16  ;;  %v335_v36 = vshrl.u32 %v3933_v5, 16  ;;  %v3508_v47 = vld [vmem:[#allocation2 + $0x90] sm:$0xff]   ;;  %v3509_v51 = vld [vmem:[#allocation2 + $0x38] sm:$0xff]  }
  0x7c   : > { %425 = vrot.lane.b32.xlu0 %v3929_v3, %s3742_s14  ;;  %429 = vrot.lane.b32.xlu1 %v3933_v5, %s3742_s14  ;;  %v3959_v20 = vor.u32 %v317_v18, %v316_v16  ;;  %v389_v25 = vor.u32 %v388_v21, %v314_v10  ;;  %v323_v28 = vrot.slane %v321_v19, 7  ;;  %v394_v41 = vrot.slane %v338_v26, 1  ;;  %v3510_v54 = vld [vmem:[#allocation2 + $0x98] sm:$0xff]   ;;  %v3511_v55 = vld [vmem:[#allocation2 + $0x40] sm:$0xff]   ;;  %v3513_v61 = vld [vmem:[#allocation2 + $0x48] sm:$0xff]  }
  0x7d   : > { %809 = vmatpush1.bf16.msra.mxu1 %v3499_v13  ;;  %648 = vmatpush1.bf16.msra.mxu0 %v3500_v15  ;;  %v392_v35 = vrot.slane %v331_v31, 1  ;;  %v390_v38 = vrot.slane %v324_v33, 1  ;;  %v345_v53 = vshll.u32 %v3935_v6, 16  ;;  %v342_v56 = vshrl.u32 %v3935_v6, 16  ;;  %v3512_v58 = vld [vmem:[#allocation2 + $0xa0] sm:$0xff]   ;;  %v3514_v13 = vld [vmem:[#allocation2 + $0xa8] sm:$0xff]  }
  0x7e   : > { %810 = vmatprep.subr.bf16.mxu1 %v3741_v0  ;;  %649 = vmatprep.subr.bf16.mxu0 %v3741_v0  ;;  %v415_v27 = vsel %vm3963_vm2, %v389_v25, 0  ;;  %v3984_v37 = vor.u32 %v324_v33, %v323_v28  ;;  %v395_v44 = vor.u32 %v394_v41, %v335_v36  ;;  %v352_v59 = vshll.u32 %v3940_v8, 16  ;;  %v3515_v16 = vld [vmem:[#allocation2 + $0x50] sm:$0xff]   ;;  %v3517_v28 = vld [vmem:[#allocation2 + $0x58] sm:$0xff]   ;;  %v3587_v22 = vld [vmem:[#allocation6 + $0x80] sm:$0xff]  }
  0x7f   : > { %v2990_v30 = vcombine.low %v3741_v0, %v415_v27  ;;  %v393_v40 = vor.u32 %v392_v35, %v328_v34  ;;  %v391_v43 = vor.u32 %v390_v38, %v321_v19  ;;  %v396_v57 = vrot.slane %v345_v53, 1  ;;  %v3516_v25 = vld [vmem:[#allocation2 + $0xb0] sm:$0xff]  }
  0x80   : > { %431 = vrot.lane.b32.xlu0 %v3935_v6, %s3742_s14  ;;  %433 = vrot.lane.b32.xlu1 %v3940_v8, %s3742_s14  ;;  %v4002_v48 = vsel %vm3963_vm2, %v395_v44, 0  ;;  %v359_v62 = vshll.u32 %v3944_v12, 16  ;;  %v349_v63 = vshrl.u32 %v3940_v8, 16  ;;  %v398_v1 = vrot.slane %v352_v59, 1  ;;  %v3588_v35 = vld [vmem:[#allocation6 + $0x88] sm:$0xff]  }
  0x81   : > { %811 = vmatpush1.bf16.msra.mxu1 %v3501_v17  ;;  %650 = vmatpush1.bf16.msra.mxu0 %v3502_v23  ;;  %v3996_v45 = vsel %vm3963_vm2, %v393_v40, 0  ;;  %v416_v46 = vsel %vm3963_vm2, %v391_v43, 0  ;;  %v397_v60 = vor.u32 %v396_v57, %v342_v56  ;;  %v356_v4 = vshrl.u32 %v3944_v12, 16 }
  0x82   : > { %812 = vmatprep.subr.bf16.mxu1 %v3741_v0  ;;  %651 = vmatprep.subr.bf16.mxu0 %v3741_v0  ;;  %v2966_v49 = vcombine.low %v415_v27, %v416_v46  ;;  %v4005_v50 = vcombine.low %v416_v46, %v3996_v45  ;;  %v2968_v52 = vcombine.low %v3996_v45, %v4002_v48  ;;  %v400_v9 = vrot.slane %v359_v62, 1 }
  0x83   : > { %3009 = vmatprep.mubr.msk.bf16.mxu1 %vm439_vm3, %v2990_v30  ;;  %v4027_v3 = vsel %vm3963_vm2, %v397_v60, 0  ;;  %v366_v10 = vshll.u32 %v3947_v14, 16  ;;  %v363_v11 = vshrl.u32 %v3947_v14, 16  ;;  %v399_v15 = vor.u32 %v398_v1, %v349_v63  ;;  %v3518_v30 = vld [vmem:[#allocation2 + $0xb8] sm:$0xff]   ;;  %v3520_v1 = vld [vmem:[#allocation2 + $0xc8] sm:$0xff]  }
  0x84   : > { %435 = vrot.lane.b32.xlu0 %v3944_v12, %s3742_s14  ;;  %437 = vrot.lane.b32.xlu1 %v3947_v14, %s3742_s14  ;;  %v4032_v7 = vcombine.low %v4002_v48, %v4027_v3  ;;  %v401_v18 = vor.u32 %v400_v9, %v356_v4  ;;  %v330_v33 = vrot.slane %v328_v34, 7  ;;  %v337_v38 = vrot.slane %v335_v36, 7  ;;  %v3521_v48 = vld [vmem:[#allocation2 + $0xd0] sm:$0xff]  }
  0x85   : > { %813 = vmatpush1.bf16.msra.mxu1 %v3503_v24  ;;  %652 = vmatpush1.bf16.msra.mxu0 %v3504_v29  ;;  %v402_v17 = vrot.slane %v366_v10, 1  ;;  %v4044_v19 = vsel %vm3963_vm2, %v399_v15, 0  ;;  %v344_v40 = vrot.slane %v342_v56, 7  ;;  %v380_v41 = vsel %vm4068_vm6, 0, %v3959_v20 }
  0x86   : > { %814 = vmatprep.subr.bf16.mxu1 %v3741_v0  ;;  %653 = vmatprep.subr.bf16.mxu0 %v3741_v0  ;;  %v2970_v21 = vcombine.low %v4027_v3, %v4044_v19  ;;  %v4050_v23 = vsel %vm3963_vm2, %v401_v18, 0  ;;  %v351_v43 = vrot.slane %v349_v63, 7  ;;  %v381_v20 = vsel %vm4068_vm6, 0, %v3984_v37  ;;  %v3522_v18 = vld [vmem:[#allocation2 + $0xd8] sm:$0xff]   ;;  %v3525_v3 = vld [vmem:[#allocation2 + $0xf0] sm:$0xff]  }
  0x87   : > { %2985 = vmatprep.mubr.msk.bf16.mxu0 %vm439_vm3, %v2966_v49  ;;  %v403_v24 = vor.u32 %v402_v17, %v363_v11  ;;  %v4054_v27 = vcombine.low %v4044_v19, %v4050_v23  ;;  %v347_v2 = vor.u32 %v345_v53, %v344_v40  ;;  %v358_v36 = vrot.slane %v356_v4, 7  ;;  %v3519_v53 = vld [vmem:[#allocation2 + $0xc0] sm:$0xff]   ;;  %v3526_v19 = vld [vmem:[#allocation2 + $0xf8] sm:$0xff]  }
  0x88   : > { %v354_v49 = vor.u32 %v352_v59, %v351_v43  ;;  %v3534_v40 = vld [vmem:[#allocation6 + $0xc0] sm:$0xff]   ;;  %v3540_v43 = vld [vmem:[#allocation6 + $0x110] sm:$0xff]  }
  0x89   : > { %815 = vmatpush1.bf16.msra.mxu1 %v3505_v32  ;;  %654 = vmatpush1.bf16.msra.mxu0 %v3506_v39  ;;  %v4059_v29 = vsel %vm3963_vm2, %v403_v24, 0  ;;  %v333_v39 = vor.u32 %v331_v31, %v330_v33  ;;  %v384_v37 = vsel %vm4068_vm6, 0, %v347_v2  ;;  %v361_v8 = vor.u32 %v359_v62, %v358_v36  ;;  %v3523_v24 = vld [vmem:[#allocation2 + $0xe0] sm:$0xff]  }
  0x8a   : > { %816 = vmatprep.subr.bf16.mxu1 %v3741_v0  ;;  %655 = vmatprep.subr.bf16.mxu0 %v3741_v0  ;;  %v2972_v32 = vcombine.low %v4050_v23, %v4059_v29  ;;  %v385_v60 = vsel %vm4068_vm6, 0, %v354_v49  ;;  %v3528_v23 = vld [vmem:[#allocation2 + $0x108] sm:$0xff]   ;;  %v3545_v2 = vld [vmem:[#allocation6 + $0x18] sm:$0xff]  }
  0x8b   : > { %v382_v44 = vsel %vm4068_vm6, 0, %v333_v39  ;;  %v386_v14 = vsel %vm4068_vm6, 0, %v361_v8  ;;  %v3531_v33 = vld [vmem:[#allocation6 + $0x40] sm:$0xff]   ;;  %v3551_v49 = vld [vmem:[#allocation6 + $0x68] sm:$0xff]   ;;  %v3561_v8 = vld [vmem:[#allocation6 + $0x38] sm:$0xff]  }
  0x8c   : > { %v3533_v39 = vld [vmem:[#allocation6] sm:$0xff]  }
  0x8d   : > { %817 = vmatpush1.bf16.msra.mxu1 %v3507_v42  ;;  %656 = vmatpush1.bf16.msra.mxu0 %v3508_v47  ;;  %v340_v42 = vor.u32 %v338_v26, %v337_v38  ;;  %v3532_v38 = vld [vmem:[#allocation6 + $0x100] sm:$0xff]  }
  0x8e   : > { %818 = vmatprep.subr.bf16.mxu1 %v3741_v0  ;;  %657 = vmatprep.subr.bf16.mxu0 %v3741_v0  ;;  %v3548_v36 = vld [vmem:[#allocation6 + $0x120] sm:$0xff]  }
  0x8f   : > { %v383_v26 = vsel %vm4068_vm6, 0, %v340_v42  ;;  %v3536_v42 = vld [vmem:[#allocation6 + $0x108] sm:$0xff]  }
  0x91   : > { %819 = vmatpush1.bf16.msra.mxu1 %v3509_v51  ;;  %658 = vmatpush1.bf16.msra.mxu0 %v3510_v54  ;;  %v365_v51 = vrot.slane %v363_v11, 7 }
  0x92   : > { %820 = vmatprep.subr.bf16.mxu1 %v3741_v0  ;;  %659 = vmatprep.subr.bf16.mxu0 %v3741_v0 }
  0x95   : > { %821 = vmatpush1.bf16.msra.mxu1 %v3511_v55  ;;  %660 = vmatpush1.bf16.msra.mxu0 %v3512_v58 }
  0x96   : > { %822 = vmatprep.subr.bf16.mxu1 %v3741_v0  ;;  %661 = vmatprep.subr.bf16.mxu0 %v3741_v0 }
  0x99   : > { %823 = vmatpush1.bf16.msra.mxu1 %v3513_v61  ;;  %662 = vmatpush1.bf16.msra.mxu0 %v3514_v13  ;;  %v368_v61 = vor.u32 %v366_v10, %v365_v51  ;;  %v3552_v51 = vld [vmem:[#allocation6 + $0x128] sm:$0xff]  }
  0x9a   : > { %824 = vmatprep.subr.bf16.mxu1 %v3741_v0  ;;  %663 = vmatprep.subr.bf16.mxu0 %v3741_v0 }
  0x9b   : > { %v387_v11 = vsel %vm4068_vm6, 0, %v368_v61  ;;  %v4156_v61 = vld [vmem:[#allocation6 + $0x140] sm:$0xff]  }
  0x9d   : > { %825 = vmatpush1.bf16.msra.mxu1 %v3515_v16  ;;  %664 = vmatpush1.bf16.msra.mxu0 %v3516_v25  ;;  %v3524_v25 = vld [vmem:[#allocation2 + $0xe8] sm:$0xff]  }
  0x9e   : > { %826 = vmatprep.subr.bf16.mxu1 %v3741_v0  ;;  %665 = vmatprep.subr.bf16.mxu0 %v3741_v0 }
  0xa1   : > { %827 = vmatpush1.bf16.msra.mxu1 %v3517_v28  ;;  %666 = vmatpush1.bf16.msra.mxu0 %v3518_v30  ;;  %v3529_v28 = vld [vmem:[#allocation2 + $0x110] sm:$0xff]   ;;  %v3530_v30 = vld [vmem:[#allocation2 + $0x118] sm:$0xff]  }
  0xa2   : > { %972 = vmatprep.subr.bf16.mxu0 %v3741_v0  ;;  %3163 = vmatprep.subr.bf16.mxu1 %v3532_v38 }
  0xea   : > { %v424_v34 = vpop.permute.xlu0 %423  ;;  %v428_v47 = vpop.permute.xlu1 %427 }
  0xeb   : > { %v442_v46 = vsel %vm439_vm3, %v380_v41, %v424_v34  ;;  %v448_v5 = vsel %vm439_vm3, %v382_v44, %v428_v47  ;;  %v3535_v41 = vld [vmem:[#allocation6 + $0x48] sm:$0xff]   ;;  %v3541_v34 = vld [vmem:[#allocation6 + $0x10] sm:$0xff]   ;;  %v3544_v47 = vld [vmem:[#allocation6 + $0x118] sm:$0xff]  }
  0xec   : > { %v2989_v31 = vcombine.low %v3741_v0, %v442_v46  ;;  %v3542_v44 = vld [vmem:[#allocation6 + $0xd0] sm:$0xff]  }
  0xee   : > { %v426_v54 = vpop.permute.xlu0 %425  ;;  %837 = vmatmul.mubr.bf16.vlgmr.msra.gmra.mrb[0].mxu1 %v2989_v31  ;;  %v430_v55 = vpop.permute.xlu1 %429  ;;  %v3546_v31 = vld [vmem:[#allocation6 + $0xd8] sm:$0xff]  }
  0xef   : > { %v445_v6 = vsel %vm439_vm3, %v381_v20, %v426_v54  ;;  %3010 = vmatprep.mubr.msk.bf16.mxu1 %vm439_vm3, %v4005_v50  ;;  %v451_v58 = vsel %vm439_vm3, %v383_v26, %v430_v55  ;;  %3164 = vmatpush3.bf16.msra.mxu1 %v3534_v40  ;;  %v3547_v20 = vld [vmem:[#allocation6 + $0x60] sm:$0xff]   ;;  %v3553_v54 = vld [vmem:[#allocation6 + $0x28] sm:$0xff]   ;;  %v3556_v55 = vld [vmem:[#allocation6 + $0x130] sm:$0xff]  }
  0xf0   : > { %v2965_v56 = vcombine.low %v442_v46, %v445_v6  ;;  %v4100_v57 = vcombine.low %v445_v6, %v448_v5  ;;  %v2967_v59 = vcombine.low %v448_v5, %v451_v58  ;;  %3165 = vmatprep.subr.bf16.mxu1 %v3536_v42  ;;  %v3543_v46 = vld [vmem:[#allocation6 + $0x58] sm:$0xff]   ;;  %v3549_v5 = vld [vmem:[#allocation6 + $0x20] sm:$0xff]   ;;  %v3554_v6 = vld [vmem:[#allocation6 + $0xe8] sm:$0xff]  }
  0xf1   : > { %v3550_v26 = vld [vmem:[#allocation6 + $0xe0] sm:$0xff]  }
  0xf2   : > { %676 = vmatmul.mubr.bf16.vlgmr.msra.gmra.mrb[0].mxu0 %v2965_v56  ;;  %v432_v63 = vpop.permute.xlu0 %431  ;;  %v434_v12 = vpop.permute.xlu1 %433  ;;  %v3558_v56 = vld [vmem:[#allocation6 + $0xf0] sm:$0xff]  }
  0xf3   : > { %973 = vmatpush1.bf16.msra.mxu0 %v3519_v53  ;;  %2986 = vmatprep.mubr.msk.bf16.mxu0 %vm439_vm3, %v2968_v52  ;;  %v454_v4 = vsel %vm439_vm3, %v384_v37, %v432_v63  ;;  %v457_v9 = vsel %vm439_vm3, %v385_v60, %v434_v12  ;;  %v3555_v53 = vld [vmem:[#allocation6 + $0x70] sm:$0xff]   ;;  %v3563_v60 = vld [vmem:[#allocation6 + $0x1c0] sm:$0xff]  }
  0xf4   : > { %974 = vmatprep.subr.bf16.mxu0 %v3741_v0  ;;  %v2993_v62 = vcombine.low %v451_v58, %v454_v4  ;;  %v2969_v10 = vcombine.low %v454_v4, %v457_v9  ;;  %v3557_v37 = vld [vmem:[#allocation6 + $0x30] sm:$0xff]   ;;  %v3560_v58 = vld [vmem:[#allocation6 + $0x138] sm:$0xff]  }
  0xf6   : > { %845 = vmatmul.mubr.bf16.gmra.mrb[4].mxu1 %v4100_v57  ;;  %v436_v45 = vpop.permute.xlu0 %435  ;;  %v438_v13 = vpop.permute.xlu1 %437 }
  0xf7   : > { %975 = vmatpush1.bf16.msra.mxu0 %v3520_v1  ;;  %3011 = vmatprep.mubr.msk.bf16.mxu1 %vm439_vm3, %v4032_v7  ;;  %v460_v52 = vsel %vm439_vm3, %v386_v14, %v436_v45  ;;  %v463_v16 = vsel %vm439_vm3, %v387_v11, %v438_v13 }
  0xf8   : > { %976 = vmatprep.subr.bf16.mxu0 %v3741_v0  ;;  %v2995_v15 = vcombine.low %v457_v9, %v460_v52  ;;  %v2971_v17 = vcombine.low %v460_v52, %v463_v16 }
  0xfa   : > { %684 = vmatmul.mubr.bf16.gmra.mrb[4].mxu0 %v2967_v59  ;;  %v3562_v59 = vld [vmem:[#allocation6 + $0xf8] sm:$0xff]  }
  0xfb   : > { %977 = vmatpush1.bf16.msra.mxu0 %v3521_v48  ;;  %2987 = vmatprep.mubr.msk.bf16.mxu0 %vm439_vm3, %v2970_v21  ;;  %v3527_v21 = vld [vmem:[#allocation2 + $0x100] sm:$0xff]  }
  0xfc   : > { %978 = vmatprep.subr.bf16.mxu0 %v3741_v0 }
  0xfe   : > { %853 = vmatmul.mubr.bf16.gmra.mrb[8].mxu1 %v2993_v62 }
  0xff   : > { %979 = vmatpush1.bf16.msra.mxu0 %v3522_v18  ;;  %3012 = vmatprep.mubr.msk.bf16.mxu1 %vm439_vm3, %v4054_v27 }
 0x100   : > { %980 = vmatprep.subr.bf16.mxu0 %v3741_v0 }
 0x102   : > { %692 = vmatmul.mubr.bf16.gmra.mrb[8].mxu0 %v2969_v10 }
 0x103   : > { %981 = vmatpush1.bf16.msra.mxu0 %v3523_v24  ;;  %2988 = vmatprep.mubr.msk.bf16.mxu0 %vm439_vm3, %v2972_v32  ;;  %v3013_v32 = vcombine.low %v463_v16, %v3741_v0 }
 0x104   : > { %982 = vmatprep.subr.bf16.mxu0 %v3741_v0 }
 0x106   : > { %861 = vmatmul.mubr.bf16.gmra.mrb[12].mxu1 %v2995_v15 }
 0x107   : > { %983 = vmatpush1.bf16.msra.mxu0 %v3524_v25 }
 0x108   : > { %984 = vmatprep.subr.bf16.mxu0 %v3741_v0 }
 0x10a   : > { %700 = vmatmul.mubr.bf16.gmra.mrb[12].mxu0 %v2971_v17 }
 0x10b   : > { %985 = vmatpush1.bf16.msra.mxu0 %v3525_v3  ;;  %3027 = vmatprep.mubr.msk.bf16.mxu0 %vm439_vm3, %v4005_v50  ;;  %v3014_v50 = vcombine.low %v4059_v29, %v3741_v0  ;;  %v3539_v29 = vld [vmem:[#allocation6 + $0x50] sm:$0xff]  }
 0x10c   : > { %986 = vmatprep.subr.bf16.mxu0 %v3741_v0 }
 0x10f   : > { %987 = vmatpush1.bf16.msra.mxu0 %v3526_v19 }
 0x110   : > { %988 = vmatprep.subr.bf16.mxu0 %v3741_v0 }
 0x113   : > { %989 = vmatpush1.bf16.msra.mxu0 %v3527_v21 }
 0x114   : > { %990 = vmatprep.subr.bf16.mxu0 %v3741_v0 }
 0x117   : > { %991 = vmatpush1.bf16.msra.mxu0 %v3528_v23 }
 0x118   : > { %992 = vmatprep.subr.bf16.mxu0 %v3741_v0 }
 0x11b   : > { %993 = vmatpush1.bf16.msra.mxu0 %v3529_v28 }
 0x11c   : > { %994 = vmatprep.subr.bf16.mxu0 %v3741_v0 }
 0x11f   : > { %995 = vmatpush1.bf16.msra.mxu0 %v3530_v30 }
 0x120   : > { %3215 = vmatprep.subr.bf16.mxu0 %v3531_v33 }
 0x122   : > { %1005 = vmatmul.mubr.bf16.vlgmr.msra.gmra.mrb[16].mxu0 %v4100_v57  ;;  %v3559_v57 = vld [vmem:[#allocation6 + $0x78] sm:$0xff]  }
 0x123   : > { %3028 = vmatprep.mubr.msk.bf16.mxu0 %vm439_vm3, %v4032_v7  ;;  %3216 = vmatpush3.bf16.msra.mxu0 %v3533_v39  ;;  %v3537_v7 = vld [vmem:[#allocation6 + $0x8] sm:$0xff]  }
 0x124   : > { %3217 = vmatprep.subr.bf16.mxu0 %v3535_v41 }
 0x127   : > { %3218 = vmatpush3.bf16.msra.mxu0 %v3537_v7 }
 0x128   : > { %3219 = vmatprep.subr.bf16.mxu0 %v3539_v29 }
 0x12a   : > { %1013 = vmatmul.mubr.bf16.gmra.mrb[20].mxu0 %v2993_v62 }
 0x12b   : > { %3029 = vmatprep.mubr.msk.bf16.mxu0 %vm439_vm3, %v4054_v27  ;;  %v3538_v27 = vld [vmem:[#allocation6 + $0xc8] sm:$0xff]   ;;  %3220 = vmatpush3.bf16.msra.mxu0 %v3541_v34 }
 0x12c   : > { %3166 = vmatpush3.bf16.msra.mxu1 %v3538_v27  ;;  %3221 = vmatprep.subr.bf16.mxu0 %v3543_v46 }
 0x12d   : > { %3167 = vmatprep.subr.bf16.mxu1 %v3540_v43 }
 0x12f   : > { %3222 = vmatpush3.bf16.msra.mxu0 %v3545_v2  ;;  %v4167_v2 = vld [vmem:[#allocation4] ss:$0 sm:$0xff] }
 0x130   : > { %3168 = vmatpush3.bf16.msra.mxu1 %v3542_v44  ;;  %3223 = vmatprep.subr.bf16.mxu0 %v3547_v20 }
 0x131   : > { %3169 = vmatprep.subr.bf16.mxu1 %v3544_v47 }
 0x132   : > { %1021 = vmatmul.mubr.bf16.gmra.mrb[24].mxu0 %v2995_v15 }
 0x133   : > { %3030 = vmatprep.mubr.msk.bf16.mxu0 %vm439_vm3, %v3014_v50  ;;  %3224 = vmatpush3.bf16.msra.mxu0 %v3549_v5 }
 0x134   : > { %3170 = vmatpush3.bf16.msra.mxu1 %v3546_v31  ;;  %3225 = vmatprep.subr.bf16.mxu0 %v3551_v49 }
 0x135   : > { %3171 = vmatprep.subr.bf16.mxu1 %v3548_v36 }
 0x137   : > { %3226 = vmatpush3.bf16.msra.mxu0 %v3553_v54 }
 0x138   : > { %3172 = vmatpush3.bf16.msra.mxu1 %v3550_v26  ;;  %3227 = vmatprep.subr.bf16.mxu0 %v3555_v53 }
 0x139   : > { %3173 = vmatprep.subr.bf16.mxu1 %v3552_v51 }
 0x13a   : > { %1029 = vmatmul.mubr.bf16.gmra.mrb[28].mxu0 %v3013_v32 }
 0x13b   : > { %3228 = vmatpush3.bf16.msra.mxu0 %v3557_v37 }
 0x13c   : > { %3174 = vmatpush3.bf16.msra.mxu1 %v3554_v6  ;;  %3229 = vmatprep.subr.bf16.mxu0 %v3559_v57 }
 0x13d   : > { %3175 = vmatprep.subr.bf16.mxu1 %v3556_v55 }
 0x13f   : > { %3230 = vmatpush3.bf16.msra.mxu0 %v3561_v8 }
 0x140   : > { %3176 = vmatpush3.bf16.msra.mxu1 %v3558_v56  ;;  %3267 = vmatprep.subr.bf16.mxu0 %v3563_v60 }
 0x141   : > { %3177 = vmatprep.subr.bf16.mxu1 %v3560_v58 }
 0x144   : > { %3178 = vmatpush3.bf16.msra.mxu1 %v3562_v59 }
 0x145   : > { %3319 = vmatprep.subr.bf16.mxu1 %v4156_v61 }
 0x1c1   : > { %v838_v63 = vpop.f32.mrb[0].mxu1 }
 0x1c2   : > { %v840_v1 = vpop.f32.mrb[1].mxu1 }
 0x1c3   : > { %v841_v4 = vpop.f32.mrb[2].mxu1 }
 0x1c4   : > { %v843_v12 = vpop.f32.mrb[3].mxu1 }
 0x1c5   : > { %v677_v62 = vpop.f32.mrb[0].mxu0 }
 0x1c6   : > { %v839_v9 = vadd.f32 %v838_v63, %v677_v62  ;;  %v679_v14 = vpop.f32.mrb[1].mxu0 }
 0x1c7   : > { %v680_v10 = vpop.f32.mrb[2].mxu0 }
 0x1c8   : > { %v842_v11 = vadd.f32 %v841_v4, %v680_v10  ;;  %v682_v45 = vpop.f32.mrb[3].mxu0 }
 0x1c9   : > { %v846_v48 = vpop.f32.mrb[4].mxu1 }
 0x1ca   : > { %v848_v52 = vpop.f32.mrb[5].mxu1 }
 0x1cb   : > { %v849_v13 = vpop.f32.mrb[6].mxu1 }
 0x1cc   : > { %v851_v15 = vpop.f32.mrb[7].mxu1 }
 0x1cd   : > { %v685_v16 = vpop.f32.mrb[4].mxu0 }
 0x1ce   : > { %v847_v17 = vadd.f32 %v846_v48, %v685_v16  ;;  %v687_v18 = vpop.f32.mrb[5].mxu0 }
 0x1cf   : > { %v688_v24 = vpop.f32.mrb[6].mxu0 }
 0x1d0   : > { %v850_v25 = vadd.f32 %v849_v13, %v688_v24  ;;  %v690_v3 = vpop.f32.mrb[7].mxu0 }
 0x1d1   : > { %v854_v19 = vpop.f32.mrb[8].mxu1  ;;  %v3565_v3 = vld [vmem:[#allocation6 + $0x180] sm:$0xff]  }
 0x1d2   : > { %v856_v21 = vpop.f32.mrb[9].mxu1 }
 0x1d3   : > { %v857_v23 = vpop.f32.mrb[10].mxu1 }
 0x1d4   : > { %v859_v28 = vpop.f32.mrb[11].mxu1 }
 0x1d5   : > { %v693_v30 = vpop.f32.mrb[8].mxu0 }
 0x1d6   : > { %v4159_v50 = vadd.f32 %v854_v19, %v693_v30  ;;  %v695_v32 = vpop.f32.mrb[9].mxu0 }
 0x1d7   : > { %v696_v33 = vpop.f32.mrb[10].mxu0 }
 0x1d8   : > { %v4161_v38 = vadd.f32 %v857_v23, %v696_v33  ;;  %v698_v39 = vpop.f32.mrb[11].mxu0  ;;  %v3566_v23 = vld [vmem:[#allocation6 + $0x1c8] sm:$0xff]  }
 0x1d9   : > { %v862_v40 = vpop.f32.mrb[12].mxu1 }
 0x1da   : > { %v864_v41 = vpop.f32.mrb[13].mxu1 }
 0x1db   : > { %v865_v42 = vpop.f32.mrb[14].mxu1 }
 0x1dc   : > { %v867_v7 = vpop.f32.mrb[15].mxu1 }
 0x1dd   : > { %v701_v27 = vpop.f32.mrb[12].mxu0 }
 0x1de   : > { %v4163_v29 = vadd.f32 %v862_v40, %v701_v27  ;;  %v703_v43 = vpop.f32.mrb[13].mxu0 }
 0x1df   : > { %v704_v34 = vpop.f32.mrb[14].mxu0 }
 0x1e0   : > { %v4165_v44 = vadd.f32 %v865_v42, %v704_v34  ;;  %v706_v46 = vpop.f32.mrb[15].mxu0  ;;  %v3567_v34 = vld [vmem:[#allocation6 + $0x148] sm:$0xff]  }
 0x1f5   : > { %v1006_v47 = vpop.f32.mrb[16].mxu0 }
 0x1f6   : > { %v1037_v31 = vadd.f32 %v1006_v47, %v839_v9  ;;  %v1008_v20 = vpop.f32.mrb[17].mxu0 }
 0x1f7   : > { %v1009_v36 = vpop.f32.mrb[18].mxu0  ;;  %v3568_v20 = vld [vmem:[#allocation6 + $0x188] sm:$0xff]  }
 0x1f8   : > { %v1052_v5 = vadd.f32 %v4167_v2, %v1037_v31  ;;  %v1038_v26 = vadd.f32 %v1009_v36, %v842_v11  ;;  %v1011_v49 = vpop.f32.mrb[19].mxu0 }
 0x1f9   : > { %v3569_v49 = vld [vmem:[#allocation6 + $0x1d0] sm:$0xff]  }
 0x1fa   : > { %v1060_v51 = vmax.f32 %v1052_v5, 0.0  ;;  %v1053_v54 = vadd.f32 %v4167_v2, %v1038_v26 }
 0x1fc   : > { %v1068_v6 = vpack.c.bf16 %v1060_v51, %v1060_v51  ;;  %v1061_v53 = vmax.f32 %v1053_v54, 0.0 }
 0x1fd   : > { %v1014_v55 = vpop.f32.mrb[20].mxu0 }
 0x1fe   : > { %v1077_v37 = vshrl.u32 %v1068_v6, 16  ;;  %v1080_v56 = vshll.u32 %v1068_v6, 16  ;;  %v1069_v57 = vpack.c.bf16 %v1061_v53, %v1061_v53  ;;  %v1039_v58 = vadd.f32 %v1014_v55, %v847_v17  ;;  %v1016_v8 = vpop.f32.mrb[21].mxu0 }
 0x1ff   : > { %v1017_v59 = vpop.f32.mrb[22].mxu0  ;;  %v3156_v60 = vpack.c.bf16 %v1061_v53, %v1060_v51  ;;  %v3069_v63 = vcombine.low %v3741_v0, %v1068_v6 }
 0x200   : > { %v1079_v1 = vrot.slane %v1077_v37, 7  ;;  %v1084_v4 = vshrl.u32 %v1069_v57, 16  ;;  %v1087_v12 = vshll.u32 %v1069_v57, 16  ;;  %v1054_v62 = vadd.f32 %v4167_v2, %v1039_v58  ;;  %v1019_v9 = vpop.f32.mrb[23].mxu0 }
 0x201   : > { %v1040_v14 = vadd.f32 %v1017_v59, %v850_v25  ;;  %1525 = vmatprep.mubr.bf16.mxu1 %v3156_v60  ;;  %1823 = vmatprep.mubr.bf16.mxu0 %v3069_v63  ;;  %v1148_v10 = vrot.slane %v1080_v56, 1  ;;  %v3571_v63 = vld [vmem:[#allocation6 + $0x190] sm:$0xff]  }
 0x202   : > { %v1082_v11 = vor.u32 %v1080_v56, %v1079_v1  ;;  %v1086_v45 = vrot.slane %v1084_v4, 7  ;;  %v1062_v48 = vmax.f32 %v1054_v62, 0.0  ;;  %v1150_v52 = vrot.slane %v1087_v12, 1 }
 0x203   : > { %v1055_v13 = vadd.f32 %v4167_v2, %v1040_v14  ;;  %v1149_v15 = vor.u32 %v1148_v10, %v1077_v37  ;;  %v3570_v37 = vld [vmem:[#allocation6 + $0x150] sm:$0xff]  }
 0x204   : > { %v1089_v16 = vor.u32 %v1087_v12, %v1086_v45  ;;  %v1070_v17 = vpack.c.bf16 %v1062_v48, %v1062_v48  ;;  %v1140_v18 = vsel %vm4068_vm6, 0, %v1082_v11  ;;  %v4176_v24 = vpack.c.bf16 %v1062_v48, %v1061_v53  ;;  %v3572_v12 = vld [vmem:[#allocation6 + $0x1d8] sm:$0xff]  }
 0x205   : > { %v1063_v19 = vmax.f32 %v1055_v13, 0.0  ;;  %v1022_v25 = vpop.f32.mrb[24].mxu0  ;;  %v3068_v21 = vcombine.low %v3741_v0, %v1140_v18  ;;  %v1151_v28 = vor.u32 %v1150_v52, %v1084_v4  ;;  %v4181_v30 = vsel %vm3963_vm2, %v1149_v15, 0 }
 0x206   : > { %v1091_v32 = vshrl.u32 %v1070_v17, 16  ;;  %v1041_v33 = vadd.f32 %v1022_v25, %v4159_v50  ;;  %v1024_v39 = vpop.f32.mrb[25].mxu0  ;;  %v1141_v40 = vsel %vm4068_vm6, 0, %v1089_v16  ;;  %v1094_v41 = vshll.u32 %v1070_v17, 16 }
 0x207   : > { %v1071_v42 = vpack.c.bf16 %v1063_v19, %v1063_v19  ;;  %v1025_v7 = vpop.f32.mrb[26].mxu0  ;;  %1824 = vmatmul.mubr.bf16.vlgmr.msra.gmra.mrb[32].mxu0 %v3068_v21  ;;  %v3032_v27 = vcombine.low %v1140_v18, %v1141_v40  ;;  %v3157_v43 = vpack.c.bf16 %v1063_v19, %v1062_v48  ;;  %v4188_v46 = vsel %vm3963_vm2, %v1151_v28, 0  ;;  %v3573_v21 = vld [vmem:[#allocation6 + $0x158] sm:$0xff]  }
 0x208   : > { %v1056_v47 = vadd.f32 %v4167_v2, %v1041_v33  ;;  %v1042_v31 = vadd.f32 %v1025_v7, %v4161_v38  ;;  %v1027_v50 = vpop.f32.mrb[27].mxu0  ;;  %1831 = vmatprep.mubr.bf16.mxu0 %v4176_v24  ;;  %3268 = vmatpush3.bf16.msra.mxu0 %v3565_v3  ;;  %v1093_v36 = vrot.slane %v1091_v32, 7  ;;  %v1152_v5 = vrot.slane %v1094_v41, 1 }
 0x209   : > { %v1098_v26 = vshrl.u32 %v1071_v42, 16  ;;  %1526 = vmatmul.mubr.bf16.vlgmr.msra.gmra.mrb[16].mxu1 %v3032_v27  ;;  %3269 = vmatprep.subr.bf16.mxu0 %v3566_v23  ;;  %v1101_v51 = vshll.u32 %v1071_v42, 16  ;;  %v3034_v54 = vcombine.low %v4181_v30, %v4188_v46  ;;  %v3574_v23 = vld [vmem:[#allocation6 + $0x198] sm:$0xff]  }
 0x20a   : > { %v1064_v6 = vmax.f32 %v1056_v47, 0.0  ;;  %v1057_v53 = vadd.f32 %v4167_v2, %v1042_v31  ;;  %3320 = vmatpush3.bf16.msra.mxu1 %v4156_v61  ;;  %1533 = vmatprep.mubr.bf16.mxu1 %v3157_v43  ;;  %v1096_v38 = vor.u32 %v1094_v41, %v1093_v36  ;;  %v1153_v55 = vor.u32 %v1152_v5, %v1091_v32  ;;  %v3575_v32 = vld [vmem:[#allocation6 + $0x1e0] sm:$0xff]  }
 0x20b   : > { %3321 = vmatprep.subr.bf16.mxu1 %v3567_v34  ;;  %v1100_v56 = vrot.slane %v1098_v26, 7  ;;  %v1154_v57 = vrot.slane %v1101_v51, 1  ;;  %v3576_v31 = vld [vmem:[#allocation6 + $0x160] sm:$0xff]  }
 0x20c   : > { %v1072_v58 = vpack.c.bf16 %v1064_v6, %v1064_v6  ;;  %v1065_v8 = vmax.f32 %v1057_v53, 0.0  ;;  %3270 = vmatpush3.bf16.msra.mxu0 %v3568_v20  ;;  %v1142_v59 = vsel %vm4068_vm6, 0, %v1096_v38  ;;  %v4199_v60 = vpack.c.bf16 %v1064_v6, %v1063_v19  ;;  %v3578_v38 = vld [vmem:[#allocation6 + $0x1e8] sm:$0xff]  }
 0x20d   : > { %v1030_v1 = vpop.f32.mrb[28].mxu0  ;;  %v4201_v4 = vcombine.low %v1141_v40, %v1142_v59  ;;  %3271 = vmatprep.subr.bf16.mxu0 %v3569_v49  ;;  %v1103_v61 = vor.u32 %v1101_v51, %v1100_v56  ;;  %v1155_v62 = vor.u32 %v1154_v57, %v1098_v26  ;;  %v4205_v9 = vsel %vm3963_vm2, %v1153_v55, 0 }
 0x20e   : > { %v1105_v14 = vshrl.u32 %v1072_v58, 16  ;;  %v1073_v10 = vpack.c.bf16 %v1065_v8, %v1065_v8  ;;  %v1043_v11 = vadd.f32 %v1030_v1, %v4163_v29  ;;  %3322 = vmatpush3.bf16.msra.mxu1 %v3567_v34  ;;  %v1032_v45 = vpop.f32.mrb[29].mxu0  ;;  %v3158_v48 = vpack.c.bf16 %v1065_v8, %v1064_v6 }
 0x20f   : > { %v1033_v52 = vpop.f32.mrb[30].mxu0  ;;  %1832 = vmatmul.mubr.bf16.gmra.mrb[36].mxu0 %v4201_v4  ;;  %3323 = vmatprep.subr.bf16.mxu1 %v3570_v37  ;;  %v1143_v13 = vsel %vm4068_vm6, 0, %v1103_v61  ;;  %v1108_v15 = vshll.u32 %v1072_v58, 16  ;;  %v4213_v16 = vsel %vm3963_vm2, %v1155_v62, 0  ;;  %v4217_v17 = vcombine.low %v4188_v46, %v4205_v9  ;;  %v3580_v61 = vld [vmem:[#allocation6 + $0x1a8] sm:$0xff]   ;;  %v3590_v46 = vld [vmem:[#allocation6 + $0x98] sm:$0xff]  }
 0x210   : > { %v1112_v29 = vshrl.u32 %v1073_v10, 16  ;;  %v1058_v18 = vadd.f32 %v4167_v2, %v1043_v11  ;;  %v1044_v3 = vadd.f32 %v1033_v52, %v4165_v44  ;;  %v1035_v19 = vpop.f32.mrb[31].mxu0  ;;  %1839 = vmatprep.mubr.bf16.mxu0 %v4199_v60  ;;  %3272 = vmatpush3.bf16.msra.mxu0 %v3571_v63  ;;  %v3035_v25 = vcombine.low %v1142_v59, %v1143_v13 }
 0x211   : > { %3273 = vmatprep.subr.bf16.mxu0 %v3572_v12  ;;  %v1107_v28 = vrot.slane %v1105_v14, 7  ;;  %v1115_v33 = vshll.u32 %v1073_v10, 16  ;;  %v3037_v39 = vcombine.low %v4205_v9, %v4213_v16  ;;  %v1156_v40 = vrot.slane %v1108_v15, 1  ;;  %v3581_v10 = vld [vmem:[#allocation6 + $0x1f0] sm:$0xff]   ;;  %v3592_v9 = vld [vmem:[#allocation6 + $0xa8] sm:$0xff]  }
 0x212   : > { %v1066_v41 = vmax.f32 %v1058_v18, 0.0  ;;  %v1059_v42 = vadd.f32 %v4167_v2, %v1044_v3  ;;  %1534 = vmatmul.mubr.bf16.gmra.mrb[20].mxu1 %v3035_v25  ;;  %v1114_v44 = vrot.slane %v1112_v29, 7  ;;  %v3577_v2 = vld [vmem:[#allocation6 + $0x1a0] sm:$0xff]   ;;  %v3583_v3 = vld [vmem:[#allocation6 + $0x1b0] sm:$0xff]  }
 0x213   : > { %3324 = vmatpush3.bf16.msra.mxu1 %v3570_v37  ;;  %1541 = vmatprep.mubr.bf16.mxu1 %v3158_v48  ;;  %v1110_v7 = vor.u32 %v1108_v15, %v1107_v28  ;;  %v1157_v27 = vor.u32 %v1156_v40, %v1105_v14  ;;  %v1158_v43 = vrot.slane %v1115_v33, 1  ;;  %v3585_v40 = vld [vmem:[#allocation6 + $0x178] sm:$0xff]  }
 0x214   : > { %v1074_v34 = vpack.c.bf16 %v1066_v41, %v1066_v41  ;;  %v1067_v47 = vmax.f32 %v1059_v42, 0.0  ;;  %3325 = vmatprep.subr.bf16.mxu1 %v3573_v21  ;;  %3274 = vmatpush3.bf16.msra.mxu0 %v3574_v23  ;;  %v4225_v50 = vpack.c.bf16 %v1066_v41, %v1065_v8  ;;  %v1117_v20 = vor.u32 %v1115_v33, %v1114_v44  ;;  %v3579_v8 = vld [vmem:[#allocation6 + $0x168] sm:$0xff]   ;;  %v3595_v42 = vld [vmem:[#allocation6 + $0x200] sm:$0xff]  }
 0x215   : > { %v1144_v36 = vsel %vm4068_vm6, 0, %v1110_v7  ;;  %3275 = vmatprep.subr.bf16.mxu0 %v3575_v32  ;;  %v1159_v5 = vor.u32 %v1158_v43, %v1112_v29  ;;  %v4231_v26 = vsel %vm3963_vm2, %v1157_v27, 0  ;;  %v3596_v44 = vld [vmem:[#allocation6 + $0x208] sm:$0xff]   ;;  %v3597_v7 = vld [vmem:[#allocation6 + $0x210] sm:$0xff]   ;;  %v3598_v27 = vld [vmem:[#allocation6 + $0x218] sm:$0xff]  }
 0x216   : > { %v1119_v49 = vshrl.u32 %v1074_v34, 16  ;;  %v4233_v51 = vpack.c.bf16 %v1067_v47, %v1067_v47  ;;  %v4235_v6 = vcombine.low %v1143_v13, %v1144_v36  ;;  %v1145_v53 = vsel %vm4068_vm6, 0, %v1117_v20  ;;  %v3582_v13 = vld [vmem:[#allocation6 + $0x170] sm:$0xff]   ;;  %v3599_v43 = vld [vmem:[#allocation6 + $0x220] sm:$0xff]  }
 0x217   : > { %3326 = vmatpush3.bf16.msra.mxu1 %v3573_v21  ;;  %v3038_v55 = vcombine.low %v1144_v36, %v1145_v53  ;;  %v3159_v37 = vpack.c.bf16 %v1067_v47, %v1066_v41  ;;  %v1122_v56 = vshll.u32 %v1074_v34, 16  ;;  %v1177_v57 = vsel %vm3963_vm2, %v1159_v5, 0  ;;  %v3584_v21 = vld [vmem:[#allocation6 + $0x1f8] sm:$0xff]   ;;  %v3600_v34 = vld [vmem:[#allocation6 + $0x228] sm:$0xff]   ;;  %v3601_v47 = vld [vmem:[#allocation6 + $0x230] sm:$0xff]  }
 0x218   : > { %v1126_v58 = vshrl.u32 %v4233_v51, 16  ;;  %1840 = vmatmul.mubr.bf16.gmra.mrb[40].mxu0 %v4235_v6  ;;  %3327 = vmatprep.subr.bf16.mxu1 %v3576_v31  ;;  %v1121_v59 = vrot.slane %v1119_v49, 7  ;;  %v1129_v63 = vshll.u32 %v4233_v51, 16  ;;  %v3040_v1 = vcombine.low %v4231_v26, %v1177_v57  ;;  %v3586_v41 = vld [vmem:[#allocation6 + $0x1b8] sm:$0xff]  }
 0x219   : > { %1847 = vmatprep.mubr.bf16.mxu0 %v4225_v50  ;;  %3276 = vmatpush3.bf16.msra.mxu0 %v3577_v2  ;;  %v1160_v12 = vrot.slane %v1122_v56, 1  ;;  %v4248_v62 = vcombine.low %v4213_v16, %v4231_v26  ;;  %v3593_v16 = vld [vmem:[#allocation6 + $0xb0] sm:$0xff]  }
 0x21a   : > { %1542 = vmatmul.mubr.bf16.gmra.mrb[24].mxu1 %v3038_v55  ;;  %3277 = vmatprep.subr.bf16.mxu0 %v3578_v38  ;;  %v1124_v14 = vor.u32 %v1122_v56, %v1121_v59  ;;  %v1128_v11 = vrot.slane %v1126_v58, 7  ;;  %v1162_v45 = vrot.slane %v1129_v63, 1 }
 0x21b   : > { %3328 = vmatpush3.bf16.msra.mxu1 %v3576_v31  ;;  %1549 = vmatprep.mubr.bf16.mxu1 %v3159_v37  ;;  %v1161_v48 = vor.u32 %v1160_v12, %v1119_v49  ;;  %v3602_v31 = vld [vmem:[#allocation6 + $0x238] sm:$0xff]  }
 0x21c   : > { %3329 = vmatprep.subr.bf16.mxu1 %v3579_v8  ;;  %v1146_v52 = vsel %vm4068_vm6, 0, %v1124_v14  ;;  %v1131_v15 = vor.u32 %v1129_v63, %v1128_v11  ;;  %v1163_v29 = vor.u32 %v1162_v45, %v1126_v58 }
 0x21d   : > { %3278 = vmatpush3.bf16.msra.mxu0 %v3580_v61  ;;  %v3077_v18 = vcombine.low %v1145_v53, %v1146_v52  ;;  %v1178_v19 = vsel %vm3963_vm2, %v1161_v48, 0 }
 0x21e   : > { %3279 = vmatprep.subr.bf16.mxu0 %v3581_v10  ;;  %v1147_v25 = vsel %vm4068_vm6, 0, %v1131_v15  ;;  %v4258_v23 = vsel %vm3963_vm2, %v1163_v29, 0  ;;  %v4260_v28 = vcombine.low %v1177_v57, %v1178_v19 }
 0x21f   : > { %3330 = vmatpush3.bf16.msra.mxu1 %v3579_v8  ;;  %v3041_v32 = vcombine.low %v1146_v52, %v1147_v25  ;;  %v3043_v33 = vcombine.low %v1178_v19, %v4258_v23 }
 0x220   : > { %1848 = vmatmul.mubr.bf16.gmra.mrb[44].mxu0 %v3077_v18  ;;  %3331 = vmatprep.subr.bf16.mxu1 %v3582_v13 }
 0x221   : > { %3280 = vmatpush3.bf16.msra.mxu0 %v3583_v3  ;;  %2152 = vmatprep.mubr.bf16.mxu0 %v4176_v24  ;;  %v3589_v24 = vld [vmem:[#allocation6 + $0x90] sm:$0xff]  }
 0x222   : > { %1550 = vmatmul.mubr.bf16.gmra.mrb[28].mxu1 %v3041_v32  ;;  %3281 = vmatprep.subr.bf16.mxu0 %v3584_v21 }
 0x223   : > { %3332 = vmatpush3.bf16.msra.mxu1 %v3582_v13  ;;  %3335 = vmatprep.mubr.bf16.mxu1 %v3034_v54  ;;  %v3070_v54 = vcombine.low %v3741_v0, %v4181_v30  ;;  %v3594_v30 = vld [vmem:[#allocation6 + $0xb8] sm:$0xff]  }
 0x224   : > { %3333 = vmatprep.subr.bf16.mxu1 %v3585_v40 }
 0x225   : > { %3282 = vmatpush3.bf16.msra.mxu0 %v3586_v41 }
 0x227   : > { %3334 = vmatpush3.bf16.msra.mxu1 %v3585_v40 }
 0x228   : > { %2153 = vmatmul.mubr.bf16.vlgmr.msra.gmra.mrb[48].mxu0 %v4201_v4  ;;  %3343 = vmatprep.subr.bf16.mxu1 %v3587_v22  ;;  %v3105_v4 = vcombine.low %v4233_v51, %v3741_v0 }
 0x229   : > { %2160 = vmatprep.mubr.bf16.mxu0 %v4199_v60  ;;  %v3591_v60 = vld [vmem:[#allocation6 + $0xa0] sm:$0xff]  }
 0x22a   : > { %3336 = vmatmul.mubr.bf16.vlgmr.msra.gmra.mrb[32].mxu1 %v3037_v39  ;;  %v3104_v39 = vcombine.low %v1147_v25, %v3741_v0 }
 0x22b   : > { %3344 = vmatpush3.bf16.msra.mxu1 %v3587_v22  ;;  %3339 = vmatprep.mubr.bf16.mxu1 %v3040_v1 }
 0x22c   : > { %3345 = vmatprep.subr.bf16.mxu1 %v3588_v35 }
 0x22f   : > { %3346 = vmatpush3.bf16.msra.mxu1 %v3588_v35 }
 0x230   : > { %2161 = vmatmul.mubr.bf16.gmra.mrb[52].mxu0 %v4235_v6  ;;  %3347 = vmatprep.subr.bf16.mxu1 %v3589_v24 }
 0x231   : > { %2168 = vmatprep.mubr.bf16.mxu0 %v4225_v50 }
 0x232   : > { %3340 = vmatmul.mubr.bf16.gmra.mrb[36].mxu1 %v3043_v33 }
 0x233   : > { %3348 = vmatpush3.bf16.msra.mxu1 %v3589_v24  ;;  %3359 = vmatprep.mubr.bf16.mxu1 %v3070_v54 }
 0x234   : > { %3349 = vmatprep.subr.bf16.mxu1 %v3590_v46 }
 0x237   : > { %3350 = vmatpush3.bf16.msra.mxu1 %v3590_v46 }
 0x238   : > { %2169 = vmatmul.mubr.bf16.gmra.mrb[56].mxu0 %v3077_v18  ;;  %3351 = vmatprep.subr.bf16.mxu1 %v3591_v60 }
 0x239   : > { %2176 = vmatprep.mubr.bf16.mxu0 %v3105_v4 }
 0x23b   : > { %3352 = vmatpush3.bf16.msra.mxu1 %v3591_v60 }
 0x23c   : > { %3353 = vmatprep.subr.bf16.mxu1 %v3592_v9 }
 0x23f   : > { %3354 = vmatpush3.bf16.msra.mxu1 %v3592_v9 }
 0x240   : > { %2177 = vmatmul.mubr.bf16.gmra.mrb[60].mxu0 %v3104_v39  ;;  %3355 = vmatprep.subr.bf16.mxu1 %v3593_v16 }
 0x243   : > { %3356 = vmatpush3.bf16.msra.mxu1 %v3593_v16 }
 0x244   : > { %3357 = vmatprep.subr.bf16.mxu1 %v3594_v30 }
 0x247   : > { %3358 = vmatpush3.bf16.msra.mxu1 %v3594_v30 }
 0x248   : > { %3367 = vmatprep.subr.bf16.mxu1 %v3595_v42 }
 0x24a   : > { %3360 = vmatmul.mubr.bf16.vlgmr.msra.gmra.mrb[32].mxu1 %v4217_v17 }
 0x24b   : > { %3363 = vmatprep.mubr.bf16.mxu1 %v4248_v62  ;;  %3368 = vmatpush3.bf16.msra.mxu1 %v3595_v42 }
 0x24c   : > { %3369 = vmatprep.subr.bf16.mxu1 %v3596_v44 }
 0x24f   : > { %3370 = vmatpush3.bf16.msra.mxu1 %v3596_v44 }
 0x250   : > { %3371 = vmatprep.subr.bf16.mxu1 %v3597_v7 }
 0x252   : > { %3364 = vmatmul.mubr.bf16.gmra.mrb[36].mxu1 %v4260_v28 }
 0x253   : > { %3372 = vmatpush3.bf16.msra.mxu1 %v3597_v7  ;;  %3383 = vmatprep.mubr.bf16.mxu1 %v4217_v17  ;;  %v3106_v17 = vcombine.low %v4258_v23, %v3741_v0 }
 0x254   : > { %3373 = vmatprep.subr.bf16.mxu1 %v3598_v27 }
 0x257   : > { %3374 = vmatpush3.bf16.msra.mxu1 %v3598_v27 }
 0x258   : > { %3375 = vmatprep.subr.bf16.mxu1 %v3599_v43 }
 0x25b   : > { %3376 = vmatpush3.bf16.msra.mxu1 %v3599_v43 }
 0x25c   : > { %3377 = vmatprep.subr.bf16.mxu1 %v3600_v34 }
 0x25f   : > { %3378 = vmatpush3.bf16.msra.mxu1 %v3600_v34 }
 0x260   : > { %3379 = vmatprep.subr.bf16.mxu1 %v3601_v47 }
 0x263   : > { %3380 = vmatpush3.bf16.msra.mxu1 %v3601_v47 }
 0x264   : > { %3381 = vmatprep.subr.bf16.mxu1 %v3602_v31 }
 0x267   : > { %3382 = vmatpush3.bf16.msra.mxu1 %v3602_v31 }
 0x26a   : > { %3384 = vmatmul.mubr.bf16.vlgmr.msra.gmra.mrb[32].mxu1 %v4248_v62 }
 0x26b   : > { %3387 = vmatprep.mubr.bf16.mxu1 %v4260_v28 }
 0x272   : > { %3388 = vmatmul.mubr.bf16.gmra.mrb[36].mxu1 %v3106_v17 }
 0x2da   : > { %v3231_v50 = vpop.f32.mrb[32].mxu0 }
 0x2db   : > { %v3232_v20 = vpop.f32.mrb[33].mxu0 }
 0x2dc   : > { %v3233_v36 = vadd.f32 %v3232_v20, %v3231_v50  ;;  %v3179_v2 = vpop.f32.mrb[16].mxu1  ;;  %v3234_v5 = vpop.f32.mrb[34].mxu0 }
 0x2dd   : > { %v3180_v26 = vpop.f32.mrb[17].mxu1  ;;  %v3235_v49 = vpop.f32.mrb[35].mxu0 }
 0x2de   : > { %v3181_v51 = vadd.f32 %v3180_v26, %v3179_v2  ;;  %v3236_v6 = vadd.f32 %v3235_v49, %v3234_v5  ;;  %v3182_v53 = vpop.f32.mrb[18].mxu1 }
 0x2df   : > { %v3183_v38 = vpop.f32.mrb[19].mxu1 }
 0x2e0   : > { %v3394_v55 = vadd.f32 %v3233_v36, %v3181_v51  ;;  %v3184_v37 = vadd.f32 %v3183_v38, %v3182_v53 }
 0x2e2   : > { %v3400_v56 = vadd.f32 %v3236_v6, %v3184_v37  ;;  %v3237_v57 = vpop.f32.mrb[36].mxu0 }
 0x2e3   : > { %v3238_v58 = vpop.f32.mrb[37].mxu0 }
 0x2e4   : > { %v3239_v8 = vadd.f32 %v3238_v58, %v3237_v57  ;;  %v3240_v59 = vpop.f32.mrb[38].mxu0 }
 0x2e5   : > { %v3185_v0 = vpop.f32.mrb[20].mxu1  ;;  %v3241_v63 = vpop.f32.mrb[39].mxu0 }
 0x2e6   : > { %v3186_v1 = vpop.f32.mrb[21].mxu1  ;;  %v3242_v61 = vadd.f32 %v3241_v63, %v3240_v59 }
 0x2e7   : > { %v3187_v12 = vadd.f32 %v3186_v1, %v3185_v0  ;;  %v3188_v62 = vpop.f32.mrb[22].mxu1 }
 0x2e8   : > { %v3189_v14 = vpop.f32.mrb[23].mxu1 }
 0x2e9   : > { %v3391_v10 = vadd.f32 %v3239_v8, %v3187_v12  ;;  %v3190_v11 = vadd.f32 %v3189_v14, %v3188_v62 }
 0x2eb   : > { %v3397_v45 = vadd.f32 %v3242_v61, %v3190_v11  ;;  %v3243_v48 = vpop.f32.mrb[40].mxu0  ;;  %v3131_v11 = vld [vmem:[#allocation7] ss:$0 sm:$0xff] }
 0x2ec   : > { %v3244_v52 = vpop.f32.mrb[41].mxu0 }
 0x2ed   : > { %v3245_v13 = vadd.f32 %v3244_v52, %v3243_v48  ;;  %v3191_v15 = vpop.f32.mrb[24].mxu1  ;;  %v3246_v29 = vpop.f32.mrb[42].mxu0  ;;  %v2300_v48 = vlaneseq }
 0x2ee   : > { %v3192_v18 = vpop.f32.mrb[25].mxu1  ;;  %v3247_v3 = vpop.f32.mrb[43].mxu0 }
 0x2ef   : > { %v3193_v19 = vadd.f32 %v3192_v18, %v3191_v15  ;;  %v3248_v25 = vadd.f32 %v3247_v3, %v3246_v29  ;;  %v3194_v21 = vpop.f32.mrb[26].mxu1 }
 0x2f0   : > { %v3195_v23 = vpop.f32.mrb[27].mxu1 }
 0x2f1   : > { %v3406_v28 = vadd.f32 %v3245_v13, %v3193_v19  ;;  %v3196_v32 = vadd.f32 %v3195_v23, %v3194_v21  ;;  %v2301_v23 = vshrl.u32 %v2300_v48, 7 }
 0x2f3   : > { %v3412_v33 = vadd.f32 %v3248_v25, %v3196_v32  ;;  %v3249_v40 = vpop.f32.mrb[44].mxu0 }
 0x2f4   : > { %v3250_v41 = vpop.f32.mrb[45].mxu0 }
 0x2f5   : > { %v3251_v22 = vadd.f32 %v3250_v41, %v3249_v40  ;;  %v3197_v35 = vpop.f32.mrb[28].mxu1  ;;  %v3252_v24 = vpop.f32.mrb[46].mxu0  ;;  %v3744_v40 = vmov 1935823168  }
 0x2f6   : > { %v3198_v46 = vpop.f32.mrb[29].mxu1  ;;  %v3253_v54 = vpop.f32.mrb[47].mxu0  ;;  %v2538_v41 = vunpack.c.l.s4 %v3744_v40 }
 0x2f7   : > { %v3199_v60 = vadd.f32 %v3198_v46, %v3197_v35  ;;  %v3254_v4 = vadd.f32 %v3253_v54, %v3252_v24  ;;  %v3200_v9 = vpop.f32.mrb[30].mxu1  ;;  %v3745_v35 = vmov 1983009808  }
 0x2f8   : > { %v3201_v16 = vpop.f32.mrb[31].mxu1  ;;  %v2650_v24 = vunpack.c.l.s4 %v3745_v35 }
 0x2f9   : > { %v3403_v39 = vadd.f32 %v3251_v22, %v3199_v60  ;;  %v3202_v30 = vadd.f32 %v3201_v16, %v3200_v9 }
 0x2fb   : > { %v3409_v42 = vadd.f32 %v3254_v4, %v3202_v30  ;;  %v3283_v44 = vpop.f32.mrb[48].mxu0  ;;  %v2539_v30 = vunpack.c.0.s8 %v2538_v41 }
 0x2fc   : > { %v3284_v7 = vpop.f32.mrb[49].mxu0 }
 0x2fd   : > { %v3285_v27 = vadd.f32 %v3284_v7, %v3283_v44  ;;  %v3286_v43 = vpop.f32.mrb[50].mxu0 }
 0x2fe   : > { %v3287_v34 = vpop.f32.mrb[51].mxu0 }
 0x2ff   : > { %v3288_v47 = vadd.f32 %v3287_v34, %v3286_v43  ;;  %v3395_v31 = vadd.f32 %v3394_v55, %v3285_v27  ;;  %v2651_v27 = vunpack.c.0.s8 %v2650_v24 }
 0x301   : > { %v3401_v17 = vadd.f32 %v3400_v56, %v3288_v47 }
 0x303   : > { %v3289_v50 = vpop.f32.mrb[52].mxu0 }
 0x304   : > { %v3290_v20 = vpop.f32.mrb[53].mxu0 }
 0x305   : > { %v3291_v36 = vadd.f32 %v3290_v20, %v3289_v50  ;;  %v3292_v2 = vpop.f32.mrb[54].mxu0 }
 0x306   : > { %v3293_v5 = vpop.f32.mrb[55].mxu0 }
 0x307   : > { %v3294_v26 = vadd.f32 %v3293_v5, %v3292_v2  ;;  %v3392_v49 = vadd.f32 %v3391_v10, %v3291_v36  ;;  %v3743_v10 = vmov 1966171168  }
 0x309   : > { %v3398_v51 = vadd.f32 %v3397_v45, %v3294_v26  ;;  %v2298_v45 = vunpack.c.l.s4 %v3743_v10 }
 0x30b   : > { %v3295_v6 = vpop.f32.mrb[56].mxu0  ;;  %v2299_v21 = vunpack.c.0.s8 %v2298_v45 }
 0x30c   : > { %v3296_v53 = vpop.f32.mrb[57].mxu0 }
 0x30d   : > { %v3297_v38 = vadd.f32 %v3296_v53, %v3295_v6  ;;  %v3298_v37 = vpop.f32.mrb[58].mxu0  ;;  %v4287_v60 = vsub.s32 %v2299_v21, %v2301_v23  ;;  %v4292_v53 = vsub.s32 %v2651_v27, %v2301_v23 }
 0x30e   : > { %v3299_v57 = vpop.f32.mrb[59].mxu0 }
 0x30f   : > { %v3300_v58 = vadd.f32 %v3299_v57, %v3298_v37  ;;  %v3407_v8 = vadd.f32 %v3406_v28, %v3297_v38 }
 0x311   : > { %v3413_v59 = vadd.f32 %v3412_v33, %v3300_v58 }
 0x313   : > { %v3301_v0 = vpop.f32.mrb[60].mxu0 }
 0x314   : > { %v3302_v63 = vpop.f32.mrb[61].mxu0 }
 0x315   : > { %v3303_v55 = vadd.f32 %v3302_v63, %v3301_v0  ;;  %v3304_v56 = vpop.f32.mrb[62].mxu0 }
 0x316   : > { %v3305_v1 = vpop.f32.mrb[63].mxu0 }
 0x317   : > { %v3306_v61 = vadd.f32 %v3305_v1, %v3304_v56  ;;  %v3404_v12 = vadd.f32 %v3403_v39, %v3303_v55 }
 0x319   : > { %v3410_v62 = vadd.f32 %v3409_v42, %v3306_v61 }
 0x33d   : > { %v3385_v14 = vpop.f32.mrb[32].mxu1 }
 0x33e   : > { %v3393_v52 = vadd.f32 %v3392_v49, %v3385_v14  ;;  %v2219_v13 = vpop.f32.mrb[33].mxu1  ;;  %v4290_v49 = vsub.s32 %v2539_v30, %v2301_v23 }
 0x33f   : > { %v3396_v15 = vadd.f32 %v3395_v31, %v2219_v13  ;;  %v3386_v29 = vpop.f32.mrb[34].mxu1 }
 0x340   : > { %v2267_v18 = vadd.f32 %v3393_v52, %v3131_v11  ;;  %v3399_v3 = vadd.f32 %v3398_v51, %v3386_v29  ;;  %v2222_v19 = vpop.f32.mrb[35].mxu1 }
 0x341   : > { %v2265_v25 = vadd.f32 %v3396_v15, %v3131_v11  ;;  %v3402_v28 = vadd.f32 %v3401_v17, %v2222_v19 }
 0x342   : > { %v2275_v32 = vmax.f32 %v2267_v18, 0.0  ;;  %v2268_v33 = vadd.f32 %v3399_v3, %v3131_v11 }
 0x343   : > { %v2273_v22 = vmax.f32 %v2265_v25, 0.0  ;;  %v2266_v46 = vadd.f32 %v3402_v28, %v3131_v11 }
 0x344   : > { %v2276_v54 = vmax.f32 %v2268_v33, 0.0  ;;  %v2283_v16 = vpack.c.bf16 %v2275_v32, %v2275_v32 }
 0x345   : > { %v2274_v4 = vmax.f32 %v2266_v46, 0.0  ;;  %v3389_v9 = vpop.f32.mrb[36].mxu1  ;;  %v2281_v7 = vpack.c.bf16 %v2273_v22, %v2273_v22 }
 0x346   : > { %v2284_v39 = vpack.c.bf16 %v2276_v54, %v2276_v54  ;;  %v3405_v42 = vadd.f32 %v3404_v12, %v3389_v9  ;;  %v2235_v44 = vpop.f32.mrb[37].mxu1 }
 0x347   : > { %v2282_v43 = vpack.c.bf16 %v2274_v4, %v2274_v4  ;;  %v3408_v34 = vadd.f32 %v3407_v8, %v2235_v44  ;;  %v3390_v47 = vpop.f32.mrb[38].mxu1 }
 0x348   : > { %v2290_v31 = vmax.bf16 %v2284_v39, %v2283_v16  ;;  %v2271_v17 = vadd.f32 %v3405_v42, %v3131_v11  ;;  %v3411_v50 = vadd.f32 %v3410_v62, %v3390_v47  ;;  %v2238_v20 = vpop.f32.mrb[39].mxu1 }
 0x349   : > { %v2289_v36 = vmax.bf16 %v2282_v43, %v2281_v7  ;;  %v2269_v2 = vadd.f32 %v3408_v34, %v3131_v11  ;;  %v3414_v5 = vadd.f32 %v3413_v59, %v2238_v20 }
 0x34a   : > { %v2327_v26 = vrot.slane %v2290_v31, %v4287_v60  ;;  %v2279_v51 = vmax.f32 %v2271_v17, 0.0  ;;  %v2272_v6 = vadd.f32 %v3411_v50, %v3131_v11 }
 0x34b   : > { %v2303_v38 = vrot.slane %v2289_v36, %v4287_v60  ;;  %v2277_v37 = vmax.f32 %v2269_v2, 0.0  ;;  %v2270_v57 = vadd.f32 %v3414_v5, %v3131_v11 }
 0x34c   : > { %v2328_v58 = vcombine.high %v2327_v26, %v2327_v26  ;;  %v2335_v8 = vrot.slane %v2327_v26, %v4287_v60  ;;  %v2287_v0 = vpack.c.bf16 %v2279_v51, %v2279_v51  ;;  %v2280_v63 = vmax.f32 %v2272_v6, 0.0 }
 0x34d   : > { %v2304_v55 = vcombine.high %v2303_v38, %v2303_v38  ;;  %v2311_v59 = vrot.slane %v2303_v38, %v4287_v60  ;;  %v2285_v56 = vpack.c.bf16 %v2277_v37, %v2277_v37  ;;  %v2278_v1 = vmax.f32 %v2270_v57, 0.0 }
 0x34e   : > { %v2342_v61 = vrot.slane %v2328_v58, %v4287_v60  ;;  %v2343_v12 = vcombine.high %v2335_v8, %v2335_v8  ;;  %v2430_v62 = vshrl.u32 %v2335_v8, 16  ;;  %v2288_v14 = vpack.c.bf16 %v2280_v63, %v2280_v63 }
 0x34f   : > { %v2318_v10 = vrot.slane %v2304_v55, %v4287_v60  ;;  %v2319_v45 = vcombine.high %v2311_v59, %v2311_v59  ;;  %v2410_v48 = vshrl.u32 %v2311_v59, 16  ;;  %v2286_v11 = vpack.c.bf16 %v2278_v1, %v2278_v1 }
 0x350   : > { %v2344_v52 = vcombine.high %v2342_v61, %v2342_v61  ;;  %v2435_v13 = vshrl.u32 %v2342_v61, 16  ;;  %v2440_v15 = vshrl.u32 %v2343_v12, 16  ;;  %v2509_v29 = vmax.bf16 %v2430_v62, %v2335_v8 }
 0x351   : > { %v2320_v18 = vcombine.high %v2318_v10, %v2318_v10  ;;  %v2415_v3 = vshrl.u32 %v2318_v10, 16  ;;  %v2420_v19 = vshrl.u32 %v2319_v45, 16  ;;  %v2505_v25 = vmax.bf16 %v2410_v48, %v2311_v59 }
 0x352   : > { %v2445_v21 = vshrl.u32 %v2344_v52, 16  ;;  %v2510_v23 = vmax.bf16 %v2435_v13, %v2342_v61  ;;  %v2511_v28 = vmax.bf16 %v2440_v15, %v2343_v12  ;;  %v2571_v32 = vrot.slane %v2509_v29, %v4290_v49 }
 0x353   : > { %v2425_v33 = vshrl.u32 %v2320_v18, 16  ;;  %v2506_v40 = vmax.bf16 %v2415_v3, %v2318_v10  ;;  %v2507_v41 = vmax.bf16 %v2420_v19, %v2319_v45  ;;  %v2543_v22 = vrot.slane %v2505_v25, %v4290_v49 }
 0x354   : > { %v2512_v35 = vmax.bf16 %v2445_v21, %v2344_v52  ;;  %v2578_v24 = vrot.slane %v2510_v23, %v4290_v49  ;;  %v2585_v46 = vrot.slane %v2511_v28, %v4290_v49  ;;  %v2683_v54 = vrot.slane %v2571_v32, %v4292_v53 }
 0x355   : > { %v2508_v4 = vmax.bf16 %v2425_v33, %v2320_v18  ;;  %v2550_v9 = vrot.slane %v2506_v40, %v4290_v49  ;;  %v2557_v16 = vrot.slane %v2507_v41, %v4290_v49  ;;  %v2655_v39 = vrot.slane %v2543_v22, %v4292_v53 }
 0x356   : > { %v2592_v30 = vrot.slane %v2512_v35, %v4290_v49  ;;  %v2690_v42 = vrot.slane %v2578_v24, %v4292_v53  ;;  %v2697_v44 = vrot.slane %v2585_v46, %v4292_v53  ;;  %v2765_v7 = vunpack.c.l.b16 %v2683_v54 }
 0x357   : > { %v2564_v27 = vrot.slane %v2508_v4, %v4290_v49  ;;  %v2662_v43 = vrot.slane %v2550_v9, %v4292_v53  ;;  %v2669_v34 = vrot.slane %v2557_v16, %v4292_v53  ;;  %v2761_v47 = vunpack.c.l.b16 %v2655_v39 }
 0x358   : > { %v2704_v31 = vrot.slane %v2592_v30, %v4292_v53  ;;  %v2766_v17 = vunpack.c.l.b16 %v2690_v42  ;;  %v2767_v50 = vunpack.c.l.b16 %v2697_v44  ;;  %v2292_v20 = vmax.bf16 %v2288_v14, %v2287_v0 }
 0x359   : > { %v2676_v36 = vrot.slane %v2564_v27, %v4292_v53  ;;  %v2762_v2 = vunpack.c.l.b16 %v2662_v43  ;;  %v2763_v5 = vunpack.c.l.b16 %v2669_v34  ;;  %v2291_v26 = vmax.bf16 %v2286_v11, %v2285_v56 }
 0x35a   : > { %v2768_v51 = vunpack.c.l.b16 %v2704_v31  ;;  %v2786_v6 = vrot.slane %v2766_v17, 7  ;;  %v2788_v38 = vrot.slane %v2767_v50, 6  ;;  %v2375_v37 = vrot.slane %v2292_v20, %v4287_v60 }
 0x35b   : > { %v2764_v57 = vunpack.c.l.b16 %v2676_v36  ;;  %v2777_v58 = vrot.slane %v2762_v2, 7  ;;  %v2780_v8 = vrot.slane %v2763_v5, 6  ;;  %v2351_v63 = vrot.slane %v2291_v26, %v4287_v60 }
 0x35c   : > { %v2787_v55 = vsel %vm2778_vm7, %v2786_v6, %v2765_v7  ;;  %v2790_v59 = vrot.slane %v2768_v51, 5  ;;  %v2376_v0 = vcombine.high %v2375_v37, %v2375_v37  ;;  %v2383_v1 = vrot.slane %v2375_v37, %v4287_v60 }
 0x35d   : > { %v2789_v61 = vsel %vm2781_vm8, %v2788_v38, %v2787_v55  ;;  %v2779_v56 = vsel %vm2778_vm7, %v2777_v58, %v2761_v47  ;;  %v2783_v12 = vrot.slane %v2764_v57, 5  ;;  %v2352_v62 = vcombine.high %v2351_v63, %v2351_v63 }
 0x35e   : > { %v2791_v14 = vsel %vm2784_vm9, %v2790_v59, %v2789_v61  ;;  %v2782_v10 = vsel %vm2781_vm8, %v2780_v8, %v2779_v56  ;;  %v2390_v45 = vrot.slane %v2376_v0, %v4287_v60  ;;  %v2391_v48 = vcombine.high %v2383_v1, %v2383_v1 }
 0x35f   : > { %v2805_v11 = vpack.c.b16 %v2791_v14, %v2791_v14  ;;  %v2785_v52 = vsel %vm2784_vm9, %v2783_v12, %v2782_v10  ;;  %v2470_v13 = vshrl.u32 %v2383_v1, 16  ;;  %v2359_v15 = vrot.slane %v2351_v63, %v4287_v60 }
 0x360   : > { %v2804_v29 = vpack.c.b16 %v2785_v52, %v2785_v52  ;;  %v2392_v18 = vcombine.high %v2390_v45, %v2390_v45  ;;  %v2475_v3 = vshrl.u32 %v2390_v45, 16  ;;  %v2480_v19 = vshrl.u32 %v2391_v48, 16 }
 0x361   : > { %3149 = vst.sshfl [vmem:[%s4325_s21 + $0x2] sm:$0x3 pattern:$0x76325410] %v2805_v11  ;;  %v2517_v25 = vmax.bf16 %v2470_v13, %v2383_v1  ;;  %v2366_v21 = vrot.slane %v2352_v62, %v4287_v60  ;;  %v2367_v23 = vcombine.high %v2359_v15, %v2359_v15  ;;  %v2450_v28 = vshrl.u32 %v2359_v15, 16 }
 0x362   : > { %3148 = vst.sshfl [vmem:[%s4325_s21] sm:$0x3 pattern:$0x76325410] %v2804_v29  ;;  %v2485_v32 = vshrl.u32 %v2392_v18, 16  ;;  %v2518_v33 = vmax.bf16 %v2475_v3, %v2390_v45  ;;  %v2519_v40 = vmax.bf16 %v2480_v19, %v2391_v48 }
 0x363   : > { %v2627_v41 = vrot.slane %v2517_v25, %v4290_v49  ;;  %v2368_v22 = vcombine.high %v2366_v21, %v2366_v21  ;;  %v2455_v35 = vshrl.u32 %v2366_v21, 16  ;;  %v2460_v24 = vshrl.u32 %v2367_v23, 16 }
 0x364   : > { %v2520_v46 = vmax.bf16 %v2485_v32, %v2392_v18  ;;  %v2634_v54 = vrot.slane %v2518_v33, %v4290_v49  ;;  %v2641_v4 = vrot.slane %v2519_v40, %v4290_v49  ;;  %v2513_v9 = vmax.bf16 %v2450_v28, %v2359_v15 }
 0x365   : > { %v2739_v16 = vrot.slane %v2627_v41, %v4292_v53  ;;  %v2465_v60 = vshrl.u32 %v2368_v22, 16  ;;  %v2514_v39 = vmax.bf16 %v2455_v35, %v2366_v21  ;;  %v2515_v30 = vmax.bf16 %v2460_v24, %v2367_v23 }
 0x366   : > { %v2648_v42 = vrot.slane %v2520_v46, %v4290_v49  ;;  %v2746_v44 = vrot.slane %v2634_v54, %v4292_v53  ;;  %v2753_v7 = vrot.slane %v2641_v4, %v4292_v53  ;;  %v2599_v27 = vrot.slane %v2513_v9, %v4290_v49 }
 0x367   : > { %v2516_v43 = vmax.bf16 %v2465_v60, %v2368_v22  ;;  %v2606_v34 = vrot.slane %v2514_v39, %v4290_v49  ;;  %v2613_v47 = vrot.slane %v2515_v30, %v4290_v49  ;;  %v2773_v26 = vunpack.c.l.b16 %v2739_v16 }
 0x368   : > { %v2760_v31 = vrot.slane %v2648_v42, %v4292_v53  ;;  %v2774_v17 = vunpack.c.l.b16 %v2746_v44  ;;  %v2775_v50 = vunpack.c.l.b16 %v2753_v7  ;;  %v2711_v20 = vrot.slane %v2599_v27, %v4292_v53 }
 0x369   : > { %v2620_v36 = vrot.slane %v2516_v43, %v4290_v49  ;;  %v2718_v2 = vrot.slane %v2606_v34, %v4292_v53  ;;  %v2725_v5 = vrot.slane %v2613_v47, %v4292_v53 }
 0x36a   : > { %v2776_v51 = vunpack.c.l.b16 %v2760_v31  ;;  %v2798_v6 = vrot.slane %v2774_v17, 7  ;;  %v2800_v38 = vrot.slane %v2775_v50, 6  ;;  %v2769_v55 = vunpack.c.l.b16 %v2711_v20 }
 0x36b   : > { %v2732_v37 = vrot.slane %v2620_v36, %v4292_v53  ;;  %v2770_v57 = vunpack.c.l.b16 %v2718_v2  ;;  %v2771_v58 = vunpack.c.l.b16 %v2725_v5 }
 0x36c   : > { %v2799_v8 = vsel %vm2778_vm7, %v2798_v6, %v2773_v26  ;;  %v2802_v63 = vrot.slane %v2776_v51, 5 }
 0x36d   : > { %v2801_v49 = vsel %vm2781_vm8, %v2800_v38, %v2799_v8  ;;  %v2772_v59 = vunpack.c.l.b16 %v2732_v37  ;;  %v2792_v0 = vrot.slane %v2770_v57, 7  ;;  %v2794_v1 = vrot.slane %v2771_v58, 6 }
 0x36e   : > { %v2803_v61 = vsel %vm2784_vm9, %v2802_v63, %v2801_v49 }
 0x36f   : > { %v2807_v56 = vpack.c.b16 %v2803_v61, %v2803_v61  ;;  %v2793_v12 = vsel %vm2778_vm7, %v2792_v0, %v2769_v55  ;;  %v2796_v62 = vrot.slane %v2772_v59, 5 }
 0x370   : > { %v2795_v53 = vsel %vm2781_vm8, %v2794_v1, %v2793_v12 }
 0x371   : > { %3151 = vst.sshfl [vmem:[%s4325_s21 + $0x6] sm:$0x3 pattern:$0x76325410] %v2807_v56  ;;  %v2797_v14 = vsel %vm2784_vm9, %v2796_v62, %v2795_v53 }
 0x372   : > { %v2806_v10 = vpack.c.b16 %v2797_v14, %v2797_v14 }
 0x374   : > { %3150 = vst.sshfl [vmem:[%s4325_s21 + $0x4] sm:$0x3 pattern:$0x76325410] %v2806_v10 }
 0x375 PF: > { %s18_s18 = sadd.s32 1, %s3733_s18  }
 0x376   : > { %p15_p6 = scmp.ge.s32.totalorder %s18_s18, 6  }
 0x378   :  { %17 = sbr.rel (!%p15_p6) target bundleno = 3 (0x3), region = 91 }
 0x37f   :  { %2865 = vsyncpa [#allocation3], 1 }
 0x380   :  { %2867 = vsyncpa [#allocation3 + $0x1], 1 }
 0x381   :  { %2868 = vsyncpa [#allocation5], 1 }
 0x382   :  { %2869 = vsyncpa [#allocation8], 1 }

// kernel: perceptual_loss.4
= control target key start
LH: loop header
LB: loop body
LE: loop exit
PB: predicated region body
PF: predicated region fallthrough
CT: control target
= control target key end

     0   :  { %10 = vsyncpa [#allocation3], 0  ;;  %s7164_s0 = inlined_call_operand.vmem [shape: bf16[4,16,16,3], index: 0, kind: input, shape index: {}]   ;;  %s7165_s1 = inlined_call_operand.vmem [shape: bf16[3,9,64], index: 1, kind: input, shape index: {}]   ;;  %s7166_s2 = inlined_call_operand.hbm [shape: f32[1,64], index: 2, kind: input, shape index: {}]   ;;  %s7167_s3 = inlined_call_operand.vmem [shape: bf16[3,192,64], index: 3, kind: input, shape index: {}]   ;;  %s7168_s4 = inlined_call_operand.hbm [shape: f32[1,64], index: 4, kind: input, shape index: {}]   ;;  %s7169_s5 = inlined_call_operand.vmem [shape: bf16[4,8,8,64], index: 5, kind: output, shape index: {}]  }
   0x1   :  { %11 = vsyncpa [#allocation5], 0  ;;  %s5546_s18 = smov 0  }
   0x2 LB: > { %s5552_s19 = sadd.s32 4294967295, %s5505_s18   ;;  %p4844_p0 = scmp.ge.s32.totalorder %s5505_s18, 1  ;;  %s5505_s18 = sphi %s5546_s18, %s17_s18  }
   0x3   : > { %p158_p1 = scmp.lt.s32.totalorder %s5505_s18, 5  ;;  %p7170_p2 = scmp.eq.s32.totalorder %s5552_s19, 0 }
   0x4   : > { %s5507_s21 = smov [#allocation2]   ;;  %s5508_s23 = smov [#allocation4]  }
   0x5   : > { %p5557_p3 = pnand %p4844_p0, %p158_p1  ;;  %s174_s22 = sshll.u32 %s5507_s21, 4  ;;  %s175_s22 = int_to_ptr.vmem [resolvable:$true] %s174_s22 }
   0x6   : > { %s188_s24 = sshll.u32 %s5508_s23, 4  ;;  %s5435_s28 = scalar_lea.hbm %s7166_s2, 16  ;;  %s5569_s24 = int_to_ptr.vmem [resolvable:$true] %s188_s24 }
   0x7   : > { %s7172_s20 = scalar_select %p5557_p3, 1, 0 }
   0x8   : > { %p5351_p4 = pneg %p5557_p3  ;;  %p5436_p6 = scmp.ne.s32.totalorder %s7166_s2, %s5435_s28 }
   0x9   : > { %p5442_p10 = scmp.lt.u32.totalorder %s5435_s28, %s7166_s2 }
   0xa   : > { %p5565_p5 = pnand %p7170_p2, %p5351_p4 }
   0xc   : > { %p5437_p7 = pneg %p5565_p5 }
   0xe   : > { %p5438_p8 = pnand %p5437_p7, %p5436_p6 }
  0x10   : > { %p5439_p9 = pneg %p5438_p8 }
  0x12   : > { %p5444_p11 = pnand %p5442_p10, %p5439_p9 }
  0x14   : > { %5447 = shalt.err (!%p5444_p11)
}
  0x15   : > { %s5448_s8 = scalar_lea.vmem %s175_s22, 16  ;;  %s5455_s9 = scalar_lea.vmem %s175_s22, 32 }
  0x16   : > { %p5449_p12 = scmp.ne.s32.totalorder %s175_s22, %s5448_s8  ;;  %p5456_p1 = scmp.lt.s32.totalorder %s175_s22, %s175_s22 }
  0x17   : > { %p5457_p4 = scmp.lt.s32.totalorder %s5455_s9, %s5448_s8 }
  0x18   : > { %p5451_p13 = pnand %p5449_p12, %p5437_p7 }
  0x19   : > { %p5458_p2 = por %p5457_p4, %p5456_p1 }
  0x1a   : > { %p5452_p0 = pneg %p5451_p13 }
  0x1c   : > { %p5459_p3 = pnand %p5458_p2, %p5452_p0 }
  0x1e   : > { %5462 = shalt.err (!%p5459_p3)
}
  0x1f   : > { %5354 = dma.hbm_to_vmem [thread:$0]  (!%p5565_p5), %s7166_s2, 16, %s175_s22, [#allocation3]  }
  0x20   : > { %s5463_s14 = scalar_lea.hbm %s7168_s4, 16 }
  0x21   : > { %p5464_p6 = scmp.ne.s32.totalorder %s7168_s4, %s5463_s14  ;;  %p5470_p3 = scmp.lt.u32.totalorder %s5463_s14, %s7168_s4 }
  0x23   : > { %p5466_p8 = pnand %p5464_p6, %p5437_p7 }
  0x25   : > { %p5467_p2 = pneg %p5466_p8 }
  0x27   : > { %p5472_p9 = pnand %p5470_p3, %p5467_p2 }
  0x29   : > { %5475 = shalt.err (!%p5472_p9)
}
  0x2a   : > { %s5476_s22 = scalar_lea.vmem %s5569_s24, 16  ;;  %s5483_s23 = scalar_lea.vmem %s5569_s24, 32 }
  0x2b   : > { %p5477_p10 = scmp.ne.s32.totalorder %s5569_s24, %s5476_s22  ;;  %p5484_p13 = scmp.lt.s32.totalorder %s5569_s24, %s5569_s24 }
  0x2c   : > { %p5485_p0 = scmp.lt.s32.totalorder %s5483_s23, %s5476_s22 }
  0x2d   : > { %p5479_p11 = pnand %p5477_p10, %p5437_p7 }
  0x2e   : > { %p5486_p1 = por %p5485_p0, %p5484_p13 }
  0x2f   : > { %p5480_p12 = pneg %p5479_p11 }
  0x31   : > { %p5487_p4 = pnand %p5486_p1, %p5480_p12 }
  0x33   : > { %5490 = shalt.err (!%p5487_p4)
}
  0x34   : > { %5357 = dma.hbm_to_vmem [thread:$0]  (!%p5565_p5), %s7168_s4, 16, %s5569_s24, [#allocation5]  }
  0x35   : > { %p7174_p6 = scmp.ne.s32.totalorder %s7172_s20, 0 }
  0x37   : > { %209 = sbr.rel (%p7174_p6) target bundleno = 1219 (0x4c3), region = 40 }
  0x3e   : > { %p7175_p7 = scmp.eq.s32.totalorder %s5552_s19, 0 }
  0x40   : > { %5496 = dma.done.wait (%p7175_p7), [#allocation3], 16   ;;  %p7176_p8 = pmov %p7175_p7 }
  0x41   : > { %p7177_p2 = pmov %p7175_p7 }
  0x42   : > { %5498 = vsyncadd (%p7176_p8), [#allocation3], 4294967280 }
  0x43   : > { %5500 = dma.done.wait (%p7177_p2), [#allocation5], 16   ;;  %p7178_p3 = pmov %p7177_p2 }
  0x44   : > { %p241_p9 = scmp.lt.s32.totalorder %s5552_s19, 3  ;;  %vm560_vm0 = vsmask.f32 7424  ;;  %vm559_vm1 = vcmask 1047552   ;;  %s5509_s29 = smov 3   ;;  %vm783_vm3 = vcmask 1043456  }
  0x45   : > { %5502 = vsyncadd (%p7178_p3), [#allocation5], 4294967280  ;;  %s5510_s30 = smov 6   ;;  %vm784_vm4 = vcmask 1044480   ;;  %v5511_v59 = vmov 65535   ;;  %vm492_vm5 = vcmask 1040384  }
  0x46   : > { %s7216_s19 = smov (!%p241_p9, %s5552_s19), 3  ;;  %vm5644_vm2 = vmand %vm559_vm1, %vm560_vm0  ;;  %v785_v60 = vsel %vm783_vm3, 4294967295, %v5511_v59  ;;  %vm493_vm6 = vsmask.f32 256  ;;  %vm658_vm8 = vcmask 23552   ;;  %vm707_vm9 = vcmask 48128  }
  0x47   : > { %s5122_s20 = sshll.u32 %s7216_s19, 7  ;;  %vm5809_vm7 = vmand %vm492_vm5, %vm493_vm6  ;;  %vm750_vm10 = vcmask 72704   ;;  %s5513_s14 = smov 64   ;;  %vm1670_vm11 = vcmask 523264   ;;  %vm4622_vm12 = vcmask 1041409   ;;  %vm4625_vm13 = vcmask 1042434  }
  0x48   : > { %s5637_s28 = scalar_lea.vmem %s7164_s0, %s5122_s20  ;;  %vm4628_vm14 = vcmask 1043459   ;;  %vm4631_vm15 = vcmask 1044484   ;;  %vm4634_vm0 = vcmask 1045509   ;;  %vm4637_vm1 = vcmask 1046534   ;;  %s5123_s16 = sshll.u32 %s7216_s19, 5 }
  0x49   : > { %v5379_v0 = vld [vmem:[%s5637_s28] sm:$0xff]   ;;  %v5380_v1 = vld [vmem:[%s5637_s28 + $0x8] sm:$0xff]   ;;  %v5381_v4 = vld [vmem:[%s5637_s28 + $0x10] sm:$0xff]   ;;  %vm4756_vm3 = vcmask 519168   ;;  %s6773_s21 = scalar_lea.vmem %s7169_s5, %s5123_s16 }
  0x4a   : > { %578 = vrot.lane.b32.xlu0 %v5379_v0, %s5509_s29  ;;  %v365_v2 = vshrl.u32 %v5379_v0, 16  ;;  %v368_v3 = vshll.u32 %v5379_v0, 16  ;;  %v372_v5 = vshrl.u32 %v5380_v1, 16  ;;  %v375_v6 = vshll.u32 %v5380_v1, 16  ;;  %v5382_v7 = vld [vmem:[%s5637_s28 + $0x18] sm:$0xff]   ;;  %v5383_v16 = vld [vmem:[%s5637_s28 + $0x20] sm:$0xff]  }
  0x4b   : > { %v379_v13 = vshrl.u32 %v5381_v4, 16  ;;  %v382_v14 = vshll.u32 %v5381_v4, 16  ;;  %v389_v17 = vshll.u32 %v5382_v7, 16  ;;  %v386_v25 = vshrl.u32 %v5382_v7, 16  ;;  %v5384_v28 = vld [vmem:[%s5637_s28 + $0x28] sm:$0xff]   ;;  %v5662_v30 = vld [vmem:[%s5637_s28 + $0x30] sm:$0xff]  }
  0x4c   : > { %v511_v8 = vrot.slane %v368_v3, 1  ;;  %v367_v9 = vrot.slane %v365_v2, 7  ;;  %v374_v11 = vrot.slane %v372_v5, 7  ;;  %v513_v12 = vrot.slane %v375_v6, 1  ;;  %v5670_v37 = vld [vmem:[%s5637_s28 + $0x38] sm:$0xff]   ;;  %v5675_v41 = vld [vmem:[%s5637_s28 + $0x40] sm:$0xff]  }
  0x4d   : > { %v381_v20 = vrot.slane %v379_v13, 7  ;;  %v515_v21 = vrot.slane %v382_v14, 1  ;;  %v517_v26 = vrot.slane %v389_v17, 1  ;;  %v396_v27 = vshll.u32 %v5383_v16, 16  ;;  %v5678_v43 = vld [vmem:[%s5637_s28 + $0x48] sm:$0xff]   ;;  %v5681_v44 = vld [vmem:[%s5637_s28 + $0x50] sm:$0xff]  }
  0x4e   : > { %580 = vrot.lane.b32.xlu0 %v5380_v1, %s5509_s29  ;;  %v512_v15 = vor.u32 %v511_v8, %v365_v2  ;;  %v5650_v18 = vor.u32 %v368_v3, %v367_v9  ;;  %v514_v19 = vor.u32 %v513_v12, %v372_v5  ;;  %v5652_v22 = vor.u32 %v375_v6, %v374_v11  ;;  %v5708_v8 = vld [vmem:[%s5637_s28 + $0x58] sm:$0xff]   ;;  %v5711_v11 = vld [vmem:[%s5637_s28 + $0x60] sm:$0xff]  }
  0x4f   : > { %v516_v24 = vor.u32 %v515_v21, %v379_v13  ;;  %v5664_v31 = vor.u32 %v382_v14, %v381_v20  ;;  %v393_v33 = vshrl.u32 %v5383_v16, 16  ;;  %v519_v34 = vrot.slane %v396_v27, 1 }
  0x50   : > { %v562_v23 = vsel %vm5644_vm2, %v512_v15, 0  ;;  %v563_v29 = vsel %vm5644_vm2, %v514_v19, 0  ;;  %v518_v35 = vor.u32 %v517_v26, %v386_v25  ;;  %v403_v36 = vshll.u32 %v5384_v28, 16  ;;  %v5395_v26 = vld [vmem:[%s7165_s1 + $0x8] sm:$0x1f]  }
  0x51   : > { %626 = vrot.lane.b32.xlu1 %v562_v23, %s5510_s30  ;;  %v564_v32 = vsel %vm5644_vm2, %v516_v24, 0  ;;  %v388_v38 = vrot.slane %v386_v25, 7  ;;  %v400_v39 = vshrl.u32 %v5384_v28, 16  ;;  %v410_v40 = vshll.u32 %v5662_v30, 16 }
  0x52   : > { %582 = vrot.lane.b32.xlu0 %v5381_v4, %s5509_s29  ;;  %v520_v42 = vor.u32 %v519_v34, %v393_v33  ;;  %v395_v45 = vrot.slane %v393_v33, 7  ;;  %v565_v47 = vsel %vm5644_vm2, %v518_v35, 0  ;;  %v521_v48 = vrot.slane %v403_v36, 1  ;;  %v5392_v34 = vld [vmem:[%s5637_s28 + $0x68] sm:$0xff]  }
  0x53   : > { %v402_v46 = vrot.slane %v400_v39, 7  ;;  %v407_v49 = vshrl.u32 %v5662_v30, 16  ;;  %v417_v50 = vshll.u32 %v5670_v37, 16  ;;  %v523_v51 = vrot.slane %v410_v40, 1 }
  0x54   : > { %v424_v52 = vshll.u32 %v5675_v41, 16  ;;  %v5690_v53 = vor.u32 %v389_v17, %v388_v38  ;;  %v566_v54 = vsel %vm5644_vm2, %v520_v42, 0  ;;  %v431_v55 = vshll.u32 %v5678_v43, 16 }
  0x55   : > { %628 = vrot.lane.b32.xlu1 %v563_v29, %s5510_s30  ;;  %v438_v56 = vshll.u32 %v5681_v44, 16  ;;  %v409_v57 = vrot.slane %v407_v49, 7  ;;  %v414_v58 = vshrl.u32 %v5670_v37, 16  ;;  %v522_v61 = vor.u32 %v521_v48, %v400_v39 }
  0x56   : > { %630 = vrot.lane.b32.xlu0 %v564_v32, %s5510_s30  ;;  %v525_v62 = vrot.slane %v417_v50, 1  ;;  %v421_v63 = vshrl.u32 %v5675_v41, 16  ;;  %v5700_v0 = vor.u32 %v396_v27, %v395_v45  ;;  %v524_v1 = vor.u32 %v523_v51, %v407_v49  ;;  %v5397_v45 = vld [vmem:[%s7165_s1] sm:$0x1f]  }
  0x57   : > { %v527_v2 = vrot.slane %v424_v52, 1  ;;  %v428_v3 = vshrl.u32 %v5678_v43, 16  ;;  %v5704_v4 = vor.u32 %v403_v36, %v402_v46  ;;  %v529_v5 = vrot.slane %v431_v55, 1 }
  0x58   : > { %v435_v6 = vshrl.u32 %v5681_v44, 16  ;;  %v416_v9 = vrot.slane %v414_v58, 7  ;;  %v786_v12 = vsel %vm784_vm4, %v785_v60, 0  ;;  %v567_v13 = vsel %vm5644_vm2, %v522_v61, 0 }
  0x59   : > { %584 = vrot.lane.b32.xlu1 %v5382_v7, %s5509_s29  ;;  %v531_v7 = vrot.slane %v438_v56, 1  ;;  %v526_v14 = vor.u32 %v525_v62, %v414_v58  ;;  %v423_v15 = vrot.slane %v421_v63, 7  ;;  %v568_v17 = vsel %vm5644_vm2, %v524_v1, 0 }
  0x5a   : > { %586 = vrot.lane.b32.xlu0 %v5383_v16, %s5509_s29  ;;  %v430_v16 = vrot.slane %v428_v3, 7  ;;  %v528_v19 = vor.u32 %v527_v2, %v421_v63  ;;  %v437_v20 = vrot.slane %v435_v6, 7  ;;  %v442_v21 = vshrl.u32 %v5708_v8, 16 }
  0x5b   : > { %v530_v23 = vor.u32 %v529_v5, %v428_v3  ;;  %v532_v24 = vor.u32 %v531_v7, %v435_v6  ;;  %v445_v25 = vshll.u32 %v5708_v8, 16  ;;  %v5726_v27 = vor.u32 %v410_v40, %v409_v57  ;;  %v5393_v40 = vld [vmem:[%s5637_s28 + $0x70] sm:$0xff]  }
  0x5c   : > { %v452_v29 = vshll.u32 %v5711_v11, 16  ;;  %v5733_v32 = vor.u32 %v417_v50, %v416_v9  ;;  %v444_v33 = vrot.slane %v442_v21, 7  ;;  %v788_v35 = vand.u32 %v5395_v26, %v786_v12 }
  0x5d   : > { %632 = vrot.lane.b32.xlu1 %v565_v47, %s5510_s30  ;;  %v5737_v36 = vor.u32 %v424_v52, %v423_v15  ;;  %v569_v38 = vsel %vm5644_vm2, %v526_v14, 0  ;;  %v570_v39 = vsel %vm5644_vm2, %v528_v19, 0  ;;  %v571_v46 = vsel %vm5644_vm2, %v530_v23, 0 }
  0x5e   : > { %634 = vrot.lane.b32.xlu0 %v566_v54, %s5510_s30  ;;  %v572_v47 = vsel %vm5644_vm2, %v532_v24, 0  ;;  %v533_v48 = vrot.slane %v445_v25, 1  ;;  %5175 = vmatprep.subr.bf16.mxu0 %v788_v35  ;;  %v535_v50 = vrot.slane %v452_v29, 1  ;;  %v5754_v51 = vand.u32 %v5397_v45, %v786_v12 }
  0x5f   : > { %5176 = vmatpush3.bf16.msra.mxu0 %v788_v35  ;;  %v5756_v52 = vor.u32 %v431_v55, %v430_v16  ;;  %v5758_v54 = vor.u32 %v438_v56, %v437_v20  ;;  %v456_v57 = vshrl.u32 %v5392_v34, 16  ;;  %v459_v58 = vshll.u32 %v5392_v34, 16  ;;  %v5394_v56 = vld [vmem:[%s5637_s28 + $0x78] sm:$0xff]  }
  0x60   : > { %v5763_v59 = vor.u32 %v445_v25, %v444_v33  ;;  %v463_v60 = vshrl.u32 %v5393_v40, 16  ;;  %v466_v61 = vshll.u32 %v5393_v40, 16  ;;  %5209 = vmatprep.subr.bf16.mxu0 %v5754_v51  ;;  %v470_v63 = vshrl.u32 %v5394_v56, 16 }
  0x61   : > { %588 = vrot.lane.b32.xlu1 %v5384_v28, %s5509_s29  ;;  %v449_v28 = vshrl.u32 %v5711_v11, 16  ;;  %v458_v55 = vrot.slane %v456_v57, 7  ;;  %v537_v2 = vrot.slane %v459_v58, 1  ;;  %v473_v7 = vshll.u32 %v5394_v56, 16 }
  0x62   : > { %590 = vrot.lane.b32.xlu0 %v5662_v30, %s5509_s29  ;;  %v5396_v30 = vld [vmem:[%s7165_s1 + $0x10] sm:$0x1f]   ;;  %v472_v3 = vrot.slane %v470_v63, 7  ;;  %v5512_v16 = vmov 0   ;;  %v495_v23 = vsel %vm5809_vm7, 0, %v5650_v18  ;;  %v496_v26 = vsel %vm5809_vm7, 0, %v5652_v22 }
  0x63   : > { %v5745_v42 = vand.u32 %v5396_v30, %v786_v12  ;;  %v451_v49 = vrot.slane %v449_v28, 7  ;;  %v5776_v1 = vor.u32 %v459_v58, %v458_v55  ;;  %v536_v9 = vor.u32 %v535_v50, %v449_v28 }
  0x64   : > { %v539_v12 = vrot.slane %v466_v61, 1  ;;  %v541_v15 = vrot.slane %v473_v7, 1  ;;  %v498_v45 = vsel %vm5809_vm7, 0, %v5690_v53  ;;  %v500_v58 = vsel %vm5809_vm7, 0, %v5704_v4 }
  0x65   : > { %636 = vrot.lane.b32.xlu1 %v567_v13, %s5510_s30  ;;  %5277 = vmatprep.subr.bf16.mxu1 %v5745_v42  ;;  %v5770_v62 = vor.u32 %v452_v29, %v451_v49  ;;  %v538_v13 = vor.u32 %v537_v2, %v456_v57  ;;  %v497_v29 = vsel %vm5809_vm7, 0, %v5664_v31  ;;  %v502_v2 = vsel %vm5809_vm7, 0, %v5733_v32 }
  0x66   : > { %638 = vrot.lane.b32.xlu0 %v568_v17, %s5510_s30  ;;  %5278 = vmatpush3.bf16.msra.mxu1 %v5745_v42  ;;  %v540_v14 = vor.u32 %v539_v12, %v463_v60  ;;  %v542_v17 = vor.u32 %v541_v15, %v470_v63 }
  0x67   : > { %1904 = vmatprep.subr.bf16.mxu1 %v5512_v16 }
  0x68   : > { %v577_v19 = vsel %vm5644_vm2, %v542_v17, 0 }
  0x69   : > { %592 = vrot.lane.b32.xlu1 %v5670_v37, %s5509_s29  ;;  %v465_v37 = vrot.slane %v463_v60, 7 }
  0x6a   : > { %594 = vrot.lane.b32.xlu0 %v5675_v41, %s5509_s29  ;;  %v534_v41 = vor.u32 %v533_v48, %v442_v21 }
  0x6b   : > { %v5780_v5 = vor.u32 %v466_v61, %v465_v37 }
  0x6c   : > { %v573_v6 = vsel %vm5644_vm2, %v534_v41, 0 }
  0x6d   : > { %640 = vrot.lane.b32.xlu1 %v569_v38, %s5510_s30 }
  0x6e   : > { %642 = vrot.lane.b32.xlu0 %v570_v39, %s5510_s30 }
  0x71   : > { %596 = vrot.lane.b32.xlu1 %v5678_v43, %s5509_s29  ;;  %v5788_v43 = vor.u32 %v473_v7, %v472_v3 }
  0x72   : > { %598 = vrot.lane.b32.xlu0 %v5681_v44, %s5509_s29  ;;  %v574_v44 = vsel %vm5644_vm2, %v536_v9, 0 }
  0x75   : > { %644 = vrot.lane.b32.xlu1 %v571_v46, %s5510_s30 }
  0x76   : > { %646 = vrot.lane.b32.xlu0 %v572_v47, %s5510_s30 }
  0x79   : > { %600 = vrot.lane.b32.xlu1 %v5708_v8, %s5509_s29  ;;  %v575_v8 = vsel %vm5644_vm2, %v538_v13, 0 }
  0x7a   : > { %602 = vrot.lane.b32.xlu0 %v5711_v11, %s5509_s29  ;;  %v576_v11 = vsel %vm5644_vm2, %v540_v14, 0  ;;  %v504_v14 = vsel %vm5809_vm7, 0, %v5756_v52 }
  0x7d   : > { %648 = vrot.lane.b32.xlu1 %v573_v6, %s5510_s30 }
  0x7e   : > { %650 = vrot.lane.b32.xlu0 %v574_v44, %s5510_s30 }
  0x81   : > { %604 = vrot.lane.b32.xlu1 %v5392_v34, %s5509_s29 }
  0x82   : > { %606 = vrot.lane.b32.xlu0 %v5393_v40, %s5509_s29  ;;  %v499_v40 = vsel %vm5809_vm7, 0, %v5700_v0  ;;  %v501_v0 = vsel %vm5809_vm7, 0, %v5726_v27  ;;  %v503_v27 = vsel %vm5809_vm7, 0, %v5737_v36  ;;  %v505_v36 = vsel %vm5809_vm7, 0, %v5758_v54 }
  0x83   : > { %v507_v54 = vsel %vm5809_vm7, 0, %v5770_v62 }
  0x85   : > { %652 = vrot.lane.b32.xlu1 %v575_v8, %s5510_s30 }
  0x86   : > { %654 = vrot.lane.b32.xlu0 %v576_v11, %s5510_s30 }
  0x89   : > { %608 = vrot.lane.b32.xlu1 %v5394_v56, %s5509_s29 }
  0x8d   : > { %656 = vrot.lane.b32.xlu1 %v577_v19, %s5510_s30 }
  0xbc   : > { %v579_v21 = vpop.permute.xlu0 %578 }
  0xbd   : > { %v661_v25 = vsel %vm658_vm8, %v495_v23, %v579_v21 }
  0xc0   : > { %v581_v24 = vpop.permute.xlu0 %580 }
  0xc1   : > { %v664_v18 = vsel %vm658_vm8, %v496_v26, %v581_v24  ;;  %v506_v24 = vsel %vm5809_vm7, 0, %v5763_v59  ;;  %v509_v59 = vsel %vm5809_vm7, 0, %v5780_v5  ;;  %v510_v5 = vsel %vm5809_vm7, 0, %v5788_v43 }
  0xc3   : > { %v627_v28 = vpop.permute.xlu1 %626 }
  0xc4   : > { %v583_v30 = vpop.permute.xlu0 %582  ;;  %v5824_v33 = vsel %vm707_vm9, %v661_v25, %v627_v28 }
  0xc5   : > { %5177 = vmatprep.mubr.msk.bf16.mxu0 %vm750_vm10, %v5824_v33  ;;  %v667_v34 = vsel %vm658_vm8, %v497_v29, %v583_v30 }
  0xc7   : > { %v629_v35 = vpop.permute.xlu1 %628 }
  0xc8   : > { %v5831_v22 = vsel %vm707_vm9, %v664_v18, %v629_v35  ;;  %v631_v38 = vpop.permute.xlu0 %630  ;;  %v508_v35 = vsel %vm5809_vm7, 0, %v5776_v1 }
  0xc9   : > { %v5834_v39 = vsel %vm707_vm9, %v667_v34, %v631_v38  ;;  %5178 = vmatmul.mubr.msk.bf16.vlgmr.msra.gmra.mrb[0].mxu0 %vm750_vm10, %v5831_v22 }
  0xca   : > { %5210 = vmatpush3.bf16.msra.mxu0 %v5754_v51  ;;  %5181 = vmatprep.mubr.msk.bf16.mxu0 %vm750_vm10, %v5834_v39 }
  0xcb   : > { %v585_v31 = vpop.permute.xlu1 %584  ;;  %5243 = vmatprep.subr.bf16.mxu0 %v5745_v42 }
  0xcc   : > { %v587_v46 = vpop.permute.xlu0 %586  ;;  %v670_v48 = vsel %vm658_vm8, %v498_v45, %v585_v31 }
  0xcd   : > { %v673_v47 = vsel %vm658_vm8, %v499_v40, %v587_v46 }
  0xcf   : > { %v633_v49 = vpop.permute.xlu1 %632 }
  0xd0   : > { %v5851_v50 = vsel %vm707_vm9, %v670_v48, %v633_v49  ;;  %v635_v51 = vpop.permute.xlu0 %634 }
  0xd1   : > { %v5854_v57 = vsel %vm707_vm9, %v673_v47, %v635_v51  ;;  %5182 = vmatmul.mubr.msk.bf16.gmra.mrb[4].mxu0 %vm750_vm10, %v5851_v50 }
  0xd2   : > { %5185 = vmatprep.mubr.msk.bf16.mxu0 %vm750_vm10, %v5854_v57 }
  0xd3   : > { %v589_v53 = vpop.permute.xlu1 %588 }
  0xd4   : > { %v591_v60 = vpop.permute.xlu0 %590  ;;  %v676_v55 = vsel %vm658_vm8, %v500_v58, %v589_v53 }
  0xd5   : > { %v679_v61 = vsel %vm658_vm8, %v501_v0, %v591_v60  ;;  %v5399_v0 = vld [vmem:[%s7167_s3 + $0xc0] sm:$0xff]  }
  0xd7   : > { %v637_v56 = vpop.permute.xlu1 %636 }
  0xd8   : > { %v5869_v37 = vsel %vm707_vm9, %v676_v55, %v637_v56  ;;  %v639_v63 = vpop.permute.xlu0 %638  ;;  %v5401_v55 = vld [vmem:[%s7167_s3 + $0xc8] sm:$0xff]   ;;  %v5402_v56 = vld [vmem:[%s7167_s3 + $0x70] sm:$0xff]  }
  0xd9   : > { %v5872_v41 = vsel %vm707_vm9, %v679_v61, %v639_v63  ;;  %5186 = vmatmul.mubr.msk.bf16.gmra.mrb[8].mxu0 %vm750_vm10, %v5869_v37  ;;  %v5400_v61 = vld [vmem:[%s7167_s3 + $0x68] sm:$0xff]   ;;  %v5404_v63 = vld [vmem:[%s7167_s3 + $0x78] sm:$0xff]  }
  0xda   : > { %5189 = vmatprep.mubr.msk.bf16.mxu0 %vm750_vm10, %v5872_v41 }
  0xdb   : > { %v593_v4 = vpop.permute.xlu1 %592 }
  0xdc   : > { %v595_v3 = vpop.permute.xlu0 %594  ;;  %v682_v7 = vsel %vm658_vm8, %v502_v2, %v593_v4  ;;  %v5406_v4 = vld [vmem:[%s7167_s3 + $0x80] sm:$0xff]   ;;  %v5408_v2 = vld [vmem:[%s7167_s3 + $0x88] sm:$0xff]  }
  0xdd   : > { %v685_v6 = vsel %vm658_vm8, %v503_v27, %v595_v3  ;;  %v5407_v27 = vld [vmem:[%s7167_s3 + $0xe0] sm:$0xff]   ;;  %v5409_v3 = vld [vmem:[%s7167_s3 + $0xe8] sm:$0xff]  }
  0xdf   : > { %v641_v9 = vpop.permute.xlu1 %640 }
  0xe0   : > { %v5887_v44 = vsel %vm707_vm9, %v682_v7, %v641_v9  ;;  %v643_v12 = vpop.permute.xlu0 %642  ;;  %v5411_v7 = vld [vmem:[%s7167_s3 + $0xf0] sm:$0xff]   ;;  %v5412_v9 = vld [vmem:[%s7167_s3 + $0x98] sm:$0xff]  }
  0xe1   : > { %v5890_v13 = vsel %vm707_vm9, %v685_v6, %v643_v12  ;;  %5190 = vmatmul.mubr.msk.bf16.gmra.mrb[12].mxu0 %vm750_vm10, %v5887_v44  ;;  %v5410_v6 = vld [vmem:[%s7167_s3 + $0x90] sm:$0xff]   ;;  %v5414_v12 = vld [vmem:[%s7167_s3 + $0xa0] sm:$0xff]  }
  0xe2   : > { %5193 = vmatprep.mubr.msk.bf16.mxu0 %vm750_vm10, %v5890_v13 }
  0xe3   : > { %v597_v32 = vpop.permute.xlu1 %596 }
  0xe4   : > { %v599_v8 = vpop.permute.xlu0 %598  ;;  %v688_v11 = vsel %vm658_vm8, %v504_v14, %v597_v32  ;;  %v5416_v32 = vld [vmem:[%s7167_s3 + $0xa8] sm:$0xff]   ;;  %v5418_v14 = vld [vmem:[%s7167_s3 + $0xb0] sm:$0xff]  }
  0xe5   : > { %v691_v15 = vsel %vm658_vm8, %v505_v36, %v599_v8  ;;  %v5417_v36 = vld [vmem:[%s7167_s3 + $0x108] sm:$0xff]   ;;  %v5419_v8 = vld [vmem:[%s7167_s3 + $0x110] sm:$0xff]  }
  0xe7   : > { %v645_v17 = vpop.permute.xlu1 %644 }
  0xe8   : > { %v5905_v19 = vsel %vm707_vm9, %v688_v11, %v645_v17  ;;  %v647_v21 = vpop.permute.xlu0 %646  ;;  %v5421_v11 = vld [vmem:[%s7167_s3 + $0x118] sm:$0xff]  }
  0xe9   : > { %v5908_v23 = vsel %vm707_vm9, %v691_v15, %v647_v21  ;;  %5194 = vmatmul.mubr.msk.bf16.gmra.mrb[16].mxu0 %vm750_vm10, %v5905_v19  ;;  %v5420_v15 = vld [vmem:[%s7167_s3 + $0xb8] sm:$0xff]  }
  0xea   : > { %5197 = vmatprep.mubr.msk.bf16.mxu0 %vm750_vm10, %v5908_v23 }
  0xeb   : > { %v601_v52 = vpop.permute.xlu1 %600 }
  0xec   : > { %v603_v25 = vpop.permute.xlu0 %602  ;;  %v694_v28 = vsel %vm658_vm8, %v506_v24, %v601_v52 }
  0xed   : > { %v697_v26 = vsel %vm658_vm8, %v507_v54, %v603_v25 }
  0xef   : > { %v649_v29 = vpop.permute.xlu1 %648 }
  0xf0   : > { %v731_v30 = vsel %vm707_vm9, %v694_v28, %v649_v29  ;;  %v651_v18 = vpop.permute.xlu0 %650 }
  0xf1   : > { %v733_v34 = vsel %vm707_vm9, %v697_v26, %v651_v18  ;;  %5198 = vmatmul.mubr.msk.bf16.gmra.mrb[20].mxu0 %vm750_vm10, %v731_v30 }
  0xf2   : > { %5201 = vmatprep.mubr.msk.bf16.mxu0 %vm750_vm10, %v733_v34 }
  0xf3   : > { %v605_v62 = vpop.permute.xlu1 %604 }
  0xf4   : > { %v607_v38 = vpop.permute.xlu0 %606  ;;  %v700_v40 = vsel %vm658_vm8, %v508_v35, %v605_v62 }
  0xf5   : > { %v703_v31 = vsel %vm658_vm8, %v509_v59, %v607_v38 }
  0xf7   : > { %v653_v45 = vpop.permute.xlu1 %652 }
  0xf8   : > { %v735_v46 = vsel %vm707_vm9, %v700_v40, %v653_v45  ;;  %v655_v47 = vpop.permute.xlu0 %654 }
  0xf9   : > { %v737_v48 = vsel %vm707_vm9, %v703_v31, %v655_v47  ;;  %5202 = vmatmul.mubr.msk.bf16.gmra.mrb[24].mxu0 %vm750_vm10, %v735_v46  ;;  %5269 = vmatprep.mubr.msk.bf16.mxu1 %vm750_vm10, %v735_v46 }
  0xfa   : > { %5270 = vmatmul.mubr.msk.bf16.vlgmr.msra.gmra.mrb[0].mxu1 %vm750_vm10, %v737_v48  ;;  %5205 = vmatprep.mubr.msk.bf16.mxu0 %vm750_vm10, %v737_v48 }
  0xfb   : > { %v609_v1 = vpop.permute.xlu1 %608 }
  0xfc   : > { %v706_v49 = vsel %vm658_vm8, %v510_v5, %v609_v1 }
  0xff   : > { %v657_v51 = vpop.permute.xlu1 %656 }
 0x100   : > { %v739_v53 = vsel %vm707_vm9, %v706_v49, %v657_v51 }
 0x101   : > { %5206 = vmatmul.mubr.msk.bf16.gmra.mrb[28].mxu0 %vm750_vm10, %v739_v53  ;;  %5273 = vmatprep.mubr.msk.bf16.mxu1 %vm750_vm10, %v739_v53 }
 0x102   : > { %5211 = vmatprep.mubr.bf16.mxu0 %v5512_v16  ;;  %5274 = vmatmul.mubr.bf16.gmra.mrb[4].mxu1 %v5512_v16 }
 0x109   : > { %5212 = vmatmul.mubr.msk.bf16.vlgmr.msra.gmra.mrb[0].mxu0 %vm750_vm10, %v5824_v33 }
 0x10a   : > { %5244 = vmatpush3.bf16.msra.mxu0 %v5745_v42  ;;  %5215 = vmatprep.mubr.msk.bf16.mxu0 %vm750_vm10, %v5831_v22 }
 0x10b   : > { %2397 = vmatprep.subr.bf16.mxu0 %v5512_v16 }
 0x111   : > { %5216 = vmatmul.mubr.msk.bf16.gmra.mrb[4].mxu0 %vm750_vm10, %v5834_v39 }
 0x112   : > { %5219 = vmatprep.mubr.msk.bf16.mxu0 %vm750_vm10, %v5851_v50 }
 0x119   : > { %5220 = vmatmul.mubr.msk.bf16.gmra.mrb[8].mxu0 %vm750_vm10, %v5854_v57 }
 0x11a   : > { %5223 = vmatprep.mubr.msk.bf16.mxu0 %vm750_vm10, %v5869_v37 }
 0x121   : > { %5224 = vmatmul.mubr.msk.bf16.gmra.mrb[12].mxu0 %vm750_vm10, %v5872_v41 }
 0x122   : > { %5227 = vmatprep.mubr.msk.bf16.mxu0 %vm750_vm10, %v5887_v44 }
 0x129   : > { %5228 = vmatmul.mubr.msk.bf16.gmra.mrb[16].mxu0 %vm750_vm10, %v5890_v13 }
 0x12a   : > { %5231 = vmatprep.mubr.msk.bf16.mxu0 %vm750_vm10, %v5905_v19 }
 0x131   : > { %5232 = vmatmul.mubr.msk.bf16.gmra.mrb[20].mxu0 %vm750_vm10, %v5908_v23 }
 0x132   : > { %5235 = vmatprep.mubr.msk.bf16.mxu0 %vm750_vm10, %v731_v30 }
 0x139   : > { %5236 = vmatmul.mubr.msk.bf16.gmra.mrb[24].mxu0 %vm750_vm10, %v733_v34 }
 0x13a   : > { %5239 = vmatprep.mubr.msk.bf16.mxu0 %vm750_vm10, %v735_v46 }
 0x141   : > { %5240 = vmatmul.mubr.msk.bf16.gmra.mrb[28].mxu0 %vm750_vm10, %v737_v48 }
 0x142   : > { %5245 = vmatprep.mubr.msk.bf16.mxu0 %vm750_vm10, %v5831_v22 }
 0x149   : > { %5246 = vmatmul.mubr.msk.bf16.vlgmr.msra.gmra.mrb[0].mxu0 %vm750_vm10, %v5834_v39 }
 0x14a   : > { %5249 = vmatprep.mubr.msk.bf16.mxu0 %vm750_vm10, %v5851_v50  ;;  %2398 = vmatpush1.bf16.msra.mxu0 %v5399_v0 }
 0x14b   : > { %2399 = vmatprep.subr.bf16.mxu0 %v5512_v16 }
 0x14e   : > { %2400 = vmatpush1.bf16.msra.mxu0 %v5401_v55 }
 0x14f   : > { %2401 = vmatprep.subr.bf16.mxu0 %v5512_v16 }
 0x151   : > { %5250 = vmatmul.mubr.msk.bf16.gmra.mrb[4].mxu0 %vm750_vm10, %v5854_v57  ;;  %v5398_v57 = vld [vmem:[%s7167_s3 + $0x60] sm:$0xff]  }
 0x152   : > { %5253 = vmatprep.mubr.msk.bf16.mxu0 %vm750_vm10, %v5869_v37  ;;  %1905 = vmatpush1.bf16.msra.mxu1 %v5398_v57  ;;  %v5403_v37 = vld [vmem:[%s7167_s3 + $0xd0] sm:$0xff]  }
 0x153   : > { %1906 = vmatprep.subr.bf16.mxu1 %v5512_v16  ;;  %2402 = vmatpush1.bf16.msra.mxu0 %v5403_v37 }
 0x154   : > { %2403 = vmatprep.subr.bf16.mxu0 %v5512_v16 }
 0x156   : > { %1907 = vmatpush1.bf16.msra.mxu1 %v5400_v61 }
 0x157   : > { %1908 = vmatprep.subr.bf16.mxu1 %v5512_v16 }
 0x159   : > { %5254 = vmatmul.mubr.msk.bf16.gmra.mrb[8].mxu0 %vm750_vm10, %v5872_v41  ;;  %v5405_v41 = vld [vmem:[%s7167_s3 + $0xd8] sm:$0xff]  }
 0x15a   : > { %5257 = vmatprep.mubr.msk.bf16.mxu0 %vm750_vm10, %v5887_v44  ;;  %1909 = vmatpush1.bf16.msra.mxu1 %v5402_v56  ;;  %v5413_v44 = vld [vmem:[%s7167_s3 + $0xf8] sm:$0xff]  }
 0x15b   : > { %1910 = vmatprep.subr.bf16.mxu1 %v5512_v16  ;;  %2404 = vmatpush1.bf16.msra.mxu0 %v5405_v41 }
 0x15c   : > { %2405 = vmatprep.subr.bf16.mxu0 %v5512_v16 }
 0x15e   : > { %1911 = vmatpush1.bf16.msra.mxu1 %v5404_v63 }
 0x15f   : > { %1912 = vmatprep.subr.bf16.mxu1 %v5512_v16  ;;  %2406 = vmatpush1.bf16.msra.mxu0 %v5407_v27 }
 0x160   : > { %2407 = vmatprep.subr.bf16.mxu0 %v5512_v16 }
 0x161   : > { %5258 = vmatmul.mubr.msk.bf16.gmra.mrb[12].mxu0 %vm750_vm10, %v5890_v13  ;;  %v5415_v13 = vld [vmem:[%s7167_s3 + $0x100] sm:$0xff]  }
 0x162   : > { %5261 = vmatprep.mubr.msk.bf16.mxu0 %vm750_vm10, %v5905_v19  ;;  %1913 = vmatpush1.bf16.msra.mxu1 %v5406_v4  ;;  %v6110_v19 = vld [vmem:[#allocation2] ss:$0 sm:$0xff] }
 0x163   : > { %1914 = vmatprep.subr.bf16.mxu1 %v5512_v16  ;;  %2408 = vmatpush1.bf16.msra.mxu0 %v5409_v3 }
 0x164   : > { %2409 = vmatprep.subr.bf16.mxu0 %v5512_v16 }
 0x166   : > { %1915 = vmatpush1.bf16.msra.mxu1 %v5408_v2 }
 0x167   : > { %1916 = vmatprep.subr.bf16.mxu1 %v5512_v16  ;;  %2410 = vmatpush1.bf16.msra.mxu0 %v5411_v7 }
 0x168   : > { %2411 = vmatprep.subr.bf16.mxu0 %v5512_v16 }
 0x169   : > { %5262 = vmatmul.mubr.msk.bf16.gmra.mrb[16].mxu0 %vm750_vm10, %v5908_v23 }
 0x16a   : > { %5265 = vmatprep.mubr.msk.bf16.mxu0 %vm750_vm10, %v731_v30  ;;  %1917 = vmatpush1.bf16.msra.mxu1 %v5410_v6 }
 0x16b   : > { %1918 = vmatprep.subr.bf16.mxu1 %v5512_v16  ;;  %2412 = vmatpush1.bf16.msra.mxu0 %v5413_v44 }
 0x16c   : > { %2413 = vmatprep.subr.bf16.mxu0 %v5512_v16 }
 0x16e   : > { %1919 = vmatpush1.bf16.msra.mxu1 %v5412_v9 }
 0x16f   : > { %1920 = vmatprep.subr.bf16.mxu1 %v5512_v16  ;;  %2414 = vmatpush1.bf16.msra.mxu0 %v5415_v13 }
 0x170   : > { %2415 = vmatprep.subr.bf16.mxu0 %v5512_v16 }
 0x171   : > { %5266 = vmatmul.mubr.msk.bf16.gmra.mrb[20].mxu0 %vm750_vm10, %v733_v34 }
 0x172   : > { %1921 = vmatpush1.bf16.msra.mxu1 %v5414_v12 }
 0x173   : > { %1922 = vmatprep.subr.bf16.mxu1 %v5512_v16  ;;  %2416 = vmatpush1.bf16.msra.mxu0 %v5417_v36 }
 0x174   : > { %2417 = vmatprep.subr.bf16.mxu0 %v5512_v16 }
 0x176   : > { %1923 = vmatpush1.bf16.msra.mxu1 %v5416_v32 }
 0x177   : > { %1924 = vmatprep.subr.bf16.mxu1 %v5512_v16  ;;  %2418 = vmatpush1.bf16.msra.mxu0 %v5419_v8 }
 0x178   : > { %2419 = vmatprep.subr.bf16.mxu0 %v5512_v16 }
 0x17a   : > { %1925 = vmatpush1.bf16.msra.mxu1 %v5418_v14 }
 0x17b   : > { %1926 = vmatprep.subr.bf16.mxu1 %v5512_v16  ;;  %2420 = vmatpush1.bf16.msra.mxu0 %v5421_v11 }
 0x17e   : > { %1927 = vmatpush1.bf16.msra.mxu1 %v5420_v15 }
 0x17f   : > { %2139 = vmatprep.subr.bf16.mxu1 %v5512_v16 }
 0x1cd   : > { %v5999_v42 = vpop.f32.mrb[0].mxu1 }
 0x1ce   : > { %v6001_v43 = vpop.f32.mrb[1].mxu1 }
 0x1cf   : > { %v6003_v33 = vpop.f32.mrb[2].mxu1 }
 0x1d0   : > { %v6005_v22 = vpop.f32.mrb[3].mxu1 }
 0x1d5   : > { %v6007_v39 = vpop.f32.mrb[4].mxu1 }
 0x1d6   : > { %v6009_v50 = vpop.f32.mrb[5].mxu1 }
 0x1d7   : > { %v6017_v58 = vpop.f32.mrb[6].mxu1 }
 0x1d8   : > { %v6019_v60 = vpop.f32.mrb[7].mxu1 }
 0x20c   : > { %v5237_v17 = vpop.f32.mrb[24].mxu0 }
 0x20d   : > { %v5279_v21 = vadd.f32 %v5999_v42, %v5237_v17  ;;  %v1092_v23 = vpop.f32.mrb[25].mxu0 }
 0x20e   : > { %v5280_v52 = vadd.f32 %v6001_v43, %v1092_v23  ;;  %v5238_v54 = vpop.f32.mrb[26].mxu0 }
 0x20f   : > { %v1360_v24 = vadd.f32 %v5279_v21, %v6110_v19  ;;  %v5281_v25 = vadd.f32 %v6003_v33, %v5238_v54  ;;  %v1095_v26 = vpop.f32.mrb[27].mxu0 }
 0x210   : > { %v1358_v28 = vadd.f32 %v5280_v52, %v6110_v19  ;;  %v5282_v29 = vadd.f32 %v6005_v22, %v1095_v26 }
 0x211   : > { %v1361_v30 = vadd.f32 %v5281_v25, %v6110_v19  ;;  %v1392_v34 = vmax.f32 %v1360_v24, 0.0 }
 0x212   : > { %v1359_v18 = vadd.f32 %v5282_v29, %v6110_v19  ;;  %v1390_v59 = vmax.f32 %v1358_v28, 0.0 }
 0x213   : > { %v1393_v62 = vmax.f32 %v1361_v30, 0.0 }
 0x214   : > { %v1391_v35 = vmax.f32 %v1359_v18, 0.0  ;;  %v5241_v38 = vpop.f32.mrb[28].mxu0 }
 0x215   : > { %v5283_v31 = vadd.f32 %v6007_v39, %v5241_v38  ;;  %v1108_v40 = vpop.f32.mrb[29].mxu0  ;;  %v6121_v45 = vpack.c.bf16 %v1393_v62, %v1392_v34 }
 0x216   : > { %v5284_v46 = vadd.f32 %v6009_v50, %v1108_v40  ;;  %v5242_v47 = vpop.f32.mrb[30].mxu0  ;;  %v6124_v48 = vpack.c.bf16 %v1391_v35, %v1390_v59 }
 0x217   : > { %v1364_v1 = vadd.f32 %v5283_v31, %v6110_v19  ;;  %v5285_v5 = vadd.f32 %v6017_v58, %v5242_v47  ;;  %v1111_v49 = vpop.f32.mrb[31].mxu0 }
 0x218   : > { %v1362_v51 = vadd.f32 %v5284_v46, %v6110_v19  ;;  %v5286_v53 = vadd.f32 %v6019_v60, %v1111_v49 }
 0x219   : > { %v1365_v42 = vadd.f32 %v5285_v5, %v6110_v19  ;;  %v1396_v33 = vmax.f32 %v1364_v1, 0.0 }
 0x21a   : > { %v1363_v43 = vadd.f32 %v5286_v53, %v6110_v19  ;;  %v1394_v39 = vmax.f32 %v1362_v51, 0.0 }
 0x21b   : > { %v1397_v22 = vmax.f32 %v1365_v42, 0.0 }
 0x21c   : > { %v1395_v50 = vmax.f32 %v1363_v43, 0.0  ;;  %v5247_v57 = vpop.f32.mrb[0].mxu0 }
 0x21d   : > { %v1336_v0 = vadd.f32 %v5247_v57, %v6110_v19  ;;  %v1168_v61 = vpop.f32.mrb[1].mxu0  ;;  %v6133_v55 = vpack.c.bf16 %v1397_v22, %v1396_v33 }
 0x21e   : > { %v1334_v58 = vadd.f32 %v6110_v19, %v1168_v61  ;;  %v5248_v56 = vpop.f32.mrb[2].mxu0  ;;  %v6136_v37 = vpack.c.bf16 %v1395_v50, %v1394_v39 }
 0x21f   : > { %v1337_v60 = vadd.f32 %v5248_v56, %v6110_v19  ;;  %v1171_v63 = vpop.f32.mrb[3].mxu0  ;;  %v1368_v4 = vmax.f32 %v1336_v0, 0.0 }
 0x220   : > { %v1335_v41 = vadd.f32 %v6110_v19, %v1171_v63  ;;  %v1366_v2 = vmax.f32 %v1334_v58, 0.0 }
 0x221   : > { %v1369_v27 = vmax.f32 %v1337_v60, 0.0 }
 0x222   : > { %v1367_v3 = vmax.f32 %v1335_v41, 0.0 }
 0x223   : > { %v1399_v6 = vpack.c.bf16 %v1369_v27, %v1368_v4 }
 0x224   : > { %v1398_v7 = vpack.c.bf16 %v1367_v3, %v1366_v2  ;;  %v5251_v9 = vpop.f32.mrb[4].mxu0 }
 0x225   : > { %v1425_v44 = vshll.u32 %v1399_v6, 16  ;;  %v1340_v12 = vadd.f32 %v5251_v9, %v6110_v19  ;;  %1640 = vrot.lane.b32.xlu1 %v1399_v6, %s5513_s14  ;;  %v1184_v13 = vpop.f32.mrb[5].mxu0  ;;  %v1422_v32 = vshrl.u32 %v1399_v6, 16 }
 0x226   : > { %v1418_v36 = vshll.u32 %v1398_v7, 16  ;;  %v1338_v14 = vadd.f32 %v6110_v19, %v1184_v13  ;;  %1638 = vrot.lane.b32.xlu0 %v1398_v7, %s5513_s14  ;;  %v5252_v8 = vpop.f32.mrb[6].mxu0  ;;  %v1415_v15 = vshrl.u32 %v1398_v7, 16 }
 0x227   : > { %v1341_v11 = vadd.f32 %v5252_v8, %v6110_v19  ;;  %v1187_v17 = vpop.f32.mrb[7].mxu0  ;;  %v1560_v21 = vrot.slane %v1425_v44, 1  ;;  %v1424_v23 = vrot.slane %v1422_v32, 7  ;;  %v1372_v25 = vmax.f32 %v1340_v12, 0.0 }
 0x228   : > { %v1339_v52 = vadd.f32 %v6110_v19, %v1187_v17  ;;  %v1558_v54 = vrot.slane %v1418_v36, 1  ;;  %v1417_v24 = vrot.slane %v1415_v15, 7  ;;  %v1370_v30 = vmax.f32 %v1338_v14, 0.0 }
 0x229   : > { %v1373_v26 = vmax.f32 %v1341_v11, 0.0  ;;  %v1561_v28 = vor.u32 %v1560_v21, %v1422_v32  ;;  %v6146_v29 = vor.u32 %v1425_v44, %v1424_v23 }
 0x22a   : > { %v1371_v18 = vmax.f32 %v1339_v52, 0.0  ;;  %v1559_v34 = vor.u32 %v1558_v54, %v1415_v15  ;;  %v6148_v62 = vor.u32 %v1418_v36, %v1417_v24 }
 0x22b   : > { %v6150_v59 = vpack.c.bf16 %v1373_v26, %v1372_v25  ;;  %v6154_v35 = vsel %vm5644_vm2, %v1561_v28, 0 }
 0x22c   : > { %v6156_v38 = vpack.c.bf16 %v1371_v18, %v1370_v30  ;;  %v5255_v31 = vpop.f32.mrb[8].mxu0  ;;  %5040 = vmatprep.mubr.msk.bf16.mxu0 %vm1670_vm11, %v6154_v35  ;;  %v6162_v40 = vsel %vm5644_vm2, %v1559_v34, 0 }
 0x22d   : > { %v1344_v46 = vadd.f32 %v5255_v31, %v6110_v19  ;;  %4961 = vmatprep.mubr.msk.bf16.mxu1 %vm1670_vm11, %v6162_v40  ;;  %1644 = vrot.lane.b32.xlu1 %v6150_v59, %s5513_s14  ;;  %v1200_v47 = vpop.f32.mrb[9].mxu0 }
 0x22e   : > { %v1342_v1 = vadd.f32 %v6110_v19, %v1200_v47  ;;  %1642 = vrot.lane.b32.xlu0 %v6156_v38, %s5513_s14  ;;  %v5256_v5 = vpop.f32.mrb[10].mxu0 }
 0x22f   : > { %v1345_v49 = vadd.f32 %v5256_v5, %v6110_v19  ;;  %v1203_v51 = vpop.f32.mrb[11].mxu0  ;;  %v1376_v42 = vmax.f32 %v1344_v46, 0.0 }
 0x230   : > { %v1343_v53 = vadd.f32 %v6110_v19, %v1203_v51  ;;  %v1374_v33 = vmax.f32 %v1342_v1, 0.0 }
 0x231   : > { %v1377_v43 = vmax.f32 %v1345_v49, 0.0 }
 0x232   : > { %v1375_v22 = vmax.f32 %v1343_v53, 0.0  ;;  %v1429_v53 = vshrl.u32 %v6156_v38, 16 }
 0x233   : > { %v6174_v39 = vpack.c.bf16 %v1377_v43, %v1376_v42  ;;  %v1439_v43 = vshll.u32 %v6150_v59, 16 }
 0x234   : > { %v6176_v50 = vpack.c.bf16 %v1375_v22, %v1374_v33  ;;  %v5259_v57 = vpop.f32.mrb[12].mxu0  ;;  %v1543_v22 = vsel %vm5809_vm7, 0, %v6146_v29 }
 0x235   : > { %v1348_v0 = vadd.f32 %v5259_v57, %v6110_v19  ;;  %1648 = vrot.lane.b32.xlu1 %v6174_v39, %s5513_s14  ;;  %v1216_v61 = vpop.f32.mrb[13].mxu0  ;;  %v5422_v57 = vld [vmem:[%s7167_s3] sm:$0xff]  }
 0x236   : > { %v1346_v58 = vadd.f32 %v6110_v19, %v1216_v61  ;;  %1646 = vrot.lane.b32.xlu0 %v6176_v50, %s5513_s14  ;;  %v5260_v56 = vpop.f32.mrb[14].mxu0 }
 0x237   : > { %v1349_v60 = vadd.f32 %v5260_v56, %v6110_v19  ;;  %v1219_v63 = vpop.f32.mrb[15].mxu0  ;;  %v1380_v4 = vmax.f32 %v1348_v0, 0.0 }
 0x238   : > { %v1347_v41 = vadd.f32 %v6110_v19, %v1219_v63  ;;  %v1378_v2 = vmax.f32 %v1346_v58, 0.0  ;;  %v1431_v58 = vrot.slane %v1429_v53, 7 }
 0x239   : > { %v1381_v27 = vmax.f32 %v1349_v60, 0.0  ;;  %v1564_v60 = vrot.slane %v1439_v43, 1 }
 0x23a   : > { %v1379_v3 = vmax.f32 %v1347_v41, 0.0  ;;  %v1436_v41 = vshrl.u32 %v6150_v59, 16 }
 0x23b   : > { %v6186_v6 = vpack.c.bf16 %v1381_v27, %v1380_v4  ;;  %v1446_v4 = vshll.u32 %v6176_v50, 16 }
 0x23c   : > { %v6188_v7 = vpack.c.bf16 %v1379_v3, %v1378_v2  ;;  %v5263_v9 = vpop.f32.mrb[16].mxu0  ;;  %v1565_v27 = vor.u32 %v1564_v60, %v1436_v41 }
 0x23d   : > { %v1352_v44 = vadd.f32 %v5263_v9, %v6110_v19  ;;  %1652 = vrot.lane.b32.xlu1 %v6186_v6, %s5513_s14  ;;  %v1232_v12 = vpop.f32.mrb[17].mxu0  ;;  %v1438_v9 = vrot.slane %v1436_v41, 7  ;;  %v1464_v41 = vshrl.u32 %v6186_v6, 16 }
 0x23e   : > { %v1350_v13 = vadd.f32 %v6110_v19, %v1232_v12  ;;  %1650 = vrot.lane.b32.xlu0 %v6188_v7, %s5513_s14  ;;  %v5264_v32 = vpop.f32.mrb[18].mxu0  ;;  %v6273_v59 = vsel %vm5644_vm2, %v1565_v27, 0 }
 0x23f   : > { %v1353_v36 = vadd.f32 %v5264_v32, %v6110_v19  ;;  %v1235_v14 = vpop.f32.mrb[19].mxu0  ;;  %v1384_v15 = vmax.f32 %v1352_v44, 0.0  ;;  %v5424_v44 = vld [vmem:[%s7167_s3 + $0x10] sm:$0xff]   ;;  %v1441_v32 = vor.u32 %v1439_v43, %v1438_v9  ;;  %v5429_v43 = vld [vmem:[%s7167_s3 + $0x38] sm:$0xff]  }
 0x240   : > { %v1351_v8 = vadd.f32 %v6110_v19, %v1235_v14  ;;  %v1382_v17 = vmax.f32 %v1350_v13, 0.0  ;;  %v1566_v13 = vrot.slane %v1446_v4, 1  ;;  %v5425_v14 = vld [vmem:[%s7167_s3 + $0x18] sm:$0xff]  }
 0x241   : > { %v1385_v11 = vmax.f32 %v1353_v36, 0.0  ;;  %v1443_v36 = vshrl.u32 %v6176_v50, 16  ;;  %v5426_v50 = vld [vmem:[%s7167_s3 + $0x20] sm:$0xff]  }
 0x242   : > { %v1383_v21 = vmax.f32 %v1351_v8, 0.0  ;;  %v1453_v8 = vshll.u32 %v6174_v39, 16 }
 0x243   : > { %v6198_v23 = vpack.c.bf16 %v1385_v11, %v1384_v15  ;;  %v1567_v11 = vor.u32 %v1566_v13, %v1443_v36 }
 0x244   : > { %v6200_v52 = vpack.c.bf16 %v1383_v21, %v1382_v17  ;;  %v5267_v54 = vpop.f32.mrb[20].mxu0  ;;  %v1545_v17 = vsel %vm5809_vm7, 0, %v1441_v32  ;;  %v1445_v21 = vrot.slane %v1443_v36, 7 }
 0x245   : > { %v1356_v24 = vadd.f32 %v5267_v54, %v6110_v19  ;;  %1656 = vrot.lane.b32.xlu1 %v6198_v23, %s5513_s14  ;;  %v1248_v25 = vpop.f32.mrb[21].mxu0 }
 0x246   : > { %v1354_v26 = vadd.f32 %v6110_v19, %v1248_v25  ;;  %1654 = vrot.lane.b32.xlu0 %v6200_v52, %s5513_s14  ;;  %v5268_v28 = vpop.f32.mrb[22].mxu0  ;;  %v1568_v25 = vrot.slane %v1453_v8, 1  ;;  %v1474_v27 = vshll.u32 %v6200_v52, 16 }
 0x247   : > { %v1357_v30 = vadd.f32 %v5268_v28, %v6110_v19  ;;  %v1251_v18 = vpop.f32.mrb[23].mxu0  ;;  %v1388_v31 = vmax.f32 %v1356_v24, 0.0  ;;  %v6298_v24 = vsel %vm5644_vm2, %v1567_v11, 0  ;;  %v1450_v28 = vshrl.u32 %v6174_v39, 16  ;;  %v5428_v39 = vld [vmem:[%s7167_s3 + $0x30] sm:$0xff]  }
 0x248   : > { %v1355_v34 = vadd.f32 %v6110_v19, %v1251_v18  ;;  %v1386_v47 = vmax.f32 %v1354_v26, 0.0  ;;  %v1432_v19 = vshll.u32 %v6156_v38, 16  ;;  %v1542_v38 = vsel %vm5809_vm7, 0, %v6148_v62  ;;  %v5423_v62 = vld [vmem:[%s7167_s3 + $0x8] sm:$0xff]  }
 0x249   : > { %v1389_v46 = vmax.f32 %v1357_v30, 0.0  ;;  %v1448_v26 = vor.u32 %v1446_v4, %v1445_v21  ;;  %v5427_v30 = vld [vmem:[%s7167_s3 + $0x28] sm:$0xff]   ;;  %v1460_v18 = vshll.u32 %v6188_v7, 16  ;;  %v1574_v36 = vrot.slane %v1474_v27, 1 }
 0x24a   : > { %v1387_v1 = vmax.f32 %v1355_v34, 0.0  ;;  %v1562_v51 = vrot.slane %v1432_v19, 1  ;;  %v1434_v63 = vor.u32 %v1432_v19, %v1431_v58  ;;  %v5431_v4 = vld [vmem:[%s7167_s3 + $0x48] sm:$0xff]   ;;  %v1481_v11 = vshll.u32 %v6198_v23, 16 }
 0x24b   : > { %v6210_v5 = vpack.c.bf16 %v1389_v46, %v1388_v31  ;;  %v1569_v31 = vor.u32 %v1568_v25, %v1450_v28  ;;  %v1546_v46 = vsel %vm5809_vm7, 0, %v1448_v26 }
 0x24c   : > { %v6212_v49 = vpack.c.bf16 %v1387_v1, %v1386_v47  ;;  %v1563_v42 = vor.u32 %v1562_v51, %v1429_v53  ;;  %v1544_v3 = vsel %vm5809_vm7, 0, %v1434_v63  ;;  %v1452_v47 = vrot.slane %v1450_v28, 7 }
 0x24d   : > { %1660 = vrot.lane.b32.xlu1 %v6210_v5, %s5513_s14  ;;  %v6323_v19 = vsel %vm5644_vm2, %v1569_v31, 0  ;;  %v1570_v51 = vrot.slane %v1460_v18, 1  ;;  %v1576_v28 = vrot.slane %v1481_v11, 1 }
 0x24e   : > { %1658 = vrot.lane.b32.xlu0 %v6212_v49, %s5513_s14  ;;  %v6247_v29 = vsel %vm5644_vm2, %v1563_v42, 0  ;;  %v1455_v53 = vor.u32 %v1453_v8, %v1452_v47  ;;  %v1457_v42 = vshrl.u32 %v6188_v7, 16  ;;  %v5430_v7 = vld [vmem:[%s7167_s3 + $0x40] sm:$0xff]   ;;  %v1471_v8 = vshrl.u32 %v6200_v52, 16 }
 0x250   : > { %v1575_v21 = vor.u32 %v1574_v36, %v1471_v8  ;;  %v1473_v25 = vrot.slane %v1471_v8, 7  ;;  %v1509_v8 = vshll.u32 %v6121_v45, 16 }
 0x251   : > { %1664 = vrot.lane.b32.xlu1 %v6121_v45, %s5513_s14 }
 0x252   : > { %1662 = vrot.lane.b32.xlu0 %v6124_v48, %s5513_s14  ;;  %v6394_v52 = vsel %vm5644_vm2, %v1575_v21, 0 }
 0x255   : > { %1668 = vrot.lane.b32.xlu1 %v6133_v55, %s5513_s14 }
 0x256   : > { %1666 = vrot.lane.b32.xlu0 %v6136_v37, %s5513_s14 }
 0x297   : > { %v1641_v33 = vpop.permute.xlu1 %1640 }
 0x298   : > { %v6236_v0 = vsel %vm1670_vm11, %v1543_v22, %v1641_v33  ;;  %v1639_v61 = vpop.permute.xlu0 %1638  ;;  %v1467_v33 = vshll.u32 %v6186_v6, 16  ;;  %v5432_v6 = vld [vmem:[%s7167_s3 + $0x50] sm:$0xff]  }
 0x299   : > { %v6242_v56 = vsel %vm1670_vm11, %v1542_v38, %v1639_v61  ;;  %2430 = vmatmul.mubr.bf16.vlgmr.msra.gmra.mrb[32].mxu0 %v6236_v0  ;;  %v1547_v61 = vsel %vm5809_vm7, 0, %v1455_v53  ;;  %v1459_v38 = vrot.slane %v1457_v42, 7 }
 0x29a   : > { %1937 = vmatmul.mubr.bf16.vlgmr.msra.gmra.mrb[8].mxu1 %v6242_v56  ;;  %5041 = vmatprep.mubr.msk.bf16.mxu0 %vm1670_vm11, %v6247_v29 }
 0x29b   : > { %2140 = vmatpush1.bf16.msra.mxu1 %v5422_v57  ;;  %4962 = vmatprep.mubr.msk.bf16.mxu1 %vm1670_vm11, %v6154_v35  ;;  %v1571_v57 = vor.u32 %v1570_v51, %v1457_v42  ;;  %v1462_v63 = vor.u32 %v1460_v18, %v1459_v38  ;;  %v1478_v18 = vshrl.u32 %v6198_v23, 16 }
 0x29c   : > { %2141 = vmatprep.subr.bf16.mxu1 %v5512_v16 }
 0x29d   : > { %v6348_v60 = vsel %vm5644_vm2, %v1571_v57, 0  ;;  %v1548_v9 = vsel %vm5809_vm7, 0, %v1462_v63 }
 0x29f   : > { %2142 = vmatpush1.bf16.msra.mxu1 %v5423_v62  ;;  %v1645_v15 = vpop.permute.xlu1 %1644  ;;  %v1572_v62 = vrot.slane %v1467_v33, 1 }
 0x2a0   : > { %v1643_v2 = vpop.permute.xlu0 %1642  ;;  %2143 = vmatprep.subr.bf16.mxu1 %v5512_v16  ;;  %v6291_v54 = vsel %vm1670_vm11, %v1545_v17, %v1645_v15  ;;  %v5433_v15 = vld [vmem:[%s7167_s3 + $0x58] sm:$0xff]  }
 0x2a1   : > { %v6267_v12 = vsel %vm1670_vm11, %v1544_v3, %v1643_v2  ;;  %v1573_v3 = vor.u32 %v1572_v62, %v1464_v41 }
 0x2a2   : > { %1945 = vmatmul.mubr.bf16.gmra.mrb[12].mxu1 %v6236_v0  ;;  %2438 = vmatmul.mubr.bf16.gmra.mrb[36].mxu0 %v6267_v12 }
 0x2a3   : > { %4963 = vmatprep.mubr.msk.bf16.mxu1 %vm1670_vm11, %v6247_v29  ;;  %5042 = vmatprep.mubr.msk.bf16.mxu0 %vm1670_vm11, %v6273_v59  ;;  %v6373_v32 = vsel %vm5644_vm2, %v1573_v3, 0 }
 0x2a4   : > { %2144 = vmatpush1.bf16.msra.mxu1 %v5424_v44  ;;  %v1466_v44 = vrot.slane %v1464_v41, 7  ;;  %v1492_v41 = vshrl.u32 %v6210_v5, 16 }
 0x2a5   : > { %2145 = vmatprep.subr.bf16.mxu1 %v5512_v16 }
 0x2a7   : > { %v1649_v22 = vpop.permute.xlu1 %1648 }
 0x2a8   : > { %2146 = vmatpush1.bf16.msra.mxu1 %v5425_v14  ;;  %v1647_v34 = vpop.permute.xlu0 %1646  ;;  %v6341_v58 = vsel %vm1670_vm11, %v1547_v61, %v1649_v22  ;;  %v1469_v14 = vor.u32 %v1467_v33, %v1466_v44  ;;  %v1495_v33 = vshll.u32 %v6210_v5, 16 }
 0x2a9   : > { %2147 = vmatprep.subr.bf16.mxu1 %v5512_v16  ;;  %v6316_v1 = vsel %vm1670_vm11, %v1546_v46, %v1647_v34  ;;  %v1488_v34 = vshll.u32 %v6212_v49, 16  ;;  %v1577_v46 = vor.u32 %v1576_v28, %v1478_v18 }
 0x2aa   : > { %1953 = vmatmul.mubr.bf16.gmra.mrb[16].mxu1 %v6267_v12  ;;  %2446 = vmatmul.mubr.bf16.gmra.mrb[40].mxu0 %v6291_v54 }
 0x2ab   : > { %4964 = vmatprep.mubr.msk.bf16.mxu1 %vm1670_vm11, %v6273_v59  ;;  %5043 = vmatprep.mubr.msk.bf16.mxu0 %vm1670_vm11, %v6298_v24  ;;  %v6411_v53 = vsel %vm5644_vm2, %v1577_v46, 0  ;;  %v1578_v23 = vrot.slane %v1488_v34, 1 }
 0x2ac   : > { %2148 = vmatpush1.bf16.msra.mxu1 %v5426_v50  ;;  %v1549_v50 = vsel %vm5809_vm7, 0, %v1469_v14  ;;  %v1499_v14 = vshrl.u32 %v6124_v48, 16 }
 0x2ad   : > { %2149 = vmatprep.subr.bf16.mxu1 %v5512_v16 }
 0x2ae   : > { %v1501_v21 = vrot.slane %v1499_v14, 7 }
 0x2af   : > { %v1653_v17 = vpop.permute.xlu1 %1652 }
 0x2b0   : > { %2150 = vmatpush1.bf16.msra.mxu1 %v5427_v30  ;;  %v1651_v2 = vpop.permute.xlu0 %1650  ;;  %v6388_v26 = vsel %vm1670_vm11, %v1549_v50, %v1653_v17  ;;  %v1476_v30 = vor.u32 %v1474_v27, %v1473_v25 }
 0x2b1   : > { %2151 = vmatprep.subr.bf16.mxu1 %v5512_v16  ;;  %v6366_v13 = vsel %vm1670_vm11, %v1548_v9, %v1651_v2  ;;  %v1494_v9 = vrot.slane %v1492_v41, 7 }
 0x2b2   : > { %1961 = vmatmul.mubr.bf16.gmra.mrb[20].mxu1 %v6291_v54  ;;  %2454 = vmatmul.mubr.bf16.gmra.mrb[44].mxu0 %v6316_v1  ;;  %v1550_v47 = vsel %vm5809_vm7, 0, %v1476_v30  ;;  %v1506_v30 = vshrl.u32 %v6121_v45, 16 }
 0x2b3   : > { %4965 = vmatprep.mubr.msk.bf16.mxu1 %vm1670_vm11, %v6298_v24  ;;  %5044 = vmatprep.mubr.msk.bf16.mxu0 %vm1670_vm11, %v6323_v19  ;;  %v1497_v36 = vor.u32 %v1495_v33, %v1494_v9 }
 0x2b4   : > { %2152 = vmatpush1.bf16.msra.mxu1 %v5428_v39  ;;  %v1480_v39 = vrot.slane %v1478_v18, 7  ;;  %v1516_v18 = vshll.u32 %v6136_v37, 16 }
 0x2b5   : > { %2153 = vmatprep.subr.bf16.mxu1 %v5512_v16  ;;  %v1553_v17 = vsel %vm5809_vm7, 0, %v1497_v36 }
 0x2b6   : > { %v1483_v42 = vor.u32 %v1481_v11, %v1480_v39  ;;  %v1586_v45 = vrot.slane %v1516_v18, 1 }
 0x2b7   : > { %v1657_v22 = vpop.permute.xlu1 %1656 }
 0x2b8   : > { %2154 = vmatpush1.bf16.msra.mxu1 %v5429_v43  ;;  %v1655_v31 = vpop.permute.xlu0 %1654  ;;  %v1485_v43 = vshrl.u32 %v6212_v49, 16  ;;  %v1551_v61 = vsel %vm5809_vm7, 0, %v1483_v42  ;;  %v1580_v49 = vrot.slane %v1495_v33, 1  ;;  %v1523_v33 = vshll.u32 %v6133_v55, 16 }
 0x2b9   : > { %2155 = vmatprep.subr.bf16.mxu1 %v5512_v16  ;;  %v6405_v51 = vsel %vm1670_vm11, %v1550_v47, %v1655_v31  ;;  %v1508_v47 = vrot.slane %v1506_v30, 7 }
 0x2ba   : > { %1969 = vmatmul.mubr.bf16.gmra.mrb[24].mxu1 %v6316_v1  ;;  %2462 = vmatmul.mubr.bf16.gmra.mrb[48].mxu0 %v6341_v58  ;;  %v1579_v57 = vor.u32 %v1578_v23, %v1485_v43  ;;  %v1487_v38 = vrot.slane %v1485_v43, 7  ;;  %v1581_v2 = vor.u32 %v1580_v49, %v1492_v41  ;;  %v1513_v43 = vshrl.u32 %v6136_v37, 16 }
 0x2bb   : > { %4966 = vmatprep.mubr.msk.bf16.mxu1 %vm1670_vm11, %v6323_v19  ;;  %5045 = vmatprep.mubr.msk.bf16.mxu0 %vm1670_vm11, %v6348_v60  ;;  %v1511_v42 = vor.u32 %v1509_v8, %v1508_v47  ;;  %v1588_v37 = vrot.slane %v1523_v33, 1 }
 0x2bc   : > { %2156 = vmatpush1.bf16.msra.mxu1 %v5430_v7  ;;  %v6422_v7 = vsel %vm1670_vm11, %v1551_v61, %v1657_v22  ;;  %v6428_v62 = vsel %vm5644_vm2, %v1579_v57, 0  ;;  %v1490_v63 = vor.u32 %v1488_v34, %v1487_v38  ;;  %v1587_v57 = vor.u32 %v1586_v45, %v1513_v43 }
 0x2bd   : > { %2157 = vmatprep.subr.bf16.mxu1 %v5512_v16  ;;  %v1555_v61 = vsel %vm5809_vm7, 0, %v1511_v42  ;;  %v1515_v38 = vrot.slane %v1513_v43, 7 }
 0x2be   : > { %v1552_v3 = vsel %vm5809_vm7, 0, %v1490_v63  ;;  %v6496_v63 = vsel %vm5644_vm2, %v1587_v57, 0 }
 0x2bf   : > { %v1518_v41 = vor.u32 %v1516_v18, %v1515_v38 }
 0x2c0   : > { %2158 = vmatpush1.bf16.msra.mxu1 %v5431_v4  ;;  %v1502_v4 = vshll.u32 %v6124_v48, 16  ;;  %v1659_v27 = vpop.permute.xlu0 %1658  ;;  %v1584_v48 = vrot.slane %v1509_v8, 1 }
 0x2c1   : > { %2159 = vmatprep.subr.bf16.mxu1 %v5512_v16  ;;  %v6439_v44 = vsel %vm1670_vm11, %v1552_v3, %v1659_v27  ;;  %v1556_v3 = vsel %vm5809_vm7, 0, %v1518_v41 }
 0x2c2   : > { %1977 = vmatmul.mubr.bf16.gmra.mrb[28].mxu1 %v6341_v58  ;;  %2470 = vmatmul.mubr.bf16.gmra.mrb[52].mxu0 %v6366_v13  ;;  %v1582_v5 = vrot.slane %v1502_v4, 1  ;;  %v1504_v28 = vor.u32 %v1502_v4, %v1501_v21  ;;  %v1585_v31 = vor.u32 %v1584_v48, %v1506_v30  ;;  %v1520_v4 = vshrl.u32 %v6133_v55, 16 }
 0x2c3   : > { %4967 = vmatprep.mubr.msk.bf16.mxu1 %vm1670_vm11, %v6348_v60  ;;  %5046 = vmatprep.mubr.msk.bf16.mxu0 %vm1670_vm11, %v6373_v32 }
 0x2c4   : > { %2160 = vmatpush1.bf16.msra.mxu1 %v5432_v6  ;;  %v6445_v6 = vsel %vm5644_vm2, %v1581_v2, 0  ;;  %v1583_v11 = vor.u32 %v1582_v5, %v1499_v14  ;;  %v1663_v34 = vpop.permute.xlu0 %1662  ;;  %v1554_v46 = vsel %vm5809_vm7, 0, %v1504_v28  ;;  %v6479_v23 = vsel %vm5644_vm2, %v1585_v31, 0 }
 0x2c5   : > { %2161 = vmatprep.subr.bf16.mxu1 %v5512_v16  ;;  %v6473_v39 = vsel %vm1670_vm11, %v1554_v46, %v1663_v34  ;;  %v1589_v2 = vor.u32 %v1588_v37, %v1520_v4  ;;  %v1522_v9 = vrot.slane %v1520_v4, 7 }
 0x2c6   : > { %v6462_v25 = vsel %vm5644_vm2, %v1583_v11, 0 }
 0x2c7   : > { %v1621_v36 = vsel %vm5644_vm2, %v1589_v2, 0  ;;  %v1525_v55 = vor.u32 %v1523_v33, %v1522_v9  ;;  %vm4640_vm2 = vcmask 1047559  }
 0x2c8   : > { %2162 = vmatpush1.bf16.msra.mxu1 %v5433_v15  ;;  %v1661_v15 = vpop.permute.xlu1 %1660  ;;  %v1667_v27 = vpop.permute.xlu0 %1666 }
 0x2c9   : > { %v6456_v50 = vsel %vm1670_vm11, %v1553_v17, %v1661_v15  ;;  %v6506_v5 = vsel %vm1670_vm11, %v1556_v3, %v1667_v27  ;;  %v1557_v8 = vsel %vm5809_vm7, 0, %v1525_v55 }
 0x2ca   : > { %1985 = vmatmul.mubr.bf16.gmra.mrb[32].mxu1 %v6366_v13  ;;  %2478 = vmatmul.mubr.bf16.gmra.mrb[56].mxu0 %v6388_v26 }
 0x2cb   : > { %4968 = vmatprep.mubr.msk.bf16.mxu1 %vm1670_vm11, %v6373_v32  ;;  %5047 = vmatprep.mubr.msk.bf16.mxu0 %vm1670_vm11, %v6394_v52 }
 0x2cc   : > { %v1665_v22 = vpop.permute.xlu1 %1664 }
 0x2cd   : > { %v6490_v49 = vsel %vm1670_vm11, %v1555_v61, %v1665_v22 }
 0x2d0   : > { %v1669_v14 = vpop.permute.xlu1 %1668 }
 0x2d1   : > { %v1733_v15 = vsel %vm1670_vm11, %v1557_v8, %v1669_v14 }
 0x2d2   : > { %1993 = vmatmul.mubr.bf16.gmra.mrb[36].mxu1 %v6388_v26  ;;  %2486 = vmatmul.mubr.bf16.gmra.mrb[60].mxu0 %v6405_v51 }
 0x2d3   : > { %4969 = vmatprep.mubr.msk.bf16.mxu1 %vm1670_vm11, %v6394_v52  ;;  %5048 = vmatprep.mubr.msk.bf16.mxu0 %vm1670_vm11, %v6411_v53 }
 0x2da   : > { %2001 = vmatmul.mubr.bf16.gmra.mrb[40].mxu1 %v6405_v51  ;;  %2494 = vmatmul.mubr.bf16.gmra.mrb[64].mxu0 %v6422_v7 }
 0x2db   : > { %4970 = vmatprep.mubr.msk.bf16.mxu1 %vm1670_vm11, %v6411_v53  ;;  %5049 = vmatprep.mubr.msk.bf16.mxu0 %vm1670_vm11, %v6428_v62 }
 0x2e2   : > { %2009 = vmatmul.mubr.bf16.gmra.mrb[44].mxu1 %v6422_v7  ;;  %2502 = vmatmul.mubr.bf16.gmra.mrb[68].mxu0 %v6439_v44 }
 0x2e3   : > { %4971 = vmatprep.mubr.msk.bf16.mxu1 %vm1670_vm11, %v6428_v62  ;;  %5050 = vmatprep.mubr.msk.bf16.mxu0 %vm1670_vm11, %v6445_v6 }
 0x2ea   : > { %2017 = vmatmul.mubr.bf16.gmra.mrb[48].mxu1 %v6439_v44  ;;  %2510 = vmatmul.mubr.bf16.gmra.mrb[72].mxu0 %v6456_v50 }
 0x2eb   : > { %4972 = vmatprep.mubr.msk.bf16.mxu1 %vm1670_vm11, %v6445_v6  ;;  %5051 = vmatprep.mubr.msk.bf16.mxu0 %vm1670_vm11, %v6462_v25 }
 0x2f2   : > { %2025 = vmatmul.mubr.bf16.gmra.mrb[52].mxu1 %v6456_v50  ;;  %2518 = vmatmul.mubr.bf16.gmra.mrb[76].mxu0 %v6473_v39 }
 0x2f3   : > { %4973 = vmatprep.mubr.msk.bf16.mxu1 %vm1670_vm11, %v6462_v25  ;;  %5052 = vmatprep.mubr.msk.bf16.mxu0 %vm1670_vm11, %v6479_v23 }
 0x2fa   : > { %2033 = vmatmul.mubr.bf16.gmra.mrb[56].mxu1 %v6473_v39  ;;  %2526 = vmatmul.mubr.bf16.gmra.mrb[80].mxu0 %v6490_v49 }
 0x2fb   : > { %4974 = vmatprep.mubr.msk.bf16.mxu1 %vm1670_vm11, %v6479_v23  ;;  %5053 = vmatprep.mubr.msk.bf16.mxu0 %vm1670_vm11, %v6496_v63 }
 0x302   : > { %2041 = vmatmul.mubr.bf16.gmra.mrb[60].mxu1 %v6490_v49  ;;  %2534 = vmatmul.mubr.bf16.gmra.mrb[84].mxu0 %v6506_v5 }
 0x303   : > { %4975 = vmatprep.mubr.msk.bf16.mxu1 %vm1670_vm11, %v6496_v63  ;;  %5054 = vmatprep.mubr.msk.bf16.mxu0 %vm1670_vm11, %v1621_v36 }
 0x30a   : > { %2049 = vmatmul.mubr.bf16.gmra.mrb[64].mxu1 %v6506_v5  ;;  %2542 = vmatmul.mubr.bf16.gmra.mrb[88].mxu0 %v1733_v15 }
 0x30b   : > { %4976 = vmatprep.mubr.msk.bf16.mxu1 %vm1670_vm11, %v1621_v36  ;;  %2549 = vmatprep.mubr.bf16.mxu0 %v5512_v16 }
 0x312   : > { %2057 = vmatmul.mubr.bf16.gmra.mrb[68].mxu1 %v1733_v15  ;;  %2550 = vmatmul.mubr.bf16.gmra.mrb[92].mxu0 %v5512_v16 }
 0x313   : > { %2171 = vmatprep.mubr.bf16.mxu1 %v5512_v16 }
 0x31a   : > { %2172 = vmatmul.mubr.bf16.vlgmr.msra.gmra.mrb[72].mxu1 %v5512_v16 }
 0x31b   : > { %4989 = vmatprep.mubr.msk.bf16.mxu1 %vm1670_vm11, %v6162_v40 }
 0x322   : > { %2180 = vmatmul.mubr.bf16.gmra.mrb[76].mxu1 %v6242_v56 }
 0x323   : > { %4990 = vmatprep.mubr.msk.bf16.mxu1 %vm1670_vm11, %v6154_v35 }
 0x32a   : > { %2188 = vmatmul.mubr.bf16.gmra.mrb[80].mxu1 %v6236_v0 }
 0x32b   : > { %4991 = vmatprep.mubr.msk.bf16.mxu1 %vm1670_vm11, %v6247_v29 }
 0x332   : > { %2196 = vmatmul.mubr.bf16.gmra.mrb[84].mxu1 %v6267_v12 }
 0x333   : > { %4992 = vmatprep.mubr.msk.bf16.mxu1 %vm1670_vm11, %v6273_v59 }
 0x33a   : > { %2204 = vmatmul.mubr.bf16.gmra.mrb[88].mxu1 %v6291_v54 }
 0x33b   : > { %4993 = vmatprep.mubr.msk.bf16.mxu1 %vm1670_vm11, %v6298_v24 }
 0x342   : > { %2212 = vmatmul.mubr.bf16.gmra.mrb[92].mxu1 %v6316_v1 }
 0x343   : > { %4994 = vmatprep.mubr.msk.bf16.mxu1 %vm1670_vm11, %v6323_v19 }
 0x34a   : > { %2220 = vmatmul.mubr.bf16.gmra.mrb[96].mxu1 %v6341_v58 }
 0x34b   : > { %4995 = vmatprep.mubr.msk.bf16.mxu1 %vm1670_vm11, %v6348_v60 }
 0x352   : > { %2228 = vmatmul.mubr.bf16.gmra.mrb[100].mxu1 %v6366_v13 }
 0x353   : > { %4996 = vmatprep.mubr.msk.bf16.mxu1 %vm1670_vm11, %v6373_v32 }
 0x35a   : > { %2236 = vmatmul.mubr.bf16.gmra.mrb[104].mxu1 %v6388_v26 }
 0x35b   : > { %4997 = vmatprep.mubr.msk.bf16.mxu1 %vm1670_vm11, %v6394_v52 }
 0x362   : > { %2244 = vmatmul.mubr.bf16.gmra.mrb[108].mxu1 %v6405_v51 }
 0x363   : > { %4998 = vmatprep.mubr.msk.bf16.mxu1 %vm1670_vm11, %v6411_v53 }
 0x36a   : > { %2252 = vmatmul.mubr.bf16.gmra.mrb[112].mxu1 %v6422_v7 }
 0x36b   : > { %4999 = vmatprep.mubr.msk.bf16.mxu1 %vm1670_vm11, %v6428_v62 }
 0x36c   : > { %v6556_v10 = vpop.f32.mrb[32].mxu0 }
 0x36d   : > { %v6558_v16 = vpop.f32.mrb[8].mxu1  ;;  %v2433_v20 = vpop.f32.mrb[33].mxu0 }
 0x36e   : > { %v1940_v35 = vpop.f32.mrb[9].mxu1  ;;  %v6560_v40 = vpop.f32.mrb[34].mxu0 }
 0x36f   : > { %v6562_v0 = vpop.f32.mrb[10].mxu1  ;;  %v2436_v56 = vpop.f32.mrb[35].mxu0 }
 0x370   : > { %v1943_v29 = vpop.f32.mrb[11].mxu1 }
 0x372   : > { %2260 = vmatmul.mubr.bf16.gmra.mrb[116].mxu1 %v6439_v44 }
 0x373   : > { %5000 = vmatprep.mubr.msk.bf16.mxu1 %vm1670_vm11, %v6445_v6 }
 0x375   : > { %v6567_v12 = vpop.f32.mrb[12].mxu1  ;;  %v6569_v59 = vpop.f32.mrb[36].mxu0 }
 0x376   : > { %v1948_v54 = vpop.f32.mrb[13].mxu1  ;;  %v2441_v24 = vpop.f32.mrb[37].mxu0 }
 0x377   : > { %v6571_v1 = vpop.f32.mrb[14].mxu1  ;;  %v6573_v19 = vpop.f32.mrb[38].mxu0 }
 0x378   : > { %v1951_v58 = vpop.f32.mrb[15].mxu1  ;;  %v2444_v60 = vpop.f32.mrb[39].mxu0 }
 0x37a   : > { %2268 = vmatmul.mubr.bf16.gmra.mrb[120].mxu1 %v6456_v50 }
 0x37b   : > { %5001 = vmatprep.mubr.msk.bf16.mxu1 %vm1670_vm11, %v6462_v25 }
 0x37d   : > { %v6578_v13 = vpop.f32.mrb[16].mxu1  ;;  %v6580_v32 = vpop.f32.mrb[40].mxu0 }
 0x37e   : > { %v1956_v26 = vpop.f32.mrb[17].mxu1  ;;  %v2449_v52 = vpop.f32.mrb[41].mxu0 }
 0x37f   : > { %v6582_v51 = vpop.f32.mrb[18].mxu1  ;;  %v6584_v53 = vpop.f32.mrb[42].mxu0 }
 0x380   : > { %v1959_v7 = vpop.f32.mrb[19].mxu1  ;;  %v2452_v62 = vpop.f32.mrb[43].mxu0 }
 0x382   : > { %2276 = vmatmul.mubr.bf16.gmra.mrb[124].mxu1 %v6473_v39 }
 0x383   : > { %5002 = vmatprep.mubr.msk.bf16.mxu1 %vm1670_vm11, %v6479_v23 }
 0x385   : > { %v6589_v44 = vpop.f32.mrb[20].mxu1  ;;  %v6591_v6 = vpop.f32.mrb[44].mxu0 }
 0x386   : > { %v1964_v11 = vpop.f32.mrb[21].mxu1  ;;  %v2457_v17 = vpop.f32.mrb[45].mxu0 }
 0x387   : > { %v6593_v21 = vpop.f32.mrb[22].mxu1  ;;  %v6595_v50 = vpop.f32.mrb[46].mxu0 }
 0x388   : > { %v1967_v25 = vpop.f32.mrb[23].mxu1  ;;  %v2460_v48 = vpop.f32.mrb[47].mxu0 }
 0x38a   : > { %2284 = vmatmul.mubr.bf16.gmra.mrb[128].mxu1 %v6490_v49 }
 0x38b   : > { %5003 = vmatprep.mubr.msk.bf16.mxu1 %vm1670_vm11, %v6496_v63 }
 0x38d   : > { %v6600_v28 = vpop.f32.mrb[24].mxu1  ;;  %v6602_v30 = vpop.f32.mrb[48].mxu0 }
 0x38e   : > { %v1972_v18 = vpop.f32.mrb[25].mxu1  ;;  %v2465_v34 = vpop.f32.mrb[49].mxu0 }
 0x38f   : > { %v6604_v31 = vpop.f32.mrb[26].mxu1  ;;  %v6606_v46 = vpop.f32.mrb[50].mxu0 }
 0x390   : > { %v1975_v47 = vpop.f32.mrb[27].mxu1  ;;  %v2468_v39 = vpop.f32.mrb[51].mxu0 }
 0x392   : > { %2292 = vmatmul.mubr.bf16.gmra.mrb[132].mxu1 %v6506_v5 }
 0x395   : > { %v6609_v23 = vpop.f32.mrb[28].mxu1  ;;  %v6611_v45 = vpop.f32.mrb[52].mxu0 }
 0x396   : > { %v1980_v42 = vpop.f32.mrb[29].mxu1  ;;  %v2473_v43 = vpop.f32.mrb[53].mxu0 }
 0x397   : > { %v6613_v33 = vpop.f32.mrb[30].mxu1  ;;  %v6615_v22 = vpop.f32.mrb[54].mxu0 }
 0x398   : > { %v1983_v57 = vpop.f32.mrb[31].mxu1  ;;  %v2476_v61 = vpop.f32.mrb[55].mxu0 }
 0x39d   : > { %v6617_v38 = vpop.f32.mrb[32].mxu1  ;;  %v6619_v49 = vpop.f32.mrb[56].mxu0 }
 0x39e   : > { %v1988_v63 = vpop.f32.mrb[33].mxu1  ;;  %v2481_v37 = vpop.f32.mrb[57].mxu0 }
 0x39f   : > { %v6621_v41 = vpop.f32.mrb[34].mxu1  ;;  %v6623_v4 = vpop.f32.mrb[58].mxu0 }
 0x3a0   : > { %v1991_v27 = vpop.f32.mrb[35].mxu1  ;;  %v2484_v2 = vpop.f32.mrb[59].mxu0 }
 0x3a5   : > { %v6625_v3 = vpop.f32.mrb[36].mxu1  ;;  %v6627_v9 = vpop.f32.mrb[60].mxu0 }
 0x3a6   : > { %v1996_v5 = vpop.f32.mrb[37].mxu1  ;;  %v2489_v36 = vpop.f32.mrb[61].mxu0 }
 0x3a7   : > { %v6629_v55 = vpop.f32.mrb[38].mxu1  ;;  %v6631_v14 = vpop.f32.mrb[62].mxu0 }
 0x3a8   : > { %v1999_v8 = vpop.f32.mrb[39].mxu1  ;;  %v2492_v15 = vpop.f32.mrb[63].mxu0 }
 0x3ad   : > { %v6633_v20 = vpop.f32.mrb[40].mxu1  ;;  %v6635_v35 = vpop.f32.mrb[64].mxu0 }
 0x3ae   : > { %v2004_v56 = vpop.f32.mrb[41].mxu1  ;;  %v2497_v29 = vpop.f32.mrb[65].mxu0 }
 0x3af   : > { %v6637_v54 = vpop.f32.mrb[42].mxu1  ;;  %v6639_v24 = vpop.f32.mrb[66].mxu0 }
 0x3b0   : > { %v2007_v58 = vpop.f32.mrb[43].mxu1  ;;  %v2500_v60 = vpop.f32.mrb[67].mxu0 }
 0x3b5   : > { %v6641_v26 = vpop.f32.mrb[44].mxu1  ;;  %v6643_v52 = vpop.f32.mrb[68].mxu0 }
 0x3b6   : > { %v2012_v7 = vpop.f32.mrb[45].mxu1  ;;  %v2505_v62 = vpop.f32.mrb[69].mxu0 }
 0x3b7   : > { %v6645_v11 = vpop.f32.mrb[46].mxu1  ;;  %v6647_v17 = vpop.f32.mrb[70].mxu0 }
 0x3b8   : > { %v2015_v25 = vpop.f32.mrb[47].mxu1  ;;  %v2508_v48 = vpop.f32.mrb[71].mxu0 }
 0x3bd   : > { %v6649_v18 = vpop.f32.mrb[48].mxu1  ;;  %v6651_v34 = vpop.f32.mrb[72].mxu0 }
 0x3be   : > { %v2020_v47 = vpop.f32.mrb[49].mxu1  ;;  %v2513_v39 = vpop.f32.mrb[73].mxu0 }
 0x3bf   : > { %v6653_v42 = vpop.f32.mrb[50].mxu1  ;;  %v6655_v43 = vpop.f32.mrb[74].mxu0 }
 0x3c0   : > { %v2023_v57 = vpop.f32.mrb[51].mxu1  ;;  %v2516_v61 = vpop.f32.mrb[75].mxu0 }
 0x3c5   : > { %v6657_v63 = vpop.f32.mrb[52].mxu1  ;;  %v6659_v37 = vpop.f32.mrb[76].mxu0 }
 0x3c6   : > { %7183 = vst [vmem:[#allocation8_spill] sm:$0xff] %v6659_v37  ;;  %v2028_v27 = vpop.f32.mrb[53].mxu1  ;;  %v2521_v2 = vpop.f32.mrb[77].mxu0 }
 0x3c7   : > { %v6661_v5 = vpop.f32.mrb[54].mxu1  ;;  %v6663_v36 = vpop.f32.mrb[78].mxu0 }
 0x3c8   : > { %7184 = vst [vmem:[#allocation9_spill] sm:$0xff] %v6663_v36  ;;  %v2031_v8 = vpop.f32.mrb[55].mxu1  ;;  %v2524_v15 = vpop.f32.mrb[79].mxu0 }
 0x3cd   : > { %v6665_v56 = vpop.f32.mrb[56].mxu1  ;;  %v6667_v29 = vpop.f32.mrb[80].mxu0 }
 0x3ce   : > { %7185 = vst [vmem:[#allocation10_spill] sm:$0xff] %v6665_v56  ;;  %7186 = vst [vmem:[#allocation11_spill] sm:$0xff] %v6667_v29  ;;  %v2036_v58 = vpop.f32.mrb[57].mxu1  ;;  %v2529_v60 = vpop.f32.mrb[81].mxu0  ;;  %v6694_v29 = vld [vmem:[#allocation4] ss:$0 sm:$0xff] }
 0x3cf   : > { %v6669_v7 = vpop.f32.mrb[58].mxu1  ;;  %v6671_v62 = vpop.f32.mrb[82].mxu0 }
 0x3d0   : > { %7187 = vst [vmem:[#allocation12_spill] sm:$0xff] %v6669_v7  ;;  %7188 = vst [vmem:[#allocation13_spill] sm:$0xff] %v6671_v62  ;;  %v2039_v25 = vpop.f32.mrb[59].mxu1  ;;  %v2532_v48 = vpop.f32.mrb[83].mxu0 }
 0x3d5   : > { %v6673_v47 = vpop.f32.mrb[60].mxu1  ;;  %v6675_v39 = vpop.f32.mrb[84].mxu0 }
 0x3d6   : > { %7189 = vst [vmem:[#allocation14_spill] sm:$0xff] %v6673_v47  ;;  %7190 = vst [vmem:[#allocation15_spill] sm:$0xff] %v6675_v39  ;;  %v2044_v57 = vpop.f32.mrb[61].mxu1  ;;  %v2537_v61 = vpop.f32.mrb[85].mxu0 }
 0x3d7   : > { %v6677_v27 = vpop.f32.mrb[62].mxu1  ;;  %v6679_v2 = vpop.f32.mrb[86].mxu0 }
 0x3d8   : > { %7191 = vst [vmem:[#allocation16_spill] sm:$0xff] %v6677_v27  ;;  %7192 = vst [vmem:[#allocation17_spill] sm:$0xff] %v6679_v2  ;;  %v2047_v8 = vpop.f32.mrb[63].mxu1  ;;  %v2540_v15 = vpop.f32.mrb[87].mxu0 }
 0x3dd   : > { %v6681_v58 = vpop.f32.mrb[64].mxu1  ;;  %v6683_v60 = vpop.f32.mrb[88].mxu0 }
 0x3de   : > { %7193 = vst [vmem:[#allocation18_spill] sm:$0xff] %v6681_v58  ;;  %7194 = vst [vmem:[#allocation19_spill] sm:$0xff] %v6683_v60  ;;  %v2052_v7 = vpop.f32.mrb[65].mxu1  ;;  %v2545_v62 = vpop.f32.mrb[89].mxu0  ;;  %v5514_v60 = vmov 1966171168  }
 0x3df   : > { %v6685_v25 = vpop.f32.mrb[66].mxu1  ;;  %v6687_v48 = vpop.f32.mrb[90].mxu0  ;;  %v2695_v56 = vunpack.c.l.s4 %v5514_v60 }
 0x3e0   : > { %7195 = vst [vmem:[#allocation20_spill] sm:$0xff] %v6685_v25  ;;  %7196 = vst [vmem:[#allocation21_spill] sm:$0xff] %v6687_v48  ;;  %v2055_v47 = vpop.f32.mrb[67].mxu1  ;;  %v2548_v39 = vpop.f32.mrb[91].mxu0 }
 0x3e5   : > { %v6689_v57 = vpop.f32.mrb[68].mxu1 }
 0x3e6   : > { %7197 = vst [vmem:[#allocation22_spill] sm:$0xff] %v6689_v57  ;;  %v2060_v61 = vpop.f32.mrb[69].mxu1 }
 0x3e7   : > { %v6691_v27 = vpop.f32.mrb[70].mxu1 }
 0x3e8   : > { %7198 = vst [vmem:[#allocation23_spill] sm:$0xff] %v6691_v27  ;;  %v2063_v2 = vpop.f32.mrb[71].mxu1 }
 0x3ed   : > { %v2173_v8 = vpop.f32.mrb[72].mxu1 }
 0x3ee   : > { %v2174_v15 = vadd.f32 %v2173_v8, %v6558_v16  ;;  %v2175_v58 = vpop.f32.mrb[73].mxu1 }
 0x3ef   : > { %v2176_v7 = vpop.f32.mrb[74].mxu1 }
 0x3f0   : > { %v2558_v62 = vadd.f32 %v6556_v10, %v2174_v15  ;;  %v2177_v25 = vadd.f32 %v2176_v7, %v6562_v0  ;;  %v2178_v48 = vpop.f32.mrb[75].mxu1 }
 0x3f1   : > { %v2697_v48 = vlaneseq }
 0x3f2   : > { %v2597_v47 = vadd.f32 %v6694_v29, %v2558_v62  ;;  %v2559_v39 = vadd.f32 %v6560_v40, %v2177_v25  ;;  %v2696_v62 = vunpack.c.0.s8 %v2695_v56 }
 0x3f4   : > { %v2598_v61 = vadd.f32 %v6694_v29, %v2559_v39  ;;  %v2629_v2 = vmax.f32 %v2597_v47, 0.0  ;;  %v2698_v47 = vshrl.u32 %v2697_v48, 7 }
 0x3f5   : > { %v2181_v27 = vpop.f32.mrb[76].mxu1 }
 0x3f6   : > { %v2630_v57 = vmax.f32 %v2598_v61, 0.0  ;;  %v2182_v16 = vadd.f32 %v2181_v27, %v6567_v12  ;;  %v2183_v58 = vpop.f32.mrb[77].mxu1  ;;  %v5515_v61 = vmov 1935823168  }
 0x3f7   : > { %v2184_v8 = vpop.f32.mrb[78].mxu1 }
 0x3f8   : > { %v2661_v36 = vpack.c.bf16 %v2630_v57, %v2629_v2  ;;  %v2560_v10 = vadd.f32 %v6569_v59, %v2182_v16  ;;  %v2185_v0 = vadd.f32 %v2184_v8, %v6571_v1  ;;  %v2186_v15 = vpop.f32.mrb[79].mxu1  ;;  %v3662_v59 = vunpack.c.l.s4 %v5515_v61 }
 0x3f9   : > { %v6708_v16 = vsub.s32 %v2696_v62, %v2698_v47 }
 0x3fa   : > { %v2599_v40 = vadd.f32 %v6694_v29, %v2560_v10  ;;  %v2561_v25 = vadd.f32 %v6573_v19, %v2185_v0  ;;  %v3663_v0 = vunpack.c.0.s8 %v3662_v59 }
 0x3fc   : > { %v2600_v7 = vadd.f32 %v6694_v29, %v2561_v25  ;;  %v2631_v27 = vmax.f32 %v2599_v40, 0.0 }
 0x3fd   : > { %v2189_v12 = vpop.f32.mrb[80].mxu1 }
 0x3fe   : > { %v2632_v39 = vmax.f32 %v2600_v7, 0.0  ;;  %v2190_v60 = vadd.f32 %v2189_v12, %v6578_v13  ;;  %v2191_v57 = vpop.f32.mrb[81].mxu1 }
 0x3ff   : > { %v2192_v2 = vpop.f32.mrb[82].mxu1 }
 0x400   : > { %v2662_v1 = vpack.c.bf16 %v2632_v39, %v2631_v27  ;;  %v2562_v58 = vadd.f32 %v6580_v32, %v2190_v60  ;;  %v2193_v19 = vadd.f32 %v2192_v2, %v6582_v51  ;;  %v2194_v8 = vpop.f32.mrb[83].mxu1  ;;  %v6718_v27 = vsub.s32 %v3663_v0, %v2698_v47 }
 0x402   : > { %v2677_v10 = vmax.bf16 %v2662_v1, %v2661_v36  ;;  %v2563_v56 = vadd.f32 %v6584_v53, %v2193_v19  ;;  %v2601_v48 = vadd.f32 %v6694_v29, %v2562_v58 }
 0x404   : > { %v2693_v15 = vcombine.high %v2677_v10, %v2677_v10  ;;  %v2700_v13 = vrot.slane %v2677_v10, %v6708_v16  ;;  %v2602_v40 = vadd.f32 %v6694_v29, %v2563_v56  ;;  %v2633_v36 = vmax.f32 %v2601_v48, 0.0 }
 0x405   : > { %v2197_v25 = vpop.f32.mrb[84].mxu1 }
 0x406   : > { %v2707_v7 = vrot.slane %v2693_v15, %v6708_v16  ;;  %v2708_v62 = vcombine.high %v2700_v13, %v2700_v13  ;;  %v2716_v32 = vrot.slane %v2700_v13, %v6708_v16  ;;  %v2634_v12 = vmax.f32 %v2602_v40, 0.0  ;;  %v2199_v51 = vpop.f32.mrb[85].mxu1 }
 0x407   : > { %v2198_v53 = vadd.f32 %v2197_v25, %v6589_v44  ;;  %v2200_v39 = vpop.f32.mrb[86].mxu1 }
 0x408   : > { %v2709_v60 = vcombine.high %v2707_v7, %v2707_v7  ;;  %v2723_v57 = vrot.slane %v2707_v7, %v6708_v16  ;;  %v2730_v61 = vrot.slane %v2708_v62, %v6708_v16  ;;  %v2738_v59 = vcombine.high %v2716_v32, %v2716_v32  ;;  %v2202_v2 = vpop.f32.mrb[87].mxu1 }
 0x409   : > { %v3150_v1 = vshrl.u32 %v2716_v32, 16  ;;  %v6723_v58 = vpack.c.bf16 %v2634_v12, %v2633_v36  ;;  %v2564_v19 = vadd.f32 %v6591_v6, %v2198_v53  ;;  %v2201_v8 = vadd.f32 %v2200_v39, %v6593_v21 }
 0x40a   : > { %v2737_v47 = vrot.slane %v2709_v60, %v6708_v16  ;;  %v2739_v10 = vcombine.high %v2723_v57, %v2723_v57  ;;  %v2740_v56 = vcombine.high %v2730_v61, %v2730_v61  ;;  %v3155_v44 = vshrl.u32 %v2730_v61, 16 }
 0x40b   : > { %v3160_v0 = vshrl.u32 %v2738_v59, 16  ;;  %v3170_v48 = vshrl.u32 %v2723_v57, 16  ;;  %v3533_v15 = vmax.bf16 %v3150_v1, %v2716_v32 }
 0x40c   : > { %v2741_v13 = vcombine.high %v2737_v47, %v2737_v47  ;;  %v3165_v40 = vshrl.u32 %v2740_v56, 16  ;;  %v3175_v25 = vshrl.u32 %v2737_v47, 16  ;;  %v3180_v7 = vshrl.u32 %v2739_v10, 16 }
 0x40d   : > { %v3534_v62 = vmax.bf16 %v3155_v44, %v2730_v61  ;;  %v3535_v12 = vmax.bf16 %v3160_v0, %v2738_v59  ;;  %v3537_v51 = vmax.bf16 %v3170_v48, %v2723_v57  ;;  %v3667_v6 = vrot.slane %v3533_v15, %v6718_v27  ;;  %v2205_v21 = vpop.f32.mrb[88].mxu1 }
 0x40e   : > { %v3185_v36 = vshrl.u32 %v2741_v13, 16  ;;  %v3536_v53 = vmax.bf16 %v3165_v40, %v2740_v56  ;;  %v3538_v39 = vmax.bf16 %v3175_v25, %v2737_v47  ;;  %v3539_v60 = vmax.bf16 %v3180_v7, %v2739_v10  ;;  %v2207_v2 = vpop.f32.mrb[89].mxu1 }
 0x40f   : > { %v3674_v32 = vrot.slane %v3667_v6, %v6718_v27  ;;  %v3681_v1 = vrot.slane %v3534_v62, %v6718_v27  ;;  %v3695_v37 = vrot.slane %v3535_v12, %v6718_v27  ;;  %v3723_v61 = vrot.slane %v3537_v51, %v6718_v27  ;;  %v2208_v57 = vpop.f32.mrb[90].mxu1  ;;  %v6745_v2 = vpop.f32.mrb[92].mxu0 }
 0x410   : > { %v3540_v59 = vmax.bf16 %v3185_v36, %v2741_v13  ;;  %v3709_v44 = vrot.slane %v3536_v53, %v6718_v27  ;;  %v3737_v0 = vrot.slane %v3538_v39, %v6718_v27  ;;  %v3751_v47 = vrot.slane %v3539_v60, %v6718_v27  ;;  %v2210_v10 = vpop.f32.mrb[91].mxu1 }
 0x411   : > { %v3688_v56 = vrot.slane %v3681_v1, %v6718_v27  ;;  %v3702_v48 = vrot.slane %v3695_v37, %v6718_v27  ;;  %v3730_v15 = vrot.slane %v3723_v61, %v6718_v27  ;;  %v2603_v40 = vadd.f32 %v6694_v29, %v2564_v19 }
 0x412   : > { %v3716_v25 = vrot.slane %v3709_v44, %v6718_v27  ;;  %v3744_v13 = vrot.slane %v3737_v0, %v6718_v27  ;;  %v3758_v7 = vrot.slane %v3751_v47, %v6718_v27  ;;  %v3765_v62 = vrot.slane %v3540_v59, %v6718_v27  ;;  %v2553_v47 = vpop.f32.mrb[93].mxu0 }
 0x413   : > { %v4557_v12 = vunpack.c.l.b16 %v3674_v32  ;;  %v4558_v51 = vunpack.c.l.b16 %v3688_v56  ;;  %v4559_v6 = vunpack.c.l.b16 %v3702_v48  ;;  %v4561_v36 = vunpack.c.l.b16 %v3730_v15  ;;  %v6748_v15 = vpop.f32.mrb[94].mxu0 }
 0x414   : > { %v3772_v37 = vrot.slane %v3765_v62, %v6718_v27  ;;  %v4560_v53 = vunpack.c.l.b16 %v3716_v25  ;;  %v4562_v39 = vunpack.c.l.b16 %v3744_v13  ;;  %v4563_v60 = vunpack.c.l.b16 %v3758_v7 }
 0x415   : > { %v4621_v19 = vrot.slane %v4558_v51, 7  ;;  %v4624_v1 = vrot.slane %v4559_v6, 6  ;;  %v2635_v61 = vmax.f32 %v2603_v40, 0.0  ;;  %v2565_v44 = vadd.f32 %v6595_v50, %v2201_v8  ;;  %v2213_v0 = vpop.f32.mrb[92].mxu1  ;;  %v2556_v50 = vpop.f32.mrb[95].mxu0 }
 0x416   : > { %v4564_v59 = vunpack.c.l.b16 %v3772_v37  ;;  %v4627_v10 = vrot.slane %v4560_v53, 5  ;;  %v4630_v32 = vrot.slane %v4561_v36, 4  ;;  %v4633_v56 = vrot.slane %v4562_v39, 3  ;;  %v2215_v48 = vpop.f32.mrb[93].mxu1 }
 0x417   : > { %v4623_v25 = vsel %vm4622_vm12, %v4621_v19, %v4557_v12  ;;  %v2604_v13 = vadd.f32 %v6694_v29, %v2565_v44  ;;  %v2206_v7 = vadd.f32 %v2205_v21, %v6600_v28  ;;  %v2209_v40 = vadd.f32 %v2208_v57, %v6604_v31  ;;  %v2216_v62 = vpop.f32.mrb[94].mxu1 }
 0x418   : > { %v4626_v8 = vsel %vm4625_vm13, %v4624_v1, %v4623_v25  ;;  %v4636_v51 = vrot.slane %v4563_v60, 2  ;;  %v2214_v6 = vadd.f32 %v2213_v0, %v6609_v23  ;;  %v2217_v36 = vadd.f32 %v2216_v62, %v6613_v33  ;;  %v2218_v37 = vpop.f32.mrb[95].mxu1 }
 0x419   : > { %v4629_v53 = vsel %vm4628_vm14, %v4627_v10, %v4626_v8  ;;  %v2636_v39 = vmax.f32 %v2604_v13, 0.0  ;;  %v2566_v12 = vadd.f32 %v6602_v30, %v2206_v7  ;;  %v2567_v19 = vadd.f32 %v6606_v46, %v2209_v40 }
 0x41a   : > { %v4632_v28 = vsel %vm4631_vm15, %v4630_v32, %v4629_v53  ;;  %v4639_v31 = vrot.slane %v4564_v59, 1  ;;  %v2568_v21 = vadd.f32 %v6611_v45, %v2214_v6  ;;  %v2569_v57 = vadd.f32 %v6615_v22, %v2217_v36 }
 0x41b   : > { %v4635_v23 = vsel %vm4634_vm0, %v4633_v56, %v4632_v28  ;;  %v2664_v60 = vpack.c.bf16 %v2636_v39, %v2635_v61  ;;  %v2605_v33 = vadd.f32 %v6694_v29, %v2566_v12  ;;  %v2606_v1 = vadd.f32 %v6694_v29, %v2567_v19 }
 0x41c   : > { %v4638_v44 = vsel %vm4637_vm1, %v4636_v51, %v4635_v23  ;;  %v2607_v30 = vadd.f32 %v6694_v29, %v2568_v21  ;;  %v2608_v46 = vadd.f32 %v6694_v29, %v2569_v57 }
 0x41d   : > { %v4641_v45 = vsel %vm4640_vm2, %v4639_v31, %v4638_v44  ;;  %v2678_v22 = vmax.bf16 %v2664_v60, %v6723_v58  ;;  %v2637_v61 = vmax.f32 %v2605_v33, 0.0  ;;  %v2638_v0 = vmax.f32 %v2606_v1, 0.0  ;;  %v2221_v47 = vpop.f32.mrb[96].mxu1 }
 0x41e   : > { %v4740_v59 = vpack.c.b16 %v4641_v45, %v4641_v45  ;;  %v2639_v10 = vmax.f32 %v2607_v30, 0.0  ;;  %v2640_v32 = vmax.f32 %v2608_v46, 0.0  ;;  %v2222_v56 = vadd.f32 %v2221_v47, %v6617_v38  ;;  %v2223_v48 = vpop.f32.mrb[97].mxu1 }
 0x41f   : > { %v2742_v25 = vcombine.high %v2678_v22, %v2678_v22  ;;  %v2749_v13 = vrot.slane %v2678_v22, %v6708_v16  ;;  %v2665_v7 = vpack.c.bf16 %v2638_v0, %v2637_v61  ;;  %v2224_v40 = vpop.f32.mrb[98].mxu1 }
 0x420   : > { %4757 = vst.msk [vmem:[%s6773_s21] sm:$0xf] %vm4756_vm3, %v4740_v59  ;;  %v2666_v62 = vpack.c.bf16 %v2640_v32, %v2639_v10  ;;  %v2570_v50 = vadd.f32 %v6619_v49, %v2222_v56  ;;  %v2225_v58 = vadd.f32 %v2224_v40, %v6621_v41  ;;  %v2226_v8 = vpop.f32.mrb[99].mxu1 }
 0x421   : > { %v2756_v51 = vrot.slane %v2742_v25, %v6708_v16  ;;  %v2757_v6 = vcombine.high %v2749_v13, %v2749_v13  ;;  %v2765_v36 = vrot.slane %v2749_v13, %v6708_v16 }
 0x422   : > { %v2679_v38 = vmax.bf16 %v2666_v62, %v2665_v7  ;;  %v6786_v37 = vadd.f32 %v6694_v29, %v2570_v50  ;;  %v6789_v53 = vadd.f32 %v6623_v4, %v2225_v58 }
 0x423   : > { %v2758_v39 = vcombine.high %v2756_v51, %v2756_v51  ;;  %v2772_v12 = vrot.slane %v2756_v51, %v6708_v16  ;;  %v2779_v49 = vrot.slane %v2757_v6, %v6708_v16  ;;  %v2787_v19 = vcombine.high %v2765_v36, %v2765_v36 }
 0x424   : > { %v3190_v41 = vshrl.u32 %v2765_v36, 16  ;;  %v2791_v28 = vcombine.high %v2679_v38, %v2679_v38  ;;  %v6794_v31 = vrot.slane %v2679_v38, %v6708_v16  ;;  %v2641_v21 = vmax.f32 %v6786_v37, 0.0 }
 0x425   : > { %v2786_v57 = vrot.slane %v2758_v39, %v6708_v16  ;;  %v2788_v23 = vcombine.high %v2772_v12, %v2772_v12  ;;  %v2789_v60 = vcombine.high %v2779_v49, %v2779_v49  ;;  %v3195_v33 = vshrl.u32 %v2779_v49, 16  ;;  %v6798_v4 = vpop.f32.mrb[100].mxu1 }
 0x426   : > { %v3200_v1 = vshrl.u32 %v2787_v19, 16  ;;  %v3210_v44 = vshrl.u32 %v2772_v12, 16  ;;  %v3541_v30 = vmax.bf16 %v3190_v41, %v2765_v36  ;;  %v2805_v46 = vrot.slane %v2791_v28, %v6708_v16  ;;  %v2231_v45 = vpop.f32.mrb[101].mxu1 }
 0x427   : > { %v2790_v22 = vcombine.high %v2786_v57, %v2786_v57  ;;  %v3205_v61 = vshrl.u32 %v2789_v60, 16  ;;  %v3215_v0 = vshrl.u32 %v2786_v57, 16  ;;  %v3220_v47 = vshrl.u32 %v2788_v23, 16  ;;  %v6801_v59 = vpop.f32.mrb[102].mxu1 }
 0x428   : > { %v3542_v10 = vmax.bf16 %v3195_v33, %v2779_v49  ;;  %v3543_v32 = vmax.bf16 %v3200_v1, %v2787_v19  ;;  %v3545_v56 = vmax.bf16 %v3210_v44, %v2772_v12  ;;  %v3779_v48 = vrot.slane %v3541_v30, %v6718_v27  ;;  %v2234_v25 = vpop.f32.mrb[103].mxu1 }
 0x429   : > { %v3225_v13 = vshrl.u32 %v2790_v22, 16  ;;  %v3544_v7 = vmax.bf16 %v3205_v61, %v2789_v60  ;;  %v3546_v40 = vmax.bf16 %v3215_v0, %v2786_v57  ;;  %v3547_v62 = vmax.bf16 %v3220_v47, %v2788_v23 }
 0x42a   : > { %v3786_v50 = vrot.slane %v3779_v48, %v6718_v27  ;;  %v3793_v58 = vrot.slane %v3542_v10, %v6718_v27  ;;  %v3807_v8 = vrot.slane %v3543_v32, %v6718_v27  ;;  %v3835_v51 = vrot.slane %v3545_v56, %v6718_v27 }
 0x42b   : > { %v3548_v6 = vmax.bf16 %v3225_v13, %v2790_v22  ;;  %v3821_v36 = vrot.slane %v3544_v7, %v6718_v27  ;;  %v3849_v38 = vrot.slane %v3546_v40, %v6718_v27  ;;  %v3863_v39 = vrot.slane %v3547_v62, %v6718_v27 }
 0x42c   : > { %v3800_v12 = vrot.slane %v3793_v58, %v6718_v27  ;;  %v3814_v49 = vrot.slane %v3807_v8, %v6718_v27  ;;  %v3842_v19 = vrot.slane %v3835_v51, %v6718_v27  ;;  %v4565_v41 = vunpack.c.l.b16 %v3786_v50 }
 0x42d   : > { %v3828_v28 = vrot.slane %v3821_v36, %v6718_v27  ;;  %v3856_v57 = vrot.slane %v3849_v38, %v6718_v27  ;;  %v3870_v23 = vrot.slane %v3863_v39, %v6718_v27  ;;  %v3877_v60 = vrot.slane %v3548_v6, %v6718_v27  ;;  %v6818_v33 = vpop.f32.mrb[104].mxu1 }
 0x42e   : > { %v4566_v1 = vunpack.c.l.b16 %v3800_v12  ;;  %v4567_v44 = vunpack.c.l.b16 %v3814_v49  ;;  %v4569_v30 = vunpack.c.l.b16 %v3842_v19  ;;  %v2806_v45 = vcombine.high %v6794_v31, %v6794_v31  ;;  %v2239_v22 = vpop.f32.mrb[105].mxu1 }
 0x42f   : > { %v3884_v61 = vrot.slane %v3877_v60, %v6718_v27  ;;  %v4568_v0 = vunpack.c.l.b16 %v3828_v28  ;;  %v4570_v47 = vunpack.c.l.b16 %v3856_v57  ;;  %v4571_v10 = vunpack.c.l.b16 %v3870_v23  ;;  %v6823_v32 = vpop.f32.mrb[106].mxu1 }
 0x430   : > { %v4642_v56 = vrot.slane %v4566_v1, 7  ;;  %v4644_v48 = vrot.slane %v4567_v44, 6  ;;  %v4648_v25 = vrot.slane %v4569_v30, 4  ;;  %v2807_v13 = vcombine.high %v2805_v46, %v2805_v46  ;;  %v2242_v7 = vpop.f32.mrb[107].mxu1 }
 0x431   : > { %v4572_v40 = vunpack.c.l.b16 %v3884_v61  ;;  %v4646_v62 = vrot.slane %v4568_v0, 5  ;;  %v4650_v50 = vrot.slane %v4570_v47, 3  ;;  %v4652_v58 = vrot.slane %v4571_v10, 2 }
 0x432   : > { %v4643_v8 = vsel %vm4622_vm12, %v4642_v56, %v4565_v41  ;;  %v2814_v51 = vrot.slane %v6794_v31, %v6708_v16  ;;  %v2821_v6 = vrot.slane %v2805_v46, %v6708_v16  ;;  %v2828_v36 = vrot.slane %v2806_v45, %v6708_v16 }
 0x433   : > { %v4645_v38 = vsel %vm4625_vm13, %v4644_v48, %v4643_v8  ;;  %v4654_v39 = vrot.slane %v4572_v40, 1  ;;  %v2835_v12 = vrot.slane %v2807_v13, %v6708_v16  ;;  %v6834_v49 = vadd.f32 %v6694_v29, %v6789_v53 }
 0x434   : > { %v4647_v19 = vsel %vm4628_vm14, %v4646_v62, %v4645_v38  ;;  %v2836_v28 = vcombine.high %v2814_v51, %v2814_v51  ;;  %v2837_v41 = vcombine.high %v2821_v6, %v2821_v6  ;;  %v2838_v57 = vcombine.high %v2828_v36, %v2828_v36 }
 0x435   : > { %v4649_v31 = vsel %vm4631_vm15, %v4648_v25, %v4647_v19  ;;  %v2839_v23 = vcombine.high %v2835_v12, %v2835_v12  ;;  %v3230_v46 = vshrl.u32 %v2814_v51, 16  ;;  %v3235_v60 = vshrl.u32 %v2828_v36, 16  ;;  %v6838_v1 = vpop.f32.mrb[108].mxu1 }
 0x436   : > { %v4651_v44 = vsel %vm4634_vm0, %v4650_v50, %v4649_v31  ;;  %v3240_v30 = vshrl.u32 %v2836_v28, 16  ;;  %v3245_v45 = vshrl.u32 %v2838_v57, 16  ;;  %v3250_v22 = vshrl.u32 %v2821_v6, 16  ;;  %v2247_v61 = vpop.f32.mrb[109].mxu1 }
 0x437   : > { %v4653_v53 = vsel %vm4637_vm1, %v4652_v58, %v4651_v44  ;;  %v3255_v0 = vshrl.u32 %v2835_v12, 16  ;;  %v3260_v47 = vshrl.u32 %v2837_v41, 16  ;;  %v3265_v10 = vshrl.u32 %v2839_v23, 16  ;;  %v2248_v56 = vpop.f32.mrb[110].mxu1 }
 0x438   : > { %v4655_v48 = vsel %vm4640_vm2, %v4654_v39, %v4653_v53  ;;  %v3549_v25 = vmax.bf16 %v3230_v46, %v2814_v51  ;;  %v3550_v13 = vmax.bf16 %v3235_v60, %v2828_v36  ;;  %v3551_v7 = vmax.bf16 %v3240_v30, %v2836_v28  ;;  %v2250_v40 = vpop.f32.mrb[111].mxu1 }
 0x439   : > { %v4741_v62 = vpack.c.b16 %v4655_v48, %v4655_v48  ;;  %v3552_v8 = vmax.bf16 %v3245_v45, %v2838_v57  ;;  %v3553_v50 = vmax.bf16 %v3250_v22, %v2821_v6  ;;  %v3554_v38 = vmax.bf16 %v3255_v0, %v2835_v12 }
 0x43a   : > { %v3555_v19 = vmax.bf16 %v3260_v47, %v2837_v41  ;;  %v3556_v31 = vmax.bf16 %v3265_v10, %v2839_v23  ;;  %v3891_v61 = vrot.slane %v3549_v25, %v6718_v27  ;;  %v3905_v58 = vrot.slane %v3550_v13, %v6718_v27 }
 0x43b   : > { %4758 = vst.msk [vmem:[%s6773_s21 + $0x4] sm:$0xf] %vm4756_vm3, %v4741_v62  ;;  %v3919_v44 = vrot.slane %v3551_v7, %v6718_v27  ;;  %v3933_v39 = vrot.slane %v3552_v8, %v6718_v27  ;;  %v3947_v51 = vrot.slane %v3553_v50, %v6718_v27  ;;  %v3961_v36 = vrot.slane %v3554_v38, %v6718_v27 }
 0x43c   : > { %v3898_v28 = vrot.slane %v3891_v61, %v6718_v27  ;;  %v3912_v6 = vrot.slane %v3905_v58, %v6718_v27  ;;  %v3975_v12 = vrot.slane %v3555_v19, %v6718_v27  ;;  %v3989_v41 = vrot.slane %v3556_v31, %v6718_v27 }
 0x43d   : > { %v3926_v57 = vrot.slane %v3919_v44, %v6718_v27  ;;  %v3940_v23 = vrot.slane %v3933_v39, %v6718_v27  ;;  %v3954_v46 = vrot.slane %v3947_v51, %v6718_v27  ;;  %v3968_v60 = vrot.slane %v3961_v36, %v6718_v27  ;;  %v2253_v30 = vpop.f32.mrb[112].mxu1 }
 0x43e   : > { %v3982_v45 = vrot.slane %v3975_v12, %v6718_v27  ;;  %v3996_v22 = vrot.slane %v3989_v41, %v6718_v27  ;;  %v4573_v53 = vunpack.c.l.b16 %v3898_v28  ;;  %v4574_v0 = vunpack.c.l.b16 %v3912_v6  ;;  %v2255_v47 = vpop.f32.mrb[113].mxu1 }
 0x43f   : > { %v4575_v10 = vunpack.c.l.b16 %v3926_v57  ;;  %v4576_v48 = vunpack.c.l.b16 %v3940_v23  ;;  %v4577_v25 = vunpack.c.l.b16 %v3954_v46  ;;  %v4578_v13 = vunpack.c.l.b16 %v3968_v60  ;;  %v2256_v7 = vpop.f32.mrb[114].mxu1 }
 0x440   : > { %v4579_v40 = vunpack.c.l.b16 %v3982_v45  ;;  %v4580_v62 = vunpack.c.l.b16 %v3996_v22  ;;  %v4656_v8 = vrot.slane %v4574_v0, 7  ;;  %v2642_v50 = vmax.f32 %v6834_v49, 0.0  ;;  %v2258_v38 = vpop.f32.mrb[115].mxu1 }
 0x441   : > { %v4658_v19 = vrot.slane %v4575_v10, 6  ;;  %v4660_v31 = vrot.slane %v4576_v48, 5  ;;  %v4662_v61 = vrot.slane %v4577_v25, 4  ;;  %v4664_v58 = vrot.slane %v4578_v13, 3 }
 0x442   : > { %v4657_v44 = vsel %vm4622_vm12, %v4656_v8, %v4573_v53  ;;  %v4666_v39 = vrot.slane %v4579_v40, 2  ;;  %v4668_v51 = vrot.slane %v4580_v62, 1  ;;  %v2667_v36 = vpack.c.bf16 %v2642_v50, %v2641_v21 }
 0x443   : > { %v4659_v28 = vsel %vm4625_vm13, %v4658_v19, %v4657_v44  ;;  %v2230_v6 = vadd.f32 %v6798_v4, %v6625_v3  ;;  %v2233_v49 = vadd.f32 %v6801_v59, %v6629_v55  ;;  %v2238_v12 = vadd.f32 %v6818_v33, %v6633_v20  ;;  %v7200_v44 = vld [vmem:[#allocation9_spill] sm:$0xff] }
 0x444   : > { %v4661_v41 = vsel %vm4628_vm14, %v4660_v31, %v4659_v28  ;;  %v2241_v57 = vadd.f32 %v6823_v32, %v6637_v54  ;;  %v2246_v37 = vadd.f32 %v6838_v1, %v6641_v26  ;;  %v2249_v21 = vadd.f32 %v2248_v56, %v6645_v11 }
 0x445   : > { %v4663_v23 = vsel %vm4631_vm15, %v4662_v61, %v4661_v41  ;;  %v2572_v3 = vadd.f32 %v6627_v9, %v2230_v6  ;;  %v2573_v4 = vadd.f32 %v6631_v14, %v2233_v49  ;;  %v2574_v55 = vadd.f32 %v6635_v35, %v2238_v12  ;;  %v2261_v59 = vpop.f32.mrb[116].mxu1  ;;  %v7199_v61 = vld [vmem:[#allocation8_spill] sm:$0xff] }
 0x446   : > { %v4665_v20 = vsel %vm4634_vm0, %v4664_v58, %v4663_v23  ;;  %v2575_v33 = vadd.f32 %v6639_v24, %v2241_v57  ;;  %v2576_v54 = vadd.f32 %v6643_v52, %v2246_v37  ;;  %v2577_v32 = vadd.f32 %v6647_v17, %v2249_v21  ;;  %v2263_v26 = vpop.f32.mrb[117].mxu1 }
 0x447   : > { %v4667_v11 = vsel %vm4637_vm1, %v4666_v39, %v4665_v20  ;;  %v2611_v1 = vadd.f32 %v6694_v29, %v2572_v3  ;;  %v2612_v9 = vadd.f32 %v6694_v29, %v2573_v4  ;;  %v2613_v14 = vadd.f32 %v6694_v29, %v2574_v55  ;;  %v2264_v35 = vpop.f32.mrb[118].mxu1 }
 0x448   : > { %v4669_v56 = vsel %vm4640_vm2, %v4668_v51, %v4667_v11  ;;  %v2614_v46 = vadd.f32 %v6694_v29, %v2575_v33  ;;  %v2615_v24 = vadd.f32 %v6694_v29, %v2576_v54  ;;  %v2616_v52 = vadd.f32 %v6694_v29, %v2577_v32  ;;  %v2266_v17 = vpop.f32.mrb[119].mxu1 }
 0x449   : > { %v4742_v60 = vpack.c.b16 %v4669_v56, %v4669_v56  ;;  %v2643_v45 = vmax.f32 %v2611_v1, 0.0  ;;  %v2644_v22 = vmax.f32 %v2612_v9, 0.0  ;;  %v2645_v53 = vmax.f32 %v2613_v14, 0.0 }
 0x44a   : > { %v2646_v0 = vmax.f32 %v2614_v46, 0.0  ;;  %v2647_v47 = vmax.f32 %v2615_v24, 0.0  ;;  %v2648_v10 = vmax.f32 %v2616_v52, 0.0  ;;  %v2254_v48 = vadd.f32 %v2253_v30, %v6649_v18 }
 0x44b   : > { %4759 = vst.msk [vmem:[%s6773_s21 + $0x8] sm:$0xf] %vm4756_vm3, %v4742_v60  ;;  %v2668_v25 = vpack.c.bf16 %v2644_v22, %v2643_v45  ;;  %v2257_v13 = vadd.f32 %v2256_v7, %v6653_v42  ;;  %v2262_v40 = vadd.f32 %v2261_v59, %v6657_v63  ;;  %v2265_v62 = vadd.f32 %v2264_v35, %v6661_v5  ;;  %v7201_v42 = vld [vmem:[#allocation10_spill] sm:$0xff] }
 0x44c   : > { %v2669_v8 = vpack.c.bf16 %v2646_v0, %v2645_v53  ;;  %v2670_v50 = vpack.c.bf16 %v2648_v10, %v2647_v47  ;;  %v2578_v38 = vadd.f32 %v6651_v34, %v2254_v48 }
 0x44d   : > { %v2680_v19 = vmax.bf16 %v2668_v25, %v2667_v36  ;;  %v2579_v31 = vadd.f32 %v6655_v43, %v2257_v13  ;;  %v2580_v58 = vadd.f32 %v7199_v61, %v2262_v40  ;;  %v2581_v18 = vadd.f32 %v7200_v44, %v2265_v62  ;;  %v2269_v30 = vpop.f32.mrb[120].mxu1 }
 0x44e   : > { %v2681_v39 = vmax.bf16 %v2670_v50, %v2669_v8  ;;  %v6905_v51 = vadd.f32 %v6694_v29, %v2578_v38  ;;  %v6908_v63 = vadd.f32 %v2269_v30, %v7201_v42  ;;  %v2271_v5 = vpop.f32.mrb[121].mxu1 }
 0x44f   : > { %v2840_v7 = vcombine.high %v2680_v19, %v2680_v19  ;;  %v2847_v28 = vrot.slane %v2680_v19, %v6708_v16  ;;  %v6912_v34 = vadd.f32 %v6694_v29, %v2579_v31  ;;  %v6915_v43 = vadd.f32 %v6694_v29, %v2580_v58  ;;  %v6917_v36 = vpop.f32.mrb[122].mxu1 }
 0x450   : > { %v2889_v6 = vcombine.high %v2681_v39, %v2681_v39  ;;  %v2896_v49 = vrot.slane %v2681_v39, %v6708_v16  ;;  %v2649_v12 = vmax.f32 %v6905_v51, 0.0  ;;  %v6922_v41 = vadd.f32 %v6694_v29, %v2581_v18  ;;  %v2274_v57 = vpop.f32.mrb[123].mxu1  ;;  %v7203_v51 = vld [vmem:[#allocation12_spill] sm:$0xff] }
 0x451   : > { %v2854_v37 = vrot.slane %v2840_v7, %v6708_v16  ;;  %v2855_v21 = vcombine.high %v2847_v28, %v2847_v28  ;;  %v2863_v23 = vrot.slane %v2847_v28, %v6708_v16  ;;  %v2650_v3 = vmax.f32 %v6912_v34, 0.0 }
 0x452   : > { %v2903_v4 = vrot.slane %v2889_v6, %v6708_v16  ;;  %v2904_v55 = vcombine.high %v2896_v49, %v2896_v49  ;;  %v6929_v59 = vrot.slane %v2896_v49, %v6708_v16  ;;  %v2651_v20 = vmax.f32 %v6915_v43, 0.0 }
 0x453   : > { %v2856_v33 = vcombine.high %v2854_v37, %v2854_v37  ;;  %v2870_v29 = vrot.slane %v2854_v37, %v6708_v16  ;;  %v2877_v54 = vrot.slane %v2855_v21, %v6708_v16  ;;  %v2885_v32 = vcombine.high %v2863_v23, %v2863_v23 }
 0x454   : > { %v3270_v26 = vshrl.u32 %v2863_v23, 16  ;;  %v2905_v11 = vcombine.high %v2903_v4, %v2903_v4  ;;  %v6935_v1 = vrot.slane %v2903_v4, %v6708_v16  ;;  %v6938_v9 = vrot.slane %v2904_v55, %v6708_v16 }
 0x455   : > { %v2884_v14 = vrot.slane %v2856_v33, %v6708_v16  ;;  %v2886_v35 = vcombine.high %v2870_v29, %v2870_v29  ;;  %v2887_v56 = vcombine.high %v2877_v54, %v2877_v54  ;;  %v3275_v46 = vshrl.u32 %v2877_v54, 16  ;;  %v6941_v24 = vpop.f32.mrb[124].mxu1 }
 0x456   : > { %v3280_v52 = vshrl.u32 %v2885_v32, 16  ;;  %v3290_v17 = vshrl.u32 %v2870_v29, 16  ;;  %v3557_v60 = vmax.bf16 %v3270_v26, %v2863_v23  ;;  %v6944_v45 = vrot.slane %v2905_v11, %v6708_v16  ;;  %v2279_v22 = vpop.f32.mrb[125].mxu1 }
 0x457   : > { %v2888_v53 = vcombine.high %v2884_v14, %v2884_v14  ;;  %v3285_v0 = vshrl.u32 %v2887_v56, 16  ;;  %v3295_v47 = vshrl.u32 %v2884_v14, 16  ;;  %v3300_v10 = vshrl.u32 %v2886_v35, 16  ;;  %v6946_v48 = vpop.f32.mrb[126].mxu1 }
 0x458   : > { %v3558_v25 = vmax.bf16 %v3275_v46, %v2877_v54  ;;  %v3559_v13 = vmax.bf16 %v3280_v52, %v2885_v32  ;;  %v3561_v40 = vmax.bf16 %v3290_v17, %v2870_v29  ;;  %v4003_v62 = vrot.slane %v3557_v60, %v6718_v27  ;;  %v2282_v8 = vpop.f32.mrb[127].mxu1 }
 0x459   : > { %v3305_v50 = vshrl.u32 %v2888_v53, 16  ;;  %v3560_v38 = vmax.bf16 %v3285_v0, %v2887_v56  ;;  %v3562_v19 = vmax.bf16 %v3295_v47, %v2884_v14  ;;  %v3563_v31 = vmax.bf16 %v3300_v10, %v2886_v35 }
 0x45a   : > { %v4010_v61 = vrot.slane %v4003_v62, %v6718_v27  ;;  %v4017_v58 = vrot.slane %v3558_v25, %v6718_v27  ;;  %v4031_v44 = vrot.slane %v3559_v13, %v6718_v27  ;;  %v4059_v18 = vrot.slane %v3561_v40, %v6718_v27 }
 0x45b   : > { %v3564_v30 = vmax.bf16 %v3305_v50, %v2888_v53  ;;  %v4045_v39 = vrot.slane %v3560_v38, %v6718_v27  ;;  %v4073_v42 = vrot.slane %v3562_v19, %v6718_v27  ;;  %v4087_v5 = vrot.slane %v3563_v31, %v6718_v27 }
 0x45c   : > { %v4024_v7 = vrot.slane %v4017_v58, %v6718_v27  ;;  %v4038_v28 = vrot.slane %v4031_v44, %v6718_v27  ;;  %v4066_v6 = vrot.slane %v4059_v18, %v6718_v27  ;;  %v4581_v49 = vunpack.c.l.b16 %v4010_v61 }
 0x45d   : > { %v4052_v57 = vrot.slane %v4045_v39, %v6718_v27  ;;  %v4080_v37 = vrot.slane %v4073_v42, %v6718_v27  ;;  %v4094_v21 = vrot.slane %v4087_v5, %v6718_v27  ;;  %v4101_v23 = vrot.slane %v3564_v30, %v6718_v27  ;;  %v6963_v4 = vpop.f32.mrb[128].mxu1 }
 0x45e   : > { %v4582_v55 = vunpack.c.l.b16 %v4024_v7  ;;  %v4583_v33 = vunpack.c.l.b16 %v4038_v28  ;;  %v4585_v29 = vunpack.c.l.b16 %v4066_v6  ;;  %v2934_v54 = vcombine.high %v6929_v59, %v6929_v59  ;;  %v2287_v32 = vpop.f32.mrb[129].mxu1 }
 0x45f   : > { %v4108_v26 = vrot.slane %v4101_v23, %v6718_v27  ;;  %v4584_v11 = vunpack.c.l.b16 %v4052_v57  ;;  %v4586_v14 = vunpack.c.l.b16 %v4080_v37  ;;  %v4587_v35 = vunpack.c.l.b16 %v4094_v21  ;;  %v6968_v56 = vpop.f32.mrb[130].mxu1 }
 0x460   : > { %v4670_v46 = vrot.slane %v4582_v55, 7  ;;  %v4672_v52 = vrot.slane %v4583_v33, 6  ;;  %v4676_v17 = vrot.slane %v4585_v29, 4  ;;  %v2935_v60 = vcombine.high %v6935_v1, %v6935_v1  ;;  %v2290_v22 = vpop.f32.mrb[131].mxu1 }
 0x461   : > { %v4588_v53 = vunpack.c.l.b16 %v4108_v26  ;;  %v4674_v0 = vrot.slane %v4584_v11, 5  ;;  %v4678_v47 = vrot.slane %v4586_v14, 3  ;;  %v4680_v10 = vrot.slane %v4587_v35, 2 }
 0x462   : > { %v4671_v25 = vsel %vm4622_vm12, %v4670_v46, %v4581_v49  ;;  %v2936_v13 = vcombine.high %v6938_v9, %v6938_v9  ;;  %v2937_v40 = vcombine.high %v6944_v45, %v6944_v45  ;;  %v3310_v62 = vshrl.u32 %v6929_v59, 16 }
 0x463   : > { %v4673_v8 = vsel %vm4625_vm13, %v4672_v52, %v4671_v25  ;;  %v4682_v50 = vrot.slane %v4588_v53, 1  ;;  %v3315_v38 = vshrl.u32 %v6938_v9, 16  ;;  %v3320_v19 = vshrl.u32 %v2934_v54, 16 }
 0x464   : > { %v4675_v31 = vsel %vm4628_vm14, %v4674_v0, %v4673_v8  ;;  %v3325_v61 = vshrl.u32 %v2936_v13, 16  ;;  %v3330_v58 = vshrl.u32 %v6935_v1, 16  ;;  %v3335_v44 = vshrl.u32 %v6944_v45, 16 }
 0x465   : > { %v4677_v18 = vsel %vm4631_vm15, %v4676_v17, %v4675_v31  ;;  %v3340_v30 = vshrl.u32 %v2935_v60, 16  ;;  %v3345_v39 = vshrl.u32 %v2937_v40, 16  ;;  %v3565_v42 = vmax.bf16 %v3310_v62, %v6929_v59  ;;  %v6985_v5 = vpop.f32.mrb[132].mxu1 }
 0x466   : > { %v4679_v7 = vsel %vm4634_vm0, %v4678_v47, %v4677_v18  ;;  %v3566_v28 = vmax.bf16 %v3315_v38, %v6938_v9  ;;  %v3567_v6 = vmax.bf16 %v3320_v19, %v2934_v54  ;;  %v3568_v49 = vmax.bf16 %v3325_v61, %v2936_v13  ;;  %v2295_v57 = vpop.f32.mrb[133].mxu1 }
 0x467   : > { %v4681_v37 = vsel %vm4637_vm1, %v4680_v10, %v4679_v7  ;;  %v3569_v21 = vmax.bf16 %v3330_v58, %v6935_v1  ;;  %v3570_v23 = vmax.bf16 %v3335_v44, %v6944_v45  ;;  %v3571_v55 = vmax.bf16 %v3340_v30, %v2935_v60  ;;  %v6992_v33 = vpop.f32.mrb[134].mxu1 }
 0x468   : > { %v4683_v59 = vsel %vm4640_vm2, %v4682_v50, %v4681_v37  ;;  %v3572_v29 = vmax.bf16 %v3345_v39, %v2937_v40  ;;  %v4115_v32 = vrot.slane %v3565_v42, %v6718_v27  ;;  %v4129_v9 = vrot.slane %v3566_v28, %v6718_v27  ;;  %v2298_v54 = vpop.f32.mrb[135].mxu1  ;;  %v7204_v37 = vld [vmem:[#allocation14_spill] sm:$0xff] }
 0x469   : > { %v4743_v26 = vpack.c.b16 %v4683_v59, %v4683_v59  ;;  %v4143_v11 = vrot.slane %v3567_v6, %v6718_v27  ;;  %v4157_v14 = vrot.slane %v3568_v49, %v6718_v27  ;;  %v4171_v1 = vrot.slane %v3569_v21, %v6718_v27  ;;  %v7202_v49 = vld [vmem:[#allocation11_spill] sm:$0xff] }
 0x46a   : > { %v4122_v45 = vrot.slane %v4115_v32, %v6718_v27  ;;  %v4136_v35 = vrot.slane %v4129_v9, %v6718_v27  ;;  %v4185_v46 = vrot.slane %v3570_v23, %v6718_v27  ;;  %v4199_v52 = vrot.slane %v3571_v55, %v6718_v27  ;;  %v7205_v23 = vld [vmem:[#allocation16_spill] sm:$0xff]  ;;  %v7032_v59 = vld [vmem:[#allocation4] ss:$0 sm:$0xff] }
 0x46b   : > { %4760 = vst.msk [vmem:[%s6773_s21 + $0xc] sm:$0xf] %vm4756_vm3, %v4743_v26  ;;  %v4150_v17 = vrot.slane %v4143_v11, %v6718_v27  ;;  %v4164_v60 = vrot.slane %v4157_v14, %v6718_v27  ;;  %v4178_v22 = vrot.slane %v4171_v1, %v6718_v27  ;;  %v4213_v53 = vrot.slane %v3572_v29, %v6718_v27  ;;  %v7206_v29 = vld [vmem:[#allocation13_spill] sm:$0xff]  ;;  %v7208_v54 = vld [vmem:[#allocation15_spill] sm:$0xff] }
 0x46c   : > { %v4192_v0 = vrot.slane %v4185_v46, %v6718_v27  ;;  %v4206_v47 = vrot.slane %v4199_v52, %v6718_v27  ;;  %v4589_v10 = vunpack.c.l.b16 %v4122_v45  ;;  %v4590_v25 = vunpack.c.l.b16 %v4136_v35  ;;  %v7210_v1 = vld [vmem:[#allocation19_spill] sm:$0xff] }
 0x46d   : > { %v4220_v13 = vrot.slane %v4213_v53, %v6718_v27  ;;  %v4591_v40 = vunpack.c.l.b16 %v4150_v17  ;;  %v4592_v62 = vunpack.c.l.b16 %v4164_v60  ;;  %v4593_v8 = vunpack.c.l.b16 %v4178_v22 }
 0x46e   : > { %v4594_v50 = vunpack.c.l.b16 %v4192_v0  ;;  %v4595_v38 = vunpack.c.l.b16 %v4206_v47  ;;  %v4684_v19 = vrot.slane %v4590_v25, 7  ;;  %v2671_v31 = vpack.c.bf16 %v2650_v3, %v2649_v12 }
 0x46f   : > { %v4596_v61 = vunpack.c.l.b16 %v4220_v13  ;;  %v4686_v58 = vrot.slane %v4591_v40, 6  ;;  %v4688_v44 = vrot.slane %v4592_v62, 5  ;;  %v4690_v18 = vrot.slane %v4593_v8, 4  ;;  %v7211_v8 = vld [vmem:[#allocation20_spill] sm:$0xff] }
 0x470   : > { %v4685_v30 = vsel %vm4622_vm12, %v4684_v19, %v4589_v10  ;;  %v4692_v39 = vrot.slane %v4594_v50, 3  ;;  %v4694_v42 = vrot.slane %v4595_v38, 2  ;;  %v2652_v7 = vmax.f32 %v6922_v41, 0.0 }
 0x471   : > { %v4687_v28 = vsel %vm4625_vm13, %v4686_v58, %v4685_v30  ;;  %v4696_v6 = vrot.slane %v4596_v61, 1  ;;  %v2582_v57 = vadd.f32 %v7202_v49, %v6908_v63  ;;  %v2273_v34 = vadd.f32 %v6917_v36, %v7203_v51  ;;  %v7207_v36 = vld [vmem:[#allocation18_spill] sm:$0xff] }
 0x472   : > { %v4689_v12 = vsel %vm4628_vm14, %v4688_v44, %v4687_v28  ;;  %v2672_v3 = vpack.c.bf16 %v2652_v7, %v2651_v20  ;;  %v2278_v21 = vadd.f32 %v6941_v24, %v7204_v37  ;;  %v2281_v41 = vadd.f32 %v6946_v48, %v7205_v23  ;;  %v7209_v24 = vld [vmem:[#allocation17_spill] sm:$0xff] }
 0x473   : > { %v4691_v55 = vsel %vm4631_vm15, %v4690_v18, %v4689_v12  ;;  %v2621_v63 = vadd.f32 %v7032_v59, %v2582_v57  ;;  %v2583_v32 = vadd.f32 %v7206_v29, %v2273_v34  ;;  %v2286_v9 = vadd.f32 %v6963_v4, %v7207_v36  ;;  %v7212_v18 = vld [vmem:[#allocation21_spill] sm:$0xff] }
 0x474   : > { %v4693_v43 = vsel %vm4634_vm0, %v4692_v39, %v4691_v55  ;;  %v2682_v20 = vmax.bf16 %v2672_v3, %v2671_v31  ;;  %v2584_v26 = vadd.f32 %v7208_v54, %v2278_v21  ;;  %v2585_v11 = vadd.f32 %v7209_v24, %v2281_v41  ;;  %v7213_v39 = vld [vmem:[#allocation22_spill] sm:$0xff] }
 0x475   : > { %v4695_v48 = vsel %vm4637_vm1, %v4694_v42, %v4693_v43  ;;  %v2622_v14 = vadd.f32 %v7032_v59, %v2583_v32  ;;  %v2586_v45 = vadd.f32 %v7210_v1, %v2286_v9  ;;  %v2653_v60 = vmax.f32 %v2621_v63, 0.0 }
 0x476   : > { %v4697_v35 = vsel %vm4640_vm2, %v4696_v6, %v4695_v48  ;;  %v2938_v46 = vcombine.high %v2682_v20, %v2682_v20  ;;  %v2945_v52 = vrot.slane %v2682_v20, %v6708_v16  ;;  %v2623_v4 = vadd.f32 %v7032_v59, %v2584_v26 }
 0x477   : > { %v4744_v17 = vpack.c.b16 %v4697_v35, %v4697_v35  ;;  %v2654_v22 = vmax.f32 %v2622_v14, 0.0  ;;  %v2624_v53 = vadd.f32 %v7032_v59, %v2585_v11  ;;  %v7051_v25 = vadd.f32 %v7032_v59, %v2586_v45 }
 0x478   : > { %v2952_v0 = vrot.slane %v2938_v46, %v6708_v16  ;;  %v2953_v47 = vcombine.high %v2945_v52, %v2945_v52  ;;  %v2961_v10 = vrot.slane %v2945_v52, %v6708_v16  ;;  %v2655_v40 = vmax.f32 %v2623_v4, 0.0 }
 0x479   : > { %4761 = vst.msk [vmem:[%s6773_s21 + $0x10] sm:$0xf] %vm4756_vm3, %v4744_v17  ;;  %v2673_v13 = vpack.c.bf16 %v2654_v22, %v2653_v60  ;;  %v2656_v62 = vmax.f32 %v2624_v53, 0.0  ;;  %v2289_v50 = vadd.f32 %v6968_v56, %v7211_v8  ;;  %v2294_v42 = vadd.f32 %v6985_v5, %v7213_v39 }
 0x47a   : > { %v2954_v38 = vcombine.high %v2952_v0, %v2952_v0  ;;  %v2968_v19 = vrot.slane %v2952_v0, %v6708_v16  ;;  %v2975_v31 = vrot.slane %v2953_v47, %v6708_v16  ;;  %v2983_v61 = vcombine.high %v2961_v10, %v2961_v10 }
 0x47b   : > { %v3350_v58 = vshrl.u32 %v2961_v10, 16  ;;  %v2674_v44 = vpack.c.bf16 %v2656_v62, %v2655_v40  ;;  %v2587_v30 = vadd.f32 %v7212_v18, %v2289_v50 }
 0x47c   : > { %v2982_v7 = vrot.slane %v2954_v38, %v6708_v16  ;;  %v2984_v28 = vcombine.high %v2968_v19, %v2968_v19  ;;  %v2985_v6 = vcombine.high %v2975_v31, %v2975_v31  ;;  %v3355_v49 = vshrl.u32 %v2975_v31, 16 }
 0x47d   : > { %v3360_v57 = vshrl.u32 %v2983_v61, 16  ;;  %v3370_v56 = vshrl.u32 %v2968_v19, 16  ;;  %v3573_v51 = vmax.bf16 %v3350_v58, %v2961_v10  ;;  %v2683_v34 = vmax.bf16 %v2674_v44, %v2673_v13 }
 0x47e   : > { %v2986_v12 = vcombine.high %v2982_v7, %v2982_v7  ;;  %v3365_v3 = vshrl.u32 %v2985_v6, 16  ;;  %v3375_v37 = vshrl.u32 %v2982_v7, 16  ;;  %v3380_v21 = vshrl.u32 %v2984_v28, 16 }
 0x47f   : > { %v3574_v23 = vmax.bf16 %v3355_v49, %v2975_v31  ;;  %v3575_v41 = vmax.bf16 %v3360_v57, %v2983_v61  ;;  %v3577_v55 = vmax.bf16 %v3370_v56, %v2968_v19  ;;  %v4227_v63 = vrot.slane %v3573_v51, %v6718_v27 }
 0x480   : > { %v3385_v29 = vshrl.u32 %v2986_v12, 16  ;;  %v3576_v5 = vmax.bf16 %v3365_v3, %v2985_v6  ;;  %v3578_v32 = vmax.bf16 %v3375_v37, %v2982_v7  ;;  %v3579_v36 = vmax.bf16 %v3380_v21, %v2984_v28 }
 0x481   : > { %v4234_v9 = vrot.slane %v4227_v63, %v6718_v27  ;;  %v4241_v43 = vrot.slane %v3574_v23, %v6718_v27  ;;  %v4255_v20 = vrot.slane %v3575_v41, %v6718_v27  ;;  %v4283_v54 = vrot.slane %v3577_v55, %v6718_v27 }
 0x482   : > { %v3580_v26 = vmax.bf16 %v3385_v29, %v2986_v12  ;;  %v4269_v24 = vrot.slane %v3576_v5, %v6718_v27  ;;  %v4297_v11 = vrot.slane %v3578_v32, %v6718_v27  ;;  %v4311_v48 = vrot.slane %v3579_v36, %v6718_v27 }
 0x483   : > { %v4248_v14 = vrot.slane %v4241_v43, %v6718_v27  ;;  %v4262_v1 = vrot.slane %v4255_v20, %v6718_v27  ;;  %v4290_v45 = vrot.slane %v4283_v54, %v6718_v27  ;;  %v4597_v35 = vunpack.c.l.b16 %v4234_v9 }
 0x484   : > { %v4276_v46 = vrot.slane %v4269_v24, %v6718_v27  ;;  %v4304_v52 = vrot.slane %v4297_v11, %v6718_v27  ;;  %v4318_v4 = vrot.slane %v4311_v48, %v6718_v27  ;;  %v4325_v17 = vrot.slane %v3580_v26, %v6718_v27 }
 0x485   : > { %v4598_v60 = vunpack.c.l.b16 %v4248_v14  ;;  %v4599_v22 = vunpack.c.l.b16 %v4262_v1  ;;  %v4601_v53 = vunpack.c.l.b16 %v4290_v45  ;;  %v2987_v0 = vcombine.high %v2683_v34, %v2683_v34 }
 0x486   : > { %v4332_v47 = vrot.slane %v4325_v17, %v6718_v27  ;;  %v4600_v10 = vunpack.c.l.b16 %v4276_v46  ;;  %v4602_v13 = vunpack.c.l.b16 %v4304_v52  ;;  %v4603_v40 = vunpack.c.l.b16 %v4318_v4 }
 0x487   : > { %v4698_v62 = vrot.slane %v4598_v60, 7  ;;  %v4700_v8 = vrot.slane %v4599_v22, 6  ;;  %v4704_v50 = vrot.slane %v4601_v53, 4  ;;  %v2994_v38 = vrot.slane %v2683_v34, %v6708_v16 }
 0x488   : > { %v4604_v19 = vunpack.c.l.b16 %v4332_v47  ;;  %v4702_v31 = vrot.slane %v4600_v10, 5  ;;  %v4706_v61 = vrot.slane %v4602_v13, 3  ;;  %v4708_v58 = vrot.slane %v4603_v40, 2 }
 0x489   : > { %v4699_v44 = vsel %vm4622_vm12, %v4698_v62, %v4597_v35  ;;  %v3001_v18 = vrot.slane %v2987_v0, %v6708_v16  ;;  %v3002_v39 = vcombine.high %v2994_v38, %v2994_v38  ;;  %v3010_v7 = vrot.slane %v2994_v38, %v6708_v16 }
 0x48a   : > { %v4701_v28 = vsel %vm4625_vm13, %v4700_v8, %v4699_v44  ;;  %v4710_v6 = vrot.slane %v4604_v19, 1  ;;  %v2626_v49 = vadd.f32 %v7032_v59, %v2587_v30  ;;  %v7086_v57 = vadd.f32 %v6745_v2, %v2294_v42 }
 0x48b   : > { %v4703_v56 = vsel %vm4628_vm14, %v4702_v31, %v4701_v28  ;;  %v3003_v51 = vcombine.high %v3001_v18, %v3001_v18  ;;  %v3017_v34 = vrot.slane %v3001_v18, %v6708_v16  ;;  %v3024_v12 = vrot.slane %v3002_v39, %v6708_v16 }
 0x48c   : > { %v4705_v3 = vsel %vm4631_vm15, %v4704_v50, %v4703_v56  ;;  %v3032_v37 = vcombine.high %v3010_v7, %v3010_v7  ;;  %v3390_v21 = vshrl.u32 %v3010_v7, 16  ;;  %v2658_v23 = vmax.f32 %v2626_v49, 0.0 }
 0x48d   : > { %v4707_v41 = vsel %vm4634_vm0, %v4706_v61, %v4705_v3  ;;  %v3031_v55 = vrot.slane %v3003_v51, %v6708_v16  ;;  %v3033_v30 = vcombine.high %v3017_v34, %v3017_v34  ;;  %v3034_v63 = vcombine.high %v3024_v12, %v3024_v12 }
 0x48e   : > { %v4709_v2 = vsel %vm4637_vm1, %v4708_v58, %v4707_v41  ;;  %v3395_v42 = vshrl.u32 %v3024_v12, 16  ;;  %v3400_v29 = vshrl.u32 %v3032_v37, 16  ;;  %v3410_v5 = vshrl.u32 %v3017_v34, 16 }
 0x48f   : > { %v4711_v32 = vsel %vm4640_vm2, %v4710_v6, %v4709_v2  ;;  %v3035_v36 = vcombine.high %v3031_v55, %v3031_v55  ;;  %v3405_v9 = vshrl.u32 %v3034_v63, 16  ;;  %v3415_v43 = vshrl.u32 %v3031_v55, 16 }
 0x490   : > { %v4745_v20 = vpack.c.b16 %v4711_v32, %v4711_v32  ;;  %v3420_v54 = vshrl.u32 %v3033_v30, 16  ;;  %v3581_v26 = vmax.bf16 %v3390_v21, %v3010_v7  ;;  %v3582_v24 = vmax.bf16 %v3395_v42, %v3024_v12  ;;  %v7214_v21 = vld [vmem:[#allocation23_spill] sm:$0xff] }
 0x491   : > { %v3425_v11 = vshrl.u32 %v3035_v36, 16  ;;  %v3583_v48 = vmax.bf16 %v3400_v29, %v3032_v37  ;;  %v3584_v14 = vmax.bf16 %v3405_v9, %v3034_v63  ;;  %v3585_v1 = vmax.bf16 %v3410_v5, %v3017_v34 }
 0x492   : > { %4762 = vst.msk [vmem:[%s6773_s21 + $0x14] sm:$0xf] %vm4756_vm3, %v4745_v20  ;;  %v3586_v45 = vmax.bf16 %v3415_v43, %v3031_v55  ;;  %v3587_v35 = vmax.bf16 %v3420_v54, %v3033_v30  ;;  %v4339_v46 = vrot.slane %v3581_v26, %v6718_v27  ;;  %v4353_v52 = vrot.slane %v3582_v24, %v6718_v27 }
 0x493   : > { %v3588_v4 = vmax.bf16 %v3425_v11, %v3035_v36  ;;  %v4367_v17 = vrot.slane %v3583_v48, %v6718_v27  ;;  %v4381_v60 = vrot.slane %v3584_v14, %v6718_v27  ;;  %v4395_v22 = vrot.slane %v3585_v1, %v6718_v27 }
 0x494   : > { %v4346_v53 = vrot.slane %v4339_v46, %v6718_v27  ;;  %v4360_v0 = vrot.slane %v4353_v52, %v6718_v27  ;;  %v4409_v47 = vrot.slane %v3586_v45, %v6718_v27  ;;  %v4423_v10 = vrot.slane %v3587_v35, %v6718_v27 }
 0x495   : > { %v4374_v13 = vrot.slane %v4367_v17, %v6718_v27  ;;  %v4388_v40 = vrot.slane %v4381_v60, %v6718_v27  ;;  %v4402_v62 = vrot.slane %v4395_v22, %v6718_v27  ;;  %v4437_v8 = vrot.slane %v3588_v4, %v6718_v27 }
 0x496   : > { %v4416_v50 = vrot.slane %v4409_v47, %v6718_v27  ;;  %v4430_v38 = vrot.slane %v4423_v10, %v6718_v27  ;;  %v4606_v19 = vunpack.c.l.b16 %v4360_v0  ;;  %v2657_v31 = vmax.f32 %v7051_v25, 0.0 }
 0x497   : > { %v4444_v61 = vrot.slane %v4437_v8, %v6718_v27  ;;  %v4607_v58 = vunpack.c.l.b16 %v4374_v13  ;;  %v4608_v44 = vunpack.c.l.b16 %v4388_v40  ;;  %v4609_v18 = vunpack.c.l.b16 %v4402_v62 }
 0x498   : > { %v4605_v39 = vunpack.c.l.b16 %v4346_v53  ;;  %v4610_v7 = vunpack.c.l.b16 %v4416_v50  ;;  %v4712_v28 = vrot.slane %v4606_v19, 7  ;;  %v2675_v6 = vpack.c.bf16 %v2658_v23, %v2657_v31 }
 0x499   : > { %v4611_v49 = vunpack.c.l.b16 %v4430_v38  ;;  %v4714_v56 = vrot.slane %v4607_v58, 6  ;;  %v4716_v51 = vrot.slane %v4608_v44, 5  ;;  %v4612_v34 = vunpack.c.l.b16 %v4444_v61 }
 0x49a   : > { %v4713_v12 = vsel %vm4622_vm12, %v4712_v28, %v4605_v39  ;;  %v4718_v37 = vrot.slane %v4609_v18, 4  ;;  %v2297_v25 = vadd.f32 %v6992_v33, %v7214_v21  ;;  %v4720_v55 = vrot.slane %v4610_v7, 3 }
 0x49b   : > { %v4715_v3 = vsel %vm4625_vm13, %v4714_v56, %v4713_v12  ;;  %v4722_v63 = vrot.slane %v4611_v49, 2  ;;  %v2627_v23 = vadd.f32 %v7032_v59, %v7086_v57  ;;  %v4724_v29 = vrot.slane %v4612_v34, 1 }
 0x49c   : > { %v4717_v41 = vsel %vm4628_vm14, %v4716_v51, %v4715_v3  ;;  %v2589_v2 = vadd.f32 %v6748_v15, %v2297_v25 }
 0x49d   : > { %v4719_v30 = vsel %vm4631_vm15, %v4718_v37, %v4717_v41  ;;  %v2659_v9 = vmax.f32 %v2627_v23, 0.0 }
 0x49e   : > { %v4721_v42 = vsel %vm4634_vm0, %v4720_v55, %v4719_v30  ;;  %v2628_v32 = vadd.f32 %v7032_v59, %v2589_v2 }
 0x49f   : > { %v4723_v5 = vsel %vm4637_vm1, %v4722_v63, %v4721_v42 }
 0x4a0   : > { %v4725_v33 = vsel %vm4640_vm2, %v4724_v29, %v4723_v5  ;;  %v2660_v43 = vmax.f32 %v2628_v32, 0.0 }
 0x4a1   : > { %v4746_v36 = vpack.c.b16 %v4725_v33, %v4725_v33 }
 0x4a2   : > { %v2676_v20 = vpack.c.bf16 %v2660_v43, %v2659_v9 }
 0x4a3   : > { %4763 = vst.msk [vmem:[%s6773_s21 + $0x18] sm:$0xf] %vm4756_vm3, %v4746_v36 }
 0x4a4   : > { %v2684_v54 = vmax.bf16 %v2676_v20, %v2675_v6 }
 0x4a6   : > { %v3036_v26 = vcombine.high %v2684_v54, %v2684_v54  ;;  %v3043_v57 = vrot.slane %v2684_v54, %v6708_v16 }
 0x4a8   : > { %v3050_v15 = vrot.slane %v3036_v26, %v6708_v16  ;;  %v3051_v24 = vcombine.high %v3043_v57, %v3043_v57  ;;  %v3059_v11 = vrot.slane %v3043_v57, %v6708_v16 }
 0x4aa   : > { %v3052_v48 = vcombine.high %v3050_v15, %v3050_v15  ;;  %v3066_v59 = vrot.slane %v3050_v15, %v6708_v16  ;;  %v3073_v14 = vrot.slane %v3051_v24, %v6708_v16  ;;  %v3081_v1 = vcombine.high %v3059_v11, %v3059_v11 }
 0x4ab   : > { %v3430_v45 = vshrl.u32 %v3059_v11, 16 }
 0x4ac   : > { %v3080_v35 = vrot.slane %v3052_v48, %v6708_v16  ;;  %v3082_v46 = vcombine.high %v3066_v59, %v3066_v59  ;;  %v3083_v52 = vcombine.high %v3073_v14, %v3073_v14  ;;  %v3435_v4 = vshrl.u32 %v3073_v14, 16 }
 0x4ad   : > { %v3440_v17 = vshrl.u32 %v3081_v1, 16  ;;  %v3450_v60 = vshrl.u32 %v3066_v59, 16  ;;  %v3589_v22 = vmax.bf16 %v3430_v45, %v3059_v11 }
 0x4ae   : > { %v3084_v53 = vcombine.high %v3080_v35, %v3080_v35  ;;  %v3445_v0 = vshrl.u32 %v3083_v52, 16  ;;  %v3455_v47 = vshrl.u32 %v3080_v35, 16  ;;  %v3460_v10 = vshrl.u32 %v3082_v46, 16 }
 0x4af   : > { %v3590_v13 = vmax.bf16 %v3435_v4, %v3073_v14  ;;  %v3591_v40 = vmax.bf16 %v3440_v17, %v3081_v1  ;;  %v3593_v62 = vmax.bf16 %v3450_v60, %v3066_v59  ;;  %v4451_v8 = vrot.slane %v3589_v22, %v6718_v27 }
 0x4b0   : > { %v3465_v50 = vshrl.u32 %v3084_v53, 16  ;;  %v3592_v38 = vmax.bf16 %v3445_v0, %v3083_v52  ;;  %v3594_v19 = vmax.bf16 %v3455_v47, %v3080_v35  ;;  %v3595_v31 = vmax.bf16 %v3460_v10, %v3082_v46 }
 0x4b1   : > { %v4465_v16 = vrot.slane %v3590_v13, %v6718_v27  ;;  %v4479_v61 = vrot.slane %v3591_v40, %v6718_v27  ;;  %v4507_v58 = vrot.slane %v3593_v62, %v6718_v27  ;;  %v4458_v28 = vrot.slane %v4451_v8, %v6718_v27 }
 0x4b2   : > { %v3596_v44 = vmax.bf16 %v3465_v50, %v3084_v53  ;;  %v4493_v18 = vrot.slane %v3592_v38, %v6718_v27  ;;  %v4521_v39 = vrot.slane %v3594_v19, %v6718_v27  ;;  %v4535_v7 = vrot.slane %v3595_v31, %v6718_v27 }
 0x4b3   : > { %v4472_v6 = vrot.slane %v4465_v16, %v6718_v27  ;;  %v4486_v49 = vrot.slane %v4479_v61, %v6718_v27  ;;  %v4514_v56 = vrot.slane %v4507_v58, %v6718_v27  ;;  %v4613_v30 = vunpack.c.l.b16 %v4458_v28 }
 0x4b4   : > { %v4500_v51 = vrot.slane %v4493_v18, %v6718_v27  ;;  %v4528_v34 = vrot.slane %v4521_v39, %v6718_v27  ;;  %v4542_v12 = vrot.slane %v4535_v7, %v6718_v27  ;;  %v4549_v3 = vrot.slane %v3596_v44, %v6718_v27 }
 0x4b5   : > { %v4614_v37 = vunpack.c.l.b16 %v4472_v6  ;;  %v4615_v21 = vunpack.c.l.b16 %v4486_v49  ;;  %v4617_v55 = vunpack.c.l.b16 %v4514_v56 }
 0x4b6   : > { %v4556_v25 = vrot.slane %v4549_v3, %v6718_v27  ;;  %v4616_v41 = vunpack.c.l.b16 %v4500_v51  ;;  %v4618_v63 = vunpack.c.l.b16 %v4528_v34  ;;  %v4619_v42 = vunpack.c.l.b16 %v4542_v12 }
 0x4b7   : > { %v4726_v23 = vrot.slane %v4614_v37, 7  ;;  %v4728_v2 = vrot.slane %v4615_v21, 6  ;;  %v4732_v36 = vrot.slane %v4617_v55, 4 }
 0x4b8   : > { %v4730_v29 = vrot.slane %v4616_v41, 5  ;;  %v4620_v5 = vunpack.c.l.b16 %v4556_v25  ;;  %v4734_v43 = vrot.slane %v4618_v63, 3  ;;  %v4736_v20 = vrot.slane %v4619_v42, 2 }
 0x4b9   : > { %v4727_v32 = vsel %vm4622_vm12, %v4726_v23, %v4613_v30 }
 0x4ba   : > { %v4729_v33 = vsel %vm4625_vm13, %v4728_v2, %v4727_v32  ;;  %v4738_v26 = vrot.slane %v4620_v5, 1 }
 0x4bb   : > { %v4731_v9 = vsel %vm4628_vm14, %v4730_v29, %v4729_v33 }
 0x4bc   : > { %v4733_v27 = vsel %vm4631_vm15, %v4732_v36, %v4731_v9 }
 0x4bd   : > { %v4735_v54 = vsel %vm4634_vm0, %v4734_v43, %v4733_v27 }
 0x4be   : > { %v4737_v57 = vsel %vm4637_vm1, %v4736_v20, %v4735_v54 }
 0x4bf   : > { %v4739_v15 = vsel %vm4640_vm2, %v4738_v26, %v4737_v57 }
 0x4c0   : > { %v4747_v24 = vpack.c.b16 %v4739_v15, %v4739_v15 }
 0x4c2   : > { %4764 = vst.msk [vmem:[%s6773_s21 + $0x1c] sm:$0xf] %vm4756_vm3, %v4747_v24 }
 0x4c3 PF: > { %s17_s18 = sadd.s32 1, %s5505_s18  }
 0x4c4   : > { %p14_p5 = scmp.ge.s32.totalorder %s17_s18, 6  }
 0x4c6   :  { %16 = sbr.rel (!%p14_p5) target bundleno = 2 (0x2), region = 83 }
 0x4cd   :  { %4786 = vsyncpa [#allocation3], 1 }
 0x4ce   :  { %4788 = vsyncpa [#allocation3 + $0x1], 1 }
 0x4cf   :  { %4789 = vsyncpa [#allocation5], 1 }

// kernel: perceptual_loss.6
= control target key start
LH: loop header
LB: loop body
LE: loop exit
PB: predicated region body
PF: predicated region fallthrough
CT: control target
= control target key end

     0   :  { %14 = vsyncpa [#allocation3], 0  ;;  %s15160_s0 = inlined_call_operand.vmem [shape: bf16[4,4,4,128], index: 0, kind: input, shape index: {}]   ;;  %s15161_s1 = inlined_call_operand.vmem [shape: bf16[3,384,256], index: 1, kind: input, shape index: {}]   ;;  %s15162_s2 = inlined_call_operand.vmem [shape: f32[1,256], index: 2, kind: input, shape index: {}]   ;;  %s15163_s3 = inlined_call_operand.vmem [shape: bf16[3,768,256], index: 3, kind: input, shape index: {}]   ;;  %s15164_s4 = inlined_call_operand.vmem [shape: f32[1,256], index: 4, kind: input, shape index: {}]   ;;  %s15165_s5 = inlined_call_operand.hbm [shape: bf16[3,768,256], index: 5, kind: input, shape index: {}]   ;;  %s15166_s6 = inlined_call_operand.vmem [shape: f32[1,256], index: 6, kind: input, shape index: {}]   ;;  %s15167_s7 = inlined_call_operand.hbm [shape: bf16[3,768,256], index: 7, kind: input, shape index: {}]   ;;  %s15168_s8 = inlined_call_operand.vmem [shape: f32[1,256], index: 8, kind: input, shape index: {}]   ;;  %s15169_s9 = inlined_call_operand.vmem [shape: bf16[4,4,4,256], index: 9, kind: output, shape index: {}]  }
   0x1   :  { %15 = vsyncpa [#allocation5], 0  ;;  %s12784_s30 = smov 0  }
   0x2 LB: > { %s12790_s10 = sadd.s32 4294967295, %s12726_s30   ;;  %p9608_p0 = scmp.ge.s32.totalorder %s12726_s30, 1  ;;  %s12726_s30 = sphi %s12784_s30, %s21_s30  }
   0x3   : > { %p246_p1 = scmp.lt.s32.totalorder %s12726_s30, 5  ;;  %s12728_s11 = smov [#allocation2]  }
   0x4   : > { %s270_s12 = sshll.u32 %s12728_s11, 4  ;;  %p15170_p3 = scmp.eq.s32.totalorder %s12790_s10, 0  ;;  %s271_s12 = int_to_ptr.vmem [resolvable:$true] %s270_s12 }
   0x5   : > { %p12794_p2 = pnand %p9608_p0, %p246_p1  ;;  %s12729_s14 = smov [#allocation4]  }
   0x6   : > { %s286_s15 = sshll.u32 %s12729_s14, 4  ;;  %s12656_s19 = scalar_lea.hbm %s15165_s5, 36864  ;;  %s12807_s15 = int_to_ptr.vmem [resolvable:$true] %s286_s15 }
   0x7   : > { %s15172_s13 = scalar_select %p12794_p2, 1, 0 }
   0x8   : > { %p11119_p4 = pneg %p12794_p2  ;;  %p12657_p6 = scmp.ne.s32.totalorder %s15165_s5, %s12656_s19 }
   0x9   : > { %p12663_p10 = scmp.lt.u32.totalorder %s12656_s19, %s15165_s5 }
   0xa   : > { %p12803_p5 = pnand %p15170_p3, %p11119_p4 }
   0xc   : > { %p12658_p7 = pneg %p12803_p5 }
   0xe   : > { %p12659_p8 = pnand %p12658_p7, %p12657_p6 }
  0x10   : > { %p12660_p9 = pneg %p12659_p8 }
  0x12   : > { %p12665_p11 = pnand %p12663_p10, %p12660_p9 }
  0x14   : > { %12668 = shalt.err (!%p12665_p11)
}
  0x15   : > { %s12669_s24 = scalar_lea.vmem %s271_s12, 36864  ;;  %p12677_p1 = scmp.lt.s32.totalorder %s271_s12, %s271_s12 }
  0x16   : > { %p12670_p12 = scmp.ne.s32.totalorder %s271_s12, %s12669_s24  ;;  %p12678_p4 = scmp.lt.s32.totalorder %s12669_s24, %s12669_s24 }
  0x18   : > { %p12672_p13 = pnand %p12670_p12, %p12658_p7  ;;  %p12679_p3 = por %p12678_p4, %p12677_p1 }
  0x1a   : > { %p12673_p0 = pneg %p12672_p13 }
  0x1c   : > { %p12680_p2 = pnand %p12679_p3, %p12673_p0 }
  0x1e   : > { %12683 = shalt.err (!%p12680_p2)
}
  0x1f   : > { %s12730_s25 = smov 128   ;;  %s12731_s26 = smov 8  }
  0x20   : > { %11122 = dma.hbm_to_vmem [thread:$0]  (!%p12803_p5), %s15165_s5, 36864, %s271_s12, [#allocation3], %s12730_s25, %s12730_s25, %s12731_s26  }
  0x21   : > { %s12684_s14 = scalar_lea.hbm %s15167_s7, 36864 }
  0x22   : > { %p12685_p6 = scmp.ne.s32.totalorder %s15167_s7, %s12684_s14  ;;  %p12691_p8 = scmp.lt.u32.totalorder %s12684_s14, %s15167_s7 }
  0x24   : > { %p12687_p2 = pnand %p12685_p6, %p12658_p7 }
  0x26   : > { %p12688_p3 = pneg %p12687_p2 }
  0x28   : > { %p12693_p9 = pnand %p12691_p8, %p12688_p3 }
  0x2a   : > { %12696 = shalt.err (!%p12693_p9)
}
  0x2b   : > { %s12697_s12 = scalar_lea.vmem %s12807_s15, 36864  ;;  %p12705_p13 = scmp.lt.s32.totalorder %s12807_s15, %s12807_s15 }
  0x2c   : > { %p12698_p10 = scmp.ne.s32.totalorder %s12807_s15, %s12697_s12  ;;  %p12706_p0 = scmp.lt.s32.totalorder %s12697_s12, %s12697_s12 }
  0x2e   : > { %p12700_p11 = pnand %p12698_p10, %p12658_p7  ;;  %p12707_p1 = por %p12706_p0, %p12705_p13 }
  0x30   : > { %p12701_p12 = pneg %p12700_p11 }
  0x32   : > { %p12708_p4 = pnand %p12707_p1, %p12701_p12 }
  0x34   : > { %12711 = shalt.err (!%p12708_p4)
}
  0x35   : > { %11125 = dma.hbm_to_vmem [thread:$0]  (!%p12803_p5), %s15167_s7, 36864, %s12807_s15, [#allocation5], %s12730_s25, %s12730_s25, %s12731_s26  }
  0x36   : > { %p15174_p6 = scmp.ne.s32.totalorder %s15172_s13, 0 }
  0x37   : > { %p15175_p2 = scmp.eq.s32.totalorder (!%p15174_p6), %s12790_s10, 0 }
  0x38   : > { %313 = sbr.rel (%p15174_p6) target bundleno = 2738 (0xab2), region = 56 }
  0x3f   : > { %12717 = dma.done.wait (%p15175_p2), [#allocation3], 36864   ;;  %p15176_p7 = pmov %p15175_p2 }
  0x40   : > { %p15177_p3 = pmov %p15175_p2 }
  0x41   : > { %12719 = vsyncadd (%p15176_p7), [#allocation3], 4294930432 }
  0x42   : > { %12721 = dma.done.wait (%p15177_p3), [#allocation5], 36864   ;;  %p15178_p8 = pmov %p15175_p2 }
  0x43   : > { %v11144_v0 = vld [vmem:[%s15161_s1 + $0x184] ss:$8 sps:$4 sm:$0xff]   ;;  %v11146_v1 = vld [vmem:[%s15161_s1 + $0x180] ss:$8 sps:$4 sm:$0xff]   ;;  %v11147_v2 = vld [vmem:[%s15161_s1 + $0x194] ss:$8 sps:$4 sm:$0xff]   ;;  %v375_v9 = vlaneseq }
  0x44   : > { %12723 = vsyncadd (%p15178_p8), [#allocation5], 4294930432  ;;  %922 = vmatprep.subr.bf16.mxu0 %v11144_v0  ;;  %v11149_v3 = vld [vmem:[%s15161_s1 + $0x190] ss:$8 sps:$4 sm:$0xff]   ;;  %v11150_v4 = vld [vmem:[%s15161_s1 + $0x1a4] ss:$8 sps:$4 sm:$0xff]  }
  0x45   : > { %923 = vmatpush1.bf16.msra.mxu0 %v11146_v1  ;;  %v11152_v5 = vld [vmem:[%s15161_s1 + $0x1a0] ss:$8 sps:$4 sm:$0xff]   ;;  %p353_p5 = scmp.lt.s32.totalorder %s12790_s10, 3  ;;  %v11153_v6 = vld [vmem:[%s15161_s1 + $0x1b4] ss:$8 sps:$4 sm:$0xff]   ;;  %v12897_v13 = vshrl.u32 %v375_v9, 7 }
  0x46   : > { %924 = vmatprep.subr.bf16.mxu0 %v11147_v2  ;;  %v12732_v7 = vmov 1983009808   ;;  %v11155_v10 = vld [vmem:[%s15161_s1 + $0x1b0] ss:$8 sps:$4 sm:$0xff]   ;;  %v11156_v11 = vld [vmem:[%s15161_s1 + $0x1c4] ss:$8 sps:$4 sm:$0xff]  }
  0x47   : > { %v373_v8 = vunpack.c.l.s4 %v12732_v7  ;;  %s15184_s10 = smov (!%p353_p5, %s12790_s10), 3  ;;  %v11158_v14 = vld [vmem:[%s15161_s1 + $0x1c0] ss:$8 sps:$4 sm:$0xff]   ;;  %v11159_v15 = vld [vmem:[%s15161_s1 + $0x1d4] ss:$8 sps:$4 sm:$0xff]   ;;  %vm432_vm1 = vcmask 1040384  }
  0x48   : > { %s10993_s23 = sshll.u32 %s15184_s10, 3  ;;  %v11161_v17 = vld [vmem:[%s15161_s1 + $0x1d0] ss:$8 sps:$4 sm:$0xff]   ;;  %v11162_v18 = vld [vmem:[%s15161_s1 + $0x1e4] ss:$8 sps:$4 sm:$0xff]   ;;  %vm451_vm3 = vcmask 1041408  }
  0x49   : > { %925 = vmatpush1.bf16.msra.mxu0 %v11149_v3  ;;  %v374_v12 = vunpack.c.0.s8 %v373_v8  ;;  %s357_s26 = scalar_lea.vmem %s15160_s0, %s10993_s23  ;;  %vm433_vm0 = vsmask.f32 256  ;;  %v11164_v25 = vld [vmem:[%s15161_s1 + $0x1e0] ss:$8 sps:$4 sm:$0xff]   ;;  %v11165_v26 = vld [vmem:[%s15161_s1 + $0x1f4] ss:$8 sps:$4 sm:$0xff]  }
  0x4a   : > { %926 = vmatprep.subr.bf16.mxu0 %v11150_v4  ;;  %v364_v19 = vld [vmem:[%s357_s26] sm:$0x3]  ;;  %v365_v20 = vld [vmem:[%s357_s26 + $0x2] sm:$0x3]  ;;  %v366_v21 = vld [vmem:[%s357_s26 + $0x4] sm:$0x3] }
  0x4b   : > { %v12910_v16 = vsub.s32 %v374_v12, %v12897_v13  ;;  %v367_v22 = vld [vmem:[%s357_s26 + $0x6] sm:$0x3]  ;;  %vm12949_vm2 = vmand %vm432_vm1, %vm433_vm0  ;;  %v11167_v40 = vld [vmem:[%s15161_s1 + $0x1f0] ss:$8 sps:$4 sm:$0xff]   ;;  %vm452_vm4 = vsmask.f32 1280 }
  0x4c   : > { %v11168_v43 = vld [vmem:[%s15161_s1 + $0x204] ss:$8 sps:$4 sm:$0xff]   ;;  %v11170_v50 = vld [vmem:[%s15161_s1 + $0x200] ss:$8 sps:$4 sm:$0xff]   ;;  %v11171_v55 = vld [vmem:[%s15161_s1 + $0x214] ss:$8 sps:$4 sm:$0xff]  }
  0x4d   : > { %927 = vmatpush1.bf16.msra.mxu0 %v11152_v5  ;;  %v12919_v23 = vrot.slane %v364_v19, %v12910_v16  ;;  %v12922_v24 = vrot.slane %v365_v20, %v12910_v16  ;;  %v12931_v27 = vrot.slane %v366_v21, %v12910_v16  ;;  %v12934_v28 = vrot.slane %v367_v22, %v12910_v16  ;;  %v11173_v62 = vld [vmem:[%s15161_s1 + $0x210] ss:$8 sps:$4 sm:$0xff]   ;;  %v11174_v0 = vld [vmem:[%s15161_s1 + $0x224] ss:$8 sps:$4 sm:$0xff]   ;;  %v11176_v4 = vld [vmem:[%s15161_s1 + $0x220] ss:$8 sps:$4 sm:$0xff]  }
  0x4e   : > { %928 = vmatprep.subr.bf16.mxu0 %v11153_v6  ;;  %v11177_v5 = vld [vmem:[%s15161_s1 + $0x234] ss:$8 sps:$4 sm:$0xff]   ;;  %v11179_v7 = vld [vmem:[%s15161_s1 + $0x230] ss:$8 sps:$4 sm:$0xff]   ;;  %v11180_v8 = vld [vmem:[%s15161_s1 + $0x244] ss:$8 sps:$4 sm:$0xff]  }
  0x4f   : > { %v401_v29 = vshrl.u32 %v12919_v23, 16  ;;  %v404_v30 = vshll.u32 %v12919_v23, 16  ;;  %v408_v31 = vshrl.u32 %v12922_v24, 16  ;;  %v411_v32 = vshll.u32 %v12922_v24, 16  ;;  %v11182_v9 = vld [vmem:[%s15161_s1 + $0x240] ss:$8 sps:$4 sm:$0xff]   ;;  %vm13033_vm5 = vmand %vm451_vm3, %vm452_vm4 }
  0x50   : > { %v415_v33 = vshrl.u32 %v12931_v27, 16  ;;  %v418_v34 = vshll.u32 %v12931_v27, 16  ;;  %v422_v35 = vshrl.u32 %v12934_v28, 16  ;;  %v425_v36 = vshll.u32 %v12934_v28, 16  ;;  %v11209_v23 = vld [vmem:[%s15161_s1 + $0x2d4] ss:$8 sps:$4 sm:$0xff]  }
  0x51   : > { %929 = vmatpush1.bf16.msra.mxu0 %v11155_v10  ;;  %v403_v37 = vrot.slane %v401_v29, 7  ;;  %v410_v38 = vrot.slane %v408_v31, 7  ;;  %v11183_v10 = vld [vmem:[%s15161_s1 + $0x254] ss:$8 sps:$4 sm:$0xff]   ;;  %s10994_s15 = sshll.u32 %s15184_s10, 4 }
  0x52   : > { %930 = vmatprep.subr.bf16.mxu0 %v11156_v11  ;;  %v417_v41 = vrot.slane %v415_v33, 7  ;;  %v424_v42 = vrot.slane %v422_v35, 7  ;;  %v441_v11 = vrot.slane %v411_v32, 1  ;;  %v443_v12 = vrot.slane %v418_v34, 1  ;;  %s362_s25 = scalar_lea.vmem %s15169_s9, %s10994_s15 }
  0x53   : > { %v406_v44 = vor.u32 %v404_v30, %v403_v37  ;;  %v413_v45 = vor.u32 %v411_v32, %v410_v38  ;;  %v11197_v37 = vld [vmem:[%s15161_s1 + $0x294] ss:$8 sps:$4 sm:$0xff]   ;;  %v11195_v38 = vld [vmem:[%s15161_s1 + $0x290] ss:$8 sps:$4 sm:$0xff]  }
  0x54   : > { %v420_v46 = vor.u32 %v418_v34, %v417_v41  ;;  %v427_v47 = vor.u32 %v425_v36, %v424_v42  ;;  %v11192_v34 = vld [vmem:[%s15161_s1 + $0x280] ss:$8 sps:$4 sm:$0xff]   ;;  %v11200_v41 = vld [vmem:[%s15161_s1 + $0x2a4] ss:$8 sps:$4 sm:$0xff]   ;;  %v439_v42 = vrot.slane %v404_v30, 1 }
  0x55   : > { %931 = vmatpush1.bf16.msra.mxu0 %v11158_v14  ;;  %v435_v48 = vsel %vm12949_vm2, 0, %v406_v44  ;;  %v436_v49 = vsel %vm12949_vm2, 0, %v413_v45  ;;  %v11185_v14 = vld [vmem:[%s15161_s1 + $0x250] ss:$8 sps:$4 sm:$0xff]   ;;  %v11198_v44 = vld [vmem:[%s15161_s1 + $0x2a0] ss:$8 sps:$4 sm:$0xff]  }
  0x56   : > { %932 = vmatprep.subr.bf16.mxu0 %v11159_v15  ;;  %v437_v51 = vsel %vm12949_vm2, 0, %v420_v46  ;;  %v438_v52 = vsel %vm12949_vm2, 0, %v427_v47  ;;  %v483_v53 = vcombine.low %v435_v48, %v364_v19  ;;  %v499_v54 = vcombine.low %v436_v49, %v365_v20  ;;  %v11186_v15 = vld [vmem:[%s15161_s1 + $0x264] ss:$8 sps:$4 sm:$0xff]   ;;  %v11188_v20 = vld [vmem:[%s15161_s1 + $0x260] ss:$8 sps:$4 sm:$0xff]  }
  0x57   : > { %v515_v56 = vcombine.low %v437_v51, %v366_v21  ;;  %v531_v57 = vcombine.low %v438_v52, %v367_v22  ;;  %v11189_v21 = vld [vmem:[%s15161_s1 + $0x274] ss:$8 sps:$4 sm:$0xff]   ;;  %v440_v46 = vor.u32 %v439_v42, %v401_v29  ;;  %v11201_v30 = vld [vmem:[%s15161_s1 + $0x2b0] ss:$8 sps:$4 sm:$0xff]   ;;  %v11204_v48 = vld [vmem:[%s15161_s1 + $0x2c0] ss:$8 sps:$4 sm:$0xff]  }
  0x58   : > { %v12982_v58 = vrot.slane %v483_v53, %v12910_v16  ;;  %v12985_v59 = vrot.slane %v499_v54, %v12910_v16  ;;  %v11203_v45 = vld [vmem:[%s15161_s1 + $0x2b4] ss:$8 sps:$4 sm:$0xff]   ;;  %v11207_v51 = vld [vmem:[%s15161_s1 + $0x2d0] ss:$8 sps:$4 sm:$0xff]   ;;  %v11212_v52 = vld [vmem:[%s15161_s1 + $0x2e4] ss:$8 sps:$4 sm:$0xff]  }
  0x59   : > { %933 = vmatpush1.bf16.msra.mxu0 %v11161_v17  ;;  %v12988_v60 = vrot.slane %v515_v56, %v12910_v16  ;;  %v12991_v61 = vrot.slane %v531_v57, %v12910_v16  ;;  %v442_v17 = vor.u32 %v441_v11, %v408_v31  ;;  %v11194_v31 = vld [vmem:[%s15161_s1 + $0x284] ss:$8 sps:$4 sm:$0xff]   ;;  %v454_v29 = vsel %vm13033_vm5, %v440_v46, 0  ;;  %v11210_v57 = vld [vmem:[%s15161_s1 + $0x2e0] ss:$8 sps:$4 sm:$0xff]  }
  0x5a   : > { %934 = vmatprep.subr.bf16.mxu0 %v11162_v18  ;;  %v9667_v63 = vcombine.low %v12982_v58, %v12985_v59  ;;  %v444_v18 = vor.u32 %v443_v12, %v415_v33  ;;  %v13107_v49 = vrot.slane %v454_v29, %v12910_v16  ;;  %v11225_v11 = vld [vmem:[%s15161_s1 + $0x30] ss:$8 sps:$4 sm:$0xff]   ;;  %v11230_v12 = vld [vmem:[%s15161_s1 + $0x44] ss:$8 sps:$4 sm:$0xff]   ;;  %v11269_v29 = vld [vmem:[%s15161_s1 + $0x114] ss:$8 sps:$4 sm:$0xff]  }
  0x5b   : > { %v9669_v1 = vcombine.low %v12988_v60, %v12991_v61  ;;  %v455_v22 = vsel %vm13033_vm5, %v442_v17, 0  ;;  %v9721_v56 = vcombine.low %v12985_v59, %v12988_v60  ;;  %v11213_v59 = vld [vmem:[%s15161_s1 + $0x2f0] ss:$8 sps:$4 sm:$0xff]   ;;  %v11218_v60 = vld [vmem:[%s15161_s1 + $0x4] ss:$8 sps:$4 sm:$0xff]  }
  0x5c   : > { %v654_v2 = vrot.slane %v9667_v63, %v12910_v16  ;;  %v456_v24 = vsel %vm13033_vm5, %v444_v18, 0  ;;  %v11231_v17 = vld [vmem:[%s15161_s1 + $0x50] ss:$8 sps:$4 sm:$0xff]   ;;  %v11236_v18 = vld [vmem:[%s15161_s1 + $0x64] ss:$8 sps:$4 sm:$0xff]  }
  0x5d   : > { %935 = vmatpush1.bf16.msra.mxu0 %v11164_v25  ;;  %v668_v3 = vrot.slane %v9669_v1, %v12910_v16  ;;  %v11191_v25 = vld [vmem:[%s15161_s1 + $0x270] ss:$8 sps:$4 sm:$0xff]   ;;  %v13054_v27 = vrot.slane %v456_v24, %v12910_v16  ;;  %v11242_v24 = vld [vmem:[%s15161_s1 + $0x84] ss:$8 sps:$4 sm:$0xff]  }
  0x5e   : > { %936 = vmatprep.subr.bf16.mxu0 %v11165_v26  ;;  %v13051_v26 = vrot.slane %v455_v22, %v12910_v16  ;;  %v11237_v22 = vld [vmem:[%s15161_s1 + $0x70] ss:$8 sps:$4 sm:$0xff]   ;;  %v11254_v42 = vld [vmem:[%s15161_s1 + $0xc4] ss:$8 sps:$4 sm:$0xff]  }
  0x5f   : > { %v677_v6 = vcombine.high %v654_v2, %v668_v3  ;;  %v676_v33 = vcombine.low %v654_v2, %v668_v3  ;;  %v13138_v2 = vrot.slane %v9721_v56, %v12910_v16  ;;  %v11260_v46 = vld [vmem:[%s15161_s1 + $0xe4] ss:$8 sps:$4 sm:$0xff]   ;;  %v11270_v56 = vld [vmem:[%s15161_s1 + $0x120] ss:$8 sps:$4 sm:$0xff]  }
  0x60   : > { %v9722_v32 = vcombine.low %v13051_v26, %v13054_v27  ;;  %v9668_v54 = vcombine.low %v13107_v49, %v13051_v26  ;;  %v11405_v26 = vld [vmem:[%s15163_s3 + $0x574] ss:$8 sps:$4 sm:$0xff]  }
  0x61   : > { %937 = vmatpush1.bf16.msra.mxu0 %v11167_v40  ;;  %954 = vmatprep.mubr.bf16.mxu0 %v677_v6  ;;  %v12733_v40 = vmov 0  }
  0x62   : > { %938 = vmatprep.subr.bf16.mxu0 %v11168_v43  ;;  %v445_v43 = vrot.slane %v425_v36, 1  ;;  %v11206_v36 = vld [vmem:[%s15161_s1 + $0x2c4] ss:$8 sps:$4 sm:$0xff]   ;;  %v467_v28 = vcombine.low %v12733_v40, %v12733_v40 }
  0x64   : > { %v446_v47 = vor.u32 %v445_v43, %v422_v35  ;;  %v13119_v53 = vrot.slane %v467_v28, %v12910_v16  ;;  %v11252_v43 = vld [vmem:[%s15161_s1 + $0xc0] ss:$8 sps:$4 sm:$0xff]  }
  0x65   : > { %939 = vmatpush1.bf16.msra.mxu0 %v11170_v50 }
  0x66   : > { %940 = vmatprep.subr.bf16.mxu0 %v11171_v55  ;;  %v457_v35 = vsel %vm13033_vm5, %v446_v47, 0  ;;  %v9719_v63 = vcombine.low %v13119_v53, %v12982_v58  ;;  %v11258_v47 = vld [vmem:[%s15161_s1 + $0xe0] ss:$8 sps:$4 sm:$0xff]  }
  0x67   : > { %v13110_v50 = vrot.slane %v457_v35, %v12910_v16  ;;  %v11363_v35 = vld [vmem:[%s15163_s3 + $0x504] ss:$8 sps:$4 sm:$0xff]  }
  0x68   : > { %v13147_v3 = vrot.slane %v9719_v63, %v12910_v16  ;;  %2869 = vmatprep.subr.bf16.mxu1 %v11363_v35  ;;  %v11375_v63 = vld [vmem:[%s15163_s3 + $0x524] ss:$8 sps:$4 sm:$0xff]   ;;  %v11312_v35 = vld [vmem:[%s15161_s1 + $0x380] ss:$8 sps:$4 sm:$0xff]  }
  0x69   : > { %941 = vmatpush1.bf16.msra.mxu0 %v11173_v62  ;;  %v9670_v55 = vcombine.low %v13054_v27, %v13110_v50  ;;  %v11215_v62 = vld [vmem:[%s15161_s1 + $0x2f4] ss:$8 sps:$4 sm:$0xff]  }
  0x6a   : > { %942 = vmatprep.subr.bf16.mxu0 %v11174_v0  ;;  %v661_v0 = vrot.slane %v9668_v54, %v12910_v16  ;;  %v1041_v6 = vcombine.high %v13147_v3, %v13138_v2  ;;  %v1040_v28 = vcombine.low %v13147_v3, %v13138_v2  ;;  %v11365_v54 = vld [vmem:[%s15163_s3 + $0x500] ss:$8 sps:$4 sm:$0xff]  }
  0x6b   : > { %v675_v1 = vrot.slane %v9670_v55, %v12910_v16  ;;  %v11369_v55 = vld [vmem:[%s15163_s3 + $0x514] ss:$8 sps:$4 sm:$0xff]   ;;  %2870 = vmatpush1.bf16.msra.mxu1 %v11365_v54  ;;  %v11276_v3 = vld [vmem:[%s15161_s1 + $0x140] ss:$8 sps:$4 sm:$0xff]   ;;  %v11320_v54 = vld [vmem:[%s15161_s1 + $0x3a4] ss:$8 sps:$4 sm:$0xff]  }
  0x6c   : > { %2871 = vmatprep.subr.bf16.mxu1 %v11369_v55  ;;  %v11318_v55 = vld [vmem:[%s15161_s1 + $0x3a0] ss:$8 sps:$4 sm:$0xff]  }
  0x6d   : > { %943 = vmatpush1.bf16.msra.mxu0 %v11176_v4  ;;  %v678_v58 = vcombine.low %v661_v0, %v675_v1  ;;  %v11216_v4 = vld [vmem:[%s15161_s1] ss:$8 sps:$4 sm:$0xff]   ;;  %v11273_v0 = vld [vmem:[%s15161_s1 + $0x130] ss:$8 sps:$4 sm:$0xff]   ;;  %v11278_v1 = vld [vmem:[%s15161_s1 + $0x144] ss:$8 sps:$4 sm:$0xff]  }
  0x6e   : > { %944 = vmatprep.subr.bf16.mxu0 %v11177_v5  ;;  %v11221_v5 = vld [vmem:[%s15161_s1 + $0x14] ss:$8 sps:$4 sm:$0xff]  }
  0x71   : > { %945 = vmatpush1.bf16.msra.mxu0 %v11179_v7  ;;  %v11219_v7 = vld [vmem:[%s15161_s1 + $0x10] ss:$8 sps:$4 sm:$0xff]  }
  0x72   : > { %946 = vmatprep.subr.bf16.mxu0 %v11180_v8  ;;  %v11224_v8 = vld [vmem:[%s15161_s1 + $0x24] ss:$8 sps:$4 sm:$0xff]  }
  0x75   : > { %947 = vmatpush1.bf16.msra.mxu0 %v11182_v9  ;;  %v11222_v9 = vld [vmem:[%s15161_s1 + $0x20] ss:$8 sps:$4 sm:$0xff]  }
  0x76   : > { %948 = vmatprep.subr.bf16.mxu0 %v11183_v10  ;;  %v11227_v10 = vld [vmem:[%s15161_s1 + $0x34] ss:$8 sps:$4 sm:$0xff]  }
  0x79   : > { %949 = vmatpush1.bf16.msra.mxu0 %v11185_v14  ;;  %v11228_v14 = vld [vmem:[%s15161_s1 + $0x40] ss:$8 sps:$4 sm:$0xff]  }
  0x7a   : > { %950 = vmatprep.subr.bf16.mxu0 %v11186_v15  ;;  %v11233_v15 = vld [vmem:[%s15161_s1 + $0x54] ss:$8 sps:$4 sm:$0xff]  }
  0x7d   : > { %951 = vmatpush1.bf16.msra.mxu0 %v11188_v20  ;;  %v11234_v20 = vld [vmem:[%s15161_s1 + $0x60] ss:$8 sps:$4 sm:$0xff]  }
  0x7e   : > { %952 = vmatprep.subr.bf16.mxu0 %v11189_v21  ;;  %v11239_v21 = vld [vmem:[%s15161_s1 + $0x74] ss:$8 sps:$4 sm:$0xff]  }
  0x81   : > { %953 = vmatpush1.bf16.msra.mxu0 %v11191_v25  ;;  %v11240_v25 = vld [vmem:[%s15161_s1 + $0x80] ss:$8 sps:$4 sm:$0xff]  }
  0x82   : > { %965 = vmatprep.subr.bf16.mxu0 %v11194_v31  ;;  %v11245_v31 = vld [vmem:[%s15161_s1 + $0x94] ss:$8 sps:$4 sm:$0xff]  }
  0x84   : > { %955 = vmatmul.mubr.bf16.vlgmr.msra.gmra.mrb[0].mxu0 %v676_v33  ;;  %v11243_v33 = vld [vmem:[%s15161_s1 + $0x90] ss:$8 sps:$4 sm:$0xff]  }
  0x85   : > { %966 = vmatpush1.bf16.msra.mxu0 %v11192_v34  ;;  %997 = vmatprep.mubr.bf16.mxu0 %v12733_v40  ;;  %v11248_v34 = vld [vmem:[%s15161_s1 + $0xa4] ss:$8 sps:$4 sm:$0xff]  }
  0x86   : > { %967 = vmatprep.subr.bf16.mxu0 %v11197_v37  ;;  %v11246_v37 = vld [vmem:[%s15161_s1 + $0xa0] ss:$8 sps:$4 sm:$0xff]  }
  0x89   : > { %968 = vmatpush1.bf16.msra.mxu0 %v11195_v38  ;;  %v11251_v38 = vld [vmem:[%s15161_s1 + $0xb4] ss:$8 sps:$4 sm:$0xff]  }
  0x8a   : > { %969 = vmatprep.subr.bf16.mxu0 %v11200_v41  ;;  %v11249_v41 = vld [vmem:[%s15161_s1 + $0xb0] ss:$8 sps:$4 sm:$0xff]  }
  0x8d   : > { %970 = vmatpush1.bf16.msra.mxu0 %v11198_v44  ;;  %v11257_v44 = vld [vmem:[%s15161_s1 + $0xd4] ss:$8 sps:$4 sm:$0xff]  }
  0x8e   : > { %971 = vmatprep.subr.bf16.mxu0 %v11203_v45  ;;  %v11255_v45 = vld [vmem:[%s15161_s1 + $0xd0] ss:$8 sps:$4 sm:$0xff]  }
  0x91   : > { %972 = vmatpush1.bf16.msra.mxu0 %v11201_v30  ;;  %v11263_v30 = vld [vmem:[%s15161_s1 + $0xf4] ss:$8 sps:$4 sm:$0xff]  }
  0x92   : > { %973 = vmatprep.subr.bf16.mxu0 %v11206_v36  ;;  %v11261_v36 = vld [vmem:[%s15161_s1 + $0xf0] ss:$8 sps:$4 sm:$0xff]  }
  0x95   : > { %974 = vmatpush1.bf16.msra.mxu0 %v11204_v48  ;;  %v11266_v48 = vld [vmem:[%s15161_s1 + $0x104] ss:$8 sps:$4 sm:$0xff]  }
  0x96   : > { %975 = vmatprep.subr.bf16.mxu0 %v11209_v23  ;;  %v11264_v23 = vld [vmem:[%s15161_s1 + $0x100] ss:$8 sps:$4 sm:$0xff]  }
  0x99   : > { %976 = vmatpush1.bf16.msra.mxu0 %v11207_v51  ;;  %v11267_v51 = vld [vmem:[%s15161_s1 + $0x110] ss:$8 sps:$4 sm:$0xff]  }
  0x9a   : > { %977 = vmatprep.subr.bf16.mxu0 %v11212_v52  ;;  %v11272_v52 = vld [vmem:[%s15161_s1 + $0x124] ss:$8 sps:$4 sm:$0xff]  }
  0x9d   : > { %978 = vmatpush1.bf16.msra.mxu0 %v11210_v57  ;;  %v11275_v57 = vld [vmem:[%s15161_s1 + $0x134] ss:$8 sps:$4 sm:$0xff]  }
  0x9e   : > { %979 = vmatprep.subr.bf16.mxu0 %v11215_v62  ;;  %v11371_v62 = vld [vmem:[%s15163_s3 + $0x510] ss:$8 sps:$4 sm:$0xff]  }
  0x9f   : > { %2872 = vmatpush1.bf16.msra.mxu1 %v11371_v62  ;;  %v11326_v62 = vld [vmem:[%s15161_s1 + $0x3c4] ss:$8 sps:$4 sm:$0xff]  }
  0xa0   : > { %2873 = vmatprep.subr.bf16.mxu1 %v11375_v63  ;;  %v11324_v63 = vld [vmem:[%s15161_s1 + $0x3c0] ss:$8 sps:$4 sm:$0xff]  }
  0xa1   : > { %980 = vmatpush1.bf16.msra.mxu0 %v11213_v59  ;;  %v11377_v59 = vld [vmem:[%s15163_s3 + $0x520] ss:$8 sps:$4 sm:$0xff]  }
  0xa2   : > { %1286 = vmatprep.subr.bf16.mxu0 %v11218_v60  ;;  %v11381_v60 = vld [vmem:[%s15163_s3 + $0x534] ss:$8 sps:$4 sm:$0xff]  }
  0xa3   : > { %2874 = vmatpush1.bf16.msra.mxu1 %v11377_v59  ;;  %v11332_v59 = vld [vmem:[%s15161_s1 + $0x3e4] ss:$8 sps:$4 sm:$0xff]  }
  0xa4   : > { %998 = vmatmul.mubr.bf16.vlgmr.msra.gmra.mrb[0].mxu0 %v678_v58  ;;  %2875 = vmatprep.subr.bf16.mxu1 %v11381_v60  ;;  %v11281_v58 = vld [vmem:[%s15161_s1 + $0x154] ss:$8 sps:$4 sm:$0xff]   ;;  %v11330_v60 = vld [vmem:[%s15161_s1 + $0x3e0] ss:$8 sps:$4 sm:$0xff]  }
  0xa5   : > { %1287 = vmatpush1.bf16.msra.mxu0 %v11216_v4  ;;  %1318 = vmatprep.mubr.bf16.mxu0 %v1041_v6  ;;  %v11383_v4 = vld [vmem:[%s15163_s3 + $0x530] ss:$8 sps:$4 sm:$0xff]   ;;  %v13309_v6 = vrot.slane %v12733_v40, %v12910_v16 }
  0xa6   : > { %1288 = vmatprep.subr.bf16.mxu0 %v11221_v5  ;;  %v11387_v5 = vld [vmem:[%s15163_s3 + $0x544] ss:$8 sps:$4 sm:$0xff]  }
  0xa7   : > { %2876 = vmatpush1.bf16.msra.mxu1 %v11383_v4  ;;  %v11338_v4 = vld [vmem:[%s15161_s1 + $0x404] ss:$8 sps:$4 sm:$0xff]  }
  0xa8   : > { %2877 = vmatprep.subr.bf16.mxu1 %v11387_v5  ;;  %v11336_v5 = vld [vmem:[%s15161_s1 + $0x400] ss:$8 sps:$4 sm:$0xff]  }
  0xa9   : > { %1289 = vmatpush1.bf16.msra.mxu0 %v11219_v7  ;;  %v11279_v7 = vld [vmem:[%s15161_s1 + $0x150] ss:$8 sps:$4 sm:$0xff]  }
  0xaa   : > { %1290 = vmatprep.subr.bf16.mxu0 %v11224_v8  ;;  %v11284_v8 = vld [vmem:[%s15161_s1 + $0x164] ss:$8 sps:$4 sm:$0xff]  }
  0xad   : > { %1291 = vmatpush1.bf16.msra.mxu0 %v11222_v9  ;;  %v11389_v9 = vld [vmem:[%s15163_s3 + $0x540] ss:$8 sps:$4 sm:$0xff]  }
  0xae   : > { %1292 = vmatprep.subr.bf16.mxu0 %v11227_v10  ;;  %v11393_v10 = vld [vmem:[%s15163_s3 + $0x554] ss:$8 sps:$4 sm:$0xff]   ;;  %2878 = vmatpush1.bf16.msra.mxu1 %v11389_v9  ;;  %v11339_v9 = vld [vmem:[%s15161_s1 + $0x410] ss:$8 sps:$4 sm:$0xff]  }
  0xaf   : > { %2879 = vmatprep.subr.bf16.mxu1 %v11393_v10  ;;  %v11344_v10 = vld [vmem:[%s15161_s1 + $0x424] ss:$8 sps:$4 sm:$0xff]  }
  0xb1   : > { %1293 = vmatpush1.bf16.msra.mxu0 %v11225_v11  ;;  %v9720_v11 = vcombine.low %v13309_v6, %v13107_v49  ;;  %v11399_v49 = vld [vmem:[%s15163_s3 + $0x564] ss:$8 sps:$4 sm:$0xff]  }
  0xb2   : > { %1294 = vmatprep.subr.bf16.mxu0 %v11230_v12  ;;  %v11282_v12 = vld [vmem:[%s15161_s1 + $0x160] ss:$8 sps:$4 sm:$0xff]  }
  0xb5   : > { %1295 = vmatpush1.bf16.msra.mxu0 %v11228_v14  ;;  %v11287_v14 = vld [vmem:[%s15161_s1 + $0x174] ss:$8 sps:$4 sm:$0xff]  }
  0xb6   : > { %1296 = vmatprep.subr.bf16.mxu0 %v11233_v15  ;;  %v9819_v15 = vcombine.low %v12991_v61, %v13119_v53  ;;  %v11285_v61 = vld [vmem:[%s15161_s1 + $0x170] ss:$8 sps:$4 sm:$0xff]  }
  0xb9   : > { %1297 = vmatpush1.bf16.msra.mxu0 %v11231_v17  ;;  %v11395_v17 = vld [vmem:[%s15163_s3 + $0x550] ss:$8 sps:$4 sm:$0xff]  }
  0xba   : > { %1298 = vmatprep.subr.bf16.mxu0 %v11236_v18  ;;  %2880 = vmatpush1.bf16.msra.mxu1 %v11395_v17  ;;  %v1025_v18 = vrot.slane %v9720_v11, %v12910_v16  ;;  %v11347_v11 = vld [vmem:[%s15161_s1 + $0x434] ss:$8 sps:$4 sm:$0xff]   ;;  %v11351_v17 = vld [vmem:[%s15161_s1 + $0x450] ss:$8 sps:$4 sm:$0xff]  }
  0xbb   : > { %2881 = vmatprep.subr.bf16.mxu1 %v11399_v49  ;;  %v11356_v49 = vld [vmem:[%s15161_s1 + $0x464] ss:$8 sps:$4 sm:$0xff]  }
  0xbd   : > { %1299 = vmatpush1.bf16.msra.mxu0 %v11234_v20  ;;  %v13344_v20 = vrot.slane %v9722_v32, %v12910_v16  ;;  %v11288_v32 = vld [vmem:[%s15161_s1 + $0x300] ss:$8 sps:$4 sm:$0xff]  }
  0xbe   : > { %1300 = vmatprep.subr.bf16.mxu0 %v11239_v21  ;;  %v11290_v21 = vld [vmem:[%s15161_s1 + $0x304] ss:$8 sps:$4 sm:$0xff]  }
  0xbf   : > { %v1042_v27 = vcombine.low %v1025_v18, %v13344_v20  ;;  %v11354_v18 = vld [vmem:[%s15161_s1 + $0x460] ss:$8 sps:$4 sm:$0xff]  }
  0xc1   : > { %1301 = vmatpush1.bf16.msra.mxu0 %v11237_v22  ;;  %v13353_v22 = vrot.slane %v9819_v15, %v12910_v16  ;;  %v11353_v15 = vld [vmem:[%s15161_s1 + $0x454] ss:$8 sps:$4 sm:$0xff]  }
  0xc2   : > { %1302 = vmatprep.subr.bf16.mxu0 %v11242_v24  ;;  %v11401_v24 = vld [vmem:[%s15163_s3 + $0x560] ss:$8 sps:$4 sm:$0xff]  }
  0xc3   : > { %2882 = vmatpush1.bf16.msra.mxu1 %v11401_v24 }
  0xc4   : > { %2883 = vmatprep.subr.bf16.mxu1 %v11405_v26  ;;  %v11362_v26 = vld [vmem:[%s15163_s3 + $0x304] ss:$8 sps:$4 sm:$0xff]  }
  0xc5   : > { %1303 = vmatpush1.bf16.msra.mxu0 %v11240_v25  ;;  %v11293_v25 = vld [vmem:[%s15161_s1 + $0x314] ss:$8 sps:$4 sm:$0xff]  }
  0xc6   : > { %1304 = vmatprep.subr.bf16.mxu0 %v11245_v31  ;;  %v1438_v31 = vcombine.high %v13138_v2, %v13353_v22 }
  0xc9   : > { %1305 = vmatpush1.bf16.msra.mxu0 %v11243_v33  ;;  %v11407_v33 = vld [vmem:[%s15163_s3 + $0x570] ss:$8 sps:$4 sm:$0xff]  }
  0xca   : > { %1306 = vmatprep.subr.bf16.mxu0 %v11248_v34  ;;  %v11411_v34 = vld [vmem:[%s15163_s3 + $0x584] ss:$8 sps:$4 sm:$0xff]   ;;  %2884 = vmatpush1.bf16.msra.mxu1 %v11407_v33  ;;  %v11378_v33 = vld [vmem:[%s15163_s3 + $0x330] ss:$8 sps:$4 sm:$0xff]  }
  0xcb   : > { %2885 = vmatprep.subr.bf16.mxu1 %v11411_v34  ;;  %v11386_v34 = vld [vmem:[%s15163_s3 + $0x344] ss:$8 sps:$4 sm:$0xff]  }
  0xcd   : > { %1307 = vmatpush1.bf16.msra.mxu0 %v11246_v37  ;;  %v11291_v37 = vld [vmem:[%s15161_s1 + $0x310] ss:$8 sps:$4 sm:$0xff]  }
  0xce   : > { %1308 = vmatprep.subr.bf16.mxu0 %v11251_v38  ;;  %v11296_v38 = vld [vmem:[%s15161_s1 + $0x324] ss:$8 sps:$4 sm:$0xff]  }
  0xd1   : > { %1309 = vmatpush1.bf16.msra.mxu0 %v11249_v41  ;;  %v11413_v41 = vld [vmem:[%s15163_s3 + $0x580] ss:$8 sps:$4 sm:$0xff]  }
  0xd2   : > { %1310 = vmatprep.subr.bf16.mxu0 %v11254_v42  ;;  %v11294_v42 = vld [vmem:[%s15161_s1 + $0x320] ss:$8 sps:$4 sm:$0xff]   ;;  %2886 = vmatpush1.bf16.msra.mxu1 %v11413_v41  ;;  %v11390_v41 = vld [vmem:[%s15163_s3 + $0x350] ss:$8 sps:$4 sm:$0xff]  }
  0xd5   : > { %1311 = vmatpush1.bf16.msra.mxu0 %v11252_v43  ;;  %v11299_v43 = vld [vmem:[%s15161_s1 + $0x334] ss:$8 sps:$4 sm:$0xff]  }
  0xd6   : > { %1312 = vmatprep.subr.bf16.mxu0 %v11257_v44  ;;  %v11297_v44 = vld [vmem:[%s15161_s1 + $0x330] ss:$8 sps:$4 sm:$0xff]  }
  0xd9   : > { %1313 = vmatpush1.bf16.msra.mxu0 %v11255_v45  ;;  %v11302_v45 = vld [vmem:[%s15161_s1 + $0x344] ss:$8 sps:$4 sm:$0xff]  }
  0xda   : > { %1314 = vmatprep.subr.bf16.mxu0 %v11260_v46  ;;  %v11300_v46 = vld [vmem:[%s15161_s1 + $0x340] ss:$8 sps:$4 sm:$0xff]  }
  0xdd   : > { %1315 = vmatpush1.bf16.msra.mxu0 %v11258_v47  ;;  %v11305_v47 = vld [vmem:[%s15161_s1 + $0x354] ss:$8 sps:$4 sm:$0xff]  }
  0xde   : > { %1316 = vmatprep.subr.bf16.mxu0 %v11263_v30  ;;  %v11303_v30 = vld [vmem:[%s15161_s1 + $0x350] ss:$8 sps:$4 sm:$0xff]  }
  0xe1   : > { %1317 = vmatpush1.bf16.msra.mxu0 %v11261_v36  ;;  %v11308_v36 = vld [vmem:[%s15161_s1 + $0x364] ss:$8 sps:$4 sm:$0xff]  }
  0xe2   : > { %1329 = vmatprep.subr.bf16.mxu0 %v11266_v48  ;;  %v11306_v48 = vld [vmem:[%s15161_s1 + $0x360] ss:$8 sps:$4 sm:$0xff]  }
  0xe4   : > { %1319 = vmatmul.mubr.bf16.vlgmr.msra.gmra.mrb[0].mxu0 %v1040_v28  ;;  %v11309_v28 = vld [vmem:[%s15161_s1 + $0x370] ss:$8 sps:$4 sm:$0xff]  }
  0xe5   : > { %1330 = vmatpush1.bf16.msra.mxu0 %v11264_v23  ;;  %1361 = vmatprep.mubr.bf16.mxu0 %v12733_v40  ;;  %v11311_v23 = vld [vmem:[%s15161_s1 + $0x374] ss:$8 sps:$4 sm:$0xff]  }
  0xe6   : > { %1331 = vmatprep.subr.bf16.mxu0 %v11269_v29  ;;  %v11314_v29 = vld [vmem:[%s15161_s1 + $0x384] ss:$8 sps:$4 sm:$0xff]  }
  0xe9   : > { %1332 = vmatpush1.bf16.msra.mxu0 %v11267_v51  ;;  %v11317_v51 = vld [vmem:[%s15161_s1 + $0x394] ss:$8 sps:$4 sm:$0xff]  }
  0xea   : > { %1333 = vmatprep.subr.bf16.mxu0 %v11272_v52  ;;  %v11315_v52 = vld [vmem:[%s15161_s1 + $0x390] ss:$8 sps:$4 sm:$0xff]  }
  0xed   : > { %1334 = vmatpush1.bf16.msra.mxu0 %v11270_v56  ;;  %v11323_v56 = vld [vmem:[%s15161_s1 + $0x3b4] ss:$8 sps:$4 sm:$0xff]  }
  0xee   : > { %1335 = vmatprep.subr.bf16.mxu0 %v11275_v57  ;;  %v11321_v57 = vld [vmem:[%s15161_s1 + $0x3b0] ss:$8 sps:$4 sm:$0xff]  }
  0xf1   : > { %1336 = vmatpush1.bf16.msra.mxu0 %v11273_v0  ;;  %v11329_v0 = vld [vmem:[%s15161_s1 + $0x3d4] ss:$8 sps:$4 sm:$0xff]  }
  0xf2   : > { %1337 = vmatprep.subr.bf16.mxu0 %v11278_v1  ;;  %v11327_v1 = vld [vmem:[%s15161_s1 + $0x3d0] ss:$8 sps:$4 sm:$0xff]  }
  0xf5   : > { %1338 = vmatpush1.bf16.msra.mxu0 %v11276_v3  ;;  %v11335_v3 = vld [vmem:[%s15161_s1 + $0x3f4] ss:$8 sps:$4 sm:$0xff]  }
  0xf6   : > { %1339 = vmatprep.subr.bf16.mxu0 %v11281_v58  ;;  %v11333_v58 = vld [vmem:[%s15161_s1 + $0x3f0] ss:$8 sps:$4 sm:$0xff]  }
  0xf9   : > { %1340 = vmatpush1.bf16.msra.mxu0 %v11279_v7  ;;  %v1437_v7 = vcombine.low %v13138_v2, %v13353_v22  ;;  %v11342_v2 = vld [vmem:[%s15161_s1 + $0x420] ss:$8 sps:$4 sm:$0xff]   ;;  %v11357_v22 = vld [vmem:[%s15161_s1 + $0x470] ss:$8 sps:$4 sm:$0xff]  }
  0xfa   : > { %1341 = vmatprep.subr.bf16.mxu0 %v11284_v8  ;;  %v11341_v8 = vld [vmem:[%s15161_s1 + $0x414] ss:$8 sps:$4 sm:$0xff]  }
  0xfd   : > { %1342 = vmatpush1.bf16.msra.mxu0 %v11282_v12  ;;  %v11345_v12 = vld [vmem:[%s15161_s1 + $0x430] ss:$8 sps:$4 sm:$0xff]  }
  0xfe   : > { %1343 = vmatprep.subr.bf16.mxu0 %v11287_v14  ;;  %v11350_v14 = vld [vmem:[%s15161_s1 + $0x444] ss:$8 sps:$4 sm:$0xff]  }
 0x101   : > { %1344 = vmatpush1.bf16.msra.mxu0 %v11285_v61  ;;  %v11359_v61 = vld [vmem:[%s15161_s1 + $0x474] ss:$8 sps:$4 sm:$0xff]  }
 0x102   : > { %1683 = vmatprep.subr.bf16.mxu0 %v11290_v21  ;;  %v9820_v21 = vcombine.low %v13110_v50, %v13309_v6  ;;  %v11368_v6 = vld [vmem:[%s15163_s3 + $0x314] ss:$8 sps:$4 sm:$0xff]  }
 0x104   : > { %1362 = vmatmul.mubr.bf16.vlgmr.msra.gmra.mrb[0].mxu0 %v1042_v27  ;;  %v1436_v24 = vrot.slane %v9820_v21, %v12910_v16  ;;  %v11360_v27 = vld [vmem:[%s15163_s3 + $0x300] ss:$8 sps:$4 sm:$0xff]  }
 0x105   : > { %1684 = vmatpush1.bf16.msra.mxu0 %v11288_v32  ;;  %1715 = vmatprep.mubr.bf16.mxu0 %v1438_v31  ;;  %v11366_v32 = vld [vmem:[%s15163_s3 + $0x310] ss:$8 sps:$4 sm:$0xff]   ;;  %v11380_v31 = vld [vmem:[%s15163_s3 + $0x334] ss:$8 sps:$4 sm:$0xff]  }
 0x106   : > { %1685 = vmatprep.subr.bf16.mxu0 %v11293_v25  ;;  %v1439_v50 = vcombine.low %v13344_v20, %v1436_v24  ;;  %v11374_v25 = vld [vmem:[%s15163_s3 + $0x324] ss:$8 sps:$4 sm:$0xff]   ;;  %v11372_v20 = vld [vmem:[%s15163_s3 + $0x320] ss:$8 sps:$4 sm:$0xff]  }
 0x109   : > { %1686 = vmatpush1.bf16.msra.mxu0 %v11291_v37  ;;  %v11384_v37 = vld [vmem:[%s15163_s3 + $0x340] ss:$8 sps:$4 sm:$0xff]  }
 0x10a   : > { %1687 = vmatprep.subr.bf16.mxu0 %v11296_v38  ;;  %v11392_v38 = vld [vmem:[%s15163_s3 + $0x354] ss:$8 sps:$4 sm:$0xff]  }
 0x10d   : > { %1688 = vmatpush1.bf16.msra.mxu0 %v11294_v42  ;;  %v11398_v42 = vld [vmem:[%s15163_s3 + $0x364] ss:$8 sps:$4 sm:$0xff]  }
 0x10e   : > { %1689 = vmatprep.subr.bf16.mxu0 %v11299_v43  ;;  %v11396_v43 = vld [vmem:[%s15163_s3 + $0x360] ss:$8 sps:$4 sm:$0xff]  }
 0x111   : > { %1690 = vmatpush1.bf16.msra.mxu0 %v11297_v44  ;;  %v11404_v44 = vld [vmem:[%s15163_s3 + $0x374] ss:$8 sps:$4 sm:$0xff]  }
 0x112   : > { %1691 = vmatprep.subr.bf16.mxu0 %v11302_v45  ;;  %v11402_v45 = vld [vmem:[%s15163_s3 + $0x370] ss:$8 sps:$4 sm:$0xff]  }
 0x115   : > { %1692 = vmatpush1.bf16.msra.mxu0 %v11300_v46  ;;  %v11410_v46 = vld [vmem:[%s15163_s3 + $0x384] ss:$8 sps:$4 sm:$0xff]  }
 0x116   : > { %1693 = vmatprep.subr.bf16.mxu0 %v11305_v47  ;;  %v11408_v47 = vld [vmem:[%s15163_s3 + $0x380] ss:$8 sps:$4 sm:$0xff]  }
 0x119   : > { %1694 = vmatpush1.bf16.msra.mxu0 %v11303_v30  ;;  %v11416_v30 = vld [vmem:[%s15163_s3 + $0x394] ss:$8 sps:$4 sm:$0xff]  }
 0x11a   : > { %1695 = vmatprep.subr.bf16.mxu0 %v11308_v36  ;;  %v11417_v36 = vld [vmem:[%s15163_s3 + $0x594] ss:$8 sps:$4 sm:$0xff]  }
 0x11b   : > { %2887 = vmatprep.subr.bf16.mxu1 %v11417_v36 }
 0x11d   : > { %1696 = vmatpush1.bf16.msra.mxu0 %v11306_v48  ;;  %v11414_v48 = vld [vmem:[%s15163_s3 + $0x390] ss:$8 sps:$4 sm:$0xff]  }
 0x11e   : > { %1697 = vmatprep.subr.bf16.mxu0 %v11311_v23  ;;  %v11419_v23 = vld [vmem:[%s15163_s3 + $0x590] ss:$8 sps:$4 sm:$0xff]  }
 0x11f   : > { %2888 = vmatpush1.bf16.msra.mxu1 %v11419_v23 }
 0x121   : > { %1698 = vmatpush1.bf16.msra.mxu0 %v11309_v28  ;;  %v11422_v28 = vld [vmem:[%s15163_s3 + $0x3a4] ss:$8 sps:$4 sm:$0xff]  }
 0x122   : > { %1699 = vmatprep.subr.bf16.mxu0 %v11314_v29  ;;  %v11423_v29 = vld [vmem:[%s15163_s3 + $0x5a4] ss:$8 sps:$4 sm:$0xff]  }
 0x123   : > { %2889 = vmatprep.subr.bf16.mxu1 %v11423_v29 }
 0x125   : > { %1700 = vmatpush1.bf16.msra.mxu0 %v11312_v35  ;;  %v11420_v35 = vld [vmem:[%s15163_s3 + $0x3a0] ss:$8 sps:$4 sm:$0xff]  }
 0x126   : > { %1701 = vmatprep.subr.bf16.mxu0 %v11317_v51  ;;  %v11425_v51 = vld [vmem:[%s15163_s3 + $0x5a0] ss:$8 sps:$4 sm:$0xff]  }
 0x127   : > { %2890 = vmatpush1.bf16.msra.mxu1 %v11425_v51 }
 0x129   : > { %1702 = vmatpush1.bf16.msra.mxu0 %v11315_v52  ;;  %v11428_v52 = vld [vmem:[%s15163_s3 + $0x3b4] ss:$8 sps:$4 sm:$0xff]  }
 0x12a   : > { %1703 = vmatprep.subr.bf16.mxu0 %v11320_v54  ;;  %v11429_v54 = vld [vmem:[%s15163_s3 + $0x5b4] ss:$8 sps:$4 sm:$0xff]  }
 0x12b   : > { %2891 = vmatprep.subr.bf16.mxu1 %v11429_v54 }
 0x12d   : > { %1704 = vmatpush1.bf16.msra.mxu0 %v11318_v55  ;;  %v11426_v55 = vld [vmem:[%s15163_s3 + $0x3b0] ss:$8 sps:$4 sm:$0xff]  }
 0x12e   : > { %1705 = vmatprep.subr.bf16.mxu0 %v11323_v56  ;;  %v11431_v56 = vld [vmem:[%s15163_s3 + $0x5b0] ss:$8 sps:$4 sm:$0xff]  }
 0x12f   : > { %2892 = vmatpush1.bf16.msra.mxu1 %v11431_v56 }
 0x131   : > { %1706 = vmatpush1.bf16.msra.mxu0 %v11321_v57  ;;  %v11434_v57 = vld [vmem:[%s15163_s3 + $0x3c4] ss:$8 sps:$4 sm:$0xff]  }
 0x132   : > { %1707 = vmatprep.subr.bf16.mxu0 %v11326_v62  ;;  %v11435_v62 = vld [vmem:[%s15163_s3 + $0x5c4] ss:$8 sps:$4 sm:$0xff]  }
 0x133   : > { %2893 = vmatprep.subr.bf16.mxu1 %v11435_v62 }
 0x135   : > { %1708 = vmatpush1.bf16.msra.mxu0 %v11324_v63  ;;  %v11432_v63 = vld [vmem:[%s15163_s3 + $0x3c0] ss:$8 sps:$4 sm:$0xff]  }
 0x136   : > { %1709 = vmatprep.subr.bf16.mxu0 %v11329_v0  ;;  %v11437_v0 = vld [vmem:[%s15163_s3 + $0x5c0] ss:$8 sps:$4 sm:$0xff]  }
 0x137   : > { %2894 = vmatpush1.bf16.msra.mxu1 %v11437_v0 }
 0x139   : > { %1710 = vmatpush1.bf16.msra.mxu0 %v11327_v1  ;;  %v11438_v1 = vld [vmem:[%s15163_s3 + $0x3d0] ss:$8 sps:$4 sm:$0xff]  }
 0x13a   : > { %1711 = vmatprep.subr.bf16.mxu0 %v11332_v59  ;;  %v11440_v59 = vld [vmem:[%s15163_s3 + $0x3d4] ss:$8 sps:$4 sm:$0xff]  }
 0x13d   : > { %1712 = vmatpush1.bf16.msra.mxu0 %v11330_v60  ;;  %v11441_v60 = vld [vmem:[%s15163_s3 + $0x5d4] ss:$8 sps:$4 sm:$0xff]  }
 0x13e   : > { %1713 = vmatprep.subr.bf16.mxu0 %v11335_v3  ;;  %v11443_v3 = vld [vmem:[%s15163_s3 + $0x5d0] ss:$8 sps:$4 sm:$0xff]   ;;  %2895 = vmatprep.subr.bf16.mxu1 %v11441_v60 }
 0x13f   : > { %2896 = vmatpush1.bf16.msra.mxu1 %v11443_v3 }
 0x141   : > { %1714 = vmatpush1.bf16.msra.mxu0 %v11333_v58  ;;  %v11446_v58 = vld [vmem:[%s15163_s3 + $0x3e4] ss:$8 sps:$4 sm:$0xff]  }
 0x142   : > { %1726 = vmatprep.subr.bf16.mxu0 %v11338_v4  ;;  %v11444_v4 = vld [vmem:[%s15163_s3 + $0x3e0] ss:$8 sps:$4 sm:$0xff]  }
 0x144   : > { %1716 = vmatmul.mubr.bf16.vlgmr.msra.gmra.mrb[0].mxu0 %v1437_v7  ;;  %v11449_v7 = vld [vmem:[%s15163_s3 + $0x5e0] ss:$8 sps:$4 sm:$0xff]  }
 0x145   : > { %1727 = vmatpush1.bf16.msra.mxu0 %v11336_v5  ;;  %1758 = vmatprep.mubr.bf16.mxu0 %v12733_v40  ;;  %v11348_v40 = vld [vmem:[%s15161_s1 + $0x440] ss:$8 sps:$4 sm:$0xff]   ;;  %v11447_v5 = vld [vmem:[%s15163_s3 + $0x5e4] ss:$8 sps:$4 sm:$0xff]  }
 0x146   : > { %1728 = vmatprep.subr.bf16.mxu0 %v11341_v8  ;;  %v11452_v8 = vld [vmem:[%s15163_s3 + $0x3f4] ss:$8 sps:$4 sm:$0xff]   ;;  %2897 = vmatprep.subr.bf16.mxu1 %v11447_v5 }
 0x147   : > { %2898 = vmatpush1.bf16.msra.mxu1 %v11449_v7 }
 0x149   : > { %1729 = vmatpush1.bf16.msra.mxu0 %v11339_v9  ;;  %v11453_v9 = vld [vmem:[%s15163_s3 + $0x5f4] ss:$8 sps:$4 sm:$0xff]  }
 0x14a   : > { %1730 = vmatprep.subr.bf16.mxu0 %v11344_v10  ;;  %v11450_v10 = vld [vmem:[%s15163_s3 + $0x3f0] ss:$8 sps:$4 sm:$0xff]   ;;  %2899 = vmatprep.subr.bf16.mxu1 %v11453_v9 }
 0x14d   : > { %1731 = vmatpush1.bf16.msra.mxu0 %v11342_v2  ;;  %v11455_v2 = vld [vmem:[%s15163_s3 + $0x5f0] ss:$8 sps:$4 sm:$0xff]  }
 0x14e   : > { %1732 = vmatprep.subr.bf16.mxu0 %v11347_v11  ;;  %2900 = vmatpush1.bf16.msra.mxu1 %v11455_v2  ;;  %v11458_v11 = vld [vmem:[%s15163_s3 + $0x404] ss:$8 sps:$4 sm:$0xff]  }
 0x151   : > { %1733 = vmatpush1.bf16.msra.mxu0 %v11345_v12  ;;  %v11461_v12 = vld [vmem:[%s15163_s3 + $0x4] ss:$8 sps:$4 sm:$0xff]  }
 0x152   : > { %1734 = vmatprep.subr.bf16.mxu0 %v11350_v14  ;;  %3452 = vmatprep.subr.bf16.mxu1 %v11461_v12  ;;  %v13666_v14 = vsub.s32 0, %v12897_v13 }
 0x155   : > { %1735 = vmatpush1.bf16.msra.mxu0 %v11348_v40  ;;  %v1773_v40 = vld [vmem:[%s15162_s2] sm:$0x3] }
 0x156   : > { %1736 = vmatprep.subr.bf16.mxu0 %v11353_v15  ;;  %v13672_v15 = vsub.s32 1, %v12897_v13 }
 0x159   : > { %1737 = vmatpush1.bf16.msra.mxu0 %v11351_v17  ;;  %v1778_v17 = vrot.slane %v1773_v40, %v13666_v14 }
 0x15a   : > { %1738 = vmatprep.subr.bf16.mxu0 %v11356_v49  ;;  %v1782_v49 = vrot.slane %v1773_v40, %v13672_v15 }
 0x15d   : > { %1739 = vmatpush1.bf16.msra.mxu0 %v11354_v18 }
 0x15e   : > { %1740 = vmatprep.subr.bf16.mxu0 %v11359_v61 }
 0x161   : > { %1741 = vmatpush1.bf16.msra.mxu0 %v11357_v22 }
 0x162   : > { %2783 = vmatprep.subr.bf16.mxu0 %v11362_v26 }
 0x164   : > { %1759 = vmatmul.mubr.bf16.vlgmr.msra.gmra.mrb[0].mxu0 %v1439_v50 }
 0x165   : > { %2784 = vmatpush1.bf16.msra.mxu0 %v11360_v27 }
 0x166   : > { %2785 = vmatprep.subr.bf16.mxu0 %v11368_v6 }
 0x169   : > { %2786 = vmatpush1.bf16.msra.mxu0 %v11366_v32 }
 0x16a   : > { %2787 = vmatprep.subr.bf16.mxu0 %v11374_v25 }
 0x16d   : > { %2788 = vmatpush1.bf16.msra.mxu0 %v11372_v20 }
 0x16e   : > { %2789 = vmatprep.subr.bf16.mxu0 %v11380_v31 }
 0x171   : > { %2790 = vmatpush1.bf16.msra.mxu0 %v11378_v33 }
 0x172   : > { %2791 = vmatprep.subr.bf16.mxu0 %v11386_v34 }
 0x175   : > { %2792 = vmatpush1.bf16.msra.mxu0 %v11384_v37 }
 0x176   : > { %2793 = vmatprep.subr.bf16.mxu0 %v11392_v38 }
 0x179   : > { %2794 = vmatpush1.bf16.msra.mxu0 %v11390_v41 }
 0x17a   : > { %2795 = vmatprep.subr.bf16.mxu0 %v11398_v42 }
 0x17d   : > { %2796 = vmatpush1.bf16.msra.mxu0 %v11396_v43 }
 0x17e   : > { %2797 = vmatprep.subr.bf16.mxu0 %v11404_v44 }
 0x181   : > { %2798 = vmatpush1.bf16.msra.mxu0 %v11402_v45 }
 0x182   : > { %2799 = vmatprep.subr.bf16.mxu0 %v11410_v46 }
 0x185   : > { %2800 = vmatpush1.bf16.msra.mxu0 %v11408_v47 }
 0x186   : > { %2801 = vmatprep.subr.bf16.mxu0 %v11416_v30 }
 0x189   : > { %2802 = vmatpush1.bf16.msra.mxu0 %v11414_v48 }
 0x18a   : > { %2803 = vmatprep.subr.bf16.mxu0 %v11422_v28 }
 0x18d   : > { %2804 = vmatpush1.bf16.msra.mxu0 %v11420_v35 }
 0x18e   : > { %2805 = vmatprep.subr.bf16.mxu0 %v11428_v52 }
 0x191   : > { %2806 = vmatpush1.bf16.msra.mxu0 %v11426_v55 }
 0x192   : > { %2807 = vmatprep.subr.bf16.mxu0 %v11434_v57 }
 0x195   : > { %2808 = vmatpush1.bf16.msra.mxu0 %v11432_v63 }
 0x196   : > { %2809 = vmatprep.subr.bf16.mxu0 %v11440_v59 }
 0x199   : > { %2810 = vmatpush1.bf16.msra.mxu0 %v11438_v1 }
 0x19a   : > { %2811 = vmatprep.subr.bf16.mxu0 %v11446_v58 }
 0x19d   : > { %2812 = vmatpush1.bf16.msra.mxu0 %v11444_v4 }
 0x19e   : > { %2813 = vmatprep.subr.bf16.mxu0 %v11452_v8 }
 0x1a1   : > { %2814 = vmatpush1.bf16.msra.mxu0 %v11450_v10 }
 0x1a2   : > { %2826 = vmatprep.subr.bf16.mxu0 %v11458_v11 }
 0x237   : > { %v1760_v18 = vpop.f32.mrb[0].mxu0 }
 0x238   : > { %v1785_v61 = vadd.f32 %v1778_v17, %v1760_v18  ;;  %v1762_v21 = vpop.f32.mrb[1].mxu0 }
 0x239   : > { %v1786_v22 = vadd.f32 %v1782_v49, %v1762_v21  ;;  %v1764_v24 = vpop.f32.mrb[2].mxu0 }
 0x23a   : > { %v1789_v26 = vmax.f32 %v1785_v61, 0.0  ;;  %v1787_v27 = vadd.f32 %v1778_v17, %v1764_v24  ;;  %v1766_v50 = vpop.f32.mrb[3].mxu0 }
 0x23b   : > { %v1790_v6 = vmax.f32 %v1786_v22, 0.0  ;;  %v1788_v32 = vadd.f32 %v1782_v49, %v1766_v50 }
 0x23c   : > { %v1791_v25 = vmax.f32 %v1787_v27, 0.0 }
 0x23d   : > { %v13676_v20 = vcombine.low %v1789_v26, %v1790_v6  ;;  %v13678_v31 = vcombine.high %v1789_v26, %v1790_v6  ;;  %v13680_v13 = vcombine.low %v1790_v6, %v1790_v6  ;;  %v13682_v33 = vcombine.high %v1790_v6, %v1790_v6 }
 0x23e   : > { %v1792_v34 = vmax.f32 %v1788_v32, 0.0 }
 0x23f   : > { %v13686_v37 = vpack.c.bf16 %v13676_v20, %v13676_v20  ;;  %v13690_v38 = vpack.c.bf16 %v13680_v13, %v13680_v13  ;;  %v13694_v41 = vpack.c.bf16 %v13678_v31, %v13678_v31  ;;  %v13698_v42 = vpack.c.bf16 %v13682_v33, %v13682_v33 }
 0x240   : > { %v9873_v43 = vpack.c.bf16 %v13680_v13, %v13676_v20  ;;  %v9874_v44 = vpack.c.bf16 %v13682_v33, %v13678_v31  ;;  %v13704_v45 = vcombine.low %v1791_v25, %v1792_v34  ;;  %v13706_v46 = vcombine.high %v1791_v25, %v1792_v34 }
 0x241   : > { %v1822_v47 = vshrl.u32 %v13686_v37, 16  ;;  %v1825_v30 = vshll.u32 %v13686_v37, 16  ;;  %v1829_v36 = vshrl.u32 %v13690_v38, 16  ;;  %v1832_v48 = vshll.u32 %v13690_v38, 16 }
 0x242   : > { %v1836_v23 = vshrl.u32 %v13694_v41, 16  ;;  %v1839_v28 = vshll.u32 %v13694_v41, 16  ;;  %v1843_v29 = vshrl.u32 %v13698_v42, 16  ;;  %v1846_v35 = vshll.u32 %v13698_v42, 16 }
 0x243   : > { %v1824_v51 = vrot.slane %v1822_v47, 7  ;;  %v1831_v52 = vrot.slane %v1829_v36, 7  ;;  %v13716_v54 = vcombine.low %v1792_v34, %v1792_v34  ;;  %v13718_v55 = vcombine.high %v1792_v34, %v1792_v34 }
 0x244   : > { %v1838_v56 = vrot.slane %v1836_v23, 7  ;;  %v1845_v57 = vrot.slane %v1843_v29, 7  ;;  %v1817_v62 = vpack.c.bf16 %v13704_v45, %v13704_v45  ;;  %v1819_v63 = vpack.c.bf16 %v13706_v46, %v13706_v46 }
 0x245   : > { %v1818_v0 = vpack.c.bf16 %v13716_v54, %v13716_v54  ;;  %v13728_v1 = vpack.c.bf16 %v13718_v55, %v13718_v55  ;;  %v9875_v59 = vpack.c.bf16 %v13716_v54, %v13704_v45  ;;  %v9876_v60 = vpack.c.bf16 %v13718_v55, %v13706_v46  ;;  %v11462_v45 = vld [vmem:[%s15163_s3 + $0x410] ss:$8 sps:$4 sm:$0xff]  }
 0x246   : > { %v1850_v3 = vshrl.u32 %v1817_v62, 16  ;;  %v1853_v58 = vshll.u32 %v1817_v62, 16  ;;  %v1864_v4 = vshrl.u32 %v1819_v63, 16  ;;  %v1867_v5 = vshll.u32 %v1819_v63, 16 }
 0x247   : > { %v1857_v7 = vshrl.u32 %v1818_v0, 16  ;;  %v1860_v8 = vshll.u32 %v1818_v0, 16  ;;  %v1871_v9 = vshrl.u32 %v13728_v1, 16  ;;  %v1874_v10 = vshll.u32 %v13728_v1, 16 }
 0x248   : > { %v1852_v2 = vrot.slane %v1850_v3, 7  ;;  %v1866_v11 = vrot.slane %v1864_v4, 7  ;;  %v1827_v12 = vor.u32 %v1825_v30, %v1824_v51  ;;  %v1834_v40 = vor.u32 %v1832_v48, %v1831_v52 }
 0x249   : > { %v1859_v17 = vrot.slane %v1857_v7, 7  ;;  %v1873_v49 = vrot.slane %v1871_v9, 7  ;;  %v1841_v18 = vor.u32 %v1839_v28, %v1838_v56  ;;  %v1848_v61 = vor.u32 %v1846_v35, %v1845_v57 }
 0x24a   : > { %v1855_v21 = vor.u32 %v1853_v58, %v1852_v2  ;;  %v1869_v22 = vor.u32 %v1867_v5, %v1866_v11  ;;  %v1885_v24 = vsel %vm12949_vm2, 0, %v1827_v12  ;;  %v1886_v26 = vsel %vm12949_vm2, 0, %v1834_v40 }
 0x24b   : > { %v1862_v27 = vor.u32 %v1860_v8, %v1859_v17  ;;  %v1876_v50 = vor.u32 %v1874_v10, %v1873_v49  ;;  %v1887_v6 = vsel %vm12949_vm2, 0, %v1841_v18  ;;  %v1888_v32 = vsel %vm12949_vm2, 0, %v1848_v61 }
 0x24c   : > { %v1889_v25 = vsel %vm12949_vm2, 0, %v1855_v21  ;;  %v1891_v34 = vsel %vm12949_vm2, 0, %v1869_v22  ;;  %v1950_v37 = vcombine.low %v1885_v24, %v1886_v26  ;;  %v1975_v38 = vcombine.low %v1887_v6, %v1888_v32 }
 0x24d   : > { %v1890_v41 = vsel %vm12949_vm2, 0, %v1862_v27  ;;  %v1892_v42 = vsel %vm12949_vm2, 0, %v1876_v50  ;;  %v1893_v51 = vrot.slane %v1825_v30, 1  ;;  %v1895_v52 = vrot.slane %v1832_v48, 1 }
 0x24e   : > { %v1958_v56 = vrot.slane %v1950_v37, %v12910_v16  ;;  %v1983_v57 = vrot.slane %v1975_v38, %v12910_v16  ;;  %v2000_v62 = vcombine.low %v1889_v25, %v1890_v41  ;;  %v2025_v63 = vcombine.low %v1891_v34, %v1892_v42  ;;  %v11464_v38 = vld [vmem:[%s15163_s3 + $0x414] ss:$8 sps:$4 sm:$0xff]  }
 0x24f   : > { %v1894_v0 = vor.u32 %v1893_v51, %v1822_v47  ;;  %v1896_v1 = vor.u32 %v1895_v52, %v1829_v36  ;;  %v1897_v2 = vrot.slane %v1839_v28, 1  ;;  %v1899_v11 = vrot.slane %v1846_v35, 1 }
 0x250   : > { %v2008_v12 = vrot.slane %v2000_v62, %v12910_v16  ;;  %v13756_v40 = vrot.slane %v2025_v63, %v12910_v16  ;;  %v9973_v17 = vcombine.low %v1958_v56, %v1983_v57  ;;  %v1901_v49 = vrot.slane %v1853_v58, 1 }
 0x251   : > { %v1898_v18 = vor.u32 %v1897_v2, %v1836_v23  ;;  %v1900_v30 = vor.u32 %v1899_v11, %v1843_v29  ;;  %v1903_v48 = vrot.slane %v1860_v8, 1  ;;  %v1905_v61 = vrot.slane %v1867_v5, 1 }
 0x252   : > { %v9975_v21 = vcombine.low %v2008_v12, %v13756_v40  ;;  %v2253_v22 = vrot.slane %v9973_v17, %v12910_v16  ;;  %v10075_v24 = vcombine.low %v1983_v57, %v2008_v12  ;;  %v1902_v47 = vor.u32 %v1901_v49, %v1850_v3 }
 0x253   : > { %v1904_v36 = vor.u32 %v1903_v48, %v1857_v7  ;;  %v1906_v28 = vor.u32 %v1905_v61, %v1864_v4  ;;  %v1907_v35 = vrot.slane %v1874_v10, 1  ;;  %v1917_v26 = vsel %vm13033_vm5, %v1894_v0, 0  ;;  %v11456_v10 = vld [vmem:[%s15163_s3 + $0x400] ss:$8 sps:$4 sm:$0xff]  }
 0x254   : > { %v2267_v27 = vrot.slane %v9975_v21, %v12910_v16  ;;  %v1918_v23 = vsel %vm13033_vm5, %v1896_v1, 0  ;;  %v1919_v29 = vsel %vm13033_vm5, %v1898_v18, 0  ;;  %v1920_v58 = vsel %vm13033_vm5, %v1900_v30, 0  ;;  %v11468_v18 = vld [vmem:[%s15163_s3 + $0x420] ss:$8 sps:$4 sm:$0xff]  }
 0x255   : > { %v1908_v5 = vor.u32 %v1907_v35, %v1871_v9  ;;  %v1921_v3 = vsel %vm13033_vm5, %v1902_v47, 0  ;;  %v1922_v4 = vsel %vm13033_vm5, %v1904_v36, 0  ;;  %v1923_v7 = vsel %vm13033_vm5, %v1906_v28, 0 }
 0x256   : > { %v2276_v8 = vcombine.high %v2253_v22, %v2267_v27  ;;  %v1967_v50 = vcombine.low %v1917_v26, %v1918_v23  ;;  %v1992_v6 = vcombine.low %v1919_v29, %v1920_v58  ;;  %v2017_v32 = vcombine.low %v1921_v3, %v1922_v4  ;;  %v11467_v23 = vld [vmem:[%s15163_s3 + $0x14] ss:$8 sps:$4 sm:$0xff]   ;;  %v11474_v4 = vld [vmem:[%s15163_s3 + $0x430] ss:$8 sps:$4 sm:$0xff]  }
 0x257   : > { %v1924_v9 = vsel %vm13033_vm5, %v1908_v5, 0  ;;  %v2275_v25 = vcombine.low %v2253_v22, %v2267_v27  ;;  %v1965_v34 = vrot.slane %v9873_v43, %v12910_v16  ;;  %v1990_v37 = vrot.slane %v9874_v44, %v12910_v16  ;;  %v11476_v22 = vld [vmem:[%s15163_s3 + $0x434] ss:$8 sps:$4 sm:$0xff]  }
 0x258   : > { %2815 = vmatprep.mubr.bf16.mxu0 %v2276_v8  ;;  %v1974_v41 = vrot.slane %v1967_v50, %v12910_v16  ;;  %v1999_v42 = vrot.slane %v1992_v6, %v12910_v16  ;;  %v2024_v51 = vrot.slane %v2017_v32, %v12910_v16  ;;  %v2042_v52 = vcombine.low %v1923_v7, %v1924_v9  ;;  %v11482_v7 = vld [vmem:[%s15163_s3 + $0x444] ss:$8 sps:$4 sm:$0xff]   ;;  %v11465_v6 = vld [vmem:[%s15163_s3 + $0x10] ss:$8 sps:$4 sm:$0xff]  }
 0x259   : > { %2816 = vmatmul.mubr.bf16.vlgmr.msra.gmra.mrb[4].mxu0 %v2275_v25  ;;  %v2015_v20 = vrot.slane %v9875_v59, %v12910_v16  ;;  %v2040_v31 = vrot.slane %v9876_v60, %v12910_v16  ;;  %v9974_v13 = vcombine.low %v1965_v34, %v1990_v37  ;;  %v10073_v33 = vcombine.low %v13119_v53, %v1958_v56  ;;  %v11470_v60 = vld [vmem:[%s15163_s3 + $0x424] ss:$8 sps:$4 sm:$0xff]  }
 0x25a   : > { %v2049_v43 = vrot.slane %v2042_v52, %v12910_v16  ;;  %v2279_v44 = vcombine.low %v1974_v41, %v1999_v42  ;;  %v2949_v57 = vcombine.low %v1999_v42, %v2024_v51  ;;  %2827 = vmatpush1.bf16.msra.mxu0 %v11456_v10  ;;  %v13805_v62 = vrot.slane %v10075_v24, %v12910_v16  ;;  %v11488_v42 = vld [vmem:[%s15163_s3 + $0x454] ss:$8 sps:$4 sm:$0xff]  }
 0x25b   : > { %v9976_v54 = vcombine.low %v2015_v20, %v2040_v31  ;;  %v13811_v59 = vrot.slane %v9974_v13, %v12910_v16  ;;  %v10076_v46 = vcombine.low %v1990_v37, %v2015_v20  ;;  %v13814_v55 = vrot.slane %v10073_v33, %v12910_v16  ;;  %2828 = vmatprep.subr.bf16.mxu0 %v11464_v38  ;;  %v11479_v52 = vld [vmem:[%s15163_s3 + $0x34] ss:$8 sps:$4 sm:$0xff]   ;;  %v11486_v20 = vld [vmem:[%s15163_s3 + $0x450] ss:$8 sps:$4 sm:$0xff]   ;;  %v11485_v33 = vld [vmem:[%s15163_s3 + $0x44] ss:$8 sps:$4 sm:$0xff]  }
 0x25c   : > { %v2280_v56 = vcombine.low %v2024_v51, %v2049_v43  ;;  %v2287_v63 = vrot.slane %v2279_v44, %v12910_v16  ;;  %v13821_v0 = vrot.slane %v2949_v57, %v12910_v16  ;;  %v10074_v1 = vcombine.low %v13119_v53, %v1965_v34  ;;  %v11473_v34 = vld [vmem:[%s15163_s3 + $0x24] ss:$8 sps:$4 sm:$0xff]   ;;  %v11471_v51 = vld [vmem:[%s15163_s3 + $0x20] ss:$8 sps:$4 sm:$0xff]   ;;  %v11477_v13 = vld [vmem:[%s15163_s3 + $0x30] ss:$8 sps:$4 sm:$0xff]  }
 0x25d   : > { %v13825_v2 = vrot.slane %v9976_v54, %v12910_v16  ;;  %v2945_v11 = vcombine.high %v13814_v55, %v13805_v62  ;;  %v2944_v12 = vcombine.low %v13814_v55, %v13805_v62  ;;  %v13832_v17 = vrot.slane %v10076_v46, %v12910_v16  ;;  %v11500_v44 = vld [vmem:[%s15163_s3 + $0x474] ss:$8 sps:$4 sm:$0xff]   ;;  %v11483_v57 = vld [vmem:[%s15163_s3 + $0x40] ss:$8 sps:$4 sm:$0xff]   ;;  %v11498_v54 = vld [vmem:[%s15163_s3 + $0x470] ss:$8 sps:$4 sm:$0xff]  }
 0x25e   : > { %v2294_v49 = vrot.slane %v2280_v56, %v12910_v16  ;;  %2829 = vmatpush1.bf16.msra.mxu0 %v11462_v45  ;;  %v13839_v30 = vrot.slane %v10074_v1, %v12910_v16  ;;  %v2948_v48 = vcombine.low %v13119_v53, %v1974_v41  ;;  %v10269_v61 = vcombine.low %v13756_v40, %v13119_v53  ;;  %v11459_v40 = vld [vmem:[%s15163_s3] ss:$8 sps:$4 sm:$0xff]   ;;  %v11491_v45 = vld [vmem:[%s15163_s3 + $0x54] ss:$8 sps:$4 sm:$0xff]   ;;  %v11506_v46 = vld [vmem:[%s15163_s3 + $0x484] ss:$8 sps:$4 sm:$0xff]  }
 0x25f   : > { %v2278_v21 = vcombine.high %v13811_v59, %v13825_v2  ;;  %2830 = vmatprep.subr.bf16.mxu0 %v11470_v60  ;;  %v2277_v24 = vcombine.low %v13811_v59, %v13825_v2  ;;  %v10270_v47 = vcombine.low %v2040_v31, %v13119_v53  ;;  %v3698_v36 = vcombine.low %v2049_v43, %v13119_v53  ;;  %v11480_v41 = vld [vmem:[%s15163_s3 + $0x440] ss:$8 sps:$4 sm:$0xff]   ;;  %v11494_v31 = vld [vmem:[%s15163_s3 + $0x464] ss:$8 sps:$4 sm:$0xff]   ;;  %v11489_v60 = vld [vmem:[%s15163_s3 + $0x50] ss:$8 sps:$4 sm:$0xff]  }
 0x260   : > { %v2296_v28 = vcombine.high %v2287_v63, %v2294_v49  ;;  %v2295_v35 = vcombine.low %v2287_v63, %v2294_v49  ;;  %v2947_v26 = vcombine.high %v13839_v30, %v13832_v17  ;;  %v2946_v27 = vcombine.low %v13839_v30, %v13832_v17  ;;  %v11492_v43 = vld [vmem:[%s15163_s3 + $0x460] ss:$8 sps:$4 sm:$0xff]   ;;  %v11497_v56 = vld [vmem:[%s15163_s3 + $0x64] ss:$8 sps:$4 sm:$0xff]   ;;  %v11512_v1 = vld [vmem:[%s15163_s3 + $0x494] ss:$8 sps:$4 sm:$0xff]  }
 0x261   : > { %2858 = vmatprep.mubr.bf16.mxu0 %v2278_v21  ;;  %v13864_v29 = vrot.slane %v2948_v48, %v12910_v16  ;;  %v13867_v58 = vrot.slane %v10269_v61, %v12910_v16  ;;  %v13870_v5 = vrot.slane %v10270_v47, %v12910_v16  ;;  %v13873_v3 = vrot.slane %v3698_v36, %v12910_v16  ;;  %v11504_v63 = vld [vmem:[%s15163_s3 + $0x480] ss:$8 sps:$4 sm:$0xff]   ;;  %v11503_v49 = vld [vmem:[%s15163_s3 + $0x74] ss:$8 sps:$4 sm:$0xff]   ;;  %v11518_v48 = vld [vmem:[%s15163_s3 + $0x4a4] ss:$8 sps:$4 sm:$0xff]  }
 0x262   : > { %2901 = vmatprep.mubr.bf16.mxu1 %v2296_v28  ;;  %2831 = vmatpush1.bf16.msra.mxu0 %v11468_v18  ;;  %v11510_v18 = vld [vmem:[%s15163_s3 + $0x490] ss:$8 sps:$4 sm:$0xff]   ;;  %v11509_v21 = vld [vmem:[%s15163_s3 + $0x84] ss:$8 sps:$4 sm:$0xff]   ;;  %v11524_v47 = vld [vmem:[%s15163_s3 + $0x4b4] ss:$8 sps:$4 sm:$0xff]  }
 0x263   : > { %2902 = vmatmul.mubr.bf16.vlgmr.msra.gmra.mrb[0].mxu1 %v2295_v35  ;;  %2832 = vmatprep.subr.bf16.mxu0 %v11476_v22  ;;  %v2965_v8 = vcombine.high %v13864_v29, %v13821_v0  ;;  %v2964_v10 = vcombine.low %v13864_v29, %v13821_v0  ;;  %v3695_v50 = vcombine.high %v13805_v62, %v13867_v58  ;;  %v11501_v61 = vld [vmem:[%s15163_s3 + $0x70] ss:$8 sps:$4 sm:$0xff]   ;;  %v11516_v22 = vld [vmem:[%s15163_s3 + $0x4a0] ss:$8 sps:$4 sm:$0xff]   ;;  %v11515_v28 = vld [vmem:[%s15163_s3 + $0x94] ss:$8 sps:$4 sm:$0xff]  }
 0x264   : > { %3453 = vmatpush1.bf16.msra.mxu1 %v11459_v40  ;;  %3484 = vmatprep.mubr.bf16.mxu1 %v2945_v11  ;;  %v3694_v32 = vcombine.low %v13805_v62, %v13867_v58  ;;  %v3697_v9 = vcombine.high %v13832_v17, %v13870_v5  ;;  %v3696_v25 = vcombine.low %v13832_v17, %v13870_v5  ;;  %v11495_v11 = vld [vmem:[%s15163_s3 + $0x60] ss:$8 sps:$4 sm:$0xff]   ;;  %v11522_v40 = vld [vmem:[%s15163_s3 + $0x4b0] ss:$8 sps:$4 sm:$0xff]   ;;  %v11530_v35 = vld [vmem:[%s15163_s3 + $0x4c4] ss:$8 sps:$4 sm:$0xff]  }
 0x265   : > { %3454 = vmatprep.subr.bf16.mxu1 %v11467_v23  ;;  %v3707_v37 = vcombine.high %v13821_v0, %v13873_v3  ;;  %v3706_v38 = vcombine.low %v13821_v0, %v13873_v3  ;;  %v11507_v36 = vld [vmem:[%s15163_s3 + $0x80] ss:$8 sps:$4 sm:$0xff]   ;;  %v11513_v23 = vld [vmem:[%s15163_s3 + $0x90] ss:$8 sps:$4 sm:$0xff]   ;;  %v11557_v59 = vld [vmem:[%s15163_s3 + $0x114] ss:$8 sps:$4 sm:$0xff]  }
 0x266   : > { %2833 = vmatpush1.bf16.msra.mxu0 %v11474_v4  ;;  %v11521_v4 = vld [vmem:[%s15163_s3 + $0xa4] ss:$8 sps:$4 sm:$0xff]   ;;  %v11555_v2 = vld [vmem:[%s15163_s3 + $0x110] ss:$8 sps:$4 sm:$0xff]   ;;  %v11558_v55 = vld [vmem:[%s15163_s3 + $0x120] ss:$8 sps:$4 sm:$0xff]  }
 0x267   : > { %2834 = vmatprep.subr.bf16.mxu0 %v11482_v7  ;;  %v11528_v7 = vld [vmem:[%s15163_s3 + $0x4c0] ss:$8 sps:$4 sm:$0xff]   ;;  %v11795_v62 = vld [vmem:[#allocation2 + $0x310] ss:$8 sps:$4 sm:$0xff]   ;;  %v11800_v58 = vld [vmem:[#allocation2 + $0x324] ss:$8 sps:$4 sm:$0xff]  }
 0x268   : > { %3455 = vmatpush1.bf16.msra.mxu1 %v11465_v6  ;;  %v11536_v6 = vld [vmem:[%s15163_s3 + $0x4d4] ss:$8 sps:$4 sm:$0xff]   ;;  %v11606_v30 = vld [vmem:[%s15163_s3 + $0x220] ss:$8 sps:$4 sm:$0xff]   ;;  %v11836_v0 = vld [vmem:[#allocation2 + $0x3e4] ss:$8 sps:$4 sm:$0xff]  }
 0x269   : > { %3456 = vmatprep.subr.bf16.mxu1 %v11473_v34  ;;  %v11519_v34 = vld [vmem:[%s15163_s3 + $0xa0] ss:$8 sps:$4 sm:$0xff]   ;;  %v11755_v5 = vld [vmem:[%s15163_s3 + $0x834] ss:$8 sps:$4 sm:$0xff]  }
 0x26a   : > { %2835 = vmatpush1.bf16.msra.mxu0 %v11480_v41  ;;  %v11527_v41 = vld [vmem:[%s15163_s3 + $0xb4] ss:$8 sps:$4 sm:$0xff]   ;;  %v11654_v29 = vld [vmem:[%s15163_s3 + $0x620] ss:$8 sps:$4 sm:$0xff]  }
 0x26b   : > { %2836 = vmatprep.subr.bf16.mxu0 %v11488_v42  ;;  %v11534_v42 = vld [vmem:[%s15163_s3 + $0x4d0] ss:$8 sps:$4 sm:$0xff]   ;;  %v11750_v17 = vld [vmem:[%s15163_s3 + $0x820] ss:$8 sps:$4 sm:$0xff]  }
 0x26c   : > { %3457 = vmatpush1.bf16.msra.mxu1 %v11471_v51  ;;  %v11542_v51 = vld [vmem:[%s15163_s3 + $0x4e4] ss:$8 sps:$4 sm:$0xff]   ;;  %v11834_v3 = vld [vmem:[#allocation2 + $0x3e0] ss:$8 sps:$4 sm:$0xff]  }
 0x26d   : > { %3458 = vmatprep.subr.bf16.mxu1 %v11479_v52  ;;  %v11525_v52 = vld [vmem:[%s15163_s3 + $0xb0] ss:$8 sps:$4 sm:$0xff]  }
 0x26e   : > { %2837 = vmatpush1.bf16.msra.mxu0 %v11486_v20  ;;  %v11533_v20 = vld [vmem:[%s15163_s3 + $0xc4] ss:$8 sps:$4 sm:$0xff]  }
 0x26f   : > { %2838 = vmatprep.subr.bf16.mxu0 %v11494_v31  ;;  %v11540_v31 = vld [vmem:[%s15163_s3 + $0x4e0] ss:$8 sps:$4 sm:$0xff]  }
 0x270   : > { %3459 = vmatpush1.bf16.msra.mxu1 %v11477_v13  ;;  %v11548_v13 = vld [vmem:[%s15163_s3 + $0x4f4] ss:$8 sps:$4 sm:$0xff]  }
 0x271   : > { %3460 = vmatprep.subr.bf16.mxu1 %v11485_v33  ;;  %v11531_v33 = vld [vmem:[%s15163_s3 + $0xc0] ss:$8 sps:$4 sm:$0xff]  }
 0x272   : > { %2839 = vmatpush1.bf16.msra.mxu0 %v11492_v43  ;;  %v11539_v43 = vld [vmem:[%s15163_s3 + $0xd4] ss:$8 sps:$4 sm:$0xff]  }
 0x273   : > { %2840 = vmatprep.subr.bf16.mxu0 %v11500_v44  ;;  %v11546_v44 = vld [vmem:[%s15163_s3 + $0x4f0] ss:$8 sps:$4 sm:$0xff]  }
 0x274   : > { %3461 = vmatpush1.bf16.msra.mxu1 %v11483_v57  ;;  %v11537_v57 = vld [vmem:[%s15163_s3 + $0xd0] ss:$8 sps:$4 sm:$0xff]  }
 0x275   : > { %3462 = vmatprep.subr.bf16.mxu1 %v11491_v45  ;;  %v11545_v45 = vld [vmem:[%s15163_s3 + $0xe4] ss:$8 sps:$4 sm:$0xff]  }
 0x276   : > { %2841 = vmatpush1.bf16.msra.mxu0 %v11498_v54  ;;  %v11543_v54 = vld [vmem:[%s15163_s3 + $0xe0] ss:$8 sps:$4 sm:$0xff]  }
 0x277   : > { %2842 = vmatprep.subr.bf16.mxu0 %v11506_v46  ;;  %v11551_v46 = vld [vmem:[%s15163_s3 + $0xf4] ss:$8 sps:$4 sm:$0xff]  }
 0x278   : > { %3463 = vmatpush1.bf16.msra.mxu1 %v11489_v60  ;;  %v11549_v60 = vld [vmem:[%s15163_s3 + $0xf0] ss:$8 sps:$4 sm:$0xff]  }
 0x279   : > { %3464 = vmatprep.subr.bf16.mxu1 %v11497_v56  ;;  %v11554_v56 = vld [vmem:[%s15163_s3 + $0x104] ss:$8 sps:$4 sm:$0xff]  }
 0x27a   : > { %2843 = vmatpush1.bf16.msra.mxu0 %v11504_v63  ;;  %v11552_v63 = vld [vmem:[%s15163_s3 + $0x100] ss:$8 sps:$4 sm:$0xff]  }
 0x27b   : > { %2844 = vmatprep.subr.bf16.mxu0 %v11512_v1  ;;  %v11566_v1 = vld [vmem:[%s15163_s3 + $0x144] ss:$8 sps:$4 sm:$0xff]  }
 0x27c   : > { %3465 = vmatpush1.bf16.msra.mxu1 %v11495_v11  ;;  %v11564_v11 = vld [vmem:[%s15163_s3 + $0x140] ss:$8 sps:$4 sm:$0xff]  }
 0x27d   : > { %3466 = vmatprep.subr.bf16.mxu1 %v11503_v49  ;;  %v11569_v49 = vld [vmem:[%s15163_s3 + $0x154] ss:$8 sps:$4 sm:$0xff]  }
 0x27e   : > { %2845 = vmatpush1.bf16.msra.mxu0 %v11510_v18  ;;  %v11567_v18 = vld [vmem:[%s15163_s3 + $0x150] ss:$8 sps:$4 sm:$0xff]  }
 0x27f   : > { %2846 = vmatprep.subr.bf16.mxu0 %v11518_v48  ;;  %v11572_v48 = vld [vmem:[%s15163_s3 + $0x164] ss:$8 sps:$4 sm:$0xff]  }
 0x280   : > { %3467 = vmatpush1.bf16.msra.mxu1 %v11501_v61  ;;  %v11570_v61 = vld [vmem:[%s15163_s3 + $0x160] ss:$8 sps:$4 sm:$0xff]  }
 0x281   : > { %3468 = vmatprep.subr.bf16.mxu1 %v11509_v21  ;;  %v11575_v21 = vld [vmem:[%s15163_s3 + $0x174] ss:$8 sps:$4 sm:$0xff]  }
 0x282   : > { %2847 = vmatpush1.bf16.msra.mxu0 %v11516_v22  ;;  %v11573_v22 = vld [vmem:[%s15163_s3 + $0x170] ss:$8 sps:$4 sm:$0xff]  }
 0x283   : > { %2848 = vmatprep.subr.bf16.mxu0 %v11524_v47  ;;  %v11578_v47 = vld [vmem:[%s15163_s3 + $0x184] ss:$8 sps:$4 sm:$0xff]  }
 0x284   : > { %3469 = vmatpush1.bf16.msra.mxu1 %v11507_v36  ;;  %v11576_v36 = vld [vmem:[%s15163_s3 + $0x180] ss:$8 sps:$4 sm:$0xff]  }
 0x285   : > { %3470 = vmatprep.subr.bf16.mxu1 %v11515_v28  ;;  %v11581_v28 = vld [vmem:[%s15163_s3 + $0x194] ss:$8 sps:$4 sm:$0xff]  }
 0x286   : > { %2849 = vmatpush1.bf16.msra.mxu0 %v11522_v40  ;;  %v11579_v40 = vld [vmem:[%s15163_s3 + $0x190] ss:$8 sps:$4 sm:$0xff]  }
 0x287   : > { %2850 = vmatprep.subr.bf16.mxu0 %v11530_v35  ;;  %v11584_v35 = vld [vmem:[%s15163_s3 + $0x1a4] ss:$8 sps:$4 sm:$0xff]  }
 0x288   : > { %3471 = vmatpush1.bf16.msra.mxu1 %v11513_v23  ;;  %v11582_v23 = vld [vmem:[%s15163_s3 + $0x1a0] ss:$8 sps:$4 sm:$0xff]  }
 0x289   : > { %3472 = vmatprep.subr.bf16.mxu1 %v11521_v4  ;;  %v11587_v4 = vld [vmem:[%s15163_s3 + $0x1b4] ss:$8 sps:$4 sm:$0xff]  }
 0x28a   : > { %2851 = vmatpush1.bf16.msra.mxu0 %v11528_v7  ;;  %v11585_v7 = vld [vmem:[%s15163_s3 + $0x1b0] ss:$8 sps:$4 sm:$0xff]  }
 0x28b   : > { %2852 = vmatprep.subr.bf16.mxu0 %v11536_v6  ;;  %v11590_v6 = vld [vmem:[%s15163_s3 + $0x1c4] ss:$8 sps:$4 sm:$0xff]  }
 0x28c   : > { %3473 = vmatpush1.bf16.msra.mxu1 %v11519_v34  ;;  %v11588_v34 = vld [vmem:[%s15163_s3 + $0x1c0] ss:$8 sps:$4 sm:$0xff]  }
 0x28d   : > { %3474 = vmatprep.subr.bf16.mxu1 %v11527_v41  ;;  %v11593_v41 = vld [vmem:[%s15163_s3 + $0x1d4] ss:$8 sps:$4 sm:$0xff]  }
 0x28e   : > { %2853 = vmatpush1.bf16.msra.mxu0 %v11534_v42  ;;  %v11591_v42 = vld [vmem:[%s15163_s3 + $0x1d0] ss:$8 sps:$4 sm:$0xff]  }
 0x28f   : > { %2854 = vmatprep.subr.bf16.mxu0 %v11542_v51  ;;  %v11596_v51 = vld [vmem:[%s15163_s3 + $0x1e4] ss:$8 sps:$4 sm:$0xff]  }
 0x290   : > { %3475 = vmatpush1.bf16.msra.mxu1 %v11525_v52  ;;  %v11594_v52 = vld [vmem:[%s15163_s3 + $0x1e0] ss:$8 sps:$4 sm:$0xff]  }
 0x291   : > { %3476 = vmatprep.subr.bf16.mxu1 %v11533_v20  ;;  %v11599_v20 = vld [vmem:[%s15163_s3 + $0x1f4] ss:$8 sps:$4 sm:$0xff]  }
 0x292   : > { %2855 = vmatpush1.bf16.msra.mxu0 %v11540_v31  ;;  %v11597_v31 = vld [vmem:[%s15163_s3 + $0x1f0] ss:$8 sps:$4 sm:$0xff]  }
 0x293   : > { %2856 = vmatprep.subr.bf16.mxu0 %v11548_v13  ;;  %v11602_v13 = vld [vmem:[%s15163_s3 + $0x204] ss:$8 sps:$4 sm:$0xff]  }
 0x294   : > { %3477 = vmatpush1.bf16.msra.mxu1 %v11531_v33  ;;  %v11600_v33 = vld [vmem:[%s15163_s3 + $0x200] ss:$8 sps:$4 sm:$0xff]  }
 0x295   : > { %3478 = vmatprep.subr.bf16.mxu1 %v11539_v43  ;;  %v11605_v43 = vld [vmem:[%s15163_s3 + $0x214] ss:$8 sps:$4 sm:$0xff]  }
 0x296   : > { %2857 = vmatpush1.bf16.msra.mxu0 %v11546_v44  ;;  %v11603_v44 = vld [vmem:[%s15163_s3 + $0x210] ss:$8 sps:$4 sm:$0xff]  }
 0x298   : > { %3479 = vmatpush1.bf16.msra.mxu1 %v11537_v57  ;;  %v11608_v57 = vld [vmem:[%s15163_s3 + $0x224] ss:$8 sps:$4 sm:$0xff]  }
 0x299   : > { %3480 = vmatprep.subr.bf16.mxu1 %v11545_v45  ;;  %2859 = vmatmul.mubr.bf16.vlgmr.msra.gmra.mrb[4].mxu0 %v2277_v24  ;;  %v11560_v24 = vld [vmem:[%s15163_s3 + $0x124] ss:$8 sps:$4 sm:$0xff]  }
 0x29a   : > { %v11614_v45 = vld [vmem:[%s15163_s3 + $0x244] ss:$8 sps:$4 sm:$0xff]  }
 0x29c   : > { %3481 = vmatpush1.bf16.msra.mxu1 %v11543_v54  ;;  %v11612_v54 = vld [vmem:[%s15163_s3 + $0x240] ss:$8 sps:$4 sm:$0xff]  }
 0x29d   : > { %3482 = vmatprep.subr.bf16.mxu1 %v11551_v46  ;;  %v11617_v46 = vld [vmem:[%s15163_s3 + $0x254] ss:$8 sps:$4 sm:$0xff]  }
 0x2a0   : > { %3483 = vmatpush1.bf16.msra.mxu1 %v11549_v60  ;;  %v11615_v60 = vld [vmem:[%s15163_s3 + $0x250] ss:$8 sps:$4 sm:$0xff]  }
 0x2a1   : > { %3495 = vmatprep.subr.bf16.mxu1 %v11554_v56  ;;  %v11620_v56 = vld [vmem:[%s15163_s3 + $0x264] ss:$8 sps:$4 sm:$0xff]  }
 0x2a3   : > { %3485 = vmatmul.mubr.bf16.vlgmr.msra.gmra.mrb[0].mxu1 %v2944_v12  ;;  %v11563_v12 = vld [vmem:[%s15163_s3 + $0x134] ss:$8 sps:$4 sm:$0xff]  }
 0x2a4   : > { %3496 = vmatpush1.bf16.msra.mxu1 %v11552_v63  ;;  %3527 = vmatprep.mubr.bf16.mxu1 %v2947_v26  ;;  %v11561_v26 = vld [vmem:[%s15163_s3 + $0x130] ss:$8 sps:$4 sm:$0xff]   ;;  %v11618_v63 = vld [vmem:[%s15163_s3 + $0x260] ss:$8 sps:$4 sm:$0xff]  }
 0x2a5   : > { %3497 = vmatprep.subr.bf16.mxu1 %v11557_v59  ;;  %v11623_v59 = vld [vmem:[%s15163_s3 + $0x274] ss:$8 sps:$4 sm:$0xff]  }
 0x2a8   : > { %3498 = vmatpush1.bf16.msra.mxu1 %v11555_v2  ;;  %v11621_v2 = vld [vmem:[%s15163_s3 + $0x270] ss:$8 sps:$4 sm:$0xff]  }
 0x2a9   : > { %3499 = vmatprep.subr.bf16.mxu1 %v11560_v24  ;;  %v11626_v24 = vld [vmem:[%s15163_s3 + $0x284] ss:$8 sps:$4 sm:$0xff]  }
 0x2ac   : > { %3500 = vmatpush1.bf16.msra.mxu1 %v11558_v55  ;;  %v11624_v55 = vld [vmem:[%s15163_s3 + $0x280] ss:$8 sps:$4 sm:$0xff]  }
 0x2ad   : > { %3501 = vmatprep.subr.bf16.mxu1 %v11563_v12  ;;  %v11629_v12 = vld [vmem:[%s15163_s3 + $0x294] ss:$8 sps:$4 sm:$0xff]  }
 0x2b0   : > { %3502 = vmatpush1.bf16.msra.mxu1 %v11561_v26  ;;  %v11627_v26 = vld [vmem:[%s15163_s3 + $0x290] ss:$8 sps:$4 sm:$0xff]  }
 0x2b1   : > { %3503 = vmatprep.subr.bf16.mxu1 %v11566_v1  ;;  %v11632_v1 = vld [vmem:[%s15163_s3 + $0x2a4] ss:$8 sps:$4 sm:$0xff]  }
 0x2b4   : > { %3504 = vmatpush1.bf16.msra.mxu1 %v11564_v11  ;;  %v11630_v11 = vld [vmem:[%s15163_s3 + $0x2a0] ss:$8 sps:$4 sm:$0xff]  }
 0x2b5   : > { %3505 = vmatprep.subr.bf16.mxu1 %v11569_v49  ;;  %v11635_v49 = vld [vmem:[%s15163_s3 + $0x2b4] ss:$8 sps:$4 sm:$0xff]  }
 0x2b8   : > { %3506 = vmatpush1.bf16.msra.mxu1 %v11567_v18  ;;  %v11633_v18 = vld [vmem:[%s15163_s3 + $0x2b0] ss:$8 sps:$4 sm:$0xff]  }
 0x2b9   : > { %3507 = vmatprep.subr.bf16.mxu1 %v11572_v48  ;;  %v11638_v48 = vld [vmem:[%s15163_s3 + $0x2c4] ss:$8 sps:$4 sm:$0xff]  }
 0x2bc   : > { %3508 = vmatpush1.bf16.msra.mxu1 %v11570_v61  ;;  %v11636_v61 = vld [vmem:[%s15163_s3 + $0x2c0] ss:$8 sps:$4 sm:$0xff]  }
 0x2bd   : > { %3509 = vmatprep.subr.bf16.mxu1 %v11575_v21  ;;  %v11641_v21 = vld [vmem:[%s15163_s3 + $0x2d4] ss:$8 sps:$4 sm:$0xff]  }
 0x2c0   : > { %3510 = vmatpush1.bf16.msra.mxu1 %v11573_v22  ;;  %v11639_v22 = vld [vmem:[%s15163_s3 + $0x2d0] ss:$8 sps:$4 sm:$0xff]  }
 0x2c1   : > { %3511 = vmatprep.subr.bf16.mxu1 %v11578_v47  ;;  %v11644_v47 = vld [vmem:[%s15163_s3 + $0x2e4] ss:$8 sps:$4 sm:$0xff]  }
 0x2c4   : > { %3512 = vmatpush1.bf16.msra.mxu1 %v11576_v36  ;;  %v11642_v36 = vld [vmem:[%s15163_s3 + $0x2e0] ss:$8 sps:$4 sm:$0xff]  }
 0x2c5   : > { %3513 = vmatprep.subr.bf16.mxu1 %v11581_v28  ;;  %v11647_v28 = vld [vmem:[%s15163_s3 + $0x2f4] ss:$8 sps:$4 sm:$0xff]  }
 0x2c8   : > { %3514 = vmatpush1.bf16.msra.mxu1 %v11579_v40  ;;  %v11645_v40 = vld [vmem:[%s15163_s3 + $0x2f0] ss:$8 sps:$4 sm:$0xff]  }
 0x2c9   : > { %3515 = vmatprep.subr.bf16.mxu1 %v11584_v35  ;;  %v11650_v35 = vld [vmem:[%s15163_s3 + $0x604] ss:$8 sps:$4 sm:$0xff]  }
 0x2cc   : > { %3516 = vmatpush1.bf16.msra.mxu1 %v11582_v23  ;;  %v11648_v23 = vld [vmem:[%s15163_s3 + $0x600] ss:$8 sps:$4 sm:$0xff]  }
 0x2cd   : > { %3517 = vmatprep.subr.bf16.mxu1 %v11587_v4  ;;  %v11653_v4 = vld [vmem:[%s15163_s3 + $0x614] ss:$8 sps:$4 sm:$0xff]  }
 0x2d0   : > { %3518 = vmatpush1.bf16.msra.mxu1 %v11585_v7  ;;  %v11651_v7 = vld [vmem:[%s15163_s3 + $0x610] ss:$8 sps:$4 sm:$0xff]  }
 0x2d1   : > { %3519 = vmatprep.subr.bf16.mxu1 %v11590_v6  ;;  %v11656_v6 = vld [vmem:[%s15163_s3 + $0x624] ss:$8 sps:$4 sm:$0xff]  }
 0x2d4   : > { %3520 = vmatpush1.bf16.msra.mxu1 %v11588_v34  ;;  %v11662_v34 = vld [vmem:[%s15163_s3 + $0x644] ss:$8 sps:$4 sm:$0xff]  }
 0x2d5   : > { %3521 = vmatprep.subr.bf16.mxu1 %v11593_v41  ;;  %v11660_v41 = vld [vmem:[%s15163_s3 + $0x640] ss:$8 sps:$4 sm:$0xff]  }
 0x2d8   : > { %3522 = vmatpush1.bf16.msra.mxu1 %v11591_v42  ;;  %v11665_v42 = vld [vmem:[%s15163_s3 + $0x654] ss:$8 sps:$4 sm:$0xff]  }
 0x2d9   : > { %3523 = vmatprep.subr.bf16.mxu1 %v11596_v51  ;;  %v11663_v51 = vld [vmem:[%s15163_s3 + $0x650] ss:$8 sps:$4 sm:$0xff]  }
 0x2dc   : > { %3524 = vmatpush1.bf16.msra.mxu1 %v11594_v52  ;;  %v11668_v52 = vld [vmem:[%s15163_s3 + $0x664] ss:$8 sps:$4 sm:$0xff]  }
 0x2dd   : > { %3525 = vmatprep.subr.bf16.mxu1 %v11599_v20  ;;  %v11666_v20 = vld [vmem:[%s15163_s3 + $0x660] ss:$8 sps:$4 sm:$0xff]  }
 0x2e0   : > { %3526 = vmatpush1.bf16.msra.mxu1 %v11597_v31  ;;  %v11671_v31 = vld [vmem:[%s15163_s3 + $0x674] ss:$8 sps:$4 sm:$0xff]  }
 0x2e1   : > { %3538 = vmatprep.subr.bf16.mxu1 %v11602_v13  ;;  %v11669_v13 = vld [vmem:[%s15163_s3 + $0x670] ss:$8 sps:$4 sm:$0xff]  }
 0x2e3   : > { %3528 = vmatmul.mubr.bf16.vlgmr.msra.gmra.mrb[0].mxu1 %v2946_v27  ;;  %v11611_v27 = vld [vmem:[%s15163_s3 + $0x234] ss:$8 sps:$4 sm:$0xff]  }
 0x2e4   : > { %3539 = vmatpush1.bf16.msra.mxu1 %v11600_v33  ;;  %3570 = vmatprep.mubr.bf16.mxu1 %v2965_v8  ;;  %v11609_v8 = vld [vmem:[%s15163_s3 + $0x230] ss:$8 sps:$4 sm:$0xff]   ;;  %v11674_v33 = vld [vmem:[%s15163_s3 + $0x684] ss:$8 sps:$4 sm:$0xff]  }
 0x2e5   : > { %3540 = vmatprep.subr.bf16.mxu1 %v11605_v43  ;;  %v11672_v43 = vld [vmem:[%s15163_s3 + $0x680] ss:$8 sps:$4 sm:$0xff]  }
 0x2e8   : > { %3541 = vmatpush1.bf16.msra.mxu1 %v11603_v44  ;;  %v11677_v44 = vld [vmem:[%s15163_s3 + $0x694] ss:$8 sps:$4 sm:$0xff]  }
 0x2e9   : > { %3542 = vmatprep.subr.bf16.mxu1 %v11608_v57  ;;  %v11675_v57 = vld [vmem:[%s15163_s3 + $0x690] ss:$8 sps:$4 sm:$0xff]  }
 0x2ec   : > { %3543 = vmatpush1.bf16.msra.mxu1 %v11606_v30  ;;  %v11680_v30 = vld [vmem:[%s15163_s3 + $0x6a4] ss:$8 sps:$4 sm:$0xff]  }
 0x2ed   : > { %3544 = vmatprep.subr.bf16.mxu1 %v11611_v27  ;;  %v11678_v27 = vld [vmem:[%s15163_s3 + $0x6a0] ss:$8 sps:$4 sm:$0xff]  }
 0x2f0   : > { %3545 = vmatpush1.bf16.msra.mxu1 %v11609_v8  ;;  %v11683_v8 = vld [vmem:[%s15163_s3 + $0x6b4] ss:$8 sps:$4 sm:$0xff]  }
 0x2f1   : > { %3546 = vmatprep.subr.bf16.mxu1 %v11614_v45  ;;  %v11681_v45 = vld [vmem:[%s15163_s3 + $0x6b0] ss:$8 sps:$4 sm:$0xff]  }
 0x2f4   : > { %3547 = vmatpush1.bf16.msra.mxu1 %v11612_v54  ;;  %v11686_v54 = vld [vmem:[%s15163_s3 + $0x6c4] ss:$8 sps:$4 sm:$0xff]  }
 0x2f5   : > { %3548 = vmatprep.subr.bf16.mxu1 %v11617_v46  ;;  %v11684_v46 = vld [vmem:[%s15163_s3 + $0x6c0] ss:$8 sps:$4 sm:$0xff]  }
 0x2f8   : > { %3549 = vmatpush1.bf16.msra.mxu1 %v11615_v60  ;;  %v11689_v60 = vld [vmem:[%s15163_s3 + $0x6d4] ss:$8 sps:$4 sm:$0xff]  }
 0x2f9   : > { %3550 = vmatprep.subr.bf16.mxu1 %v11620_v56  ;;  %v11687_v56 = vld [vmem:[%s15163_s3 + $0x6d0] ss:$8 sps:$4 sm:$0xff]  }
 0x2fc   : > { %3551 = vmatpush1.bf16.msra.mxu1 %v11618_v63  ;;  %v11692_v63 = vld [vmem:[%s15163_s3 + $0x6e4] ss:$8 sps:$4 sm:$0xff]  }
 0x2fd   : > { %3552 = vmatprep.subr.bf16.mxu1 %v11623_v59  ;;  %v11690_v59 = vld [vmem:[%s15163_s3 + $0x6e0] ss:$8 sps:$4 sm:$0xff]  }
 0x300   : > { %3553 = vmatpush1.bf16.msra.mxu1 %v11621_v2  ;;  %v11695_v2 = vld [vmem:[%s15163_s3 + $0x6f4] ss:$8 sps:$4 sm:$0xff]  }
 0x301   : > { %3554 = vmatprep.subr.bf16.mxu1 %v11626_v24  ;;  %v11693_v24 = vld [vmem:[%s15163_s3 + $0x6f0] ss:$8 sps:$4 sm:$0xff]  }
 0x304   : > { %3555 = vmatpush1.bf16.msra.mxu1 %v11624_v55  ;;  %v11698_v55 = vld [vmem:[%s15163_s3 + $0x704] ss:$8 sps:$4 sm:$0xff]  }
 0x305   : > { %3556 = vmatprep.subr.bf16.mxu1 %v11629_v12  ;;  %v11696_v12 = vld [vmem:[%s15163_s3 + $0x700] ss:$8 sps:$4 sm:$0xff]  }
 0x308   : > { %3557 = vmatpush1.bf16.msra.mxu1 %v11627_v26  ;;  %v11701_v26 = vld [vmem:[%s15163_s3 + $0x714] ss:$8 sps:$4 sm:$0xff]  }
 0x309   : > { %3558 = vmatprep.subr.bf16.mxu1 %v11632_v1  ;;  %v11792_v1 = vld [vmem:[#allocation2 + $0x300] ss:$8 sps:$4 sm:$0xff]  }
 0x30c   : > { %3559 = vmatpush1.bf16.msra.mxu1 %v11630_v11  ;;  %v11794_v11 = vld [vmem:[#allocation2 + $0x304] ss:$8 sps:$4 sm:$0xff]  }
 0x30d   : > { %3560 = vmatprep.subr.bf16.mxu1 %v11635_v49  ;;  %v11699_v49 = vld [vmem:[%s15163_s3 + $0x710] ss:$8 sps:$4 sm:$0xff]   ;;  %5336 = vmatprep.subr.bf16.mxu0 %v11794_v11  ;;  %v11744_v11 = vld [vmem:[%s15163_s3 + $0x800] ss:$8 sps:$4 sm:$0xff]  }
 0x30e   : > { %5337 = vmatpush1.bf16.msra.mxu0 %v11792_v1  ;;  %v11746_v1 = vld [vmem:[%s15163_s3 + $0x804] ss:$8 sps:$4 sm:$0xff]  }
 0x310   : > { %3561 = vmatpush1.bf16.msra.mxu1 %v11633_v18  ;;  %v11797_v18 = vld [vmem:[#allocation2 + $0x314] ss:$8 sps:$4 sm:$0xff]  }
 0x311   : > { %3562 = vmatprep.subr.bf16.mxu1 %v11638_v48  ;;  %v11704_v48 = vld [vmem:[%s15163_s3 + $0x724] ss:$8 sps:$4 sm:$0xff]   ;;  %5338 = vmatprep.subr.bf16.mxu0 %v11797_v18  ;;  %v11747_v18 = vld [vmem:[%s15163_s3 + $0x810] ss:$8 sps:$4 sm:$0xff]  }
 0x312   : > { %5339 = vmatpush1.bf16.msra.mxu0 %v11795_v62  ;;  %v11756_v62 = vld [vmem:[%s15163_s3 + $0x840] ss:$8 sps:$4 sm:$0xff]  }
 0x313   : > { %5340 = vmatprep.subr.bf16.mxu0 %v11800_v58  ;;  %v11761_v58 = vld [vmem:[%s15163_s3 + $0x854] ss:$8 sps:$4 sm:$0xff]  }
 0x314   : > { %3563 = vmatpush1.bf16.msra.mxu1 %v11636_v61  ;;  %v11798_v61 = vld [vmem:[#allocation2 + $0x320] ss:$8 sps:$4 sm:$0xff]  }
 0x315   : > { %3564 = vmatprep.subr.bf16.mxu1 %v11641_v21  ;;  %v11803_v21 = vld [vmem:[#allocation2 + $0x334] ss:$8 sps:$4 sm:$0xff]  }
 0x316   : > { %5341 = vmatpush1.bf16.msra.mxu0 %v11798_v61  ;;  %v11762_v61 = vld [vmem:[%s15163_s3 + $0x860] ss:$8 sps:$4 sm:$0xff]  }
 0x317   : > { %5342 = vmatprep.subr.bf16.mxu0 %v11803_v21  ;;  %v11767_v21 = vld [vmem:[%s15163_s3 + $0x874] ss:$8 sps:$4 sm:$0xff]  }
 0x318   : > { %3565 = vmatpush1.bf16.msra.mxu1 %v11639_v22  ;;  %v11705_v22 = vld [vmem:[%s15163_s3 + $0x730] ss:$8 sps:$4 sm:$0xff]  }
 0x319   : > { %3566 = vmatprep.subr.bf16.mxu1 %v11644_v47 }
 0x31c   : > { %3567 = vmatpush1.bf16.msra.mxu1 %v11642_v36  ;;  %v11710_v36 = vld [vmem:[%s15163_s3 + $0x744] ss:$8 sps:$4 sm:$0xff]  }
 0x31d   : > { %3568 = vmatprep.subr.bf16.mxu1 %v11647_v28 }
 0x320   : > { %3569 = vmatpush1.bf16.msra.mxu1 %v11645_v40 }
 0x321   : > { %4194 = vmatprep.subr.bf16.mxu1 %v11650_v35  ;;  %v11801_v35 = vld [vmem:[#allocation2 + $0x330] ss:$8 sps:$4 sm:$0xff]  }
 0x322   : > { %5343 = vmatpush1.bf16.msra.mxu0 %v11801_v35  ;;  %v11768_v35 = vld [vmem:[%s15163_s3 + $0x880] ss:$8 sps:$4 sm:$0xff]  }
 0x323   : > { %3571 = vmatmul.mubr.bf16.vlgmr.msra.gmra.mrb[0].mxu1 %v2964_v10  ;;  %v11659_v10 = vld [vmem:[%s15163_s3 + $0x634] ss:$8 sps:$4 sm:$0xff]  }
 0x324   : > { %4195 = vmatpush1.bf16.msra.mxu1 %v11648_v23  ;;  %4226 = vmatprep.mubr.bf16.mxu1 %v3695_v50  ;;  %v11657_v50 = vld [vmem:[%s15163_s3 + $0x630] ss:$8 sps:$4 sm:$0xff]  }
 0x325   : > { %4196 = vmatprep.subr.bf16.mxu1 %v11653_v4  ;;  %v11806_v4 = vld [vmem:[#allocation2 + $0x344] ss:$8 sps:$4 sm:$0xff]  }
 0x326   : > { %5344 = vmatprep.subr.bf16.mxu0 %v11806_v4  ;;  %v11773_v4 = vld [vmem:[%s15163_s3 + $0x894] ss:$8 sps:$4 sm:$0xff]  }
 0x328   : > { %4197 = vmatpush1.bf16.msra.mxu1 %v11651_v7  ;;  %v11708_v7 = vld [vmem:[%s15163_s3 + $0x740] ss:$8 sps:$4 sm:$0xff]  }
 0x329   : > { %4198 = vmatprep.subr.bf16.mxu1 %v11656_v6  ;;  %v11713_v6 = vld [vmem:[%s15163_s3 + $0x754] ss:$8 sps:$4 sm:$0xff]  }
 0x32c   : > { %4199 = vmatpush1.bf16.msra.mxu1 %v11654_v29  ;;  %v11804_v29 = vld [vmem:[#allocation2 + $0x340] ss:$8 sps:$4 sm:$0xff]  }
 0x32d   : > { %4200 = vmatprep.subr.bf16.mxu1 %v11659_v10  ;;  %v11809_v10 = vld [vmem:[#allocation2 + $0x354] ss:$8 sps:$4 sm:$0xff]   ;;  %5345 = vmatpush1.bf16.msra.mxu0 %v11804_v29  ;;  %v11774_v29 = vld [vmem:[%s15163_s3 + $0x8a0] ss:$8 sps:$4 sm:$0xff]  }
 0x32e   : > { %5346 = vmatprep.subr.bf16.mxu0 %v11809_v10  ;;  %v11779_v10 = vld [vmem:[%s15163_s3 + $0x8b4] ss:$8 sps:$4 sm:$0xff]  }
 0x330   : > { %4201 = vmatpush1.bf16.msra.mxu1 %v11657_v50  ;;  %v11711_v50 = vld [vmem:[%s15163_s3 + $0x750] ss:$8 sps:$4 sm:$0xff]  }
 0x331   : > { %4202 = vmatprep.subr.bf16.mxu1 %v11662_v34  ;;  %v11716_v34 = vld [vmem:[%s15163_s3 + $0x764] ss:$8 sps:$4 sm:$0xff]  }
 0x334   : > { %4203 = vmatpush1.bf16.msra.mxu1 %v11660_v41  ;;  %v11807_v41 = vld [vmem:[#allocation2 + $0x350] ss:$8 sps:$4 sm:$0xff]  }
 0x335   : > { %4204 = vmatprep.subr.bf16.mxu1 %v11665_v42  ;;  %v11812_v42 = vld [vmem:[#allocation2 + $0x364] ss:$8 sps:$4 sm:$0xff]   ;;  %5347 = vmatpush1.bf16.msra.mxu0 %v11807_v41  ;;  %v11780_v41 = vld [vmem:[%s15163_s3 + $0x8c0] ss:$8 sps:$4 sm:$0xff]  }
 0x336   : > { %5348 = vmatprep.subr.bf16.mxu0 %v11812_v42  ;;  %v11785_v42 = vld [vmem:[%s15163_s3 + $0x8d4] ss:$8 sps:$4 sm:$0xff]  }
 0x338   : > { %4205 = vmatpush1.bf16.msra.mxu1 %v11663_v51  ;;  %v11714_v51 = vld [vmem:[%s15163_s3 + $0x760] ss:$8 sps:$4 sm:$0xff]  }
 0x339   : > { %4206 = vmatprep.subr.bf16.mxu1 %v11668_v52  ;;  %v11719_v52 = vld [vmem:[%s15163_s3 + $0x774] ss:$8 sps:$4 sm:$0xff]  }
 0x33c   : > { %4207 = vmatpush1.bf16.msra.mxu1 %v11666_v20  ;;  %v11810_v20 = vld [vmem:[#allocation2 + $0x360] ss:$8 sps:$4 sm:$0xff]  }
 0x33d   : > { %4208 = vmatprep.subr.bf16.mxu1 %v11671_v31  ;;  %v11815_v31 = vld [vmem:[#allocation2 + $0x374] ss:$8 sps:$4 sm:$0xff]   ;;  %5349 = vmatpush1.bf16.msra.mxu0 %v11810_v20  ;;  %v11786_v20 = vld [vmem:[%s15163_s3 + $0x8e0] ss:$8 sps:$4 sm:$0xff]  }
 0x33e   : > { %5350 = vmatprep.subr.bf16.mxu0 %v11815_v31  ;;  %v11791_v31 = vld [vmem:[%s15163_s3 + $0x8f4] ss:$8 sps:$4 sm:$0xff]  }
 0x340   : > { %4209 = vmatpush1.bf16.msra.mxu1 %v11669_v13  ;;  %v11717_v13 = vld [vmem:[%s15163_s3 + $0x770] ss:$8 sps:$4 sm:$0xff]  }
 0x341   : > { %4210 = vmatprep.subr.bf16.mxu1 %v11674_v33  ;;  %v11722_v33 = vld [vmem:[%s15163_s3 + $0x784] ss:$8 sps:$4 sm:$0xff]  }
 0x344   : > { %4211 = vmatpush1.bf16.msra.mxu1 %v11672_v43  ;;  %v11813_v43 = vld [vmem:[#allocation2 + $0x370] ss:$8 sps:$4 sm:$0xff]  }
 0x345   : > { %4212 = vmatprep.subr.bf16.mxu1 %v11677_v44  ;;  %v11818_v44 = vld [vmem:[#allocation2 + $0x384] ss:$8 sps:$4 sm:$0xff]   ;;  %5351 = vmatpush1.bf16.msra.mxu0 %v11813_v43  ;;  %v11819_v43 = vld [vmem:[#allocation2 + $0x390] ss:$8 sps:$4 sm:$0xff]  }
 0x346   : > { %5352 = vmatprep.subr.bf16.mxu0 %v11818_v44  ;;  %v11822_v44 = vld [vmem:[#allocation2 + $0x3a0] ss:$8 sps:$4 sm:$0xff]  }
 0x348   : > { %4213 = vmatpush1.bf16.msra.mxu1 %v11675_v57  ;;  %v11720_v57 = vld [vmem:[%s15163_s3 + $0x780] ss:$8 sps:$4 sm:$0xff]  }
 0x349   : > { %4214 = vmatprep.subr.bf16.mxu1 %v11680_v30  ;;  %v11725_v30 = vld [vmem:[%s15163_s3 + $0x794] ss:$8 sps:$4 sm:$0xff]  }
 0x34c   : > { %4215 = vmatpush1.bf16.msra.mxu1 %v11678_v27  ;;  %v11816_v27 = vld [vmem:[#allocation2 + $0x380] ss:$8 sps:$4 sm:$0xff]  }
 0x34d   : > { %4216 = vmatprep.subr.bf16.mxu1 %v11683_v8  ;;  %v11723_v8 = vld [vmem:[%s15163_s3 + $0x790] ss:$8 sps:$4 sm:$0xff]   ;;  %5353 = vmatpush1.bf16.msra.mxu0 %v11816_v27 }
 0x34e   : > { %v11825_v27 = vld [vmem:[#allocation2 + $0x3b0] ss:$8 sps:$4 sm:$0xff]  }
 0x350   : > { %4217 = vmatpush1.bf16.msra.mxu1 %v11681_v45  ;;  %v11728_v45 = vld [vmem:[%s15163_s3 + $0x7a4] ss:$8 sps:$4 sm:$0xff]  }
 0x351   : > { %4218 = vmatprep.subr.bf16.mxu1 %v11686_v54  ;;  %v11726_v54 = vld [vmem:[%s15163_s3 + $0x7a0] ss:$8 sps:$4 sm:$0xff]  }
 0x354   : > { %4219 = vmatpush1.bf16.msra.mxu1 %v11684_v46  ;;  %v11731_v46 = vld [vmem:[%s15163_s3 + $0x7b4] ss:$8 sps:$4 sm:$0xff]  }
 0x355   : > { %4220 = vmatprep.subr.bf16.mxu1 %v11689_v60  ;;  %v11729_v60 = vld [vmem:[%s15163_s3 + $0x7b0] ss:$8 sps:$4 sm:$0xff]  }
 0x358   : > { %4221 = vmatpush1.bf16.msra.mxu1 %v11687_v56  ;;  %v11734_v56 = vld [vmem:[%s15163_s3 + $0x7c4] ss:$8 sps:$4 sm:$0xff]  }
 0x359   : > { %4222 = vmatprep.subr.bf16.mxu1 %v11692_v63  ;;  %v11732_v63 = vld [vmem:[%s15163_s3 + $0x7c0] ss:$8 sps:$4 sm:$0xff]  }
 0x35c   : > { %4223 = vmatpush1.bf16.msra.mxu1 %v11690_v59  ;;  %v11737_v59 = vld [vmem:[%s15163_s3 + $0x7d4] ss:$8 sps:$4 sm:$0xff]  }
 0x35d   : > { %4224 = vmatprep.subr.bf16.mxu1 %v11695_v2  ;;  %v11735_v2 = vld [vmem:[%s15163_s3 + $0x7d0] ss:$8 sps:$4 sm:$0xff]  }
 0x360   : > { %4225 = vmatpush1.bf16.msra.mxu1 %v11693_v24  ;;  %v11740_v24 = vld [vmem:[%s15163_s3 + $0x7e4] ss:$8 sps:$4 sm:$0xff]  }
 0x361   : > { %4237 = vmatprep.subr.bf16.mxu1 %v11698_v55  ;;  %v11738_v55 = vld [vmem:[%s15163_s3 + $0x7e0] ss:$8 sps:$4 sm:$0xff]  }
 0x363   : > { %4227 = vmatmul.mubr.bf16.vlgmr.msra.gmra.mrb[0].mxu1 %v3694_v32  ;;  %v11702_v32 = vld [vmem:[%s15163_s3 + $0x720] ss:$8 sps:$4 sm:$0xff]  }
 0x364   : > { %4238 = vmatpush1.bf16.msra.mxu1 %v11696_v12  ;;  %4269 = vmatprep.mubr.bf16.mxu1 %v3697_v9  ;;  %v11707_v9 = vld [vmem:[%s15163_s3 + $0x734] ss:$8 sps:$4 sm:$0xff]  }
 0x365   : > { %4239 = vmatprep.subr.bf16.mxu1 %v11701_v26  ;;  %v11743_v12 = vld [vmem:[%s15163_s3 + $0x7f4] ss:$8 sps:$4 sm:$0xff]   ;;  %v11741_v26 = vld [vmem:[%s15163_s3 + $0x7f0] ss:$8 sps:$4 sm:$0xff]  }
 0x368   : > { %4240 = vmatpush1.bf16.msra.mxu1 %v11699_v49  ;;  %v11749_v49 = vld [vmem:[%s15163_s3 + $0x814] ss:$8 sps:$4 sm:$0xff]  }
 0x369   : > { %4241 = vmatprep.subr.bf16.mxu1 %v11704_v48  ;;  %v11752_v48 = vld [vmem:[%s15163_s3 + $0x824] ss:$8 sps:$4 sm:$0xff]  }
 0x36c   : > { %4242 = vmatpush1.bf16.msra.mxu1 %v11702_v32  ;;  %v14392_v47 = vpop.f32.mrb[4].mxu0  ;;  %v11759_v32 = vld [vmem:[%s15163_s3 + $0x850] ss:$8 sps:$4 sm:$0xff]  }
 0x36d   : > { %4243 = vmatprep.subr.bf16.mxu1 %v11707_v9  ;;  %v14397_v28 = vpop.f32.mrb[5].mxu0  ;;  %v11764_v9 = vld [vmem:[%s15163_s3 + $0x864] ss:$8 sps:$4 sm:$0xff]  }
 0x36e   : > { %v14399_v40 = vpop.f32.mrb[6].mxu0 }
 0x36f   : > { %v14401_v23 = vpop.f32.mrb[7].mxu0 }
 0x370   : > { %4244 = vmatpush1.bf16.msra.mxu1 %v11705_v22  ;;  %v11765_v22 = vld [vmem:[%s15163_s3 + $0x870] ss:$8 sps:$4 sm:$0xff]  }
 0x371   : > { %4245 = vmatprep.subr.bf16.mxu1 %v11710_v36  ;;  %v11770_v36 = vld [vmem:[%s15163_s3 + $0x884] ss:$8 sps:$4 sm:$0xff]  }
 0x374   : > { %4246 = vmatpush1.bf16.msra.mxu1 %v11708_v7  ;;  %v11771_v7 = vld [vmem:[%s15163_s3 + $0x890] ss:$8 sps:$4 sm:$0xff]  }
 0x375   : > { %4247 = vmatprep.subr.bf16.mxu1 %v11713_v6  ;;  %v11776_v6 = vld [vmem:[%s15163_s3 + $0x8a4] ss:$8 sps:$4 sm:$0xff]  }
 0x378   : > { %4248 = vmatpush1.bf16.msra.mxu1 %v11711_v50  ;;  %v11777_v50 = vld [vmem:[%s15163_s3 + $0x8b0] ss:$8 sps:$4 sm:$0xff]  }
 0x379   : > { %4249 = vmatprep.subr.bf16.mxu1 %v11716_v34  ;;  %v11782_v34 = vld [vmem:[%s15163_s3 + $0x8c4] ss:$8 sps:$4 sm:$0xff]  }
 0x37c   : > { %4250 = vmatpush1.bf16.msra.mxu1 %v11714_v51  ;;  %v11783_v51 = vld [vmem:[%s15163_s3 + $0x8d0] ss:$8 sps:$4 sm:$0xff]  }
 0x37d   : > { %4251 = vmatprep.subr.bf16.mxu1 %v11719_v52  ;;  %v11788_v52 = vld [vmem:[%s15163_s3 + $0x8e4] ss:$8 sps:$4 sm:$0xff]  }
 0x380   : > { %4252 = vmatpush1.bf16.msra.mxu1 %v11717_v13  ;;  %v11789_v13 = vld [vmem:[%s15163_s3 + $0x8f0] ss:$8 sps:$4 sm:$0xff]  }
 0x381   : > { %4253 = vmatprep.subr.bf16.mxu1 %v11722_v33  ;;  %v11821_v33 = vld [vmem:[#allocation2 + $0x394] ss:$8 sps:$4 sm:$0xff]  }
 0x382   : > { %5354 = vmatprep.subr.bf16.mxu0 %v11821_v33 }
 0x383   : > { %5355 = vmatpush1.bf16.msra.mxu0 %v11819_v43 }
 0x384   : > { %4254 = vmatpush1.bf16.msra.mxu1 %v11720_v57  ;;  %v11824_v57 = vld [vmem:[#allocation2 + $0x3a4] ss:$8 sps:$4 sm:$0xff]  }
 0x385   : > { %4255 = vmatprep.subr.bf16.mxu1 %v11725_v30  ;;  %v11827_v30 = vld [vmem:[#allocation2 + $0x3b4] ss:$8 sps:$4 sm:$0xff]   ;;  %5356 = vmatprep.subr.bf16.mxu0 %v11824_v57 }
 0x387   : > { %5357 = vmatpush1.bf16.msra.mxu0 %v11822_v44 }
 0x388   : > { %4256 = vmatpush1.bf16.msra.mxu1 %v11723_v8  ;;  %5358 = vmatprep.subr.bf16.mxu0 %v11827_v30  ;;  %v11830_v8 = vld [vmem:[#allocation2 + $0x3c4] ss:$8 sps:$4 sm:$0xff]  }
 0x389   : > { %4257 = vmatprep.subr.bf16.mxu1 %v11728_v45  ;;  %v11828_v45 = vld [vmem:[#allocation2 + $0x3c0] ss:$8 sps:$4 sm:$0xff]  }
 0x38b   : > { %5359 = vmatpush1.bf16.msra.mxu0 %v11825_v27 }
 0x38c   : > { %4258 = vmatpush1.bf16.msra.mxu1 %v11726_v54  ;;  %5360 = vmatprep.subr.bf16.mxu0 %v11830_v8  ;;  %v11833_v54 = vld [vmem:[#allocation2 + $0x3d4] ss:$8 sps:$4 sm:$0xff]  }
 0x38d   : > { %4259 = vmatprep.subr.bf16.mxu1 %v11731_v46  ;;  %v11831_v46 = vld [vmem:[#allocation2 + $0x3d0] ss:$8 sps:$4 sm:$0xff]  }
 0x38f   : > { %5361 = vmatpush1.bf16.msra.mxu0 %v11828_v45 }
 0x390   : > { %4260 = vmatpush1.bf16.msra.mxu1 %v11729_v60  ;;  %5362 = vmatprep.subr.bf16.mxu0 %v11833_v54  ;;  %v11837_v60 = vld [vmem:[#allocation2 + $0x3f0] ss:$8 sps:$4 sm:$0xff]  }
 0x391   : > { %4261 = vmatprep.subr.bf16.mxu1 %v11734_v56  ;;  %v11842_v56 = vld [vmem:[#allocation2 + $0x404] ss:$8 sps:$4 sm:$0xff]  }
 0x393   : > { %5363 = vmatpush1.bf16.msra.mxu0 %v11831_v46 }
 0x394   : > { %4262 = vmatpush1.bf16.msra.mxu1 %v11732_v63  ;;  %5364 = vmatprep.subr.bf16.mxu0 %v11836_v0  ;;  %v4327_v63 = vld [vmem:[%s15164_s4] sm:$0x3] }
 0x395   : > { %4263 = vmatprep.subr.bf16.mxu1 %v11737_v59  ;;  %v4332_v59 = vrot.slane %v4327_v63, %v13666_v14 }
 0x397   : > { %5365 = vmatpush1.bf16.msra.mxu0 %v11834_v3 }
 0x398   : > { %4264 = vmatpush1.bf16.msra.mxu1 %v11735_v2 }
 0x399   : > { %4265 = vmatprep.subr.bf16.mxu1 %v11740_v24  ;;  %v4336_v24 = vrot.slane %v4327_v63, %v13672_v15 }
 0x39c   : > { %4266 = vmatpush1.bf16.msra.mxu1 %v11738_v55 }
 0x39d   : > { %4267 = vmatprep.subr.bf16.mxu1 %v11743_v12 }
 0x3a0   : > { %4268 = vmatpush1.bf16.msra.mxu1 %v11741_v26 }
 0x3a1   : > { %4280 = vmatprep.subr.bf16.mxu1 %v11746_v1 }
 0x3a3   : > { %4270 = vmatmul.mubr.bf16.vlgmr.msra.gmra.mrb[0].mxu1 %v3696_v25  ;;  %v11753_v25 = vld [vmem:[%s15163_s3 + $0x830] ss:$8 sps:$4 sm:$0xff]  }
 0x3a4   : > { %4281 = vmatpush1.bf16.msra.mxu1 %v11744_v11  ;;  %4312 = vmatprep.mubr.bf16.mxu1 %v3707_v37  ;;  %v11758_v37 = vld [vmem:[%s15163_s3 + $0x844] ss:$8 sps:$4 sm:$0xff]  }
 0x3a5   : > { %4282 = vmatprep.subr.bf16.mxu1 %v11749_v49 }
 0x3a8   : > { %4283 = vmatpush1.bf16.msra.mxu1 %v11747_v18 }
 0x3a9   : > { %4284 = vmatprep.subr.bf16.mxu1 %v11752_v48 }
 0x3ac   : > { %4285 = vmatpush1.bf16.msra.mxu1 %v11750_v17 }
 0x3ad   : > { %4286 = vmatprep.subr.bf16.mxu1 %v11755_v5 }
 0x3b0   : > { %4287 = vmatpush1.bf16.msra.mxu1 %v11753_v25 }
 0x3b1   : > { %4288 = vmatprep.subr.bf16.mxu1 %v11758_v37 }
 0x3b4   : > { %4289 = vmatpush1.bf16.msra.mxu1 %v11756_v62 }
 0x3b5   : > { %4290 = vmatprep.subr.bf16.mxu1 %v11761_v58 }
 0x3b8   : > { %4291 = vmatpush1.bf16.msra.mxu1 %v11759_v32 }
 0x3b9   : > { %4292 = vmatprep.subr.bf16.mxu1 %v11764_v9 }
 0x3bc   : > { %4293 = vmatpush1.bf16.msra.mxu1 %v11762_v61 }
 0x3bd   : > { %4294 = vmatprep.subr.bf16.mxu1 %v11767_v21 }
 0x3c0   : > { %4295 = vmatpush1.bf16.msra.mxu1 %v11765_v22 }
 0x3c1   : > { %4296 = vmatprep.subr.bf16.mxu1 %v11770_v36 }
 0x3c4   : > { %4297 = vmatpush1.bf16.msra.mxu1 %v11768_v35 }
 0x3c5   : > { %4298 = vmatprep.subr.bf16.mxu1 %v11773_v4 }
 0x3c8   : > { %4299 = vmatpush1.bf16.msra.mxu1 %v11771_v7 }
 0x3c9   : > { %4300 = vmatprep.subr.bf16.mxu1 %v11776_v6 }
 0x3cc   : > { %4301 = vmatpush1.bf16.msra.mxu1 %v11774_v29 }
 0x3cd   : > { %4302 = vmatprep.subr.bf16.mxu1 %v11779_v10 }
 0x3d0   : > { %4303 = vmatpush1.bf16.msra.mxu1 %v11777_v50 }
 0x3d1   : > { %4304 = vmatprep.subr.bf16.mxu1 %v11782_v34 }
 0x3d4   : > { %4305 = vmatpush1.bf16.msra.mxu1 %v11780_v41 }
 0x3d5   : > { %4306 = vmatprep.subr.bf16.mxu1 %v11785_v42 }
 0x3d8   : > { %4307 = vmatpush1.bf16.msra.mxu1 %v11783_v51 }
 0x3d9   : > { %4308 = vmatprep.subr.bf16.mxu1 %v11788_v52 }
 0x3dc   : > { %4309 = vmatpush1.bf16.msra.mxu1 %v11786_v20 }
 0x3dd   : > { %4310 = vmatprep.subr.bf16.mxu1 %v11791_v31 }
 0x3e0   : > { %4311 = vmatpush1.bf16.msra.mxu1 %v11789_v13 }
 0x3e3   : > { %4313 = vmatmul.mubr.bf16.vlgmr.msra.gmra.mrb[0].mxu1 %v3706_v38  ;;  %v11839_v38 = vld [vmem:[#allocation2 + $0x3f4] ss:$8 sps:$4 sm:$0xff]  }
 0x3e4   : > { %5366 = vmatprep.subr.bf16.mxu0 %v11839_v38 }
 0x3e5   : > { %5367 = vmatpush1.bf16.msra.mxu0 %v11837_v60 }
 0x3e6   : > { %5379 = vmatprep.subr.bf16.mxu0 %v11842_v56 }
 0x4b6   : > { %v4314_v2 = vpop.f32.mrb[0].mxu1 }
 0x4b7   : > { %v10995_v55 = vadd.f32 %v4314_v2, %v14392_v47  ;;  %v4316_v12 = vpop.f32.mrb[1].mxu1 }
 0x4b8   : > { %v10996_v26 = vadd.f32 %v4316_v12, %v14397_v28  ;;  %v4318_v1 = vpop.f32.mrb[2].mxu1 }
 0x4b9   : > { %v4339_v11 = vadd.f32 %v10995_v55, %v4332_v59  ;;  %v10997_v49 = vadd.f32 %v4318_v1, %v14399_v40  ;;  %v4320_v18 = vpop.f32.mrb[3].mxu1 }
 0x4ba   : > { %v4340_v48 = vadd.f32 %v10996_v26, %v4336_v24  ;;  %v10998_v17 = vadd.f32 %v4320_v18, %v14401_v23 }
 0x4bb   : > { %v4343_v5 = vmax.f32 %v4339_v11, 0.0  ;;  %v4341_v25 = vadd.f32 %v10997_v49, %v4332_v59 }
 0x4bc   : > { %v4344_v37 = vmax.f32 %v4340_v48, 0.0  ;;  %v4342_v62 = vadd.f32 %v10998_v17, %v4336_v24 }
 0x4bd   : > { %v4345_v58 = vmax.f32 %v4341_v25, 0.0 }
 0x4be   : > { %v14586_v32 = vcombine.low %v4343_v5, %v4344_v37  ;;  %v14588_v9 = vcombine.high %v4343_v5, %v4344_v37  ;;  %v14590_v47 = vcombine.low %v4344_v37, %v4344_v37  ;;  %v14592_v28 = vcombine.high %v4344_v37, %v4344_v37 }
 0x4bf   : > { %v4346_v61 = vmax.f32 %v4342_v62, 0.0 }
 0x4c0   : > { %v14596_v40 = vpack.c.bf16 %v14586_v32, %v14586_v32  ;;  %v14600_v23 = vpack.c.bf16 %v14590_v47, %v14590_v47  ;;  %v14604_v21 = vpack.c.bf16 %v14588_v9, %v14588_v9  ;;  %v14608_v22 = vpack.c.bf16 %v14592_v28, %v14592_v28 }
 0x4c1   : > { %v14610_v36 = vcombine.low %v4345_v58, %v4346_v61  ;;  %v14612_v35 = vcombine.high %v4345_v58, %v4346_v61  ;;  %v14614_v4 = vcombine.low %v4346_v61, %v4346_v61  ;;  %v14616_v7 = vcombine.high %v4346_v61, %v4346_v61 }
 0x4c2   : > { %v4376_v6 = vshrl.u32 %v14596_v40, 16  ;;  %v4379_v29 = vshll.u32 %v14596_v40, 16  ;;  %v4383_v10 = vshrl.u32 %v14600_v23, 16  ;;  %v4386_v50 = vshll.u32 %v14600_v23, 16 }
 0x4c3   : > { %v4390_v34 = vshrl.u32 %v14604_v21, 16  ;;  %v4393_v41 = vshll.u32 %v14604_v21, 16  ;;  %v4397_v42 = vshrl.u32 %v14608_v22, 16  ;;  %v4400_v51 = vshll.u32 %v14608_v22, 16 }
 0x4c4   : > { %v14628_v52 = vpack.c.bf16 %v14610_v36, %v14610_v36  ;;  %v14632_v20 = vpack.c.bf16 %v14614_v4, %v14614_v4  ;;  %v14636_v31 = vpack.c.bf16 %v14612_v35, %v14612_v35  ;;  %v14640_v13 = vpack.c.bf16 %v14616_v7, %v14616_v7 }
 0x4c5   : > { %v4378_v33 = vrot.slane %v4376_v6, 7  ;;  %v4385_v43 = vrot.slane %v4383_v10, 7  ;;  %v4392_v44 = vrot.slane %v4390_v34, 7  ;;  %v4399_v57 = vrot.slane %v4397_v42, 7 }
 0x4c6   : > { %v4404_v30 = vshrl.u32 %v14628_v52, 16  ;;  %v4407_v27 = vshll.u32 %v14628_v52, 16  ;;  %v4411_v8 = vshrl.u32 %v14632_v20, 16  ;;  %v4414_v45 = vshll.u32 %v14632_v20, 16 }
 0x4c7   : > { %v4418_v54 = vshrl.u32 %v14636_v31, 16  ;;  %v4421_v46 = vshll.u32 %v14636_v31, 16  ;;  %v4425_v0 = vshrl.u32 %v14640_v13, 16  ;;  %v4428_v3 = vshll.u32 %v14640_v13, 16 }
 0x4c8   : > { %v4381_v38 = vor.u32 %v4379_v29, %v4378_v33  ;;  %v4388_v60 = vor.u32 %v4386_v50, %v4385_v43  ;;  %v4395_v56 = vor.u32 %v4393_v41, %v4392_v44  ;;  %v4402_v63 = vor.u32 %v4400_v51, %v4399_v57 }
 0x4c9   : > { %v4406_v59 = vrot.slane %v4404_v30, 7  ;;  %v4413_v2 = vrot.slane %v4411_v8, 7  ;;  %v4420_v24 = vrot.slane %v4418_v54, 7  ;;  %v4427_v55 = vrot.slane %v4425_v0, 7 }
 0x4ca   : > { %v4439_v12 = vsel %vm12949_vm2, 0, %v4381_v38  ;;  %v4440_v26 = vsel %vm12949_vm2, 0, %v4388_v60  ;;  %v4441_v1 = vsel %vm12949_vm2, 0, %v4395_v56  ;;  %v4442_v11 = vsel %vm12949_vm2, 0, %v4402_v63 }
 0x4cb   : > { %v4409_v49 = vor.u32 %v4407_v27, %v4406_v59  ;;  %v4416_v18 = vor.u32 %v4414_v45, %v4413_v2  ;;  %v4423_v48 = vor.u32 %v4421_v46, %v4420_v24  ;;  %v4430_v17 = vor.u32 %v4428_v3, %v4427_v55 }
 0x4cc   : > { %v4503_v5 = vcombine.low %v4439_v12, %v4440_v26  ;;  %v4528_v25 = vcombine.low %v4441_v1, %v4442_v11  ;;  %v10371_v37 = vpack.c.bf16 %v14590_v47, %v14586_v32  ;;  %v10372_v62 = vpack.c.bf16 %v14592_v28, %v14588_v9 }
 0x4cd   : > { %v4443_v58 = vsel %vm12949_vm2, 0, %v4409_v49  ;;  %v4444_v61 = vsel %vm12949_vm2, 0, %v4416_v18  ;;  %v4445_v33 = vsel %vm12949_vm2, 0, %v4423_v48  ;;  %v4446_v43 = vsel %vm12949_vm2, 0, %v4430_v17 }
 0x4ce   : > { %v14691_v44 = vrot.slane %v4503_v5, %v12910_v16  ;;  %v14694_v32 = vrot.slane %v4528_v25, %v12910_v16  ;;  %v4553_v47 = vcombine.low %v4443_v58, %v4444_v61  ;;  %v4578_v9 = vcombine.low %v4445_v33, %v4446_v43  ;;  %v11848_v61 = vld [vmem:[#allocation2 + $0x424] ss:$8 sps:$4 sm:$0xff]  }
 0x4cf   : > { %v14697_v28 = vrot.slane %v10371_v37, %v12910_v16  ;;  %v14700_v57 = vrot.slane %v10372_v62, %v12910_v16  ;;  %v10373_v38 = vpack.c.bf16 %v14614_v4, %v14610_v36  ;;  %v10374_v60 = vpack.c.bf16 %v14616_v7, %v14612_v35  ;;  %v11840_v62 = vld [vmem:[#allocation2 + $0x400] ss:$8 sps:$4 sm:$0xff]  }
 0x4d0   : > { %v4561_v56 = vrot.slane %v4553_v47, %v12910_v16  ;;  %v14708_v63 = vrot.slane %v4578_v9, %v12910_v16  ;;  %v10375_v59 = vcombine.low %v14691_v44, %v14694_v32  ;;  %v4447_v2 = vrot.slane %v4379_v29, 1 }
 0x4d1   : > { %v4568_v24 = vrot.slane %v10373_v38, %v12910_v16  ;;  %v14714_v55 = vrot.slane %v10374_v60, %v12910_v16  ;;  %v10376_v36 = vcombine.low %v14697_v28, %v14700_v57  ;;  %v4449_v4 = vrot.slane %v4386_v50, 1 }
 0x4d2   : > { %v10377_v35 = vcombine.low %v4561_v56, %v14708_v63  ;;  %v4806_v7 = vrot.slane %v10375_v59, %v12910_v16  ;;  %v10477_v12 = vcombine.low %v14694_v32, %v4561_v56  ;;  %v4448_v26 = vor.u32 %v4447_v2, %v4376_v6 }
 0x4d3   : > { %v10378_v29 = vcombine.low %v4568_v24, %v14714_v55  ;;  %v14725_v1 = vrot.slane %v10376_v36, %v12910_v16  ;;  %v10478_v11 = vcombine.low %v14700_v57, %v4568_v24  ;;  %v4450_v49 = vor.u32 %v4449_v4, %v4383_v10  ;;  %v11846_v24 = vld [vmem:[#allocation2 + $0x420] ss:$8 sps:$4 sm:$0xff]  }
 0x4d4   : > { %v4820_v50 = vrot.slane %v10377_v35, %v12910_v16  ;;  %v4451_v18 = vrot.slane %v4393_v41, 1  ;;  %v4453_v48 = vrot.slane %v4400_v51, 1  ;;  %v4455_v40 = vrot.slane %v4407_v27, 1  ;;  %v11845_v51 = vld [vmem:[#allocation2 + $0x414] ss:$8 sps:$4 sm:$0xff]  }
 0x4d5   : > { %v14736_v6 = vrot.slane %v10378_v29, %v12910_v16  ;;  %v4457_v17 = vrot.slane %v4414_v45, 1  ;;  %v4459_v5 = vrot.slane %v4421_v46, 1  ;;  %v4461_v25 = vrot.slane %v4428_v3, 1 }
 0x4d6   : > { %v4829_v37 = vcombine.high %v4806_v7, %v4820_v50  ;;  %v4828_v58 = vcombine.low %v4806_v7, %v4820_v50  ;;  %v4452_v23 = vor.u32 %v4451_v18, %v4390_v34  ;;  %v4454_v10 = vor.u32 %v4453_v48, %v4397_v42  ;;  %v11851_v7 = vld [vmem:[#allocation2 + $0x434] ss:$8 sps:$4 sm:$0xff]  }
 0x4d7   : > { %v4831_v41 = vcombine.high %v14725_v1, %v14736_v6  ;;  %v4830_v27 = vcombine.low %v14725_v1, %v14736_v6  ;;  %v4456_v45 = vor.u32 %v4455_v40, %v4404_v30  ;;  %v4458_v46 = vor.u32 %v4457_v17, %v4411_v8  ;;  %v11843_v30 = vld [vmem:[#allocation2 + $0x410] ss:$8 sps:$4 sm:$0xff]   ;;  %v11905_v1 = vld [vmem:[#allocation2 + $0x554] ss:$8 sps:$4 sm:$0xff]  }
 0x4d8   : > { %5368 = vmatprep.mubr.bf16.mxu0 %v4829_v37  ;;  %v4460_v21 = vor.u32 %v4459_v5, %v4418_v54  ;;  %v4462_v22 = vor.u32 %v4461_v25, %v4425_v0  ;;  %v4471_v34 = vsel %vm13033_vm5, %v4448_v26, 0  ;;  %v4472_v42 = vsel %vm13033_vm5, %v4450_v49, 0  ;;  %v11849_v5 = vld [vmem:[#allocation2 + $0x430] ss:$8 sps:$4 sm:$0xff]   ;;  %v11854_v37 = vld [vmem:[#allocation2 + $0x444] ss:$8 sps:$4 sm:$0xff]  }
 0x4d9   : > { %5369 = vmatmul.mubr.bf16.vlgmr.msra.gmra.mrb[8].mxu0 %v4828_v58  ;;  %v4473_v52 = vsel %vm13033_vm5, %v4452_v23, 0  ;;  %v4474_v20 = vsel %vm13033_vm5, %v4454_v10, 0  ;;  %v4475_v31 = vsel %vm13033_vm5, %v4456_v45, 0  ;;  %v4476_v13 = vsel %vm13033_vm5, %v4458_v46, 0  ;;  %v11903_v6 = vld [vmem:[#allocation2 + $0x550] ss:$8 sps:$4 sm:$0xff]  }
 0x4da   : > { %5380 = vmatpush1.bf16.msra.mxu0 %v11840_v62  ;;  %5411 = vmatprep.mubr.bf16.mxu0 %v4831_v41  ;;  %v4477_v8 = vsel %vm13033_vm5, %v4460_v21, 0  ;;  %v4478_v54 = vsel %vm13033_vm5, %v4462_v22, 0  ;;  %v4520_v0 = vcombine.low %v4471_v34, %v4472_v42  ;;  %v4545_v3 = vcombine.low %v4473_v52, %v4474_v20  ;;  %v11852_v22 = vld [vmem:[#allocation2 + $0x440] ss:$8 sps:$4 sm:$0xff]   ;;  %v11857_v34 = vld [vmem:[#allocation2 + $0x454] ss:$8 sps:$4 sm:$0xff]  }
 0x4db   : > { %5381 = vmatprep.subr.bf16.mxu0 %v11845_v51  ;;  %v4570_v33 = vcombine.low %v4475_v31, %v4476_v13  ;;  %v4595_v43 = vcombine.low %v4477_v8, %v4478_v54  ;;  %v10475_v32 = vcombine.low %v13119_v53, %v14691_v44  ;;  %v14773_v47 = vrot.slane %v10477_v12, %v12910_v16  ;;  %v11855_v20 = vld [vmem:[#allocation2 + $0x450] ss:$8 sps:$4 sm:$0xff]   ;;  %v11860_v31 = vld [vmem:[#allocation2 + $0x464] ss:$8 sps:$4 sm:$0xff]   ;;  %v11858_v13 = vld [vmem:[#allocation2 + $0x460] ss:$8 sps:$4 sm:$0xff]  }
 0x4dc   : > { %v4527_v9 = vrot.slane %v4520_v0, %v12910_v16  ;;  %v4552_v57 = vrot.slane %v4545_v3, %v12910_v16  ;;  %v10476_v38 = vcombine.low %v13119_v53, %v14697_v28  ;;  %v14780_v60 = vrot.slane %v10478_v11, %v12910_v16  ;;  %v11861_v8 = vld [vmem:[#allocation2 + $0x470] ss:$8 sps:$4 sm:$0xff]   ;;  %v11866_v54 = vld [vmem:[#allocation2 + $0x484] ss:$8 sps:$4 sm:$0xff]   ;;  %v11864_v0 = vld [vmem:[#allocation2 + $0x480] ss:$8 sps:$4 sm:$0xff]  }
 0x4dd   : > { %v4577_v56 = vrot.slane %v4570_v33, %v12910_v16  ;;  %v4602_v59 = vrot.slane %v4595_v43, %v12910_v16  ;;  %v14785_v2 = vrot.slane %v10475_v32, %v12910_v16  ;;  %v10575_v44 = vcombine.low %v14708_v63, %v13119_v53  ;;  %v11869_v3 = vld [vmem:[#allocation2 + $0x494] ss:$8 sps:$4 sm:$0xff]   ;;  %v11872_v33 = vld [vmem:[#allocation2 + $0x4a4] ss:$8 sps:$4 sm:$0xff]   ;;  %v11870_v43 = vld [vmem:[#allocation2 + $0x4a0] ss:$8 sps:$4 sm:$0xff]  }
 0x4de   : > { %5382 = vmatpush1.bf16.msra.mxu0 %v11843_v30  ;;  %v4832_v36 = vcombine.low %v4527_v9, %v4552_v57  ;;  %v14790_v4 = vrot.slane %v10476_v38, %v12910_v16  ;;  %v5501_v28 = vcombine.low %v13119_v53, %v4527_v9  ;;  %v10576_v35 = vcombine.low %v14714_v55, %v13119_v53  ;;  %v11863_v30 = vld [vmem:[#allocation2 + $0x474] ss:$8 sps:$4 sm:$0xff]   ;;  %v11873_v9 = vld [vmem:[#allocation2 + $0x4b0] ss:$8 sps:$4 sm:$0xff]   ;;  %v11876_v38 = vld [vmem:[#allocation2 + $0x4c0] ss:$8 sps:$4 sm:$0xff]  }
 0x4df   : > { %5383 = vmatprep.subr.bf16.mxu0 %v11848_v61  ;;  %v4833_v12 = vcombine.low %v4577_v56, %v4602_v59  ;;  %v5502_v26 = vcombine.low %v4552_v57, %v4577_v56  ;;  %v5498_v29 = vcombine.high %v14785_v2, %v14773_v47  ;;  %v5497_v63 = vcombine.low %v14785_v2, %v14773_v47  ;;  %v11867_v61 = vld [vmem:[#allocation2 + $0x490] ss:$8 sps:$4 sm:$0xff]   ;;  %v11875_v32 = vld [vmem:[#allocation2 + $0x4b4] ss:$8 sps:$4 sm:$0xff]   ;;  %v11878_v57 = vld [vmem:[#allocation2 + $0x4c4] ss:$8 sps:$4 sm:$0xff]  }
 0x4e0   : > { %v14800_v11 = vrot.slane %v4832_v36, %v12910_v16  ;;  %v5500_v49 = vcombine.high %v14790_v4, %v14780_v60  ;;  %v5499_v50 = vcombine.low %v14790_v4, %v14780_v60  ;;  %v14807_v55 = vrot.slane %v5501_v28, %v12910_v16  ;;  %v11881_v56 = vld [vmem:[#allocation2 + $0x4d4] ss:$8 sps:$4 sm:$0xff]   ;;  %v11885_v28 = vld [vmem:[#allocation2 + $0x4f0] ss:$8 sps:$4 sm:$0xff]  }
 0x4e1   : > { %v14810_v18 = vrot.slane %v4833_v12, %v12910_v16  ;;  %v14813_v48 = vrot.slane %v5502_v26, %v12910_v16  ;;  %v14816_v40 = vrot.slane %v10575_v44, %v12910_v16  ;;  %v14819_v17 = vrot.slane %v10576_v35, %v12910_v16  ;;  %v11884_v44 = vld [vmem:[#allocation2 + $0x4e4] ss:$8 sps:$4 sm:$0xff]   ;;  %v11887_v36 = vld [vmem:[#allocation2 + $0x4f4] ss:$8 sps:$4 sm:$0xff]   ;;  %v11891_v26 = vld [vmem:[#allocation2 + $0x510] ss:$8 sps:$4 sm:$0xff]  }
 0x4e2   : > { %5384 = vmatpush1.bf16.msra.mxu0 %v11846_v24  ;;  %v6251_v25 = vcombine.low %v4602_v59, %v13119_v53  ;;  %v11879_v59 = vld [vmem:[#allocation2 + $0x4d0] ss:$8 sps:$4 sm:$0xff]   ;;  %v11882_v24 = vld [vmem:[#allocation2 + $0x4e0] ss:$8 sps:$4 sm:$0xff]   ;;  %v11890_v35 = vld [vmem:[#allocation2 + $0x504] ss:$8 sps:$4 sm:$0xff]  }
 0x4e3   : > { %5385 = vmatprep.subr.bf16.mxu0 %v11851_v7  ;;  %v4849_v62 = vcombine.high %v14800_v11, %v14810_v18  ;;  %v4848_v58 = vcombine.low %v14800_v11, %v14810_v18  ;;  %v5518_v23 = vcombine.high %v14807_v55, %v14813_v48  ;;  %v5517_v10 = vcombine.low %v14807_v55, %v14813_v48  ;;  %v11888_v7 = vld [vmem:[#allocation2 + $0x500] ss:$8 sps:$4 sm:$0xff]   ;;  %v11893_v12 = vld [vmem:[#allocation2 + $0x514] ss:$8 sps:$4 sm:$0xff]   ;;  %v11951_v18 = vld [vmem:[#allocation2 + $0x50] ss:$8 sps:$4 sm:$0xff]  }
 0x4e4   : > { %v6248_v41 = vcombine.high %v14773_v47, %v14816_v40  ;;  %v6247_v51 = vcombine.low %v14773_v47, %v14816_v40  ;;  %v6250_v45 = vcombine.high %v14780_v60, %v14819_v17  ;;  %v6249_v46 = vcombine.low %v14780_v60, %v14819_v17  ;;  %v11953_v11 = vld [vmem:[#allocation2 + $0x54] ss:$8 sps:$4 sm:$0xff]   ;;  %v12230_v40 = vld [vmem:[#allocation4 + $0x320] ss:$8 sps:$4 sm:$0xff]   ;;  %v12191_v17 = vld [vmem:[#allocation2 + $0x850] ss:$8 sps:$4 sm:$0xff]  }
 0x4e5   : > { %v14839_v21 = vrot.slane %v6251_v25, %v12910_v16  ;;  %v11894_v25 = vld [vmem:[#allocation2 + $0x520] ss:$8 sps:$4 sm:$0xff]   ;;  %v12001_v2 = vld [vmem:[#allocation2 + $0x154] ss:$8 sps:$4 sm:$0xff]  }
 0x4e6   : > { %5386 = vmatpush1.bf16.msra.mxu0 %v11849_v5  ;;  %v11896_v5 = vld [vmem:[#allocation2 + $0x524] ss:$8 sps:$4 sm:$0xff]   ;;  %v12049_v4 = vld [vmem:[#allocation2 + $0x254] ss:$8 sps:$4 sm:$0xff]  }
 0x4e7   : > { %5387 = vmatprep.subr.bf16.mxu0 %v11854_v37  ;;  %v6260_v42 = vcombine.high %v14813_v48, %v14839_v21  ;;  %v6259_v52 = vcombine.low %v14813_v48, %v14839_v21  ;;  %v11899_v37 = vld [vmem:[#allocation2 + $0x534] ss:$8 sps:$4 sm:$0xff]   ;;  %v12268_v48 = vld [vmem:[#allocation4 + $0x3e4] ss:$8 sps:$4 sm:$0xff]   ;;  %v12266_v21 = vld [vmem:[#allocation4 + $0x3e0] ss:$8 sps:$4 sm:$0xff]  }
 0x4e8   : > { %v12097_v55 = vld [vmem:[#allocation2 + $0x654] ss:$8 sps:$4 sm:$0xff]  }
 0x4e9   : > { %v12139_v47 = vld [vmem:[#allocation2 + $0x734] ss:$8 sps:$4 sm:$0xff]  }
 0x4ea   : > { %5388 = vmatpush1.bf16.msra.mxu0 %v11852_v22  ;;  %v11897_v22 = vld [vmem:[#allocation2 + $0x530] ss:$8 sps:$4 sm:$0xff]   ;;  %v12193_v60 = vld [vmem:[#allocation2 + $0x854] ss:$8 sps:$4 sm:$0xff]  }
 0x4eb   : > { %5389 = vmatprep.subr.bf16.mxu0 %v11857_v34  ;;  %v11902_v34 = vld [vmem:[#allocation2 + $0x544] ss:$8 sps:$4 sm:$0xff]  }
 0x4ee   : > { %5390 = vmatpush1.bf16.msra.mxu0 %v11855_v20  ;;  %v11900_v20 = vld [vmem:[#allocation2 + $0x540] ss:$8 sps:$4 sm:$0xff]  }
 0x4ef   : > { %5391 = vmatprep.subr.bf16.mxu0 %v11860_v31  ;;  %v11911_v31 = vld [vmem:[#allocation2 + $0x574] ss:$8 sps:$4 sm:$0xff]  }
 0x4f2   : > { %5392 = vmatpush1.bf16.msra.mxu0 %v11858_v13  ;;  %v11909_v13 = vld [vmem:[#allocation2 + $0x570] ss:$8 sps:$4 sm:$0xff]  }
 0x4f3   : > { %5393 = vmatprep.subr.bf16.mxu0 %v11863_v30  ;;  %v11914_v30 = vld [vmem:[#allocation2 + $0x584] ss:$8 sps:$4 sm:$0xff]  }
 0x4f6   : > { %5394 = vmatpush1.bf16.msra.mxu0 %v11861_v8  ;;  %v11912_v8 = vld [vmem:[#allocation2 + $0x580] ss:$8 sps:$4 sm:$0xff]  }
 0x4f7   : > { %5395 = vmatprep.subr.bf16.mxu0 %v11866_v54  ;;  %v11917_v54 = vld [vmem:[#allocation2 + $0x594] ss:$8 sps:$4 sm:$0xff]  }
 0x4fa   : > { %5396 = vmatpush1.bf16.msra.mxu0 %v11864_v0  ;;  %v11915_v0 = vld [vmem:[#allocation2 + $0x590] ss:$8 sps:$4 sm:$0xff]  }
 0x4fb   : > { %5397 = vmatprep.subr.bf16.mxu0 %v11869_v3  ;;  %v11920_v3 = vld [vmem:[#allocation2 + $0x5a4] ss:$8 sps:$4 sm:$0xff]  }
 0x4fe   : > { %5398 = vmatpush1.bf16.msra.mxu0 %v11867_v61  ;;  %v11918_v61 = vld [vmem:[#allocation2 + $0x5a0] ss:$8 sps:$4 sm:$0xff]  }
 0x4ff   : > { %5399 = vmatprep.subr.bf16.mxu0 %v11872_v33  ;;  %v11923_v33 = vld [vmem:[#allocation2 + $0x5b4] ss:$8 sps:$4 sm:$0xff]  }
 0x502   : > { %5400 = vmatpush1.bf16.msra.mxu0 %v11870_v43  ;;  %v11921_v43 = vld [vmem:[#allocation2 + $0x5b0] ss:$8 sps:$4 sm:$0xff]  }
 0x503   : > { %5401 = vmatprep.subr.bf16.mxu0 %v11875_v32  ;;  %v11926_v32 = vld [vmem:[#allocation2 + $0x5c4] ss:$8 sps:$4 sm:$0xff]  }
 0x506   : > { %5402 = vmatpush1.bf16.msra.mxu0 %v11873_v9  ;;  %v11924_v9 = vld [vmem:[#allocation2 + $0x5c0] ss:$8 sps:$4 sm:$0xff]  }
 0x507   : > { %5403 = vmatprep.subr.bf16.mxu0 %v11878_v57  ;;  %v11929_v57 = vld [vmem:[#allocation2 + $0x5d4] ss:$8 sps:$4 sm:$0xff]  }
 0x50a   : > { %5404 = vmatpush1.bf16.msra.mxu0 %v11876_v38  ;;  %v11927_v38 = vld [vmem:[#allocation2 + $0x5d0] ss:$8 sps:$4 sm:$0xff]  }
 0x50b   : > { %5405 = vmatprep.subr.bf16.mxu0 %v11881_v56  ;;  %v11932_v56 = vld [vmem:[#allocation2 + $0x5e4] ss:$8 sps:$4 sm:$0xff]  }
 0x50e   : > { %5406 = vmatpush1.bf16.msra.mxu0 %v11879_v59  ;;  %v11930_v59 = vld [vmem:[#allocation2 + $0x5e0] ss:$8 sps:$4 sm:$0xff]  }
 0x50f   : > { %5407 = vmatprep.subr.bf16.mxu0 %v11884_v44  ;;  %v11935_v44 = vld [vmem:[#allocation2 + $0x5f4] ss:$8 sps:$4 sm:$0xff]  }
 0x512   : > { %5408 = vmatpush1.bf16.msra.mxu0 %v11882_v24  ;;  %v11933_v24 = vld [vmem:[#allocation2 + $0x5f0] ss:$8 sps:$4 sm:$0xff]  }
 0x513   : > { %5409 = vmatprep.subr.bf16.mxu0 %v11887_v36  ;;  %v11938_v36 = vld [vmem:[#allocation2 + $0x4] ss:$8 sps:$4 sm:$0xff]  }
 0x516   : > { %5410 = vmatpush1.bf16.msra.mxu0 %v11885_v28  ;;  %v11936_v28 = vld [vmem:[#allocation2] ss:$8 sps:$4 sm:$0xff]  }
 0x517   : > { %5422 = vmatprep.subr.bf16.mxu0 %v11890_v35  ;;  %v11941_v35 = vld [vmem:[#allocation2 + $0x14] ss:$8 sps:$4 sm:$0xff]  }
 0x519   : > { %5412 = vmatmul.mubr.bf16.vlgmr.msra.gmra.mrb[8].mxu0 %v4830_v27  ;;  %v11908_v27 = vld [vmem:[#allocation2 + $0x564] ss:$8 sps:$4 sm:$0xff]  }
 0x51a   : > { %5423 = vmatpush1.bf16.msra.mxu0 %v11888_v7  ;;  %5454 = vmatprep.mubr.bf16.mxu0 %v4849_v62  ;;  %v11906_v62 = vld [vmem:[#allocation2 + $0x560] ss:$8 sps:$4 sm:$0xff]   ;;  %v11939_v7 = vld [vmem:[#allocation2 + $0x10] ss:$8 sps:$4 sm:$0xff]  }
 0x51b   : > { %5424 = vmatprep.subr.bf16.mxu0 %v11893_v12  ;;  %v11944_v12 = vld [vmem:[#allocation2 + $0x24] ss:$8 sps:$4 sm:$0xff]  }
 0x51e   : > { %5425 = vmatpush1.bf16.msra.mxu0 %v11891_v26  ;;  %v11942_v26 = vld [vmem:[#allocation2 + $0x20] ss:$8 sps:$4 sm:$0xff]  }
 0x51f   : > { %5426 = vmatprep.subr.bf16.mxu0 %v11896_v5  ;;  %v11947_v5 = vld [vmem:[#allocation2 + $0x34] ss:$8 sps:$4 sm:$0xff]  }
 0x522   : > { %5427 = vmatpush1.bf16.msra.mxu0 %v11894_v25  ;;  %v11945_v25 = vld [vmem:[#allocation2 + $0x30] ss:$8 sps:$4 sm:$0xff]  }
 0x523   : > { %5428 = vmatprep.subr.bf16.mxu0 %v11899_v37  ;;  %v11950_v37 = vld [vmem:[#allocation2 + $0x44] ss:$8 sps:$4 sm:$0xff]  }
 0x526   : > { %5429 = vmatpush1.bf16.msra.mxu0 %v11897_v22  ;;  %v11948_v22 = vld [vmem:[#allocation2 + $0x40] ss:$8 sps:$4 sm:$0xff]  }
 0x527   : > { %5430 = vmatprep.subr.bf16.mxu0 %v11902_v34  ;;  %v11959_v34 = vld [vmem:[#allocation2 + $0x74] ss:$8 sps:$4 sm:$0xff]  }
 0x52a   : > { %5431 = vmatpush1.bf16.msra.mxu0 %v11900_v20  ;;  %v11957_v20 = vld [vmem:[#allocation2 + $0x70] ss:$8 sps:$4 sm:$0xff]  }
 0x52b   : > { %5432 = vmatprep.subr.bf16.mxu0 %v11905_v1  ;;  %v11962_v1 = vld [vmem:[#allocation2 + $0x84] ss:$8 sps:$4 sm:$0xff]  }
 0x52e   : > { %5433 = vmatpush1.bf16.msra.mxu0 %v11903_v6  ;;  %v11960_v6 = vld [vmem:[#allocation2 + $0x80] ss:$8 sps:$4 sm:$0xff]  }
 0x52f   : > { %5434 = vmatprep.subr.bf16.mxu0 %v11908_v27  ;;  %v11965_v27 = vld [vmem:[#allocation2 + $0x94] ss:$8 sps:$4 sm:$0xff]  }
 0x532   : > { %5435 = vmatpush1.bf16.msra.mxu0 %v11906_v62  ;;  %v11963_v62 = vld [vmem:[#allocation2 + $0x90] ss:$8 sps:$4 sm:$0xff]  }
 0x533   : > { %5436 = vmatprep.subr.bf16.mxu0 %v11911_v31  ;;  %v11968_v31 = vld [vmem:[#allocation2 + $0xa4] ss:$8 sps:$4 sm:$0xff]  }
 0x536   : > { %5437 = vmatpush1.bf16.msra.mxu0 %v11909_v13  ;;  %v11966_v13 = vld [vmem:[#allocation2 + $0xa0] ss:$8 sps:$4 sm:$0xff]  }
 0x537   : > { %5438 = vmatprep.subr.bf16.mxu0 %v11914_v30  ;;  %v11971_v30 = vld [vmem:[#allocation2 + $0xb4] ss:$8 sps:$4 sm:$0xff]  }
 0x53a   : > { %5439 = vmatpush1.bf16.msra.mxu0 %v11912_v8  ;;  %v11969_v8 = vld [vmem:[#allocation2 + $0xb0] ss:$8 sps:$4 sm:$0xff]  }
 0x53b   : > { %5440 = vmatprep.subr.bf16.mxu0 %v11917_v54  ;;  %v11974_v54 = vld [vmem:[#allocation2 + $0xc4] ss:$8 sps:$4 sm:$0xff]  }
 0x53e   : > { %5441 = vmatpush1.bf16.msra.mxu0 %v11915_v0  ;;  %v11972_v0 = vld [vmem:[#allocation2 + $0xc0] ss:$8 sps:$4 sm:$0xff]  }
 0x53f   : > { %5442 = vmatprep.subr.bf16.mxu0 %v11920_v3  ;;  %v11977_v3 = vld [vmem:[#allocation2 + $0xd4] ss:$8 sps:$4 sm:$0xff]  }
 0x542   : > { %5443 = vmatpush1.bf16.msra.mxu0 %v11918_v61  ;;  %v11975_v61 = vld [vmem:[#allocation2 + $0xd0] ss:$8 sps:$4 sm:$0xff]  }
 0x543   : > { %5444 = vmatprep.subr.bf16.mxu0 %v11923_v33  ;;  %v11980_v33 = vld [vmem:[#allocation2 + $0xe4] ss:$8 sps:$4 sm:$0xff]  }
 0x546   : > { %5445 = vmatpush1.bf16.msra.mxu0 %v11921_v43  ;;  %v11978_v43 = vld [vmem:[#allocation2 + $0xe0] ss:$8 sps:$4 sm:$0xff]  }
 0x547   : > { %5446 = vmatprep.subr.bf16.mxu0 %v11926_v32  ;;  %v11983_v32 = vld [vmem:[#allocation2 + $0xf4] ss:$8 sps:$4 sm:$0xff]  }
 0x54a   : > { %5447 = vmatpush1.bf16.msra.mxu0 %v11924_v9  ;;  %v11981_v9 = vld [vmem:[#allocation2 + $0xf0] ss:$8 sps:$4 sm:$0xff]  }
 0x54b   : > { %5448 = vmatprep.subr.bf16.mxu0 %v11929_v57  ;;  %v11986_v57 = vld [vmem:[#allocation2 + $0x104] ss:$8 sps:$4 sm:$0xff]  }
 0x54e   : > { %5449 = vmatpush1.bf16.msra.mxu0 %v11927_v38  ;;  %v11984_v38 = vld [vmem:[#allocation2 + $0x100] ss:$8 sps:$4 sm:$0xff]  }
 0x54f   : > { %5450 = vmatprep.subr.bf16.mxu0 %v11932_v56  ;;  %v11989_v56 = vld [vmem:[#allocation2 + $0x114] ss:$8 sps:$4 sm:$0xff]  }
 0x552   : > { %5451 = vmatpush1.bf16.msra.mxu0 %v11930_v59  ;;  %v11987_v59 = vld [vmem:[#allocation2 + $0x110] ss:$8 sps:$4 sm:$0xff]  }
 0x553   : > { %5452 = vmatprep.subr.bf16.mxu0 %v11935_v44  ;;  %v11992_v44 = vld [vmem:[#allocation2 + $0x124] ss:$8 sps:$4 sm:$0xff]  }
 0x556   : > { %5453 = vmatpush1.bf16.msra.mxu0 %v11933_v24  ;;  %v11990_v24 = vld [vmem:[#allocation2 + $0x120] ss:$8 sps:$4 sm:$0xff]  }
 0x557   : > { %6005 = vmatprep.subr.bf16.mxu0 %v11938_v36  ;;  %v11995_v36 = vld [vmem:[#allocation2 + $0x134] ss:$8 sps:$4 sm:$0xff]  }
 0x559   : > { %5455 = vmatmul.mubr.bf16.vlgmr.msra.gmra.mrb[8].mxu0 %v4848_v58  ;;  %v11956_v58 = vld [vmem:[#allocation2 + $0x64] ss:$8 sps:$4 sm:$0xff]  }
 0x55a   : > { %6006 = vmatpush1.bf16.msra.mxu0 %v11936_v28  ;;  %6037 = vmatprep.mubr.bf16.mxu0 %v5498_v29  ;;  %v11954_v29 = vld [vmem:[#allocation2 + $0x60] ss:$8 sps:$4 sm:$0xff]   ;;  %v11993_v28 = vld [vmem:[#allocation2 + $0x130] ss:$8 sps:$4 sm:$0xff]  }
 0x55b   : > { %6007 = vmatprep.subr.bf16.mxu0 %v11941_v35  ;;  %v11998_v35 = vld [vmem:[#allocation2 + $0x144] ss:$8 sps:$4 sm:$0xff]  }
 0x55e   : > { %6008 = vmatpush1.bf16.msra.mxu0 %v11939_v7  ;;  %v11996_v7 = vld [vmem:[#allocation2 + $0x140] ss:$8 sps:$4 sm:$0xff]  }
 0x55f   : > { %6009 = vmatprep.subr.bf16.mxu0 %v11944_v12  ;;  %v12004_v12 = vld [vmem:[#allocation2 + $0x164] ss:$8 sps:$4 sm:$0xff]  }
 0x562   : > { %6010 = vmatpush1.bf16.msra.mxu0 %v11942_v26  ;;  %v12007_v26 = vld [vmem:[#allocation2 + $0x174] ss:$8 sps:$4 sm:$0xff]  }
 0x563   : > { %6011 = vmatprep.subr.bf16.mxu0 %v11947_v5  ;;  %v12005_v5 = vld [vmem:[#allocation2 + $0x170] ss:$8 sps:$4 sm:$0xff]  }
 0x566   : > { %6012 = vmatpush1.bf16.msra.mxu0 %v11945_v25  ;;  %v12010_v25 = vld [vmem:[#allocation2 + $0x184] ss:$8 sps:$4 sm:$0xff]  }
 0x567   : > { %6013 = vmatprep.subr.bf16.mxu0 %v11950_v37  ;;  %v12008_v37 = vld [vmem:[#allocation2 + $0x180] ss:$8 sps:$4 sm:$0xff]  }
 0x56a   : > { %6014 = vmatpush1.bf16.msra.mxu0 %v11948_v22  ;;  %v12013_v22 = vld [vmem:[#allocation2 + $0x194] ss:$8 sps:$4 sm:$0xff]  }
 0x56b   : > { %6015 = vmatprep.subr.bf16.mxu0 %v11953_v11  ;;  %v12011_v11 = vld [vmem:[#allocation2 + $0x190] ss:$8 sps:$4 sm:$0xff]  }
 0x56e   : > { %6016 = vmatpush1.bf16.msra.mxu0 %v11951_v18  ;;  %v12016_v18 = vld [vmem:[#allocation2 + $0x1a4] ss:$8 sps:$4 sm:$0xff]  }
 0x56f   : > { %6017 = vmatprep.subr.bf16.mxu0 %v11956_v58  ;;  %v12014_v58 = vld [vmem:[#allocation2 + $0x1a0] ss:$8 sps:$4 sm:$0xff]  }
 0x572   : > { %6018 = vmatpush1.bf16.msra.mxu0 %v11954_v29  ;;  %v12019_v29 = vld [vmem:[#allocation2 + $0x1b4] ss:$8 sps:$4 sm:$0xff]  }
 0x573   : > { %6019 = vmatprep.subr.bf16.mxu0 %v11959_v34  ;;  %v12017_v34 = vld [vmem:[#allocation2 + $0x1b0] ss:$8 sps:$4 sm:$0xff]  }
 0x576   : > { %6020 = vmatpush1.bf16.msra.mxu0 %v11957_v20  ;;  %v12022_v20 = vld [vmem:[#allocation2 + $0x1c4] ss:$8 sps:$4 sm:$0xff]  }
 0x577   : > { %6021 = vmatprep.subr.bf16.mxu0 %v11962_v1  ;;  %v12020_v1 = vld [vmem:[#allocation2 + $0x1c0] ss:$8 sps:$4 sm:$0xff]  }
 0x57a   : > { %6022 = vmatpush1.bf16.msra.mxu0 %v11960_v6  ;;  %v12025_v6 = vld [vmem:[#allocation2 + $0x1d4] ss:$8 sps:$4 sm:$0xff]  }
 0x57b   : > { %6023 = vmatprep.subr.bf16.mxu0 %v11965_v27  ;;  %v12023_v27 = vld [vmem:[#allocation2 + $0x1d0] ss:$8 sps:$4 sm:$0xff]  }
 0x57e   : > { %6024 = vmatpush1.bf16.msra.mxu0 %v11963_v62  ;;  %v12028_v62 = vld [vmem:[#allocation2 + $0x1e4] ss:$8 sps:$4 sm:$0xff]  }
 0x57f   : > { %6025 = vmatprep.subr.bf16.mxu0 %v11968_v31  ;;  %v12026_v31 = vld [vmem:[#allocation2 + $0x1e0] ss:$8 sps:$4 sm:$0xff]  }
 0x582   : > { %6026 = vmatpush1.bf16.msra.mxu0 %v11966_v13  ;;  %v12031_v13 = vld [vmem:[#allocation2 + $0x1f4] ss:$8 sps:$4 sm:$0xff]  }
 0x583   : > { %6027 = vmatprep.subr.bf16.mxu0 %v11971_v30  ;;  %v12029_v30 = vld [vmem:[#allocation2 + $0x1f0] ss:$8 sps:$4 sm:$0xff]  }
 0x586   : > { %6028 = vmatpush1.bf16.msra.mxu0 %v11969_v8  ;;  %v12034_v8 = vld [vmem:[#allocation2 + $0x204] ss:$8 sps:$4 sm:$0xff]  }
 0x587   : > { %6029 = vmatprep.subr.bf16.mxu0 %v11974_v54  ;;  %v12032_v54 = vld [vmem:[#allocation2 + $0x200] ss:$8 sps:$4 sm:$0xff]  }
 0x58a   : > { %6030 = vmatpush1.bf16.msra.mxu0 %v11972_v0  ;;  %v12037_v0 = vld [vmem:[#allocation2 + $0x214] ss:$8 sps:$4 sm:$0xff]  }
 0x58b   : > { %6031 = vmatprep.subr.bf16.mxu0 %v11977_v3  ;;  %v12035_v3 = vld [vmem:[#allocation2 + $0x210] ss:$8 sps:$4 sm:$0xff]  }
 0x58e   : > { %6032 = vmatpush1.bf16.msra.mxu0 %v11975_v61  ;;  %v12040_v61 = vld [vmem:[#allocation2 + $0x224] ss:$8 sps:$4 sm:$0xff]  }
 0x58f   : > { %6033 = vmatprep.subr.bf16.mxu0 %v11980_v33  ;;  %v12038_v33 = vld [vmem:[#allocation2 + $0x220] ss:$8 sps:$4 sm:$0xff]  }
 0x592   : > { %6034 = vmatpush1.bf16.msra.mxu0 %v11978_v43  ;;  %v12043_v43 = vld [vmem:[#allocation2 + $0x234] ss:$8 sps:$4 sm:$0xff]  }
 0x593   : > { %6035 = vmatprep.subr.bf16.mxu0 %v11983_v32  ;;  %v12041_v32 = vld [vmem:[#allocation2 + $0x230] ss:$8 sps:$4 sm:$0xff]  }
 0x596   : > { %6036 = vmatpush1.bf16.msra.mxu0 %v11981_v9  ;;  %v12046_v9 = vld [vmem:[#allocation2 + $0x244] ss:$8 sps:$4 sm:$0xff]  }
 0x597   : > { %6048 = vmatprep.subr.bf16.mxu0 %v11986_v57  ;;  %v12044_v57 = vld [vmem:[#allocation2 + $0x240] ss:$8 sps:$4 sm:$0xff]  }
 0x599   : > { %6038 = vmatmul.mubr.bf16.vlgmr.msra.gmra.mrb[8].mxu0 %v5497_v63  ;;  %v11999_v63 = vld [vmem:[#allocation2 + $0x150] ss:$8 sps:$4 sm:$0xff]  }
 0x59a   : > { %6049 = vmatpush1.bf16.msra.mxu0 %v11984_v38  ;;  %6080 = vmatprep.mubr.bf16.mxu0 %v5500_v49  ;;  %v12002_v49 = vld [vmem:[#allocation2 + $0x160] ss:$8 sps:$4 sm:$0xff]   ;;  %v12052_v38 = vld [vmem:[#allocation2 + $0x264] ss:$8 sps:$4 sm:$0xff]  }
 0x59b   : > { %6050 = vmatprep.subr.bf16.mxu0 %v11989_v56  ;;  %v12055_v56 = vld [vmem:[#allocation2 + $0x274] ss:$8 sps:$4 sm:$0xff]  }
 0x59e   : > { %6051 = vmatpush1.bf16.msra.mxu0 %v11987_v59  ;;  %v12053_v59 = vld [vmem:[#allocation2 + $0x270] ss:$8 sps:$4 sm:$0xff]  }
 0x59f   : > { %6052 = vmatprep.subr.bf16.mxu0 %v11992_v44  ;;  %v12058_v44 = vld [vmem:[#allocation2 + $0x284] ss:$8 sps:$4 sm:$0xff]  }
 0x5a2   : > { %6053 = vmatpush1.bf16.msra.mxu0 %v11990_v24  ;;  %v12056_v24 = vld [vmem:[#allocation2 + $0x280] ss:$8 sps:$4 sm:$0xff]  }
 0x5a3   : > { %6054 = vmatprep.subr.bf16.mxu0 %v11995_v36  ;;  %v12061_v36 = vld [vmem:[#allocation2 + $0x294] ss:$8 sps:$4 sm:$0xff]  }
 0x5a6   : > { %6055 = vmatpush1.bf16.msra.mxu0 %v11993_v28  ;;  %v12059_v28 = vld [vmem:[#allocation2 + $0x290] ss:$8 sps:$4 sm:$0xff]  }
 0x5a7   : > { %6056 = vmatprep.subr.bf16.mxu0 %v11998_v35  ;;  %v12064_v35 = vld [vmem:[#allocation2 + $0x2a4] ss:$8 sps:$4 sm:$0xff]  }
 0x5aa   : > { %6057 = vmatpush1.bf16.msra.mxu0 %v11996_v7  ;;  %v12062_v7 = vld [vmem:[#allocation2 + $0x2a0] ss:$8 sps:$4 sm:$0xff]  }
 0x5ab   : > { %6058 = vmatprep.subr.bf16.mxu0 %v12001_v2  ;;  %v12067_v2 = vld [vmem:[#allocation2 + $0x2b4] ss:$8 sps:$4 sm:$0xff]  }
 0x5ae   : > { %6059 = vmatpush1.bf16.msra.mxu0 %v11999_v63  ;;  %v12065_v63 = vld [vmem:[#allocation2 + $0x2b0] ss:$8 sps:$4 sm:$0xff]  }
 0x5af   : > { %6060 = vmatprep.subr.bf16.mxu0 %v12004_v12  ;;  %v12070_v12 = vld [vmem:[#allocation2 + $0x2c4] ss:$8 sps:$4 sm:$0xff]  }
 0x5b2   : > { %6061 = vmatpush1.bf16.msra.mxu0 %v12002_v49  ;;  %v12068_v49 = vld [vmem:[#allocation2 + $0x2c0] ss:$8 sps:$4 sm:$0xff]  }
 0x5b3   : > { %6062 = vmatprep.subr.bf16.mxu0 %v12007_v26  ;;  %v12073_v26 = vld [vmem:[#allocation2 + $0x2d4] ss:$8 sps:$4 sm:$0xff]  }
 0x5b6   : > { %6063 = vmatpush1.bf16.msra.mxu0 %v12005_v5  ;;  %v12071_v5 = vld [vmem:[#allocation2 + $0x2d0] ss:$8 sps:$4 sm:$0xff]  }
 0x5b7   : > { %6064 = vmatprep.subr.bf16.mxu0 %v12010_v25  ;;  %v12076_v25 = vld [vmem:[#allocation2 + $0x2e4] ss:$8 sps:$4 sm:$0xff]  }
 0x5ba   : > { %6065 = vmatpush1.bf16.msra.mxu0 %v12008_v37  ;;  %v12074_v37 = vld [vmem:[#allocation2 + $0x2e0] ss:$8 sps:$4 sm:$0xff]  }
 0x5bb   : > { %6066 = vmatprep.subr.bf16.mxu0 %v12013_v22  ;;  %v12079_v22 = vld [vmem:[#allocation2 + $0x2f4] ss:$8 sps:$4 sm:$0xff]  }
 0x5be   : > { %6067 = vmatpush1.bf16.msra.mxu0 %v12011_v11  ;;  %v12077_v11 = vld [vmem:[#allocation2 + $0x2f0] ss:$8 sps:$4 sm:$0xff]  }
 0x5bf   : > { %6068 = vmatprep.subr.bf16.mxu0 %v12016_v18  ;;  %v12082_v18 = vld [vmem:[#allocation2 + $0x604] ss:$8 sps:$4 sm:$0xff]  }
 0x5c2   : > { %6069 = vmatpush1.bf16.msra.mxu0 %v12014_v58  ;;  %v12080_v58 = vld [vmem:[#allocation2 + $0x600] ss:$8 sps:$4 sm:$0xff]  }
 0x5c3   : > { %6070 = vmatprep.subr.bf16.mxu0 %v12019_v29  ;;  %v12085_v29 = vld [vmem:[#allocation2 + $0x614] ss:$8 sps:$4 sm:$0xff]  }
 0x5c6   : > { %6071 = vmatpush1.bf16.msra.mxu0 %v12017_v34  ;;  %v12083_v34 = vld [vmem:[#allocation2 + $0x610] ss:$8 sps:$4 sm:$0xff]  }
 0x5c7   : > { %6072 = vmatprep.subr.bf16.mxu0 %v12022_v20  ;;  %v12088_v20 = vld [vmem:[#allocation2 + $0x624] ss:$8 sps:$4 sm:$0xff]  }
 0x5ca   : > { %6073 = vmatpush1.bf16.msra.mxu0 %v12020_v1  ;;  %v12086_v1 = vld [vmem:[#allocation2 + $0x620] ss:$8 sps:$4 sm:$0xff]  }
 0x5cb   : > { %6074 = vmatprep.subr.bf16.mxu0 %v12025_v6  ;;  %v12091_v6 = vld [vmem:[#allocation2 + $0x634] ss:$8 sps:$4 sm:$0xff]  }
 0x5ce   : > { %6075 = vmatpush1.bf16.msra.mxu0 %v12023_v27  ;;  %v12089_v27 = vld [vmem:[#allocation2 + $0x630] ss:$8 sps:$4 sm:$0xff]  }
 0x5cf   : > { %6076 = vmatprep.subr.bf16.mxu0 %v12028_v62  ;;  %v12094_v62 = vld [vmem:[#allocation2 + $0x644] ss:$8 sps:$4 sm:$0xff]  }
 0x5d2   : > { %6077 = vmatpush1.bf16.msra.mxu0 %v12026_v31  ;;  %v12092_v31 = vld [vmem:[#allocation2 + $0x640] ss:$8 sps:$4 sm:$0xff]  }
 0x5d3   : > { %6078 = vmatprep.subr.bf16.mxu0 %v12031_v13  ;;  %v12100_v13 = vld [vmem:[#allocation2 + $0x664] ss:$8 sps:$4 sm:$0xff]  }
 0x5d6   : > { %6079 = vmatpush1.bf16.msra.mxu0 %v12029_v30  ;;  %v12103_v30 = vld [vmem:[#allocation2 + $0x674] ss:$8 sps:$4 sm:$0xff]  }
 0x5d7   : > { %6091 = vmatprep.subr.bf16.mxu0 %v12034_v8  ;;  %v12101_v8 = vld [vmem:[#allocation2 + $0x670] ss:$8 sps:$4 sm:$0xff]  }
 0x5d9   : > { %6081 = vmatmul.mubr.bf16.vlgmr.msra.gmra.mrb[8].mxu0 %v5499_v50  ;;  %v12047_v50 = vld [vmem:[#allocation2 + $0x250] ss:$8 sps:$4 sm:$0xff]  }
 0x5da   : > { %6092 = vmatpush1.bf16.msra.mxu0 %v12032_v54  ;;  %6123 = vmatprep.mubr.bf16.mxu0 %v5518_v23  ;;  %v12050_v23 = vld [vmem:[#allocation2 + $0x260] ss:$8 sps:$4 sm:$0xff]   ;;  %v12106_v54 = vld [vmem:[#allocation2 + $0x684] ss:$8 sps:$4 sm:$0xff]  }
 0x5db   : > { %6093 = vmatprep.subr.bf16.mxu0 %v12037_v0  ;;  %v12104_v0 = vld [vmem:[#allocation2 + $0x680] ss:$8 sps:$4 sm:$0xff]  }
 0x5de   : > { %6094 = vmatpush1.bf16.msra.mxu0 %v12035_v3  ;;  %v12109_v3 = vld [vmem:[#allocation2 + $0x694] ss:$8 sps:$4 sm:$0xff]  }
 0x5df   : > { %6095 = vmatprep.subr.bf16.mxu0 %v12040_v61  ;;  %v12107_v61 = vld [vmem:[#allocation2 + $0x690] ss:$8 sps:$4 sm:$0xff]  }
 0x5e2   : > { %6096 = vmatpush1.bf16.msra.mxu0 %v12038_v33  ;;  %v12112_v33 = vld [vmem:[#allocation2 + $0x6a4] ss:$8 sps:$4 sm:$0xff]  }
 0x5e3   : > { %6097 = vmatprep.subr.bf16.mxu0 %v12043_v43  ;;  %v12110_v43 = vld [vmem:[#allocation2 + $0x6a0] ss:$8 sps:$4 sm:$0xff]  }
 0x5e6   : > { %6098 = vmatpush1.bf16.msra.mxu0 %v12041_v32  ;;  %v12115_v32 = vld [vmem:[#allocation2 + $0x6b4] ss:$8 sps:$4 sm:$0xff]  }
 0x5e7   : > { %6099 = vmatprep.subr.bf16.mxu0 %v12046_v9  ;;  %v12113_v9 = vld [vmem:[#allocation2 + $0x6b0] ss:$8 sps:$4 sm:$0xff]  }
 0x5ea   : > { %6100 = vmatpush1.bf16.msra.mxu0 %v12044_v57  ;;  %v12118_v57 = vld [vmem:[#allocation2 + $0x6c4] ss:$8 sps:$4 sm:$0xff]  }
 0x5eb   : > { %6101 = vmatprep.subr.bf16.mxu0 %v12049_v4  ;;  %v12116_v4 = vld [vmem:[#allocation2 + $0x6c0] ss:$8 sps:$4 sm:$0xff]  }
 0x5ee   : > { %6102 = vmatpush1.bf16.msra.mxu0 %v12047_v50  ;;  %v12121_v50 = vld [vmem:[#allocation2 + $0x6d4] ss:$8 sps:$4 sm:$0xff]  }
 0x5ef   : > { %6103 = vmatprep.subr.bf16.mxu0 %v12052_v38  ;;  %v12119_v38 = vld [vmem:[#allocation2 + $0x6d0] ss:$8 sps:$4 sm:$0xff]  }
 0x5f2   : > { %6104 = vmatpush1.bf16.msra.mxu0 %v12050_v23  ;;  %v12124_v23 = vld [vmem:[#allocation2 + $0x6e4] ss:$8 sps:$4 sm:$0xff]  }
 0x5f3   : > { %6105 = vmatprep.subr.bf16.mxu0 %v12055_v56  ;;  %v12122_v56 = vld [vmem:[#allocation2 + $0x6e0] ss:$8 sps:$4 sm:$0xff]  }
 0x5f6   : > { %6106 = vmatpush1.bf16.msra.mxu0 %v12053_v59  ;;  %v12127_v59 = vld [vmem:[#allocation2 + $0x6f4] ss:$8 sps:$4 sm:$0xff]  }
 0x5f7   : > { %6107 = vmatprep.subr.bf16.mxu0 %v12058_v44  ;;  %v12125_v44 = vld [vmem:[#allocation2 + $0x6f0] ss:$8 sps:$4 sm:$0xff]  }
 0x5fa   : > { %6108 = vmatpush1.bf16.msra.mxu0 %v12056_v24  ;;  %v12130_v24 = vld [vmem:[#allocation2 + $0x704] ss:$8 sps:$4 sm:$0xff]  }
 0x5fb   : > { %6109 = vmatprep.subr.bf16.mxu0 %v12061_v36  ;;  %v12128_v36 = vld [vmem:[#allocation2 + $0x700] ss:$8 sps:$4 sm:$0xff]  }
 0x5fe   : > { %6110 = vmatpush1.bf16.msra.mxu0 %v12059_v28  ;;  %v12133_v28 = vld [vmem:[#allocation2 + $0x714] ss:$8 sps:$4 sm:$0xff]  }
 0x5ff   : > { %6111 = vmatprep.subr.bf16.mxu0 %v12064_v35  ;;  %v12224_v35 = vld [vmem:[#allocation4 + $0x300] ss:$8 sps:$4 sm:$0xff]  }
 0x602   : > { %6112 = vmatpush1.bf16.msra.mxu0 %v12062_v7  ;;  %v12226_v7 = vld [vmem:[#allocation4 + $0x304] ss:$8 sps:$4 sm:$0xff]  }
 0x603   : > { %6113 = vmatprep.subr.bf16.mxu0 %v12067_v2  ;;  %v12131_v2 = vld [vmem:[#allocation2 + $0x710] ss:$8 sps:$4 sm:$0xff]   ;;  %7889 = vmatprep.subr.bf16.mxu1 %v12226_v7  ;;  %v12182_v7 = vld [vmem:[#allocation2 + $0x820] ss:$8 sps:$4 sm:$0xff]  }
 0x604   : > { %7890 = vmatpush1.bf16.msra.mxu1 %v12224_v35  ;;  %v12184_v35 = vld [vmem:[#allocation2 + $0x824] ss:$8 sps:$4 sm:$0xff]  }
 0x606   : > { %6114 = vmatpush1.bf16.msra.mxu0 %v12065_v63  ;;  %v12229_v63 = vld [vmem:[#allocation4 + $0x314] ss:$8 sps:$4 sm:$0xff]  }
 0x607   : > { %6115 = vmatprep.subr.bf16.mxu0 %v12070_v12  ;;  %v12136_v12 = vld [vmem:[#allocation2 + $0x724] ss:$8 sps:$4 sm:$0xff]   ;;  %7891 = vmatprep.subr.bf16.mxu1 %v12229_v63  ;;  %v12185_v63 = vld [vmem:[#allocation2 + $0x830] ss:$8 sps:$4 sm:$0xff]  }
 0x60a   : > { %6116 = vmatpush1.bf16.msra.mxu0 %v12068_v49  ;;  %v12227_v49 = vld [vmem:[#allocation4 + $0x310] ss:$8 sps:$4 sm:$0xff]  }
 0x60b   : > { %6117 = vmatprep.subr.bf16.mxu0 %v12073_v26  ;;  %v12232_v26 = vld [vmem:[#allocation4 + $0x324] ss:$8 sps:$4 sm:$0xff]   ;;  %7892 = vmatpush1.bf16.msra.mxu1 %v12227_v49  ;;  %v12188_v49 = vld [vmem:[#allocation2 + $0x840] ss:$8 sps:$4 sm:$0xff]  }
 0x60c   : > { %7893 = vmatprep.subr.bf16.mxu1 %v12232_v26  ;;  %v12199_v26 = vld [vmem:[#allocation2 + $0x874] ss:$8 sps:$4 sm:$0xff]  }
 0x60e   : > { %6118 = vmatpush1.bf16.msra.mxu0 %v12071_v5  ;;  %v12134_v5 = vld [vmem:[#allocation2 + $0x720] ss:$8 sps:$4 sm:$0xff]  }
 0x60f   : > { %6119 = vmatprep.subr.bf16.mxu0 %v12076_v25  ;;  %v12137_v25 = vld [vmem:[#allocation2 + $0x730] ss:$8 sps:$4 sm:$0xff]   ;;  %7894 = vmatpush1.bf16.msra.mxu1 %v12230_v40  ;;  %v12200_v40 = vld [vmem:[#allocation2 + $0x880] ss:$8 sps:$4 sm:$0xff]  }
 0x612   : > { %6120 = vmatpush1.bf16.msra.mxu0 %v12074_v37  ;;  %v12233_v37 = vld [vmem:[#allocation4 + $0x330] ss:$8 sps:$4 sm:$0xff]  }
 0x613   : > { %6121 = vmatprep.subr.bf16.mxu0 %v12079_v22  ;;  %v12238_v22 = vld [vmem:[#allocation4 + $0x344] ss:$8 sps:$4 sm:$0xff]  }
 0x616   : > { %6122 = vmatpush1.bf16.msra.mxu0 %v12077_v11  ;;  %v12140_v11 = vld [vmem:[#allocation2 + $0x740] ss:$8 sps:$4 sm:$0xff]  }
 0x617   : > { %6747 = vmatprep.subr.bf16.mxu0 %v12082_v18  ;;  %v12145_v18 = vld [vmem:[#allocation2 + $0x754] ss:$8 sps:$4 sm:$0xff]  }
 0x619   : > { %6124 = vmatmul.mubr.bf16.vlgmr.msra.gmra.mrb[8].mxu0 %v5517_v10  ;;  %v12095_v10 = vld [vmem:[#allocation2 + $0x650] ss:$8 sps:$4 sm:$0xff]  }
 0x61a   : > { %6748 = vmatpush1.bf16.msra.mxu0 %v12080_v58  ;;  %6779 = vmatprep.mubr.bf16.mxu0 %v6248_v41  ;;  %v12098_v41 = vld [vmem:[#allocation2 + $0x660] ss:$8 sps:$4 sm:$0xff]  }
 0x61b   : > { %6749 = vmatprep.subr.bf16.mxu0 %v12085_v29  ;;  %v12236_v58 = vld [vmem:[#allocation4 + $0x340] ss:$8 sps:$4 sm:$0xff]   ;;  %v12241_v29 = vld [vmem:[#allocation4 + $0x354] ss:$8 sps:$4 sm:$0xff]  }
 0x61e   : > { %6750 = vmatpush1.bf16.msra.mxu0 %v12083_v34  ;;  %v12143_v34 = vld [vmem:[#allocation2 + $0x750] ss:$8 sps:$4 sm:$0xff]  }
 0x61f   : > { %6751 = vmatprep.subr.bf16.mxu0 %v12088_v20  ;;  %v12148_v20 = vld [vmem:[#allocation2 + $0x764] ss:$8 sps:$4 sm:$0xff]  }
 0x622   : > { %6752 = vmatpush1.bf16.msra.mxu0 %v12086_v1  ;;  %v12239_v1 = vld [vmem:[#allocation4 + $0x350] ss:$8 sps:$4 sm:$0xff]  }
 0x623   : > { %6753 = vmatprep.subr.bf16.mxu0 %v12091_v6  ;;  %v12244_v6 = vld [vmem:[#allocation4 + $0x364] ss:$8 sps:$4 sm:$0xff]  }
 0x626   : > { %6754 = vmatpush1.bf16.msra.mxu0 %v12089_v27  ;;  %v12146_v27 = vld [vmem:[#allocation2 + $0x760] ss:$8 sps:$4 sm:$0xff]  }
 0x627   : > { %6755 = vmatprep.subr.bf16.mxu0 %v12094_v62  ;;  %v12151_v62 = vld [vmem:[#allocation2 + $0x774] ss:$8 sps:$4 sm:$0xff]  }
 0x62a   : > { %6756 = vmatpush1.bf16.msra.mxu0 %v12092_v31  ;;  %v12242_v31 = vld [vmem:[#allocation4 + $0x360] ss:$8 sps:$4 sm:$0xff]  }
 0x62b   : > { %6757 = vmatprep.subr.bf16.mxu0 %v12097_v55  ;;  %v12247_v55 = vld [vmem:[#allocation4 + $0x374] ss:$8 sps:$4 sm:$0xff]  }
 0x62e   : > { %6758 = vmatpush1.bf16.msra.mxu0 %v12095_v10  ;;  %v12149_v10 = vld [vmem:[#allocation2 + $0x770] ss:$8 sps:$4 sm:$0xff]  }
 0x62f   : > { %6759 = vmatprep.subr.bf16.mxu0 %v12100_v13  ;;  %v12154_v13 = vld [vmem:[#allocation2 + $0x784] ss:$8 sps:$4 sm:$0xff]  }
 0x632   : > { %6760 = vmatpush1.bf16.msra.mxu0 %v12098_v41  ;;  %v12245_v41 = vld [vmem:[#allocation4 + $0x370] ss:$8 sps:$4 sm:$0xff]  }
 0x633   : > { %6761 = vmatprep.subr.bf16.mxu0 %v12103_v30  ;;  %v12250_v30 = vld [vmem:[#allocation4 + $0x384] ss:$8 sps:$4 sm:$0xff]  }
 0x636   : > { %6762 = vmatpush1.bf16.msra.mxu0 %v12101_v8  ;;  %v12152_v8 = vld [vmem:[#allocation2 + $0x780] ss:$8 sps:$4 sm:$0xff]  }
 0x637   : > { %6763 = vmatprep.subr.bf16.mxu0 %v12106_v54  ;;  %v12157_v54 = vld [vmem:[#allocation2 + $0x794] ss:$8 sps:$4 sm:$0xff]  }
 0x63a   : > { %6764 = vmatpush1.bf16.msra.mxu0 %v12104_v0  ;;  %v12248_v0 = vld [vmem:[#allocation4 + $0x380] ss:$8 sps:$4 sm:$0xff]  }
 0x63b   : > { %6765 = vmatprep.subr.bf16.mxu0 %v12109_v3  ;;  %v12155_v3 = vld [vmem:[#allocation2 + $0x790] ss:$8 sps:$4 sm:$0xff]  }
 0x63e   : > { %6766 = vmatpush1.bf16.msra.mxu0 %v12107_v61  ;;  %v12160_v61 = vld [vmem:[#allocation2 + $0x7a4] ss:$8 sps:$4 sm:$0xff]  }
 0x63f   : > { %6767 = vmatprep.subr.bf16.mxu0 %v12112_v33  ;;  %v12158_v33 = vld [vmem:[#allocation2 + $0x7a0] ss:$8 sps:$4 sm:$0xff]  }
 0x642   : > { %6768 = vmatpush1.bf16.msra.mxu0 %v12110_v43  ;;  %v12163_v43 = vld [vmem:[#allocation2 + $0x7b4] ss:$8 sps:$4 sm:$0xff]  }
 0x643   : > { %6769 = vmatprep.subr.bf16.mxu0 %v12115_v32  ;;  %v12161_v32 = vld [vmem:[#allocation2 + $0x7b0] ss:$8 sps:$4 sm:$0xff]  }
 0x646   : > { %6770 = vmatpush1.bf16.msra.mxu0 %v12113_v9  ;;  %v12166_v9 = vld [vmem:[#allocation2 + $0x7c4] ss:$8 sps:$4 sm:$0xff]  }
 0x647   : > { %6771 = vmatprep.subr.bf16.mxu0 %v12118_v57  ;;  %v12164_v57 = vld [vmem:[#allocation2 + $0x7c0] ss:$8 sps:$4 sm:$0xff]  }
 0x64a   : > { %6772 = vmatpush1.bf16.msra.mxu0 %v12116_v4  ;;  %v12169_v4 = vld [vmem:[#allocation2 + $0x7d4] ss:$8 sps:$4 sm:$0xff]  }
 0x64b   : > { %6773 = vmatprep.subr.bf16.mxu0 %v12121_v50  ;;  %v12167_v50 = vld [vmem:[#allocation2 + $0x7d0] ss:$8 sps:$4 sm:$0xff]  }
 0x64e   : > { %6774 = vmatpush1.bf16.msra.mxu0 %v12119_v38  ;;  %v12172_v38 = vld [vmem:[#allocation2 + $0x7e4] ss:$8 sps:$4 sm:$0xff]  }
 0x64f   : > { %6775 = vmatprep.subr.bf16.mxu0 %v12124_v23  ;;  %v12170_v23 = vld [vmem:[#allocation2 + $0x7e0] ss:$8 sps:$4 sm:$0xff]  }
 0x652   : > { %6776 = vmatpush1.bf16.msra.mxu0 %v12122_v56  ;;  %v12175_v56 = vld [vmem:[#allocation2 + $0x7f4] ss:$8 sps:$4 sm:$0xff]  }
 0x653   : > { %6777 = vmatprep.subr.bf16.mxu0 %v12127_v59  ;;  %v12173_v59 = vld [vmem:[#allocation2 + $0x7f0] ss:$8 sps:$4 sm:$0xff]  }
 0x656   : > { %6778 = vmatpush1.bf16.msra.mxu0 %v12125_v44  ;;  %v12178_v44 = vld [vmem:[#allocation2 + $0x804] ss:$8 sps:$4 sm:$0xff]  }
 0x657   : > { %6790 = vmatprep.subr.bf16.mxu0 %v12130_v24  ;;  %v12176_v24 = vld [vmem:[#allocation2 + $0x800] ss:$8 sps:$4 sm:$0xff]  }
 0x659   : > { %6780 = vmatmul.mubr.bf16.vlgmr.msra.gmra.mrb[8].mxu0 %v6247_v51  ;;  %v12235_v51 = vld [vmem:[#allocation4 + $0x334] ss:$8 sps:$4 sm:$0xff]  }
 0x65a   : > { %6791 = vmatpush1.bf16.msra.mxu0 %v12128_v36  ;;  %6822 = vmatprep.mubr.bf16.mxu0 %v6250_v45  ;;  %v12142_v45 = vld [vmem:[#allocation2 + $0x744] ss:$8 sps:$4 sm:$0xff]   ;;  %v12181_v36 = vld [vmem:[#allocation2 + $0x814] ss:$8 sps:$4 sm:$0xff]  }
 0x65b   : > { %6792 = vmatprep.subr.bf16.mxu0 %v12133_v28  ;;  %7895 = vmatprep.subr.bf16.mxu1 %v12235_v51  ;;  %v12179_v28 = vld [vmem:[#allocation2 + $0x810] ss:$8 sps:$4 sm:$0xff]   ;;  %v12205_v51 = vld [vmem:[#allocation2 + $0x894] ss:$8 sps:$4 sm:$0xff]  }
 0x65c   : > { %7896 = vmatpush1.bf16.msra.mxu1 %v12233_v37  ;;  %v12206_v37 = vld [vmem:[#allocation2 + $0x8a0] ss:$8 sps:$4 sm:$0xff]  }
 0x65d   : > { %7897 = vmatprep.subr.bf16.mxu1 %v12238_v22  ;;  %v12211_v22 = vld [vmem:[#allocation2 + $0x8b4] ss:$8 sps:$4 sm:$0xff]  }
 0x65e   : > { %6793 = vmatpush1.bf16.msra.mxu0 %v12131_v2  ;;  %v12187_v2 = vld [vmem:[#allocation2 + $0x834] ss:$8 sps:$4 sm:$0xff]  }
 0x65f   : > { %6794 = vmatprep.subr.bf16.mxu0 %v12136_v12  ;;  %v12190_v12 = vld [vmem:[#allocation2 + $0x844] ss:$8 sps:$4 sm:$0xff]  }
 0x660   : > { %7898 = vmatpush1.bf16.msra.mxu1 %v12236_v58  ;;  %v12212_v58 = vld [vmem:[#allocation2 + $0x8c0] ss:$8 sps:$4 sm:$0xff]  }
 0x661   : > { %7899 = vmatprep.subr.bf16.mxu1 %v12241_v29  ;;  %v12217_v29 = vld [vmem:[#allocation2 + $0x8d4] ss:$8 sps:$4 sm:$0xff]  }
 0x662   : > { %6795 = vmatpush1.bf16.msra.mxu0 %v12134_v5  ;;  %v12197_v5 = vld [vmem:[#allocation2 + $0x870] ss:$8 sps:$4 sm:$0xff]  }
 0x663   : > { %6796 = vmatprep.subr.bf16.mxu0 %v12139_v47  ;;  %v12202_v47 = vld [vmem:[#allocation2 + $0x884] ss:$8 sps:$4 sm:$0xff]  }
 0x664   : > { %7900 = vmatpush1.bf16.msra.mxu1 %v12239_v1  ;;  %v12218_v1 = vld [vmem:[#allocation2 + $0x8e0] ss:$8 sps:$4 sm:$0xff]  }
 0x665   : > { %7901 = vmatprep.subr.bf16.mxu1 %v12244_v6  ;;  %v12223_v6 = vld [vmem:[#allocation2 + $0x8f4] ss:$8 sps:$4 sm:$0xff]  }
 0x666   : > { %6797 = vmatpush1.bf16.msra.mxu0 %v12137_v25  ;;  %v12203_v25 = vld [vmem:[#allocation2 + $0x890] ss:$8 sps:$4 sm:$0xff]  }
 0x667   : > { %6798 = vmatprep.subr.bf16.mxu0 %v12142_v45  ;;  %v12208_v45 = vld [vmem:[#allocation2 + $0x8a4] ss:$8 sps:$4 sm:$0xff]  }
 0x668   : > { %7902 = vmatpush1.bf16.msra.mxu1 %v12242_v31  ;;  %v12253_v31 = vld [vmem:[#allocation4 + $0x394] ss:$8 sps:$4 sm:$0xff]  }
 0x669   : > { %7903 = vmatprep.subr.bf16.mxu1 %v12247_v55  ;;  %v12254_v55 = vld [vmem:[#allocation4 + $0x3a0] ss:$8 sps:$4 sm:$0xff]  }
 0x66a   : > { %6799 = vmatpush1.bf16.msra.mxu0 %v12140_v11  ;;  %v12209_v11 = vld [vmem:[#allocation2 + $0x8b0] ss:$8 sps:$4 sm:$0xff]  }
 0x66b   : > { %6800 = vmatprep.subr.bf16.mxu0 %v12145_v18  ;;  %v12214_v18 = vld [vmem:[#allocation2 + $0x8c4] ss:$8 sps:$4 sm:$0xff]  }
 0x66c   : > { %7904 = vmatpush1.bf16.msra.mxu1 %v12245_v41  ;;  %v12257_v41 = vld [vmem:[#allocation4 + $0x3b0] ss:$8 sps:$4 sm:$0xff]  }
 0x66d   : > { %7905 = vmatprep.subr.bf16.mxu1 %v12250_v30  ;;  %v12262_v30 = vld [vmem:[#allocation4 + $0x3c4] ss:$8 sps:$4 sm:$0xff]  }
 0x66e   : > { %6801 = vmatpush1.bf16.msra.mxu0 %v12143_v34  ;;  %v12215_v34 = vld [vmem:[#allocation2 + $0x8d0] ss:$8 sps:$4 sm:$0xff]  }
 0x66f   : > { %6802 = vmatprep.subr.bf16.mxu0 %v12148_v20  ;;  %v12220_v20 = vld [vmem:[#allocation2 + $0x8e4] ss:$8 sps:$4 sm:$0xff]  }
 0x670   : > { %7906 = vmatpush1.bf16.msra.mxu1 %v12248_v0  ;;  %v12263_v0 = vld [vmem:[#allocation4 + $0x3d0] ss:$8 sps:$4 sm:$0xff]  }
 0x671   : > { %7907 = vmatprep.subr.bf16.mxu1 %v12253_v31 }
 0x672   : > { %6803 = vmatpush1.bf16.msra.mxu0 %v12146_v27  ;;  %v12221_v27 = vld [vmem:[#allocation2 + $0x8f0] ss:$8 sps:$4 sm:$0xff]  }
 0x673   : > { %6804 = vmatprep.subr.bf16.mxu0 %v12151_v62  ;;  %v12251_v62 = vld [vmem:[#allocation4 + $0x390] ss:$8 sps:$4 sm:$0xff]  }
 0x674   : > { %7908 = vmatpush1.bf16.msra.mxu1 %v12251_v62 }
 0x676   : > { %6805 = vmatpush1.bf16.msra.mxu0 %v12149_v10  ;;  %v12256_v10 = vld [vmem:[#allocation4 + $0x3a4] ss:$8 sps:$4 sm:$0xff]  }
 0x677   : > { %6806 = vmatprep.subr.bf16.mxu0 %v12154_v13  ;;  %v12259_v13 = vld [vmem:[#allocation4 + $0x3b4] ss:$8 sps:$4 sm:$0xff]   ;;  %7909 = vmatprep.subr.bf16.mxu1 %v12256_v10 }
 0x678   : > { %7910 = vmatpush1.bf16.msra.mxu1 %v12254_v55 }
 0x679   : > { %7911 = vmatprep.subr.bf16.mxu1 %v12259_v13 }
 0x67a   : > { %6807 = vmatpush1.bf16.msra.mxu0 %v12152_v8  ;;  %v12260_v8 = vld [vmem:[#allocation4 + $0x3c0] ss:$8 sps:$4 sm:$0xff]  }
 0x67b   : > { %6808 = vmatprep.subr.bf16.mxu0 %v12157_v54  ;;  %v12265_v54 = vld [vmem:[#allocation4 + $0x3d4] ss:$8 sps:$4 sm:$0xff]  }
 0x67c   : > { %7912 = vmatpush1.bf16.msra.mxu1 %v12257_v41 }
 0x67d   : > { %7913 = vmatprep.subr.bf16.mxu1 %v12262_v30 }
 0x67e   : > { %6809 = vmatpush1.bf16.msra.mxu0 %v12155_v3  ;;  %v12269_v3 = vld [vmem:[#allocation4 + $0x3f0] ss:$8 sps:$4 sm:$0xff]  }
 0x67f   : > { %6810 = vmatprep.subr.bf16.mxu0 %v12160_v61  ;;  %v12274_v61 = vld [vmem:[#allocation4 + $0x404] ss:$8 sps:$4 sm:$0xff]  }
 0x680   : > { %7914 = vmatpush1.bf16.msra.mxu1 %v12260_v8 }
 0x681   : > { %7915 = vmatprep.subr.bf16.mxu1 %v12265_v54 }
 0x682   : > { %6811 = vmatpush1.bf16.msra.mxu0 %v12158_v33  ;;  %v6880_v33 = vld [vmem:[%s15166_s6] sm:$0x3] }
 0x683   : > { %6812 = vmatprep.subr.bf16.mxu0 %v12163_v43  ;;  %v6885_v43 = vrot.slane %v6880_v33, %v13666_v14 }
 0x684   : > { %7916 = vmatpush1.bf16.msra.mxu1 %v12263_v0 }
 0x685   : > { %7917 = vmatprep.subr.bf16.mxu1 %v12268_v48 }
 0x686   : > { %6813 = vmatpush1.bf16.msra.mxu0 %v12161_v32  ;;  %v6889_v32 = vrot.slane %v6880_v33, %v13672_v15 }
 0x687   : > { %6814 = vmatprep.subr.bf16.mxu0 %v12166_v9 }
 0x688   : > { %7918 = vmatpush1.bf16.msra.mxu1 %v12266_v21 }
 0x68a   : > { %6815 = vmatpush1.bf16.msra.mxu0 %v12164_v57 }
 0x68b   : > { %6816 = vmatprep.subr.bf16.mxu0 %v12169_v4 }
 0x68e   : > { %6817 = vmatpush1.bf16.msra.mxu0 %v12167_v50 }
 0x68f   : > { %6818 = vmatprep.subr.bf16.mxu0 %v12172_v38 }
 0x692   : > { %6819 = vmatpush1.bf16.msra.mxu0 %v12170_v23 }
 0x693   : > { %6820 = vmatprep.subr.bf16.mxu0 %v12175_v56 }
 0x696   : > { %6821 = vmatpush1.bf16.msra.mxu0 %v12173_v59 }
 0x697   : > { %6833 = vmatprep.subr.bf16.mxu0 %v12178_v44 }
 0x699   : > { %6823 = vmatmul.mubr.bf16.vlgmr.msra.gmra.mrb[8].mxu0 %v6249_v46  ;;  %v12196_v46 = vld [vmem:[#allocation2 + $0x864] ss:$8 sps:$4 sm:$0xff]  }
 0x69a   : > { %6834 = vmatpush1.bf16.msra.mxu0 %v12176_v24  ;;  %6865 = vmatprep.mubr.bf16.mxu0 %v6260_v42  ;;  %v12194_v42 = vld [vmem:[#allocation2 + $0x860] ss:$8 sps:$4 sm:$0xff]  }
 0x69b   : > { %6835 = vmatprep.subr.bf16.mxu0 %v12181_v36 }
 0x69e   : > { %6836 = vmatpush1.bf16.msra.mxu0 %v12179_v28 }
 0x69f   : > { %6837 = vmatprep.subr.bf16.mxu0 %v12184_v35 }
 0x6a2   : > { %6838 = vmatpush1.bf16.msra.mxu0 %v12182_v7 }
 0x6a3   : > { %6839 = vmatprep.subr.bf16.mxu0 %v12187_v2 }
 0x6a6   : > { %6840 = vmatpush1.bf16.msra.mxu0 %v12185_v63 }
 0x6a7   : > { %6841 = vmatprep.subr.bf16.mxu0 %v12190_v12 }
 0x6aa   : > { %6842 = vmatpush1.bf16.msra.mxu0 %v12188_v49 }
 0x6ab   : > { %6843 = vmatprep.subr.bf16.mxu0 %v12193_v60 }
 0x6ae   : > { %6844 = vmatpush1.bf16.msra.mxu0 %v12191_v17 }
 0x6af   : > { %6845 = vmatprep.subr.bf16.mxu0 %v12196_v46 }
 0x6b2   : > { %6846 = vmatpush1.bf16.msra.mxu0 %v12194_v42 }
 0x6b3   : > { %6847 = vmatprep.subr.bf16.mxu0 %v12199_v26 }
 0x6b6   : > { %6848 = vmatpush1.bf16.msra.mxu0 %v12197_v5 }
 0x6b7   : > { %6849 = vmatprep.subr.bf16.mxu0 %v12202_v47 }
 0x6ba   : > { %6850 = vmatpush1.bf16.msra.mxu0 %v12200_v40 }
 0x6bb   : > { %6851 = vmatprep.subr.bf16.mxu0 %v12205_v51 }
 0x6be   : > { %6852 = vmatpush1.bf16.msra.mxu0 %v12203_v25 }
 0x6bf   : > { %6853 = vmatprep.subr.bf16.mxu0 %v12208_v45 }
 0x6c2   : > { %6854 = vmatpush1.bf16.msra.mxu0 %v12206_v37 }
 0x6c3   : > { %6855 = vmatprep.subr.bf16.mxu0 %v12211_v22 }
 0x6c6   : > { %6856 = vmatpush1.bf16.msra.mxu0 %v12209_v11 }
 0x6c7   : > { %6857 = vmatprep.subr.bf16.mxu0 %v12214_v18 }
 0x6ca   : > { %6858 = vmatpush1.bf16.msra.mxu0 %v12212_v58 }
 0x6cb   : > { %6859 = vmatprep.subr.bf16.mxu0 %v12217_v29 }
 0x6ce   : > { %6860 = vmatpush1.bf16.msra.mxu0 %v12215_v34 }
 0x6cf   : > { %6861 = vmatprep.subr.bf16.mxu0 %v12220_v20 }
 0x6d2   : > { %6862 = vmatpush1.bf16.msra.mxu0 %v12218_v1 }
 0x6d3   : > { %6863 = vmatprep.subr.bf16.mxu0 %v12223_v6 }
 0x6d6   : > { %6864 = vmatpush1.bf16.msra.mxu0 %v12221_v27 }
 0x6d9   : > { %6866 = vmatmul.mubr.bf16.vlgmr.msra.gmra.mrb[8].mxu0 %v6259_v52  ;;  %v12271_v52 = vld [vmem:[#allocation4 + $0x3f4] ss:$8 sps:$4 sm:$0xff]  }
 0x6da   : > { %7919 = vmatprep.subr.bf16.mxu1 %v12271_v52 }
 0x6db   : > { %7920 = vmatpush1.bf16.msra.mxu1 %v12269_v3 }
 0x6dc   : > { %7932 = vmatprep.subr.bf16.mxu1 %v12274_v61 }
 0x7ac   : > { %v6867_v9 = vpop.f32.mrb[8].mxu0 }
 0x7ad   : > { %v6892_v57 = vadd.f32 %v6885_v43, %v6867_v9  ;;  %v6869_v4 = vpop.f32.mrb[9].mxu0 }
 0x7ae   : > { %v6893_v50 = vadd.f32 %v6889_v32, %v6869_v4  ;;  %v6871_v38 = vpop.f32.mrb[10].mxu0 }
 0x7af   : > { %v6896_v23 = vmax.f32 %v6892_v57, 0.0  ;;  %v6894_v56 = vadd.f32 %v6885_v43, %v6871_v38  ;;  %v6873_v59 = vpop.f32.mrb[11].mxu0 }
 0x7b0   : > { %v6897_v44 = vmax.f32 %v6893_v50, 0.0  ;;  %v6895_v24 = vadd.f32 %v6889_v32, %v6873_v59 }
 0x7b1   : > { %v6898_v36 = vmax.f32 %v6894_v56, 0.0 }
 0x7b2   : > { %v14895_v28 = vcombine.low %v6896_v23, %v6897_v44  ;;  %v14897_v35 = vcombine.high %v6896_v23, %v6897_v44  ;;  %v14899_v7 = vcombine.low %v6897_v44, %v6897_v44  ;;  %v14901_v2 = vcombine.high %v6897_v44, %v6897_v44 }
 0x7b3   : > { %v6899_v63 = vmax.f32 %v6895_v24, 0.0 }
 0x7b4   : > { %v14905_v12 = vpack.c.bf16 %v14895_v28, %v14895_v28  ;;  %v14909_v49 = vpack.c.bf16 %v14899_v7, %v14899_v7  ;;  %v14913_v60 = vpack.c.bf16 %v14897_v35, %v14897_v35  ;;  %v14917_v17 = vpack.c.bf16 %v14901_v2, %v14901_v2 }
 0x7b5   : > { %v10677_v46 = vpack.c.bf16 %v14899_v7, %v14895_v28  ;;  %v10678_v42 = vpack.c.bf16 %v14901_v2, %v14897_v35  ;;  %v14923_v26 = vcombine.low %v6898_v36, %v6899_v63  ;;  %v14925_v5 = vcombine.high %v6898_v36, %v6899_v63 }
 0x7b6   : > { %v6929_v47 = vshrl.u32 %v14905_v12, 16  ;;  %v6932_v40 = vshll.u32 %v14905_v12, 16  ;;  %v6936_v51 = vshrl.u32 %v14909_v49, 16  ;;  %v6939_v25 = vshll.u32 %v14909_v49, 16 }
 0x7b7   : > { %v6943_v45 = vshrl.u32 %v14913_v60, 16  ;;  %v6946_v37 = vshll.u32 %v14913_v60, 16  ;;  %v6950_v22 = vshrl.u32 %v14917_v17, 16  ;;  %v6953_v11 = vshll.u32 %v14917_v17, 16 }
 0x7b8   : > { %v6931_v18 = vrot.slane %v6929_v47, 7  ;;  %v6938_v58 = vrot.slane %v6936_v51, 7  ;;  %v7000_v29 = vrot.slane %v6932_v40, 1  ;;  %v7002_v34 = vrot.slane %v6939_v25, 1 }
 0x7b9   : > { %v6945_v20 = vrot.slane %v6943_v45, 7  ;;  %v6952_v1 = vrot.slane %v6950_v22, 7  ;;  %v7004_v6 = vrot.slane %v6946_v37, 1  ;;  %v14943_v27 = vrot.slane %v6953_v11, 1 }
 0x7ba   : > { %v10675_v62 = vcombine.low %v6899_v63, %v6899_v63  ;;  %v10676_v31 = vcombine.high %v6899_v63, %v6899_v63  ;;  %v14947_v55 = vpack.c.bf16 %v14923_v26, %v14923_v26  ;;  %v14951_v10 = vpack.c.bf16 %v14925_v5, %v14925_v5 }
 0x7bb   : > { %v6934_v13 = vor.u32 %v6932_v40, %v6931_v18  ;;  %v6941_v41 = vor.u32 %v6939_v25, %v6938_v58  ;;  %v6948_v30 = vor.u32 %v6946_v37, %v6945_v20  ;;  %v6955_v8 = vor.u32 %v6953_v11, %v6952_v1 }
 0x7bc   : > { %v6925_v54 = vpack.c.bf16 %v10675_v62, %v10675_v62  ;;  %v6927_v0 = vpack.c.bf16 %v10676_v31, %v10676_v31  ;;  %v6957_v48 = vshrl.u32 %v14947_v55, 16  ;;  %v6960_v21 = vshll.u32 %v14947_v55, 16 }
 0x7bd   : > { %v6971_v52 = vshrl.u32 %v14951_v10, 16  ;;  %v6974_v3 = vshll.u32 %v14951_v10, 16  ;;  %v10679_v61 = vpack.c.bf16 %v10675_v62, %v14923_v26  ;;  %v10680_v33 = vpack.c.bf16 %v10676_v31, %v14925_v5 }
 0x7be   : > { %v6959_v43 = vrot.slane %v6957_v48, 7  ;;  %v6964_v32 = vshrl.u32 %v6925_v54, 16  ;;  %v6967_v9 = vshll.u32 %v6925_v54, 16  ;;  %v6978_v57 = vshrl.u32 %v6927_v0, 16 }
 0x7bf   : > { %v6973_v4 = vrot.slane %v6971_v52, 7  ;;  %v6981_v50 = vshll.u32 %v6927_v0, 16  ;;  %v7008_v38 = vrot.slane %v6960_v21, 1  ;;  %v7012_v23 = vrot.slane %v6974_v3, 1 }
 0x7c0   : > { %v6966_v56 = vrot.slane %v6964_v32, 7  ;;  %v6980_v59 = vrot.slane %v6978_v57, 7  ;;  %v7010_v44 = vrot.slane %v6967_v9, 1  ;;  %v6962_v24 = vor.u32 %v6960_v21, %v6959_v43 }
 0x7c1   : > { %v7014_v36 = vrot.slane %v6981_v50, 1  ;;  %v6976_v28 = vor.u32 %v6974_v3, %v6973_v4  ;;  %v6992_v35 = vsel %vm12949_vm2, 0, %v6934_v13  ;;  %v6993_v7 = vsel %vm12949_vm2, 0, %v6941_v41 }
 0x7c2   : > { %v6969_v2 = vor.u32 %v6967_v9, %v6966_v56  ;;  %v6983_v63 = vor.u32 %v6981_v50, %v6980_v59  ;;  %v6994_v26 = vsel %vm12949_vm2, 0, %v6948_v30  ;;  %v6995_v5 = vsel %vm12949_vm2, 0, %v6955_v8 }
 0x7c3   : > { %v6996_v40 = vsel %vm12949_vm2, 0, %v6962_v24  ;;  %v6998_v25 = vsel %vm12949_vm2, 0, %v6976_v28  ;;  %v7056_v37 = vcombine.low %v6992_v35, %v6993_v7  ;;  %v7081_v11 = vcombine.low %v6994_v26, %v6995_v5  ;;  %v12275_v26 = vld [vmem:[#allocation4 + $0x410] ss:$8 sps:$4 sm:$0xff]  }
 0x7c4   : > { %v6997_v18 = vsel %vm12949_vm2, 0, %v6969_v2  ;;  %v6999_v58 = vsel %vm12949_vm2, 0, %v6983_v63  ;;  %v14976_v20 = vrot.slane %v10677_v46, %v12910_v16  ;;  %v7096_v1 = vrot.slane %v10678_v42, %v12910_v16 }
 0x7c5   : > { %v7064_v62 = vrot.slane %v7056_v37, %v12910_v16  ;;  %v7089_v31 = vrot.slane %v7081_v11, %v12910_v16  ;;  %v7106_v55 = vcombine.low %v6996_v40, %v6997_v18  ;;  %v7131_v10 = vcombine.low %v6998_v25, %v6999_v58  ;;  %v12280_v37 = vld [vmem:[#allocation4 + $0x424] ss:$8 sps:$4 sm:$0xff]  }
 0x7c6   : > { %v7121_v13 = vrot.slane %v10679_v61, %v12910_v16  ;;  %v14983_v41 = vrot.slane %v10680_v33, %v12910_v16  ;;  %v10682_v30 = vcombine.low %v14976_v20, %v7096_v1  ;;  %v7001_v39 = vor.u32 %v7000_v29, %v6929_v47 }
 0x7c7   : > { %v7114_v46 = vrot.slane %v7106_v55, %v12910_v16  ;;  %v14990_v42 = vrot.slane %v7131_v10, %v12910_v16  ;;  %v10681_v8 = vcombine.low %v7064_v62, %v7089_v31  ;;  %v7003_v54 = vor.u32 %v7002_v34, %v6936_v51 }
 0x7c8   : > { %v10684_v0 = vcombine.low %v7121_v13, %v14983_v41  ;;  %v14996_v21 = vrot.slane %v10682_v30, %v12910_v16  ;;  %v10784_v3 = vcombine.low %v7096_v1, %v7121_v13  ;;  %v7005_v61 = vor.u32 %v7004_v6, %v6943_v45 }
 0x7c9   : > { %v10683_v12 = vcombine.low %v7114_v46, %v14990_v42  ;;  %v7359_v47 = vrot.slane %v10681_v8, %v12910_v16  ;;  %v10783_v29 = vcombine.low %v7089_v31, %v7114_v46  ;;  %v7007_v33 = vor.u32 %v14943_v27, %v6950_v22  ;;  %v12278_v46 = vld [vmem:[#allocation4 + $0x420] ss:$8 sps:$4 sm:$0xff]  }
 0x7ca   : > { %v15006_v49 = vrot.slane %v10684_v0, %v12910_v16  ;;  %v7009_v51 = vor.u32 %v7008_v38, %v6957_v48  ;;  %v7011_v34 = vor.u32 %v7010_v44, %v6964_v32  ;;  %v7013_v43 = vor.u32 %v7012_v23, %v6971_v52  ;;  %v12272_v52 = vld [vmem:[#allocation4 + $0x400] ss:$8 sps:$4 sm:$0xff]   ;;  %v12277_v38 = vld [vmem:[#allocation4 + $0x414] ss:$8 sps:$4 sm:$0xff]  }
 0x7cb   : > { %v7373_v9 = vrot.slane %v10683_v12, %v12910_v16  ;;  %v7015_v4 = vor.u32 %v7014_v36, %v6978_v57  ;;  %v7024_v60 = vsel %vm13033_vm5, %v7001_v39, 0  ;;  %v7025_v45 = vsel %vm13033_vm5, %v7003_v54, 0 }
 0x7cc   : > { %v7384_v17 = vcombine.high %v14996_v21, %v15006_v49  ;;  %v7383_v22 = vcombine.low %v14996_v21, %v15006_v49  ;;  %v7026_v6 = vsel %vm13033_vm5, %v7005_v61, 0  ;;  %v7027_v27 = vsel %vm13033_vm5, %v7007_v33, 0  ;;  %v12337_v21 = vld [vmem:[#allocation4 + $0x554] ss:$8 sps:$4 sm:$0xff]   ;;  %v12335_v49 = vld [vmem:[#allocation4 + $0x550] ss:$8 sps:$4 sm:$0xff]  }
 0x7cd   : > { %v7382_v48 = vcombine.high %v7359_v47, %v7373_v9  ;;  %v7381_v32 = vcombine.low %v7359_v47, %v7373_v9  ;;  %v7028_v57 = vsel %vm13033_vm5, %v7009_v51, 0  ;;  %v7029_v50 = vsel %vm13033_vm5, %v7011_v34, 0  ;;  %v12286_v9 = vld [vmem:[#allocation4 + $0x444] ss:$8 sps:$4 sm:$0xff]  }
 0x7ce   : > { %v7030_v23 = vsel %vm13033_vm5, %v7013_v43, 0  ;;  %v7031_v56 = vsel %vm13033_vm5, %v7015_v4, 0  ;;  %v7073_v59 = vcombine.low %v7024_v60, %v7025_v45  ;;  %v7098_v44 = vcombine.low %v7026_v6, %v7027_v27  ;;  %v12281_v43 = vld [vmem:[#allocation4 + $0x430] ss:$8 sps:$4 sm:$0xff]   ;;  %v12284_v6 = vld [vmem:[#allocation4 + $0x440] ss:$8 sps:$4 sm:$0xff]  }
 0x7cf   : > { %7921 = vmatprep.mubr.bf16.mxu1 %v7382_v48  ;;  %v7123_v24 = vcombine.low %v7028_v57, %v7029_v50  ;;  %v7148_v36 = vcombine.low %v7030_v23, %v7031_v56  ;;  %v10781_v28 = vcombine.low %v13119_v53, %v7064_v62  ;;  %v15031_v35 = vrot.slane %v10783_v29, %v12910_v16  ;;  %v12287_v27 = vld [vmem:[#allocation4 + $0x450] ss:$8 sps:$4 sm:$0xff]   ;;  %v12292_v48 = vld [vmem:[#allocation4 + $0x464] ss:$8 sps:$4 sm:$0xff]   ;;  %v12301_v23 = vld [vmem:[#allocation4 + $0x494] ss:$8 sps:$4 sm:$0xff]  }
 0x7d0   : > { %7922 = vmatmul.mubr.bf16.vlgmr.msra.gmra.mrb[4].mxu1 %v7381_v32  ;;  %v7080_v7 = vrot.slane %v7073_v59, %v12910_v16  ;;  %v7105_v2 = vrot.slane %v7098_v44, %v12910_v16  ;;  %v10782_v63 = vcombine.low %v13119_v53, %v14976_v20  ;;  %v15038_v19 = vrot.slane %v10784_v3, %v12910_v16  ;;  %v12283_v3 = vld [vmem:[#allocation4 + $0x434] ss:$8 sps:$4 sm:$0xff]   ;;  %v12293_v57 = vld [vmem:[#allocation4 + $0x470] ss:$8 sps:$4 sm:$0xff]   ;;  %v12298_v50 = vld [vmem:[#allocation4 + $0x484] ss:$8 sps:$4 sm:$0xff]  }
 0x7d1   : > { %7933 = vmatpush1.bf16.msra.mxu1 %v12272_v52  ;;  %7964 = vmatprep.mubr.bf16.mxu1 %v7384_v17  ;;  %v7130_v5 = vrot.slane %v7123_v24, %v12910_v16  ;;  %v7155_v40 = vrot.slane %v7148_v36, %v12910_v16  ;;  %v15043_v25 = vrot.slane %v10781_v28, %v12910_v16  ;;  %v12290_v52 = vld [vmem:[#allocation4 + $0x460] ss:$8 sps:$4 sm:$0xff]   ;;  %v12295_v32 = vld [vmem:[#allocation4 + $0x474] ss:$8 sps:$4 sm:$0xff]   ;;  %v12299_v56 = vld [vmem:[#allocation4 + $0x490] ss:$8 sps:$4 sm:$0xff]  }
 0x7d2   : > { %7934 = vmatprep.subr.bf16.mxu1 %v12277_v38  ;;  %v7385_v11 = vcombine.low %v7080_v7, %v7105_v2  ;;  %v15046_v18 = vrot.slane %v10782_v63, %v12910_v16  ;;  %v8054_v58 = vcombine.low %v13119_v53, %v7080_v7  ;;  %v10881_v20 = vcombine.low %v14990_v42, %v13119_v53  ;;  %v12296_v38 = vld [vmem:[#allocation4 + $0x480] ss:$8 sps:$4 sm:$0xff]   ;;  %v12304_v59 = vld [vmem:[#allocation4 + $0x4a4] ss:$8 sps:$4 sm:$0xff]   ;;  %v12307_v24 = vld [vmem:[#allocation4 + $0x4b4] ss:$8 sps:$4 sm:$0xff]  }
 0x7d3   : > { %v7386_v1 = vcombine.low %v7130_v5, %v7155_v40  ;;  %v8055_v62 = vcombine.low %v7105_v2, %v7130_v5  ;;  %v8051_v31 = vcombine.high %v15043_v25, %v15031_v35  ;;  %v8050_v55 = vcombine.low %v15043_v25, %v15031_v35  ;;  %v12302_v44 = vld [vmem:[#allocation4 + $0x4a0] ss:$8 sps:$4 sm:$0xff]   ;;  %v12305_v36 = vld [vmem:[#allocation4 + $0x4b0] ss:$8 sps:$4 sm:$0xff]   ;;  %v12310_v28 = vld [vmem:[#allocation4 + $0x4c4] ss:$8 sps:$4 sm:$0xff]  }
 0x7d4   : > { %v15056_v10 = vrot.slane %v7385_v11, %v12910_v16  ;;  %v8053_v13 = vcombine.high %v15046_v18, %v15038_v19  ;;  %v8052_v30 = vcombine.low %v15046_v18, %v15038_v19  ;;  %v15063_v39 = vrot.slane %v8054_v58, %v12910_v16  ;;  %v12308_v7 = vld [vmem:[#allocation4 + $0x4c0] ss:$8 sps:$4 sm:$0xff]   ;;  %v12313_v2 = vld [vmem:[#allocation4 + $0x4d4] ss:$8 sps:$4 sm:$0xff]   ;;  %v12311_v63 = vld [vmem:[#allocation4 + $0x4d0] ss:$8 sps:$4 sm:$0xff]  }
 0x7d5   : > { %7935 = vmatpush1.bf16.msra.mxu1 %v12275_v26  ;;  %v15066_v42 = vrot.slane %v7386_v1, %v12910_v16  ;;  %v15069_v8 = vrot.slane %v8055_v62, %v12910_v16  ;;  %v15072_v54 = vrot.slane %v10881_v20, %v12910_v16  ;;  %v10882_v0 = vcombine.low %v14983_v41, %v13119_v53  ;;  %v12316_v26 = vld [vmem:[#allocation4 + $0x4e4] ss:$8 sps:$4 sm:$0xff]   ;;  %v12314_v5 = vld [vmem:[#allocation4 + $0x4e0] ss:$8 sps:$4 sm:$0xff]   ;;  %v12325_v20 = vld [vmem:[#allocation4 + $0x514] ss:$8 sps:$4 sm:$0xff]  }
 0x7d6   : > { %7936 = vmatprep.subr.bf16.mxu1 %v12280_v37  ;;  %v8804_v61 = vcombine.low %v7155_v40, %v13119_v53  ;;  %v12319_v40 = vld [vmem:[#allocation4 + $0x4f4] ss:$8 sps:$4 sm:$0xff]   ;;  %v12317_v37 = vld [vmem:[#allocation4 + $0x4f0] ss:$8 sps:$4 sm:$0xff]   ;;  %v12322_v11 = vld [vmem:[#allocation4 + $0x504] ss:$8 sps:$4 sm:$0xff]  }
 0x7d7   : > { %v7402_v12 = vcombine.high %v15056_v10, %v15066_v42  ;;  %v7401_v47 = vcombine.low %v15056_v10, %v15066_v42  ;;  %v8071_v29 = vcombine.high %v15063_v39, %v15069_v8  ;;  %v8070_v33 = vcombine.low %v15063_v39, %v15069_v8  ;;  %v12320_v58 = vld [vmem:[#allocation4 + $0x500] ss:$8 sps:$4 sm:$0xff]   ;;  %v12323_v1 = vld [vmem:[#allocation4 + $0x510] ss:$8 sps:$4 sm:$0xff]   ;;  %v12328_v62 = vld [vmem:[#allocation4 + $0x524] ss:$8 sps:$4 sm:$0xff]  }
 0x7d8   : > { %v8801_v51 = vcombine.high %v15031_v35, %v15072_v54  ;;  %v8800_v41 = vcombine.low %v15031_v35, %v15072_v54  ;;  %v15090_v53 = vrot.slane %v10882_v0, %v12910_v16  ;;  %v15093_v34 = vrot.slane %v8804_v61, %v12910_v16  ;;  %v12289_v16 = vld [vmem:[#allocation4 + $0x454] ss:$8 sps:$4 sm:$0xff]   ;;  %v12334_v61 = vld [vmem:[#allocation4 + $0x544] ss:$8 sps:$4 sm:$0xff]   ;;  %v12383_v42 = vld [vmem:[#allocation4 + $0x50] ss:$8 sps:$4 sm:$0xff]  }
 0x7d9   : > { %7937 = vmatpush1.bf16.msra.mxu1 %v12278_v46  ;;  %v12326_v46 = vld [vmem:[#allocation4 + $0x520] ss:$8 sps:$4 sm:$0xff]   ;;  %v12331_v0 = vld [vmem:[#allocation4 + $0x534] ss:$8 sps:$4 sm:$0xff]   ;;  %v12575_v54 = vld [vmem:[#allocation4 + $0x750] ss:$8 sps:$4 sm:$0xff]  }
 0x7da   : > { %7938 = vmatprep.subr.bf16.mxu1 %v12283_v3  ;;  %v8803_v4 = vcombine.high %v15038_v19, %v15090_v53  ;;  %v8802_v60 = vcombine.low %v15038_v19, %v15090_v53  ;;  %v8813_v45 = vcombine.high %v15069_v8, %v15093_v34  ;;  %v8812_v17 = vcombine.low %v15069_v8, %v15093_v34  ;;  %v12329_v3 = vld [vmem:[#allocation4 + $0x530] ss:$8 sps:$4 sm:$0xff]   ;;  %v12385_v10 = vld [vmem:[#allocation4 + $0x54] ss:$8 sps:$4 sm:$0xff]  }
 0x7db   : > { %v12433_v25 = vld [vmem:[#allocation4 + $0x154] ss:$8 sps:$4 sm:$0xff]   ;;  %v12623_v53 = vld [vmem:[#allocation4 + $0x850] ss:$8 sps:$4 sm:$0xff]  }
 0x7dc   : > { %v12481_v18 = vld [vmem:[#allocation4 + $0x254] ss:$8 sps:$4 sm:$0xff]  }
 0x7dd   : > { %7939 = vmatpush1.bf16.msra.mxu1 %v12281_v43  ;;  %v12332_v43 = vld [vmem:[#allocation4 + $0x540] ss:$8 sps:$4 sm:$0xff]   ;;  %v12529_v39 = vld [vmem:[#allocation4 + $0x654] ss:$8 sps:$4 sm:$0xff]  }
 0x7de   : > { %7940 = vmatprep.subr.bf16.mxu1 %v12286_v9  ;;  %v12343_v9 = vld [vmem:[#allocation4 + $0x574] ss:$8 sps:$4 sm:$0xff]  }
 0x7df   : > { %v12577_v35 = vld [vmem:[#allocation4 + $0x754] ss:$8 sps:$4 sm:$0xff]  }
 0x7e0   : > { %v12625_v19 = vld [vmem:[#allocation4 + $0x854] ss:$8 sps:$4 sm:$0xff]  }
 0x7e1   : > { %7941 = vmatpush1.bf16.msra.mxu1 %v12284_v6  ;;  %v12341_v6 = vld [vmem:[#allocation4 + $0x570] ss:$8 sps:$4 sm:$0xff]  }
 0x7e2   : > { %7942 = vmatprep.subr.bf16.mxu1 %v12289_v16  ;;  %v12346_v16 = vld [vmem:[#allocation4 + $0x584] ss:$8 sps:$4 sm:$0xff]  }
 0x7e5   : > { %7943 = vmatpush1.bf16.msra.mxu1 %v12287_v27  ;;  %v12344_v27 = vld [vmem:[#allocation4 + $0x580] ss:$8 sps:$4 sm:$0xff]  }
 0x7e6   : > { %7944 = vmatprep.subr.bf16.mxu1 %v12292_v48  ;;  %v12349_v48 = vld [vmem:[#allocation4 + $0x594] ss:$8 sps:$4 sm:$0xff]  }
 0x7e9   : > { %7945 = vmatpush1.bf16.msra.mxu1 %v12290_v52  ;;  %v12347_v52 = vld [vmem:[#allocation4 + $0x590] ss:$8 sps:$4 sm:$0xff]  }
 0x7ea   : > { %7946 = vmatprep.subr.bf16.mxu1 %v12295_v32  ;;  %v12352_v32 = vld [vmem:[#allocation4 + $0x5a4] ss:$8 sps:$4 sm:$0xff]  }
 0x7ed   : > { %7947 = vmatpush1.bf16.msra.mxu1 %v12293_v57  ;;  %v12350_v57 = vld [vmem:[#allocation4 + $0x5a0] ss:$8 sps:$4 sm:$0xff]  }
 0x7ee   : > { %7948 = vmatprep.subr.bf16.mxu1 %v12298_v50  ;;  %v12355_v50 = vld [vmem:[#allocation4 + $0x5b4] ss:$8 sps:$4 sm:$0xff]  }
 0x7f1   : > { %7949 = vmatpush1.bf16.msra.mxu1 %v12296_v38  ;;  %v12353_v38 = vld [vmem:[#allocation4 + $0x5b0] ss:$8 sps:$4 sm:$0xff]  }
 0x7f2   : > { %7950 = vmatprep.subr.bf16.mxu1 %v12301_v23  ;;  %v12358_v23 = vld [vmem:[#allocation4 + $0x5c4] ss:$8 sps:$4 sm:$0xff]  }
 0x7f5   : > { %7951 = vmatpush1.bf16.msra.mxu1 %v12299_v56  ;;  %v12356_v56 = vld [vmem:[#allocation4 + $0x5c0] ss:$8 sps:$4 sm:$0xff]  }
 0x7f6   : > { %7952 = vmatprep.subr.bf16.mxu1 %v12304_v59  ;;  %v12361_v59 = vld [vmem:[#allocation4 + $0x5d4] ss:$8 sps:$4 sm:$0xff]  }
 0x7f9   : > { %7953 = vmatpush1.bf16.msra.mxu1 %v12302_v44  ;;  %v12359_v44 = vld [vmem:[#allocation4 + $0x5d0] ss:$8 sps:$4 sm:$0xff]  }
 0x7fa   : > { %7954 = vmatprep.subr.bf16.mxu1 %v12307_v24  ;;  %v12364_v24 = vld [vmem:[#allocation4 + $0x5e4] ss:$8 sps:$4 sm:$0xff]  }
 0x7fd   : > { %7955 = vmatpush1.bf16.msra.mxu1 %v12305_v36  ;;  %v12362_v36 = vld [vmem:[#allocation4 + $0x5e0] ss:$8 sps:$4 sm:$0xff]  }
 0x7fe   : > { %7956 = vmatprep.subr.bf16.mxu1 %v12310_v28  ;;  %v12367_v28 = vld [vmem:[#allocation4 + $0x5f4] ss:$8 sps:$4 sm:$0xff]  }
 0x801   : > { %7957 = vmatpush1.bf16.msra.mxu1 %v12308_v7  ;;  %v12365_v7 = vld [vmem:[#allocation4 + $0x5f0] ss:$8 sps:$4 sm:$0xff]  }
 0x802   : > { %7958 = vmatprep.subr.bf16.mxu1 %v12313_v2  ;;  %v12370_v2 = vld [vmem:[#allocation4 + $0x4] ss:$8 sps:$4 sm:$0xff]  }
 0x805   : > { %7959 = vmatpush1.bf16.msra.mxu1 %v12311_v63  ;;  %v12368_v63 = vld [vmem:[#allocation4] ss:$8 sps:$4 sm:$0xff]  }
 0x806   : > { %7960 = vmatprep.subr.bf16.mxu1 %v12316_v26  ;;  %v12373_v26 = vld [vmem:[#allocation4 + $0x14] ss:$8 sps:$4 sm:$0xff]  }
 0x809   : > { %7961 = vmatpush1.bf16.msra.mxu1 %v12314_v5  ;;  %v12371_v5 = vld [vmem:[#allocation4 + $0x10] ss:$8 sps:$4 sm:$0xff]  }
 0x80a   : > { %7962 = vmatprep.subr.bf16.mxu1 %v12319_v40  ;;  %v12376_v40 = vld [vmem:[#allocation4 + $0x24] ss:$8 sps:$4 sm:$0xff]  }
 0x80d   : > { %7963 = vmatpush1.bf16.msra.mxu1 %v12317_v37  ;;  %v12374_v37 = vld [vmem:[#allocation4 + $0x20] ss:$8 sps:$4 sm:$0xff]  }
 0x80e   : > { %7975 = vmatprep.subr.bf16.mxu1 %v12322_v11  ;;  %v12379_v11 = vld [vmem:[#allocation4 + $0x34] ss:$8 sps:$4 sm:$0xff]  }
 0x810   : > { %7965 = vmatmul.mubr.bf16.vlgmr.msra.gmra.mrb[4].mxu1 %v7383_v22  ;;  %v12340_v22 = vld [vmem:[#allocation4 + $0x564] ss:$8 sps:$4 sm:$0xff]  }
 0x811   : > { %7976 = vmatpush1.bf16.msra.mxu1 %v12320_v58  ;;  %8007 = vmatprep.mubr.bf16.mxu1 %v7402_v12  ;;  %v12338_v12 = vld [vmem:[#allocation4 + $0x560] ss:$8 sps:$4 sm:$0xff]   ;;  %v12377_v58 = vld [vmem:[#allocation4 + $0x30] ss:$8 sps:$4 sm:$0xff]  }
 0x812   : > { %7977 = vmatprep.subr.bf16.mxu1 %v12325_v20  ;;  %v12382_v20 = vld [vmem:[#allocation4 + $0x44] ss:$8 sps:$4 sm:$0xff]  }
 0x815   : > { %7978 = vmatpush1.bf16.msra.mxu1 %v12323_v1  ;;  %v12380_v1 = vld [vmem:[#allocation4 + $0x40] ss:$8 sps:$4 sm:$0xff]  }
 0x816   : > { %7979 = vmatprep.subr.bf16.mxu1 %v12328_v62  ;;  %v12391_v62 = vld [vmem:[#allocation4 + $0x74] ss:$8 sps:$4 sm:$0xff]  }
 0x819   : > { %7980 = vmatpush1.bf16.msra.mxu1 %v12326_v46  ;;  %v12389_v46 = vld [vmem:[#allocation4 + $0x70] ss:$8 sps:$4 sm:$0xff]  }
 0x81a   : > { %7981 = vmatprep.subr.bf16.mxu1 %v12331_v0  ;;  %v12394_v0 = vld [vmem:[#allocation4 + $0x84] ss:$8 sps:$4 sm:$0xff]  }
 0x81d   : > { %7982 = vmatpush1.bf16.msra.mxu1 %v12329_v3  ;;  %v12392_v3 = vld [vmem:[#allocation4 + $0x80] ss:$8 sps:$4 sm:$0xff]  }
 0x81e   : > { %7983 = vmatprep.subr.bf16.mxu1 %v12334_v61  ;;  %v12397_v61 = vld [vmem:[#allocation4 + $0x94] ss:$8 sps:$4 sm:$0xff]  }
 0x821   : > { %7984 = vmatpush1.bf16.msra.mxu1 %v12332_v43  ;;  %v12395_v43 = vld [vmem:[#allocation4 + $0x90] ss:$8 sps:$4 sm:$0xff]  }
 0x822   : > { %7985 = vmatprep.subr.bf16.mxu1 %v12337_v21  ;;  %v12400_v21 = vld [vmem:[#allocation4 + $0xa4] ss:$8 sps:$4 sm:$0xff]  }
 0x825   : > { %7986 = vmatpush1.bf16.msra.mxu1 %v12335_v49  ;;  %v12398_v49 = vld [vmem:[#allocation4 + $0xa0] ss:$8 sps:$4 sm:$0xff]  }
 0x826   : > { %7987 = vmatprep.subr.bf16.mxu1 %v12340_v22  ;;  %v12403_v22 = vld [vmem:[#allocation4 + $0xb4] ss:$8 sps:$4 sm:$0xff]  }
 0x829   : > { %7988 = vmatpush1.bf16.msra.mxu1 %v12338_v12  ;;  %v12401_v12 = vld [vmem:[#allocation4 + $0xb0] ss:$8 sps:$4 sm:$0xff]  }
 0x82a   : > { %7989 = vmatprep.subr.bf16.mxu1 %v12343_v9  ;;  %v12406_v9 = vld [vmem:[#allocation4 + $0xc4] ss:$8 sps:$4 sm:$0xff]  }
 0x82d   : > { %7990 = vmatpush1.bf16.msra.mxu1 %v12341_v6  ;;  %v12404_v6 = vld [vmem:[#allocation4 + $0xc0] ss:$8 sps:$4 sm:$0xff]  }
 0x82e   : > { %7991 = vmatprep.subr.bf16.mxu1 %v12346_v16  ;;  %v12409_v16 = vld [vmem:[#allocation4 + $0xd4] ss:$8 sps:$4 sm:$0xff]  }
 0x831   : > { %7992 = vmatpush1.bf16.msra.mxu1 %v12344_v27  ;;  %v12407_v27 = vld [vmem:[#allocation4 + $0xd0] ss:$8 sps:$4 sm:$0xff]  }
 0x832   : > { %7993 = vmatprep.subr.bf16.mxu1 %v12349_v48  ;;  %v12412_v48 = vld [vmem:[#allocation4 + $0xe4] ss:$8 sps:$4 sm:$0xff]  }
 0x835   : > { %7994 = vmatpush1.bf16.msra.mxu1 %v12347_v52  ;;  %v12410_v52 = vld [vmem:[#allocation4 + $0xe0] ss:$8 sps:$4 sm:$0xff]  }
 0x836   : > { %7995 = vmatprep.subr.bf16.mxu1 %v12352_v32  ;;  %v12415_v32 = vld [vmem:[#allocation4 + $0xf4] ss:$8 sps:$4 sm:$0xff]  }
 0x839   : > { %7996 = vmatpush1.bf16.msra.mxu1 %v12350_v57  ;;  %v12413_v57 = vld [vmem:[#allocation4 + $0xf0] ss:$8 sps:$4 sm:$0xff]  }
 0x83a   : > { %7997 = vmatprep.subr.bf16.mxu1 %v12355_v50  ;;  %v12418_v50 = vld [vmem:[#allocation4 + $0x104] ss:$8 sps:$4 sm:$0xff]  }
 0x83d   : > { %7998 = vmatpush1.bf16.msra.mxu1 %v12353_v38  ;;  %v12416_v38 = vld [vmem:[#allocation4 + $0x100] ss:$8 sps:$4 sm:$0xff]  }
 0x83e   : > { %7999 = vmatprep.subr.bf16.mxu1 %v12358_v23  ;;  %v12421_v23 = vld [vmem:[#allocation4 + $0x114] ss:$8 sps:$4 sm:$0xff]  }
 0x841   : > { %8000 = vmatpush1.bf16.msra.mxu1 %v12356_v56  ;;  %v12419_v56 = vld [vmem:[#allocation4 + $0x110] ss:$8 sps:$4 sm:$0xff]  }
 0x842   : > { %8001 = vmatprep.subr.bf16.mxu1 %v12361_v59  ;;  %v12424_v59 = vld [vmem:[#allocation4 + $0x124] ss:$8 sps:$4 sm:$0xff]  }
 0x845   : > { %8002 = vmatpush1.bf16.msra.mxu1 %v12359_v44  ;;  %v12422_v44 = vld [vmem:[#allocation4 + $0x120] ss:$8 sps:$4 sm:$0xff]  }
 0x846   : > { %8003 = vmatprep.subr.bf16.mxu1 %v12364_v24  ;;  %v12427_v24 = vld [vmem:[#allocation4 + $0x134] ss:$8 sps:$4 sm:$0xff]  }
 0x849   : > { %8004 = vmatpush1.bf16.msra.mxu1 %v12362_v36  ;;  %v12425_v36 = vld [vmem:[#allocation4 + $0x130] ss:$8 sps:$4 sm:$0xff]  }
 0x84a   : > { %8005 = vmatprep.subr.bf16.mxu1 %v12367_v28  ;;  %v12430_v28 = vld [vmem:[#allocation4 + $0x144] ss:$8 sps:$4 sm:$0xff]  }
 0x84d   : > { %8006 = vmatpush1.bf16.msra.mxu1 %v12365_v7  ;;  %v12428_v7 = vld [vmem:[#allocation4 + $0x140] ss:$8 sps:$4 sm:$0xff]  }
 0x84e   : > { %8558 = vmatprep.subr.bf16.mxu1 %v12370_v2  ;;  %v12436_v2 = vld [vmem:[#allocation4 + $0x164] ss:$8 sps:$4 sm:$0xff]  }
 0x850   : > { %8008 = vmatmul.mubr.bf16.vlgmr.msra.gmra.mrb[4].mxu1 %v7401_v47  ;;  %v12388_v47 = vld [vmem:[#allocation4 + $0x64] ss:$8 sps:$4 sm:$0xff]  }
 0x851   : > { %8559 = vmatpush1.bf16.msra.mxu1 %v12368_v63  ;;  %8590 = vmatprep.mubr.bf16.mxu1 %v8051_v31  ;;  %v12386_v31 = vld [vmem:[#allocation4 + $0x60] ss:$8 sps:$4 sm:$0xff]   ;;  %v12439_v63 = vld [vmem:[#allocation4 + $0x174] ss:$8 sps:$4 sm:$0xff]  }
 0x852   : > { %8560 = vmatprep.subr.bf16.mxu1 %v12373_v26  ;;  %v12437_v26 = vld [vmem:[#allocation4 + $0x170] ss:$8 sps:$4 sm:$0xff]  }
 0x855   : > { %8561 = vmatpush1.bf16.msra.mxu1 %v12371_v5  ;;  %v12442_v5 = vld [vmem:[#allocation4 + $0x184] ss:$8 sps:$4 sm:$0xff]  }
 0x856   : > { %8562 = vmatprep.subr.bf16.mxu1 %v12376_v40  ;;  %v12440_v40 = vld [vmem:[#allocation4 + $0x180] ss:$8 sps:$4 sm:$0xff]  }
 0x859   : > { %8563 = vmatpush1.bf16.msra.mxu1 %v12374_v37  ;;  %v12445_v37 = vld [vmem:[#allocation4 + $0x194] ss:$8 sps:$4 sm:$0xff]  }
 0x85a   : > { %8564 = vmatprep.subr.bf16.mxu1 %v12379_v11  ;;  %v12443_v11 = vld [vmem:[#allocation4 + $0x190] ss:$8 sps:$4 sm:$0xff]  }
 0x85d   : > { %8565 = vmatpush1.bf16.msra.mxu1 %v12377_v58  ;;  %v12448_v58 = vld [vmem:[#allocation4 + $0x1a4] ss:$8 sps:$4 sm:$0xff]  }
 0x85e   : > { %8566 = vmatprep.subr.bf16.mxu1 %v12382_v20  ;;  %v12446_v20 = vld [vmem:[#allocation4 + $0x1a0] ss:$8 sps:$4 sm:$0xff]  }
 0x861   : > { %8567 = vmatpush1.bf16.msra.mxu1 %v12380_v1  ;;  %v12451_v1 = vld [vmem:[#allocation4 + $0x1b4] ss:$8 sps:$4 sm:$0xff]  }
 0x862   : > { %8568 = vmatprep.subr.bf16.mxu1 %v12385_v10  ;;  %v12449_v10 = vld [vmem:[#allocation4 + $0x1b0] ss:$8 sps:$4 sm:$0xff]  }
 0x865   : > { %8569 = vmatpush1.bf16.msra.mxu1 %v12383_v42  ;;  %v12454_v42 = vld [vmem:[#allocation4 + $0x1c4] ss:$8 sps:$4 sm:$0xff]  }
 0x866   : > { %8570 = vmatprep.subr.bf16.mxu1 %v12388_v47  ;;  %v12452_v47 = vld [vmem:[#allocation4 + $0x1c0] ss:$8 sps:$4 sm:$0xff]  }
 0x869   : > { %8571 = vmatpush1.bf16.msra.mxu1 %v12386_v31  ;;  %v12457_v31 = vld [vmem:[#allocation4 + $0x1d4] ss:$8 sps:$4 sm:$0xff]  }
 0x86a   : > { %8572 = vmatprep.subr.bf16.mxu1 %v12391_v62  ;;  %v12455_v62 = vld [vmem:[#allocation4 + $0x1d0] ss:$8 sps:$4 sm:$0xff]  }
 0x86d   : > { %8573 = vmatpush1.bf16.msra.mxu1 %v12389_v46  ;;  %v12460_v46 = vld [vmem:[#allocation4 + $0x1e4] ss:$8 sps:$4 sm:$0xff]  }
 0x86e   : > { %8574 = vmatprep.subr.bf16.mxu1 %v12394_v0  ;;  %v12458_v0 = vld [vmem:[#allocation4 + $0x1e0] ss:$8 sps:$4 sm:$0xff]  }
 0x871   : > { %8575 = vmatpush1.bf16.msra.mxu1 %v12392_v3  ;;  %v12463_v3 = vld [vmem:[#allocation4 + $0x1f4] ss:$8 sps:$4 sm:$0xff]  }
 0x872   : > { %8576 = vmatprep.subr.bf16.mxu1 %v12397_v61  ;;  %v12461_v61 = vld [vmem:[#allocation4 + $0x1f0] ss:$8 sps:$4 sm:$0xff]  }
 0x875   : > { %8577 = vmatpush1.bf16.msra.mxu1 %v12395_v43  ;;  %v12466_v43 = vld [vmem:[#allocation4 + $0x204] ss:$8 sps:$4 sm:$0xff]  }
 0x876   : > { %8578 = vmatprep.subr.bf16.mxu1 %v12400_v21  ;;  %v12464_v21 = vld [vmem:[#allocation4 + $0x200] ss:$8 sps:$4 sm:$0xff]  }
 0x879   : > { %8579 = vmatpush1.bf16.msra.mxu1 %v12398_v49  ;;  %v12469_v49 = vld [vmem:[#allocation4 + $0x214] ss:$8 sps:$4 sm:$0xff]  }
 0x87a   : > { %8580 = vmatprep.subr.bf16.mxu1 %v12403_v22  ;;  %v12467_v22 = vld [vmem:[#allocation4 + $0x210] ss:$8 sps:$4 sm:$0xff]  }
 0x87d   : > { %8581 = vmatpush1.bf16.msra.mxu1 %v12401_v12  ;;  %v12472_v12 = vld [vmem:[#allocation4 + $0x224] ss:$8 sps:$4 sm:$0xff]  }
 0x87e   : > { %8582 = vmatprep.subr.bf16.mxu1 %v12406_v9  ;;  %v12470_v9 = vld [vmem:[#allocation4 + $0x220] ss:$8 sps:$4 sm:$0xff]  }
 0x881   : > { %8583 = vmatpush1.bf16.msra.mxu1 %v12404_v6  ;;  %v12475_v6 = vld [vmem:[#allocation4 + $0x234] ss:$8 sps:$4 sm:$0xff]  }
 0x882   : > { %8584 = vmatprep.subr.bf16.mxu1 %v12409_v16  ;;  %v12473_v16 = vld [vmem:[#allocation4 + $0x230] ss:$8 sps:$4 sm:$0xff]  }
 0x885   : > { %8585 = vmatpush1.bf16.msra.mxu1 %v12407_v27  ;;  %v12478_v27 = vld [vmem:[#allocation4 + $0x244] ss:$8 sps:$4 sm:$0xff]  }
 0x886   : > { %8586 = vmatprep.subr.bf16.mxu1 %v12412_v48  ;;  %v12476_v48 = vld [vmem:[#allocation4 + $0x240] ss:$8 sps:$4 sm:$0xff]  }
 0x889   : > { %8587 = vmatpush1.bf16.msra.mxu1 %v12410_v52  ;;  %v12484_v52 = vld [vmem:[#allocation4 + $0x264] ss:$8 sps:$4 sm:$0xff]  }
 0x88a   : > { %8588 = vmatprep.subr.bf16.mxu1 %v12415_v32  ;;  %v12487_v32 = vld [vmem:[#allocation4 + $0x274] ss:$8 sps:$4 sm:$0xff]  }
 0x88d   : > { %8589 = vmatpush1.bf16.msra.mxu1 %v12413_v57  ;;  %v12485_v57 = vld [vmem:[#allocation4 + $0x270] ss:$8 sps:$4 sm:$0xff]  }
 0x88e   : > { %8601 = vmatprep.subr.bf16.mxu1 %v12418_v50  ;;  %v12490_v50 = vld [vmem:[#allocation4 + $0x284] ss:$8 sps:$4 sm:$0xff]  }
 0x890   : > { %8591 = vmatmul.mubr.bf16.vlgmr.msra.gmra.mrb[4].mxu1 %v8050_v55  ;;  %v12431_v55 = vld [vmem:[#allocation4 + $0x150] ss:$8 sps:$4 sm:$0xff]  }
 0x891   : > { %8602 = vmatpush1.bf16.msra.mxu1 %v12416_v38  ;;  %8633 = vmatprep.mubr.bf16.mxu1 %v8053_v13  ;;  %v12434_v13 = vld [vmem:[#allocation4 + $0x160] ss:$8 sps:$4 sm:$0xff]  }
 0x892   : > { %8603 = vmatprep.subr.bf16.mxu1 %v12421_v23  ;;  %v12488_v38 = vld [vmem:[#allocation4 + $0x280] ss:$8 sps:$4 sm:$0xff]   ;;  %v12493_v23 = vld [vmem:[#allocation4 + $0x294] ss:$8 sps:$4 sm:$0xff]  }
 0x895   : > { %8604 = vmatpush1.bf16.msra.mxu1 %v12419_v56  ;;  %v12491_v56 = vld [vmem:[#allocation4 + $0x290] ss:$8 sps:$4 sm:$0xff]  }
 0x896   : > { %8605 = vmatprep.subr.bf16.mxu1 %v12424_v59  ;;  %v12496_v59 = vld [vmem:[#allocation4 + $0x2a4] ss:$8 sps:$4 sm:$0xff]  }
 0x899   : > { %8606 = vmatpush1.bf16.msra.mxu1 %v12422_v44  ;;  %v12494_v44 = vld [vmem:[#allocation4 + $0x2a0] ss:$8 sps:$4 sm:$0xff]  }
 0x89a   : > { %8607 = vmatprep.subr.bf16.mxu1 %v12427_v24  ;;  %v12499_v24 = vld [vmem:[#allocation4 + $0x2b4] ss:$8 sps:$4 sm:$0xff]  }
 0x89d   : > { %8608 = vmatpush1.bf16.msra.mxu1 %v12425_v36  ;;  %v12497_v36 = vld [vmem:[#allocation4 + $0x2b0] ss:$8 sps:$4 sm:$0xff]  }
 0x89e   : > { %8609 = vmatprep.subr.bf16.mxu1 %v12430_v28  ;;  %v12502_v28 = vld [vmem:[#allocation4 + $0x2c4] ss:$8 sps:$4 sm:$0xff]  }
 0x8a1   : > { %8610 = vmatpush1.bf16.msra.mxu1 %v12428_v7  ;;  %v12500_v7 = vld [vmem:[#allocation4 + $0x2c0] ss:$8 sps:$4 sm:$0xff]  }
 0x8a2   : > { %8611 = vmatprep.subr.bf16.mxu1 %v12433_v25  ;;  %v12505_v25 = vld [vmem:[#allocation4 + $0x2d4] ss:$8 sps:$4 sm:$0xff]  }
 0x8a5   : > { %8612 = vmatpush1.bf16.msra.mxu1 %v12431_v55  ;;  %v12503_v55 = vld [vmem:[#allocation4 + $0x2d0] ss:$8 sps:$4 sm:$0xff]  }
 0x8a6   : > { %8613 = vmatprep.subr.bf16.mxu1 %v12436_v2  ;;  %v12508_v2 = vld [vmem:[#allocation4 + $0x2e4] ss:$8 sps:$4 sm:$0xff]  }
 0x8a9   : > { %8614 = vmatpush1.bf16.msra.mxu1 %v12434_v13  ;;  %v12506_v13 = vld [vmem:[#allocation4 + $0x2e0] ss:$8 sps:$4 sm:$0xff]  }
 0x8aa   : > { %8615 = vmatprep.subr.bf16.mxu1 %v12439_v63  ;;  %v12511_v63 = vld [vmem:[#allocation4 + $0x2f4] ss:$8 sps:$4 sm:$0xff]  }
 0x8ad   : > { %8616 = vmatpush1.bf16.msra.mxu1 %v12437_v26  ;;  %v12509_v26 = vld [vmem:[#allocation4 + $0x2f0] ss:$8 sps:$4 sm:$0xff]  }
 0x8ae   : > { %8617 = vmatprep.subr.bf16.mxu1 %v12442_v5  ;;  %v12514_v5 = vld [vmem:[#allocation4 + $0x604] ss:$8 sps:$4 sm:$0xff]  }
 0x8b1   : > { %8618 = vmatpush1.bf16.msra.mxu1 %v12440_v40  ;;  %v12512_v40 = vld [vmem:[#allocation4 + $0x600] ss:$8 sps:$4 sm:$0xff]  }
 0x8b2   : > { %8619 = vmatprep.subr.bf16.mxu1 %v12445_v37  ;;  %v12517_v37 = vld [vmem:[#allocation4 + $0x614] ss:$8 sps:$4 sm:$0xff]  }
 0x8b5   : > { %8620 = vmatpush1.bf16.msra.mxu1 %v12443_v11  ;;  %v12515_v11 = vld [vmem:[#allocation4 + $0x610] ss:$8 sps:$4 sm:$0xff]  }
 0x8b6   : > { %8621 = vmatprep.subr.bf16.mxu1 %v12448_v58  ;;  %v12520_v58 = vld [vmem:[#allocation4 + $0x624] ss:$8 sps:$4 sm:$0xff]  }
 0x8b9   : > { %8622 = vmatpush1.bf16.msra.mxu1 %v12446_v20  ;;  %v12518_v20 = vld [vmem:[#allocation4 + $0x620] ss:$8 sps:$4 sm:$0xff]  }
 0x8ba   : > { %8623 = vmatprep.subr.bf16.mxu1 %v12451_v1  ;;  %v12523_v1 = vld [vmem:[#allocation4 + $0x634] ss:$8 sps:$4 sm:$0xff]  }
 0x8bd   : > { %8624 = vmatpush1.bf16.msra.mxu1 %v12449_v10  ;;  %v12521_v10 = vld [vmem:[#allocation4 + $0x630] ss:$8 sps:$4 sm:$0xff]  }
 0x8be   : > { %8625 = vmatprep.subr.bf16.mxu1 %v12454_v42  ;;  %v12526_v42 = vld [vmem:[#allocation4 + $0x644] ss:$8 sps:$4 sm:$0xff]  }
 0x8c1   : > { %8626 = vmatpush1.bf16.msra.mxu1 %v12452_v47  ;;  %v12524_v47 = vld [vmem:[#allocation4 + $0x640] ss:$8 sps:$4 sm:$0xff]  }
 0x8c2   : > { %8627 = vmatprep.subr.bf16.mxu1 %v12457_v31  ;;  %v12532_v31 = vld [vmem:[#allocation4 + $0x664] ss:$8 sps:$4 sm:$0xff]  }
 0x8c5   : > { %8628 = vmatpush1.bf16.msra.mxu1 %v12455_v62  ;;  %v12535_v62 = vld [vmem:[#allocation4 + $0x674] ss:$8 sps:$4 sm:$0xff]  }
 0x8c6   : > { %8629 = vmatprep.subr.bf16.mxu1 %v12460_v46  ;;  %v12533_v46 = vld [vmem:[#allocation4 + $0x670] ss:$8 sps:$4 sm:$0xff]  }
 0x8c9   : > { %8630 = vmatpush1.bf16.msra.mxu1 %v12458_v0  ;;  %v12538_v0 = vld [vmem:[#allocation4 + $0x684] ss:$8 sps:$4 sm:$0xff]  }
 0x8ca   : > { %8631 = vmatprep.subr.bf16.mxu1 %v12463_v3  ;;  %v12536_v3 = vld [vmem:[#allocation4 + $0x680] ss:$8 sps:$4 sm:$0xff]  }
 0x8cd   : > { %8632 = vmatpush1.bf16.msra.mxu1 %v12461_v61  ;;  %v12541_v61 = vld [vmem:[#allocation4 + $0x694] ss:$8 sps:$4 sm:$0xff]  }
 0x8ce   : > { %8644 = vmatprep.subr.bf16.mxu1 %v12466_v43  ;;  %v12539_v43 = vld [vmem:[#allocation4 + $0x690] ss:$8 sps:$4 sm:$0xff]  }
 0x8d0   : > { %8634 = vmatmul.mubr.bf16.vlgmr.msra.gmra.mrb[4].mxu1 %v8052_v30  ;;  %v12479_v30 = vld [vmem:[#allocation4 + $0x250] ss:$8 sps:$4 sm:$0xff]  }
 0x8d1   : > { %8645 = vmatpush1.bf16.msra.mxu1 %v12464_v21  ;;  %8676 = vmatprep.mubr.bf16.mxu1 %v8071_v29  ;;  %v12482_v29 = vld [vmem:[#allocation4 + $0x260] ss:$8 sps:$4 sm:$0xff]   ;;  %v12544_v21 = vld [vmem:[#allocation4 + $0x6a4] ss:$8 sps:$4 sm:$0xff]  }
 0x8d2   : > { %8646 = vmatprep.subr.bf16.mxu1 %v12469_v49  ;;  %v12542_v49 = vld [vmem:[#allocation4 + $0x6a0] ss:$8 sps:$4 sm:$0xff]  }
 0x8d5   : > { %8647 = vmatpush1.bf16.msra.mxu1 %v12467_v22  ;;  %v12547_v22 = vld [vmem:[#allocation4 + $0x6b4] ss:$8 sps:$4 sm:$0xff]  }
 0x8d6   : > { %8648 = vmatprep.subr.bf16.mxu1 %v12472_v12  ;;  %v12545_v12 = vld [vmem:[#allocation4 + $0x6b0] ss:$8 sps:$4 sm:$0xff]  }
 0x8d9   : > { %8649 = vmatpush1.bf16.msra.mxu1 %v12470_v9  ;;  %v12550_v9 = vld [vmem:[#allocation4 + $0x6c4] ss:$8 sps:$4 sm:$0xff]  }
 0x8da   : > { %8650 = vmatprep.subr.bf16.mxu1 %v12475_v6  ;;  %v12548_v6 = vld [vmem:[#allocation4 + $0x6c0] ss:$8 sps:$4 sm:$0xff]  }
 0x8dd   : > { %8651 = vmatpush1.bf16.msra.mxu1 %v12473_v16  ;;  %v12553_v16 = vld [vmem:[#allocation4 + $0x6d4] ss:$8 sps:$4 sm:$0xff]  }
 0x8de   : > { %8652 = vmatprep.subr.bf16.mxu1 %v12478_v27  ;;  %v12551_v27 = vld [vmem:[#allocation4 + $0x6d0] ss:$8 sps:$4 sm:$0xff]  }
 0x8e1   : > { %8653 = vmatpush1.bf16.msra.mxu1 %v12476_v48  ;;  %v12556_v48 = vld [vmem:[#allocation4 + $0x6e4] ss:$8 sps:$4 sm:$0xff]  }
 0x8e2   : > { %8654 = vmatprep.subr.bf16.mxu1 %v12481_v18  ;;  %v12554_v18 = vld [vmem:[#allocation4 + $0x6e0] ss:$8 sps:$4 sm:$0xff]  }
 0x8e5   : > { %8655 = vmatpush1.bf16.msra.mxu1 %v12479_v30  ;;  %v12559_v30 = vld [vmem:[#allocation4 + $0x6f4] ss:$8 sps:$4 sm:$0xff]  }
 0x8e6   : > { %8656 = vmatprep.subr.bf16.mxu1 %v12484_v52  ;;  %v12557_v52 = vld [vmem:[#allocation4 + $0x6f0] ss:$8 sps:$4 sm:$0xff]  }
 0x8e9   : > { %8657 = vmatpush1.bf16.msra.mxu1 %v12482_v29  ;;  %v12562_v29 = vld [vmem:[#allocation4 + $0x704] ss:$8 sps:$4 sm:$0xff]  }
 0x8ea   : > { %8658 = vmatprep.subr.bf16.mxu1 %v12487_v32  ;;  %v12560_v32 = vld [vmem:[#allocation4 + $0x700] ss:$8 sps:$4 sm:$0xff]  }
 0x8ed   : > { %8659 = vmatpush1.bf16.msra.mxu1 %v12485_v57  ;;  %v12565_v57 = vld [vmem:[#allocation4 + $0x714] ss:$8 sps:$4 sm:$0xff]  }
 0x8ee   : > { %8660 = vmatprep.subr.bf16.mxu1 %v12490_v50  ;;  %v12563_v50 = vld [vmem:[#allocation4 + $0x710] ss:$8 sps:$4 sm:$0xff]  }
 0x8f1   : > { %8661 = vmatpush1.bf16.msra.mxu1 %v12488_v38  ;;  %v12568_v38 = vld [vmem:[#allocation4 + $0x724] ss:$8 sps:$4 sm:$0xff]  }
 0x8f2   : > { %8662 = vmatprep.subr.bf16.mxu1 %v12493_v23  ;;  %v12566_v23 = vld [vmem:[#allocation4 + $0x720] ss:$8 sps:$4 sm:$0xff]  }
 0x8f5   : > { %8663 = vmatpush1.bf16.msra.mxu1 %v12491_v56  ;;  %v12571_v56 = vld [vmem:[#allocation4 + $0x734] ss:$8 sps:$4 sm:$0xff]  }
 0x8f6   : > { %8664 = vmatprep.subr.bf16.mxu1 %v12496_v59  ;;  %v12569_v59 = vld [vmem:[#allocation4 + $0x730] ss:$8 sps:$4 sm:$0xff]  }
 0x8f9   : > { %8665 = vmatpush1.bf16.msra.mxu1 %v12494_v44  ;;  %v12574_v44 = vld [vmem:[#allocation4 + $0x744] ss:$8 sps:$4 sm:$0xff]  }
 0x8fa   : > { %8666 = vmatprep.subr.bf16.mxu1 %v12499_v24  ;;  %v12572_v24 = vld [vmem:[#allocation4 + $0x740] ss:$8 sps:$4 sm:$0xff]  }
 0x8fd   : > { %8667 = vmatpush1.bf16.msra.mxu1 %v12497_v36  ;;  %v12583_v36 = vld [vmem:[#allocation4 + $0x774] ss:$8 sps:$4 sm:$0xff]  }
 0x8fe   : > { %8668 = vmatprep.subr.bf16.mxu1 %v12502_v28  ;;  %v12581_v28 = vld [vmem:[#allocation4 + $0x770] ss:$8 sps:$4 sm:$0xff]  }
 0x901   : > { %8669 = vmatpush1.bf16.msra.mxu1 %v12500_v7  ;;  %v12586_v7 = vld [vmem:[#allocation4 + $0x784] ss:$8 sps:$4 sm:$0xff]  }
 0x902   : > { %8670 = vmatprep.subr.bf16.mxu1 %v12505_v25  ;;  %v12584_v25 = vld [vmem:[#allocation4 + $0x780] ss:$8 sps:$4 sm:$0xff]  }
 0x905   : > { %8671 = vmatpush1.bf16.msra.mxu1 %v12503_v55  ;;  %v12589_v55 = vld [vmem:[#allocation4 + $0x794] ss:$8 sps:$4 sm:$0xff]  }
 0x906   : > { %8672 = vmatprep.subr.bf16.mxu1 %v12508_v2  ;;  %v12587_v2 = vld [vmem:[#allocation4 + $0x790] ss:$8 sps:$4 sm:$0xff]  }
 0x909   : > { %8673 = vmatpush1.bf16.msra.mxu1 %v12506_v13  ;;  %v12592_v13 = vld [vmem:[#allocation4 + $0x7a4] ss:$8 sps:$4 sm:$0xff]  }
 0x90a   : > { %8674 = vmatprep.subr.bf16.mxu1 %v12511_v63  ;;  %v12590_v63 = vld [vmem:[#allocation4 + $0x7a0] ss:$8 sps:$4 sm:$0xff]  }
 0x90d   : > { %8675 = vmatpush1.bf16.msra.mxu1 %v12509_v26  ;;  %v12595_v26 = vld [vmem:[#allocation4 + $0x7b4] ss:$8 sps:$4 sm:$0xff]  }
 0x90e   : > { %9300 = vmatprep.subr.bf16.mxu1 %v12514_v5  ;;  %v12593_v5 = vld [vmem:[#allocation4 + $0x7b0] ss:$8 sps:$4 sm:$0xff]  }
 0x910   : > { %8677 = vmatmul.mubr.bf16.vlgmr.msra.gmra.mrb[4].mxu1 %v8070_v33  ;;  %v12527_v33 = vld [vmem:[#allocation4 + $0x650] ss:$8 sps:$4 sm:$0xff]  }
 0x911   : > { %9301 = vmatpush1.bf16.msra.mxu1 %v12512_v40  ;;  %9332 = vmatprep.mubr.bf16.mxu1 %v8801_v51  ;;  %v12530_v51 = vld [vmem:[#allocation4 + $0x660] ss:$8 sps:$4 sm:$0xff]   ;;  %v12598_v40 = vld [vmem:[#allocation4 + $0x7c4] ss:$8 sps:$4 sm:$0xff]  }
 0x912   : > { %9302 = vmatprep.subr.bf16.mxu1 %v12517_v37  ;;  %v12596_v37 = vld [vmem:[#allocation4 + $0x7c0] ss:$8 sps:$4 sm:$0xff]  }
 0x915   : > { %9303 = vmatpush1.bf16.msra.mxu1 %v12515_v11  ;;  %v12601_v11 = vld [vmem:[#allocation4 + $0x7d4] ss:$8 sps:$4 sm:$0xff]  }
 0x916   : > { %9304 = vmatprep.subr.bf16.mxu1 %v12520_v58  ;;  %v12599_v58 = vld [vmem:[#allocation4 + $0x7d0] ss:$8 sps:$4 sm:$0xff]  }
 0x919   : > { %9305 = vmatpush1.bf16.msra.mxu1 %v12518_v20  ;;  %v12604_v20 = vld [vmem:[#allocation4 + $0x7e4] ss:$8 sps:$4 sm:$0xff]  }
 0x91a   : > { %9306 = vmatprep.subr.bf16.mxu1 %v12523_v1  ;;  %v12602_v1 = vld [vmem:[#allocation4 + $0x7e0] ss:$8 sps:$4 sm:$0xff]  }
 0x91d   : > { %9307 = vmatpush1.bf16.msra.mxu1 %v12521_v10  ;;  %v12607_v10 = vld [vmem:[#allocation4 + $0x7f4] ss:$8 sps:$4 sm:$0xff]  }
 0x91e   : > { %9308 = vmatprep.subr.bf16.mxu1 %v12526_v42  ;;  %v12605_v42 = vld [vmem:[#allocation4 + $0x7f0] ss:$8 sps:$4 sm:$0xff]  }
 0x921   : > { %9309 = vmatpush1.bf16.msra.mxu1 %v12524_v47  ;;  %v12610_v47 = vld [vmem:[#allocation4 + $0x804] ss:$8 sps:$4 sm:$0xff]  }
 0x922   : > { %9310 = vmatprep.subr.bf16.mxu1 %v12529_v39  ;;  %v12608_v39 = vld [vmem:[#allocation4 + $0x800] ss:$8 sps:$4 sm:$0xff]  }
 0x925   : > { %9311 = vmatpush1.bf16.msra.mxu1 %v12527_v33  ;;  %v12613_v33 = vld [vmem:[#allocation4 + $0x814] ss:$8 sps:$4 sm:$0xff]  }
 0x926   : > { %9312 = vmatprep.subr.bf16.mxu1 %v12532_v31  ;;  %v12611_v31 = vld [vmem:[#allocation4 + $0x810] ss:$8 sps:$4 sm:$0xff]  }
 0x929   : > { %9313 = vmatpush1.bf16.msra.mxu1 %v12530_v51  ;;  %v12616_v51 = vld [vmem:[#allocation4 + $0x824] ss:$8 sps:$4 sm:$0xff]  }
 0x92a   : > { %9314 = vmatprep.subr.bf16.mxu1 %v12535_v62  ;;  %v12614_v62 = vld [vmem:[#allocation4 + $0x820] ss:$8 sps:$4 sm:$0xff]  }
 0x92d   : > { %9315 = vmatpush1.bf16.msra.mxu1 %v12533_v46  ;;  %v12619_v46 = vld [vmem:[#allocation4 + $0x834] ss:$8 sps:$4 sm:$0xff]  }
 0x92e   : > { %9316 = vmatprep.subr.bf16.mxu1 %v12538_v0  ;;  %v12617_v0 = vld [vmem:[#allocation4 + $0x830] ss:$8 sps:$4 sm:$0xff]  }
 0x931   : > { %9317 = vmatpush1.bf16.msra.mxu1 %v12536_v3  ;;  %v12622_v3 = vld [vmem:[#allocation4 + $0x844] ss:$8 sps:$4 sm:$0xff]  }
 0x932   : > { %9318 = vmatprep.subr.bf16.mxu1 %v12541_v61  ;;  %v12620_v61 = vld [vmem:[#allocation4 + $0x840] ss:$8 sps:$4 sm:$0xff]  }
 0x935   : > { %9319 = vmatpush1.bf16.msra.mxu1 %v12539_v43  ;;  %v12631_v43 = vld [vmem:[#allocation4 + $0x874] ss:$8 sps:$4 sm:$0xff]  }
 0x936   : > { %9320 = vmatprep.subr.bf16.mxu1 %v12544_v21  ;;  %v12629_v21 = vld [vmem:[#allocation4 + $0x870] ss:$8 sps:$4 sm:$0xff]  }
 0x939   : > { %9321 = vmatpush1.bf16.msra.mxu1 %v12542_v49  ;;  %v12634_v49 = vld [vmem:[#allocation4 + $0x884] ss:$8 sps:$4 sm:$0xff]  }
 0x93a   : > { %9322 = vmatprep.subr.bf16.mxu1 %v12547_v22  ;;  %v12632_v22 = vld [vmem:[#allocation4 + $0x880] ss:$8 sps:$4 sm:$0xff]  }
 0x93d   : > { %9323 = vmatpush1.bf16.msra.mxu1 %v12545_v12  ;;  %v12637_v12 = vld [vmem:[#allocation4 + $0x894] ss:$8 sps:$4 sm:$0xff]  }
 0x93e   : > { %9324 = vmatprep.subr.bf16.mxu1 %v12550_v9  ;;  %v12635_v9 = vld [vmem:[#allocation4 + $0x890] ss:$8 sps:$4 sm:$0xff]  }
 0x941   : > { %9325 = vmatpush1.bf16.msra.mxu1 %v12548_v6  ;;  %v12640_v6 = vld [vmem:[#allocation4 + $0x8a4] ss:$8 sps:$4 sm:$0xff]  }
 0x942   : > { %9326 = vmatprep.subr.bf16.mxu1 %v12553_v16  ;;  %v12638_v16 = vld [vmem:[#allocation4 + $0x8a0] ss:$8 sps:$4 sm:$0xff]  }
 0x945   : > { %9327 = vmatpush1.bf16.msra.mxu1 %v12551_v27  ;;  %v12643_v27 = vld [vmem:[#allocation4 + $0x8b4] ss:$8 sps:$4 sm:$0xff]  }
 0x946   : > { %9328 = vmatprep.subr.bf16.mxu1 %v12556_v48  ;;  %v12641_v48 = vld [vmem:[#allocation4 + $0x8b0] ss:$8 sps:$4 sm:$0xff]  }
 0x949   : > { %9329 = vmatpush1.bf16.msra.mxu1 %v12554_v18  ;;  %v12646_v18 = vld [vmem:[#allocation4 + $0x8c4] ss:$8 sps:$4 sm:$0xff]  }
 0x94a   : > { %9330 = vmatprep.subr.bf16.mxu1 %v12559_v30  ;;  %v12644_v30 = vld [vmem:[#allocation4 + $0x8c0] ss:$8 sps:$4 sm:$0xff]  }
 0x94d   : > { %9331 = vmatpush1.bf16.msra.mxu1 %v12557_v52  ;;  %v12649_v52 = vld [vmem:[#allocation4 + $0x8d4] ss:$8 sps:$4 sm:$0xff]  }
 0x94e   : > { %9343 = vmatprep.subr.bf16.mxu1 %v12562_v29  ;;  %v12647_v29 = vld [vmem:[#allocation4 + $0x8d0] ss:$8 sps:$4 sm:$0xff]  }
 0x950   : > { %9333 = vmatmul.mubr.bf16.vlgmr.msra.gmra.mrb[4].mxu1 %v8800_v41  ;;  %v12580_v41 = vld [vmem:[#allocation4 + $0x764] ss:$8 sps:$4 sm:$0xff]  }
 0x951   : > { %9344 = vmatpush1.bf16.msra.mxu1 %v12560_v32  ;;  %9375 = vmatprep.mubr.bf16.mxu1 %v8803_v4  ;;  %v12578_v4 = vld [vmem:[#allocation4 + $0x760] ss:$8 sps:$4 sm:$0xff]   ;;  %v12652_v32 = vld [vmem:[#allocation4 + $0x8e4] ss:$8 sps:$4 sm:$0xff]  }
 0x952   : > { %9345 = vmatprep.subr.bf16.mxu1 %v12565_v57  ;;  %v12650_v57 = vld [vmem:[#allocation4 + $0x8e0] ss:$8 sps:$4 sm:$0xff]  }
 0x955   : > { %9346 = vmatpush1.bf16.msra.mxu1 %v12563_v50  ;;  %v12655_v50 = vld [vmem:[#allocation4 + $0x8f4] ss:$8 sps:$4 sm:$0xff]  }
 0x956   : > { %9347 = vmatprep.subr.bf16.mxu1 %v12568_v38  ;;  %v12653_v38 = vld [vmem:[#allocation4 + $0x8f0] ss:$8 sps:$4 sm:$0xff]  }
 0x959   : > { %9348 = vmatpush1.bf16.msra.mxu1 %v12566_v23  ;;  %v9433_v23 = vld [vmem:[%s15168_s8] sm:$0x3] }
 0x95a   : > { %9349 = vmatprep.subr.bf16.mxu1 %v12571_v56  ;;  %v9438_v56 = vrot.slane %v9433_v23, %v13666_v14 }
 0x95d   : > { %9350 = vmatpush1.bf16.msra.mxu1 %v12569_v59  ;;  %v9442_v59 = vrot.slane %v9433_v23, %v13672_v15 }
 0x95e   : > { %9351 = vmatprep.subr.bf16.mxu1 %v12574_v44 }
 0x961   : > { %9352 = vmatpush1.bf16.msra.mxu1 %v12572_v24 }
 0x962   : > { %9353 = vmatprep.subr.bf16.mxu1 %v12577_v35 }
 0x965   : > { %9354 = vmatpush1.bf16.msra.mxu1 %v12575_v54 }
 0x966   : > { %9355 = vmatprep.subr.bf16.mxu1 %v12580_v41 }
 0x969   : > { %9356 = vmatpush1.bf16.msra.mxu1 %v12578_v4 }
 0x96a   : > { %9357 = vmatprep.subr.bf16.mxu1 %v12583_v36 }
 0x96d   : > { %9358 = vmatpush1.bf16.msra.mxu1 %v12581_v28 }
 0x96e   : > { %9359 = vmatprep.subr.bf16.mxu1 %v12586_v7 }
 0x971   : > { %9360 = vmatpush1.bf16.msra.mxu1 %v12584_v25 }
 0x972   : > { %9361 = vmatprep.subr.bf16.mxu1 %v12589_v55 }
 0x975   : > { %9362 = vmatpush1.bf16.msra.mxu1 %v12587_v2 }
 0x976   : > { %9363 = vmatprep.subr.bf16.mxu1 %v12592_v13 }
 0x979   : > { %9364 = vmatpush1.bf16.msra.mxu1 %v12590_v63 }
 0x97a   : > { %9365 = vmatprep.subr.bf16.mxu1 %v12595_v26 }
 0x97d   : > { %9366 = vmatpush1.bf16.msra.mxu1 %v12593_v5 }
 0x97e   : > { %9367 = vmatprep.subr.bf16.mxu1 %v12598_v40 }
 0x981   : > { %9368 = vmatpush1.bf16.msra.mxu1 %v12596_v37 }
 0x982   : > { %9369 = vmatprep.subr.bf16.mxu1 %v12601_v11 }
 0x985   : > { %9370 = vmatpush1.bf16.msra.mxu1 %v12599_v58 }
 0x986   : > { %9371 = vmatprep.subr.bf16.mxu1 %v12604_v20 }
 0x989   : > { %9372 = vmatpush1.bf16.msra.mxu1 %v12602_v1 }
 0x98a   : > { %9373 = vmatprep.subr.bf16.mxu1 %v12607_v10 }
 0x98d   : > { %9374 = vmatpush1.bf16.msra.mxu1 %v12605_v42 }
 0x98e   : > { %9386 = vmatprep.subr.bf16.mxu1 %v12610_v47 }
 0x990   : > { %9376 = vmatmul.mubr.bf16.vlgmr.msra.gmra.mrb[4].mxu1 %v8802_v60  ;;  %v12628_v60 = vld [vmem:[#allocation4 + $0x864] ss:$8 sps:$4 sm:$0xff]  }
 0x991   : > { %9387 = vmatpush1.bf16.msra.mxu1 %v12608_v39  ;;  %9418 = vmatprep.mubr.bf16.mxu1 %v8813_v45  ;;  %v12626_v45 = vld [vmem:[#allocation4 + $0x860] ss:$8 sps:$4 sm:$0xff]  }
 0x992   : > { %9388 = vmatprep.subr.bf16.mxu1 %v12613_v33 }
 0x995   : > { %9389 = vmatpush1.bf16.msra.mxu1 %v12611_v31 }
 0x996   : > { %9390 = vmatprep.subr.bf16.mxu1 %v12616_v51 }
 0x999   : > { %9391 = vmatpush1.bf16.msra.mxu1 %v12614_v62 }
 0x99a   : > { %9392 = vmatprep.subr.bf16.mxu1 %v12619_v46 }
 0x99d   : > { %9393 = vmatpush1.bf16.msra.mxu1 %v12617_v0 }
 0x99e   : > { %9394 = vmatprep.subr.bf16.mxu1 %v12622_v3 }
 0x9a1   : > { %9395 = vmatpush1.bf16.msra.mxu1 %v12620_v61 }
 0x9a2   : > { %9396 = vmatprep.subr.bf16.mxu1 %v12625_v19 }
 0x9a5   : > { %9397 = vmatpush1.bf16.msra.mxu1 %v12623_v53 }
 0x9a6   : > { %9398 = vmatprep.subr.bf16.mxu1 %v12628_v60 }
 0x9a9   : > { %9399 = vmatpush1.bf16.msra.mxu1 %v12626_v45 }
 0x9aa   : > { %9400 = vmatprep.subr.bf16.mxu1 %v12631_v43 }
 0x9ad   : > { %9401 = vmatpush1.bf16.msra.mxu1 %v12629_v21 }
 0x9ae   : > { %9402 = vmatprep.subr.bf16.mxu1 %v12634_v49 }
 0x9b1   : > { %9403 = vmatpush1.bf16.msra.mxu1 %v12632_v22 }
 0x9b2   : > { %9404 = vmatprep.subr.bf16.mxu1 %v12637_v12 }
 0x9b5   : > { %9405 = vmatpush1.bf16.msra.mxu1 %v12635_v9 }
 0x9b6   : > { %9406 = vmatprep.subr.bf16.mxu1 %v12640_v6 }
 0x9b9   : > { %9407 = vmatpush1.bf16.msra.mxu1 %v12638_v16 }
 0x9ba   : > { %9408 = vmatprep.subr.bf16.mxu1 %v12643_v27 }
 0x9bd   : > { %9409 = vmatpush1.bf16.msra.mxu1 %v12641_v48 }
 0x9be   : > { %9410 = vmatprep.subr.bf16.mxu1 %v12646_v18 }
 0x9c1   : > { %9411 = vmatpush1.bf16.msra.mxu1 %v12644_v30 }
 0x9c2   : > { %9412 = vmatprep.subr.bf16.mxu1 %v12649_v52 }
 0x9c5   : > { %9413 = vmatpush1.bf16.msra.mxu1 %v12647_v29 }
 0x9c6   : > { %9414 = vmatprep.subr.bf16.mxu1 %v12652_v32 }
 0x9c9   : > { %9415 = vmatpush1.bf16.msra.mxu1 %v12650_v57 }
 0x9ca   : > { %9416 = vmatprep.subr.bf16.mxu1 %v12655_v50 }
 0x9cd   : > { %9417 = vmatpush1.bf16.msra.mxu1 %v12653_v38 }
 0x9d0   : > { %9419 = vmatmul.mubr.bf16.vlgmr.msra.gmra.mrb[4].mxu1 %v8812_v17 }
 0xaa3   : > { %v9420_v44 = vpop.f32.mrb[4].mxu1 }
 0xaa4   : > { %v9445_v24 = vadd.f32 %v9438_v56, %v9420_v44  ;;  %v9422_v35 = vpop.f32.mrb[5].mxu1 }
 0xaa5   : > { %v9446_v54 = vadd.f32 %v9442_v59, %v9422_v35  ;;  %v9424_v41 = vpop.f32.mrb[6].mxu1 }
 0xaa6   : > { %v9449_v4 = vmax.f32 %v9445_v24, 0.0  ;;  %v9447_v36 = vadd.f32 %v9438_v56, %v9424_v41  ;;  %v9426_v28 = vpop.f32.mrb[7].mxu1 }
 0xaa7   : > { %v9450_v7 = vmax.f32 %v9446_v54, 0.0  ;;  %v9448_v8 = vadd.f32 %v9442_v59, %v9426_v28 }
 0xaa8   : > { %v9451_v34 = vmax.f32 %v9447_v36, 0.0 }
 0xaa9   : > { %v9457_v17 = vcombine.low %v9449_v4, %v9450_v7  ;;  %v9458_v25 = vcombine.high %v9449_v4, %v9450_v7  ;;  %v10979_v55 = vcombine.low %v9450_v7, %v9450_v7  ;;  %v10980_v2 = vcombine.high %v9450_v7, %v9450_v7 }
 0xaaa   : > { %v9452_v14 = vmax.f32 %v9448_v8, 0.0 }
 0xaab   : > { %v10983_v15 = vpack.c.bf16 %v10979_v55, %v9457_v17  ;;  %v10984_v13 = vpack.c.bf16 %v10980_v2, %v9458_v25 }
 0xaac   : > { %v9459_v63 = vcombine.low %v9451_v34, %v9452_v14  ;;  %v9460_v26 = vcombine.high %v9451_v34, %v9452_v14  ;;  %v10981_v5 = vcombine.low %v9452_v14, %v9452_v14  ;;  %v10982_v40 = vcombine.high %v9452_v14, %v9452_v14 }
 0xaad   : > { %10987 = vst.sshfl [vmem:[%s362_s25] sm:$0x33 pattern:$0x76325410] %v10983_v15 }
 0xaae   : > { %10988 = vst.sshfl [vmem:[%s362_s25 + $0x4] sm:$0x33 pattern:$0x76325410] %v10984_v13  ;;  %v10985_v37 = vpack.c.bf16 %v10981_v5, %v9459_v63  ;;  %v10986_v11 = vpack.c.bf16 %v10982_v40, %v9460_v26 }
 0xab0   : > { %10989 = vst.sshfl [vmem:[%s362_s25 + $0x8] sm:$0x33 pattern:$0x76325410] %v10985_v37 }
 0xab1   : > { %10990 = vst.sshfl [vmem:[%s362_s25 + $0xc] sm:$0x33 pattern:$0x76325410] %v10986_v11 }
 0xab2 PF: > { %s21_s30 = sadd.s32 1, %s12726_s30  }
 0xab3   : > { %p18_p9 = scmp.ge.s32.totalorder %s21_s30, 6  }
 0xab5   :  { %20 = sbr.rel (!%p18_p9) target bundleno = 2 (0x2), region = 103 }
 0xabc   :  { %9550 = vsyncpa [#allocation3], 1 }
 0xabd   :  { %9552 = vsyncpa [#allocation3 + $0x1], 1 }
 0xabe   :  { %9553 = vsyncpa [#allocation5], 1 }

</bundles_post_ra>
